<compile_context>
chip_gen: v7x
topology: tpu7x:2x2x1
jax: 0.10.0
libtpu: 0.0.40
codegen_flags: <defaults>
</compile_context>

<pallas_src>
import functools

import jax
import jax.numpy as jnp
import numpy as np
from jax.experimental import pallas as pl
from jax.experimental.pallas import tpu as pltpu


# ----------------------------------------------------------------------------
# host-side helpers (constant-matrix packing)
# ----------------------------------------------------------------------------
def _interp_matrix(s_in, s_out):
    """PyTorch linear interpolation matrix, align_corners=True: (s_out, s_in)."""
    m = np.zeros((s_out, s_in), np.float32)
    if s_in == 1:
        m[:, 0] = 1.0
        return m
    scale = (s_in - 1) / (s_out - 1)
    for o in range(s_out):
        src = o * scale
        i0 = min(int(np.floor(src)), s_in - 2)
        f = src - i0
        m[o, i0] += 1.0 - f
        m[o, i0 + 1] += f
    return m


def _band_weights_concat(w_conv, w2):
    """(Cout, Cin, 3, 3, 3) -> (9*W2*Cin, W2*Cout) concatenated banded matrices.

    Tap t = kd*3 + kh.  Rows [t*W2*Cin, (t+1)*W2*Cin) hold the banded matrix
    band[t][wi*Cin + ci, wo*Cout + co] = w[co, ci, kd, kh, wi - wo + 1] when
    |wi - wo| <= 1 else 0, folding the kw taps (and W zero padding) into a
    lane-dense matmul; concatenating the 9 bands along K turns each 3x3x3 conv
    into a single MXU matmul against a (M, 9*W2*Cin) staged slab.
    """
    w_conv = np.asarray(w_conv, np.float32)
    cout, cin = w_conv.shape[0], w_conv.shape[1]
    band = np.zeros((9, w2 * cin, w2 * cout), np.float32)
    for kd in range(3):
        for kh in range(3):
            t = kd * 3 + kh
            for kw in range(3):
                tap = w_conv[:, :, kd, kh, kw].T          # (ci, co)
                for wo in range(w2):
                    wi = wo + kw - 1
                    if 0 <= wi < w2:
                        band[t, wi * cin:(wi + 1) * cin,
                             wo * cout:(wo + 1) * cout] = tap
    return band.reshape(9 * w2 * cin, w2 * cout)


# ----------------------------------------------------------------------------
# the fused kernel
# ----------------------------------------------------------------------------
def _vae_decoder_kernel(x_ref, kupr_ref, kupl_ref, b0_ref, oh_ref, oht_ref,
                        hmask_ref,
                        g1_ref, be1_ref, wbig1_ref, cb1_ref,
                        g2_ref, be2_ref, wbig2_ref, cb2_ref,
                        o_ref, slab_ref, res_ref, pad_ref,
                        *, eps, d2, h2, inv_cnt, pad_top):
    f32 = jnp.float32
    bf16 = jnp.bfloat16
    HI = jax.lax.Precision.HIGHEST
    L = o_ref.shape[2]          # lanes = W2 * Cout
    M = d2 * h2                 # rows  = D2 * H2
    rows_total = pad_ref.shape[0]

    # Zero ONLY the D-halo pad rows (megacore-safe: every grid step; a few KiB).
    # The interior rows are fully rewritten by each conv's staging store.
    pad_ref[0:pad_top, :] = jnp.zeros((pad_top, L), bf16)
    pad_ref[pad_top + M:rows_total, :] = jnp.zeros(
        (rows_total - pad_top - M, L), bf16)

    # Precomputed (host) H-edge masks: 0/1 columns broadcast over lanes.
    h_not_first = hmask_ref[:, 0:1]     # 0 where h == 0       else 1
    h_not_last = hmask_ref[:, 1:2]      # 0 where h == h2 - 1  else 1

    # --- up0: 1x1x1 conv + trilinear x2 upsample as two lane-dense matmuls ---
    x0 = x_ref[0]                                                   # (D*H, W*Cin) bf16
    y = jnp.dot(x0, kupr_ref[...], preferred_element_type=f32)      # W-upsample + conv1x1
    y = jnp.dot(kupl_ref[...], y.astype(bf16),
                preferred_element_type=f32)                         # D/H-upsample
    y = y + b0_ref[...]                                             # interp rows sum to 1
    res_ref[...] = y.astype(bf16)                                   # residual -> bf16 VMEM

    def group_norm_relu(a, gamma_l, beta_l):
        # Per-lane sums are exact f32 row reductions (XLU); only the tiny
        # lane->group one-hot dots touch the MXU (HIGHEST is negligible here).
        lane_s1 = jnp.sum(a, axis=0, keepdims=True)                 # (1, L)
        lane_s2 = jnp.sum(a * a, axis=0, keepdims=True)             # (1, L)
        s1 = jnp.dot(jnp.broadcast_to(lane_s1, (8, L)), oh_ref[...],
                     preferred_element_type=f32, precision=HI)[0:1]  # (1, G)
        s2 = jnp.dot(jnp.broadcast_to(lane_s2, (8, L)), oh_ref[...],
                     preferred_element_type=f32, precision=HI)[0:1]  # (1, G)
        mu = s1 * inv_cnt
        var = jnp.maximum(s2 * inv_cnt - mu * mu, 0.0)
        inv = jax.lax.rsqrt(var + eps)
        # broadcast per-group stats back to the (w, c) lane layout (exact 0/1 dots)
        scale8 = jnp.broadcast_to(inv, (8, inv.shape[1]))
        shift8 = jnp.broadcast_to(-mu * inv, (8, mu.shape[1]))
        scale_l = jnp.dot(scale8, oht_ref[...], preferred_element_type=f32,
                          precision=HI)[0:1]                        # (1, L)
        shift_l = jnp.dot(shift8, oht_ref[...], preferred_element_type=f32,
                          precision=HI)[0:1]                        # (1, L)
        aff_a = gamma_l * scale_l                                   # folded affine
        aff_b = gamma_l * shift_l + beta_l
        return jnp.maximum(a * aff_a + aff_b, 0.0)                  # one pass

    def conv3x3x3(a, wbig_ref, bias_l):
        # Stage the activation once (bf16) into the flat halo buffer; each of
        # the nine D/H tap shifts is a contiguous row window (no strided
        # sublane slices, no reshapes).  D edges come from the zero pad rows,
        # H edges from the 0/1 row masks.  All nine shifted slabs go into one
        # (M, 9*L) bf16 scratch and the conv is a single K=9*L MXU matmul.
        pad_ref[pad_top:pad_top + M, :] = a.astype(bf16)
        for kd in range(3):
            for kh in range(3):
                t = kd * 3 + kh
                off = (kd - 1) * h2 + (kh - 1)
                start = pad_top + off
                slab = pad_ref[start:start + M, :]
                if kh == 0:
                    slab = slab * h_not_first
                elif kh == 2:
                    slab = slab * h_not_last
                slab_ref[:, t * L:(t + 1) * L] = slab
        out = jnp.dot(slab_ref[...], wbig_ref[...],
                      preferred_element_type=f32)
        return out + bias_l

    y = group_norm_relu(y, g1_ref[...], be1_ref[...])
    y = conv3x3x3(y, wbig1_ref, cb1_ref[...])
    y = group_norm_relu(y, g2_ref[...], be2_ref[...])
    y = conv3x3x3(y, wbig2_ref, cb2_ref[...])
    o_ref[0] = (y + res_ref[...].astype(f32)).astype(o_ref.dtype)   # lane-dense store


# ----------------------------------------------------------------------------
# wrapper
# ----------------------------------------------------------------------------
def _pick_vmem_limit():
    try:
        phys = int(pltpu.get_tpu_info().vmem_capacity_bytes)
    except Exception:
        phys = 64 * 1024 * 1024
    # ~3/4 of physical: 96 MiB on v5e/v6e (128 MiB), 48 MiB on v7x (64 MiB).
    return max(32 * 1024 * 1024, min(3 * phys // 4, 96 * 1024 * 1024))


def vae_decoder_block(x, params, *, num_groups=8, eps=1e-5):
    """Pallas TPU implementation of VAEDecoderBlock.forward.

    x: (N, C_in, D, H, W) float32 (PyTorch NCDHW convention).
    """
    n, cin, d, h, w = x.shape
    cout = params["w0"].shape[0]
    assert cout % num_groups == 0
    d2, h2, w2 = 2 * d, 2 * h, 2 * w
    L = w2 * cout                       # lane width of the upsampled volume
    M = d2 * h2                         # rows of the upsampled volume
    g = num_groups
    cs = cout // g
    f32, bf16 = jnp.float32, jnp.bfloat16

    # Lane-density guards (review item): the kernel assumes unmasked stores.
    assert L % 128 == 0, (
        f"W2*Cout = {L} must be a multiple of 128 (lane-dense layout); "
        "pad channels/width on the host before calling this kernel.")
    assert M % 8 == 0, f"D2*H2 = {M} must be a multiple of 8 (sublane-dense rows)."

    # ---- constant matrices (host-side packing) ----
    md = _interp_matrix(d, d2)
    mh = _interp_matrix(h, h2)
    mw = _interp_matrix(w, w2)

    w0 = np.asarray(params["w0"], np.float32)[:, :, 0, 0, 0]        # (Cout, Cin)
    k_up_r = np.kron(mw.T, w0.T)        # (W*Cin, W2*Cout): W-upsample (x) conv1x1
    k_up_l = np.kron(md, mh)            # (D2*H2, D*H):     D/H-upsample on rows

    wb1 = _band_weights_concat(params["w1"], w2)                    # (9L, L)
    wb2 = _band_weights_concat(params["w2"], w2)                    # (9L, L)

    def lane(v):                        # (Cout,) -> (1, W2*Cout), (w, c) order
        return np.tile(np.asarray(v, np.float32), w2).reshape(1, L)

    goh = np.zeros((cout, g), np.float32)
    for c in range(cout):
        goh[c, c // cs] = 1.0
    onehot = np.tile(goh, (w2, 1))      # (L, G) lane -> group membership
    onehot_t = np.ascontiguousarray(onehot.T)

    # H-edge 0/1 masks for the conv halo, per output row r = d*h2 + h.
    hmask = np.ones((M, 2), np.float32)
    hh_idx = np.arange(M) % h2
    hmask[hh_idx == 0, 0] = 0.0
    hmask[hh_idx == h2 - 1, 1] = 0.0

    # Flat halo padding: round the (h2+1)-row halo up to a sublane multiple so
    # the interior staging store is fully aligned.
    pad_top = ((h2 + 1 + 7) // 8) * 8
    pad_bot = pad_top

    kupr = jnp.asarray(k_up_r, bf16)
    kupl = jnp.asarray(k_up_l, bf16)
    b0l = jnp.asarray(lane(params["b0"]), f32)
    oh = jnp.asarray(onehot, f32)
    oht = jnp.asarray(onehot_t, f32)
    hmaskj = jnp.asarray(hmask, bf16)
    g1l = jnp.asarray(lane(params["gamma1"]), f32)
    be1l = jnp.asarray(lane(params["beta1"]), f32)
    g2l = jnp.asarray(lane(params["gamma2"]), f32)
    be2l = jnp.asarray(lane(params["beta2"]), f32)
    wb1j = jnp.asarray(wb1, bf16)
    wb2j = jnp.asarray(wb2, bf16)
    cb1l = jnp.asarray(lane(params["b1"]), f32)
    cb2l = jnp.asarray(lane(params["b2"]), f32)

    const_inputs = (kupr, kupl, b0l, oh, oht, hmaskj,
                    g1l, be1l, wb1j, cb1l,
                    g2l, be2l, wb2j, cb2l)

    # input as (N, D*H, W*Cin), bf16 (only ever used as an MXU operand)
    x_r = jnp.transpose(jnp.asarray(x, f32), (0, 2, 3, 4, 1))
    x_r = x_r.reshape(n, d * h, w * cin).astype(bf16)

    kernel = functools.partial(
        _vae_decoder_kernel, eps=float(eps), d2=d2, h2=h2,
        inv_cnt=1.0 / float(M * w2 * cs), pad_top=pad_top)

    vmem_limit = _pick_vmem_limit()

    def _make_call(single_buffer_consts):
        def cspec(arr):
            nd = arr.ndim
            imap = lambda i, _n=nd: (0,) * _n
            if single_buffer_consts:
                # Constant index_map -> one VMEM copy is enough (v7x headroom).
                return pl.BlockSpec(arr.shape, imap,
                                    pipeline_mode=pl.Buffered(1))
            return pl.BlockSpec(arr.shape, imap)

        in_specs = [pl.BlockSpec((1, d * h, w * cin), lambda i: (i, 0, 0))]
        in_specs += [cspec(a) for a in const_inputs]

        return pl.pallas_call(
            kernel,
            out_shape=jax.ShapeDtypeStruct((n, M, L), f32),
            grid_spec=pltpu.PrefetchScalarGridSpec(
                num_scalar_prefetch=0,
                grid=(n,),
                in_specs=in_specs,
                out_specs=pl.BlockSpec((1, M, L), lambda i: (i, 0, 0)),
                scratch_shapes=[
                    pltpu.VMEM((M, 9 * L), bf16),                   # concat-K conv slab
                    pltpu.VMEM((M, L), bf16),                       # bf16 residual spill
                    pltpu.VMEM((pad_top + M + pad_bot, L), bf16),   # flat D/H halo buffer
                ]),
            compiler_params=pltpu.CompilerParams(
                dimension_semantics=("parallel",),
                vmem_limit_bytes=vmem_limit),
        )

    try:
        out = _make_call(True)(x_r, *const_inputs)
    except Exception:
        # Older JAX without BlockSpec.pipeline_mode / pl.Buffered support.
        out = _make_call(False)(x_r, *const_inputs)

    out = out.reshape(n, d2, h2, w2, cout)
    return jnp.transpose(out, (0, 4, 1, 2, 3))       # back to NCDHW


# ----------------------------------------------------------------------------
# plain-JAX reference (matches the PyTorch forward, f32 / HIGHEST precision)
# ----------------------------------------------------------------------------
def _reference_forward(x, params, *, num_groups=8, eps=1e-5):
    HI = jax.lax.Precision.HIGHEST
    n, cin, d, h, w = x.shape

    # up0.conv1 (1x1x1)
    w0 = params["w0"][:, :, 0, 0, 0]
    y = jnp.einsum("nidhw,oi->nodhw", x, w0, precision=HI)
    y = y + params["b0"][None, :, None, None, None]

    # trilinear x2, align_corners=True (separable per-axis linear interp)
    md = jnp.asarray(_interp_matrix(d, 2 * d))
    mh = jnp.asarray(_interp_matrix(h, 2 * h))
    mw = jnp.asarray(_interp_matrix(w, 2 * w))
    y = jnp.einsum("ncdhw,pd->ncphw", y, md, precision=HI)
    y = jnp.einsum("ncdhw,ph->ncdpw", y, mh, precision=HI)
    y = jnp.einsum("ncdhw,pw->ncdhp", y, mw, precision=HI)
    res = y

    def gn(v, gamma, beta):
        nn_, c_, dd, hh, ww = v.shape
        vg = v.reshape(nn_, num_groups, c_ // num_groups, dd, hh, ww)
        mu = vg.mean(axis=(2, 3, 4, 5), keepdims=True)
        var = vg.var(axis=(2, 3, 4, 5), keepdims=True)
        vn = ((vg - mu) / jnp.sqrt(var + eps)).reshape(v.shape)
        return vn * gamma[None, :, None, None, None] + beta[None, :, None, None, None]

    def conv(v, wgt, bias):
        o = jax.lax.conv_general_dilated(
            v, wgt, window_strides=(1, 1, 1),
            padding=((1, 1), (1, 1), (1, 1)),
            dimension_numbers=("NCDHW", "OIDHW", "NCDHW"),
            precision=HI)
        return o + bias[None, :, None, None, None]

    y = jnp.maximum(gn(res, params["gamma1"], params["beta1"]), 0.0)
    y = conv(y, params["w1"], params["b1"])
    y = jnp.maximum(gn(y, params["gamma2"], params["beta2"]), 0.0)
    y = conv(y, params["w2"], params["b2"])
    return y + res


if __name__ == "__main__":
    # Small shapes consistent with the module: NCDHW input, C_out divisible by
    # num_groups=8; after the x2 upsample the working volume is 8x8x8 x 16ch,
    # so the lane width W2*Cout = 128 (lane-dense throughout).
    N, CIN, COUT, D, H, W = 2, 32, 16, 4, 4, 4
    NUM_GROUPS = 8

    key = jax.random.PRNGKey(0)
    ks = jax.random.split(key, 11)
    x = jax.random.normal(ks[0], (N, CIN, D, H, W), jnp.float32)

    fan0 = CIN
    fan = COUT * 27
    params = dict(
        w0=jax.random.normal(ks[1], (COUT, CIN, 1, 1, 1), jnp.float32) / np.sqrt(fan0),
        b0=0.1 * jax.random.normal(ks[2], (COUT,), jnp.float32),
        gamma1=1.0 + 0.1 * jax.random.normal(ks[3], (COUT,), jnp.float32),
        beta1=0.1 * jax.random.normal(ks[4], (COUT,), jnp.float32),
        w1=jax.random.normal(ks[5], (COUT, COUT, 3, 3, 3), jnp.float32) / np.sqrt(fan),
        b1=0.1 * jax.random.normal(ks[6], (COUT,), jnp.float32),
        gamma2=1.0 + 0.1 * jax.random.normal(ks[7], (COUT,), jnp.float32),
        beta2=0.1 * jax.random.normal(ks[8], (COUT,), jnp.float32),
        w2=jax.random.normal(ks[9], (COUT, COUT, 3, 3, 3), jnp.float32) / np.sqrt(fan),
        b2=0.1 * jax.random.normal(ks[10], (COUT,), jnp.float32),
    )

    out = vae_decoder_block(x, params, num_groups=NUM_GROUPS)
    out = jax.block_until_ready(out)

    ref = _reference_forward(x, params, num_groups=NUM_GROUPS)
    # bf16 MXU operands / bf16 residual in the kernel vs f32/HIGHEST reference.
    np.testing.assert_allclose(np.asarray(out), np.asarray(ref), rtol=3e-2, atol=3e-2)

    print("KERNEL_OK")
</pallas_src>

<mosaic_0001>
module attributes {stable_mosaic.version = 11 : i64} {
  func.func @_vae_decoder_kernel(%arg0: i32, %arg1: memref<1x16x128xbf16, #tpu.memory_space<vmem>>, %arg2: memref<128x128xbf16, #tpu.memory_space<vmem>>, %arg3: memref<64x16xbf16, #tpu.memory_space<vmem>>, %arg4: memref<1x128xf32, #tpu.memory_space<vmem>>, %arg5: memref<128x8xf32, #tpu.memory_space<vmem>>, %arg6: memref<8x128xf32, #tpu.memory_space<vmem>>, %arg7: memref<64x2xbf16, #tpu.memory_space<vmem>>, %arg8: memref<1x128xf32, #tpu.memory_space<vmem>>, %arg9: memref<1x128xf32, #tpu.memory_space<vmem>>, %arg10: memref<1152x128xbf16, #tpu.memory_space<vmem>>, %arg11: memref<1x128xf32, #tpu.memory_space<vmem>>, %arg12: memref<1x128xf32, #tpu.memory_space<vmem>>, %arg13: memref<1x128xf32, #tpu.memory_space<vmem>>, %arg14: memref<1152x128xbf16, #tpu.memory_space<vmem>>, %arg15: memref<1x128xf32, #tpu.memory_space<vmem>>, %arg16: memref<1x64x128xf32, #tpu.memory_space<vmem>>, %arg17: memref<64x1152xbf16, #tpu.memory_space<vmem>>, %arg18: memref<64x128xbf16, #tpu.memory_space<vmem>>, %arg19: memref<96x128xbf16, #tpu.memory_space<vmem>>) attributes {dimension_semantics = [#tpu.dimension_semantics<parallel>], iteration_bounds = array<i64: 2>, scalar_prefetch = 0 : i64, scratch_operands = 3 : i64, tpu.core_type = #tpu.core_type<tc>, window_params = [{transform_indices = @transform_0, window_bounds = array<i64: 1, 16, 128>}, {pipeline_mode = #tpu.pipeline_mode<synchronous>, transform_indices = @transform_1, window_bounds = array<i64: 128, 128>}, {pipeline_mode = #tpu.pipeline_mode<synchronous>, transform_indices = @transform_2, window_bounds = array<i64: 64, 16>}, {pipeline_mode = #tpu.pipeline_mode<synchronous>, transform_indices = @transform_3, window_bounds = array<i64: 1, 128>}, {pipeline_mode = #tpu.pipeline_mode<synchronous>, transform_indices = @transform_4, window_bounds = array<i64: 128, 8>}, {pipeline_mode = #tpu.pipeline_mode<synchronous>, transform_indices = @transform_5, window_bounds = array<i64: 8, 128>}, {pipeline_mode = #tpu.pipeline_mode<synchronous>, transform_indices = @transform_6, window_bounds = array<i64: 64, 2>}, {pipeline_mode = #tpu.pipeline_mode<synchronous>, transform_indices = @transform_7, window_bounds = array<i64: 1, 128>}, {pipeline_mode = #tpu.pipeline_mode<synchronous>, transform_indices = @transform_8, window_bounds = array<i64: 1, 128>}, {pipeline_mode = #tpu.pipeline_mode<synchronous>, transform_indices = @transform_9, window_bounds = array<i64: 1152, 128>}, {pipeline_mode = #tpu.pipeline_mode<synchronous>, transform_indices = @transform_10, window_bounds = array<i64: 1, 128>}, {pipeline_mode = #tpu.pipeline_mode<synchronous>, transform_indices = @transform_11, window_bounds = array<i64: 1, 128>}, {pipeline_mode = #tpu.pipeline_mode<synchronous>, transform_indices = @transform_12, window_bounds = array<i64: 1, 128>}, {pipeline_mode = #tpu.pipeline_mode<synchronous>, transform_indices = @transform_13, window_bounds = array<i64: 1152, 128>}, {pipeline_mode = #tpu.pipeline_mode<synchronous>, transform_indices = @transform_14, window_bounds = array<i64: 1, 128>}, {transform_indices = @transform_15, window_bounds = array<i64: 1, 64, 128>}]} {
    %cst = arith.constant 0.000000e+00 : bf16
    %0 = vector.broadcast %cst : bf16 to vector<16x128xbf16>
    %c0 = arith.constant 0 : index
    %c0_0 = arith.constant 0 : index
    %1 = vector.load %arg19[%c0, %c0_0] : memref<96x128xbf16, #tpu.memory_space<vmem>>, vector<16x128xbf16>
    tpu.vector_store %arg19[%c0, %c0_0], %0 {strides = array<i32>} : memref<96x128xbf16, #tpu.memory_space<vmem>>, vector<16x128xbf16>,
    %cst_1 = arith.constant 0.000000e+00 : bf16
    %2 = vector.broadcast %cst_1 : bf16 to vector<16x128xbf16>
    %c80 = arith.constant 80 : index
    %c0_2 = arith.constant 0 : index
    %3 = vector.load %arg19[%c80, %c0_2] : memref<96x128xbf16, #tpu.memory_space<vmem>>, vector<16x128xbf16>
    tpu.vector_store %arg19[%c80, %c0_2], %2 {strides = array<i32>} : memref<96x128xbf16, #tpu.memory_space<vmem>>, vector<16x128xbf16>,
    %c0_3 = arith.constant 0 : index
    %c0_4 = arith.constant 0 : index
    %4 = vector.load %arg7[%c0_3, %c0_4] : memref<64x2xbf16, #tpu.memory_space<vmem>>, vector<64x1xbf16>
    %c0_5 = arith.constant 0 : index
    %c1 = arith.constant 1 : index
    %5 = vector.load %arg7[%c0_5, %c1] : memref<64x2xbf16, #tpu.memory_space<vmem>>, vector<64x1xbf16>
    %c0_6 = arith.constant 0 : index
    %c0_7 = arith.constant 0 : index
    %c0_8 = arith.constant 0 : index
    %6 = vector.load %arg1[%c0_6, %c0_7, %c0_8] : memref<1x16x128xbf16, #tpu.memory_space<vmem>>, vector<1x16x128xbf16>
    %7 = vector.shape_cast %6 : vector<1x16x128xbf16> to vector<16x128xbf16>
    %c0_9 = arith.constant 0 : index
    %c0_10 = arith.constant 0 : index
    %8 = vector.load %arg2[%c0_9, %c0_10] : memref<128x128xbf16, #tpu.memory_space<vmem>>, vector<128x128xbf16>
    %cst_11 = arith.constant dense<0.000000e+00> : vector<16x128xf32>
    %9 = tpu.matmul %7, %8, %cst_11 {dimension_numbers = #tpu.dot_dimension_numbers<[1], [0], [0], [1], [0, 0, 1, 1], [], []>} : vector<16x128xbf16>, vector<128x128xbf16>, vector<16x128xf32> -> vector<16x128xf32>
    %c0_12 = arith.constant 0 : index
    %c0_13 = arith.constant 0 : index
    %10 = vector.load %arg3[%c0_12, %c0_13] : memref<64x16xbf16, #tpu.memory_space<vmem>>, vector<64x16xbf16>
    %11 = arith.truncf %9 : vector<16x128xf32> to vector<16x128xbf16>
    %cst_14 = arith.constant dense<0.000000e+00> : vector<64x128xf32>
    %12 = tpu.matmul %10, %11, %cst_14 {dimension_numbers = #tpu.dot_dimension_numbers<[1], [0], [0], [1], [0, 0, 1, 1], [], []>} : vector<64x16xbf16>, vector<16x128xbf16>, vector<64x128xf32> -> vector<64x128xf32>
    %c0_15 = arith.constant 0 : index
    %c0_16 = arith.constant 0 : index
    %13 = vector.load %arg4[%c0_15, %c0_16] : memref<1x128xf32, #tpu.memory_space<vmem>>, vector<1x128xf32>
    %14 = vector.broadcast %13 : vector<1x128xf32> to vector<64x128xf32>
    %15 = arith.addf %12, %14 : vector<64x128xf32>
    %16 = arith.truncf %15 : vector<64x128xf32> to vector<64x128xbf16>
    %c0_17 = arith.constant 0 : index
    %c0_18 = arith.constant 0 : index
    %17 = vector.load %arg18[%c0_17, %c0_18] : memref<64x128xbf16, #tpu.memory_space<vmem>>, vector<64x128xbf16>
    tpu.vector_store %arg18[%c0_17, %c0_18], %16 {strides = array<i32>} : memref<64x128xbf16, #tpu.memory_space<vmem>>, vector<64x128xbf16>,
    %c0_19 = arith.constant 0 : index
    %c0_20 = arith.constant 0 : index
    %18 = vector.load %arg8[%c0_19, %c0_20] : memref<1x128xf32, #tpu.memory_space<vmem>>, vector<1x128xf32>
    %c0_21 = arith.constant 0 : index
    %c0_22 = arith.constant 0 : index
    %19 = vector.load %arg9[%c0_21, %c0_22] : memref<1x128xf32, #tpu.memory_space<vmem>>, vector<1x128xf32>
    %cst_23 = arith.constant dense<0.000000e+00> : vector<128xf32>
    %20 = vector.multi_reduction <add>, %15, %cst_23 [0] : vector<64x128xf32> to vector<128xf32>
    %21 = vector.shape_cast %20 : vector<128xf32> to vector<1x128xf32>
    %22 = arith.mulf %15, %15 : vector<64x128xf32>
    %cst_24 = arith.constant dense<0.000000e+00> : vector<128xf32>
    %23 = vector.multi_reduction <add>, %22, %cst_24 [0] : vector<64x128xf32> to vector<128xf32>
    %24 = vector.shape_cast %23 : vector<128xf32> to vector<1x128xf32>
    %25 = vector.shape_cast %21 : vector<1x128xf32> to vector<1x128xf32>
    %26 = vector.broadcast %25 : vector<1x128xf32> to vector<8x128xf32>
    %c0_25 = arith.constant 0 : index
    %c0_26 = arith.constant 0 : index
    %27 = vector.load %arg5[%c0_25, %c0_26] : memref<128x8xf32, #tpu.memory_space<vmem>>, vector<128x8xf32>
    %cst_27 = arith.constant dense<0.000000e+00> : vector<8x8xf32>
    %28 = tpu.matmul %26, %27, %cst_27 {dimension_numbers = #tpu.dot_dimension_numbers<[1], [0], [0], [1], [0, 0, 1, 1], [], []>, precision = #tpu.contract_precision<fp32>} : vector<8x128xf32>, vector<128x8xf32>, vector<8x8xf32> -> vector<8x8xf32>
    %29 = vector.extract_strided_slice %28 {offsets = [0, 0], sizes = [1, 8], strides = [1, 1]} : vector<8x8xf32> to vector<1x8xf32>
    %30 = vector.shape_cast %24 : vector<1x128xf32> to vector<1x128xf32>
    %31 = vector.broadcast %30 : vector<1x128xf32> to vector<8x128xf32>
    %c0_28 = arith.constant 0 : index
    %c0_29 = arith.constant 0 : index
    %32 = vector.load %arg5[%c0_28, %c0_29] : memref<128x8xf32, #tpu.memory_space<vmem>>, vector<128x8xf32>
    %cst_30 = arith.constant dense<0.000000e+00> : vector<8x8xf32>
    %33 = tpu.matmul %31, %32, %cst_30 {dimension_numbers = #tpu.dot_dimension_numbers<[1], [0], [0], [1], [0, 0, 1, 1], [], []>, precision = #tpu.contract_precision<fp32>} : vector<8x128xf32>, vector<128x8xf32>, vector<8x8xf32> -> vector<8x8xf32>
    %34 = vector.extract_strided_slice %33 {offsets = [0, 0], sizes = [1, 8], strides = [1, 1]} : vector<8x8xf32> to vector<1x8xf32>
    %cst_31 = arith.constant 9.765625E-4 : f32
    %35 = vector.broadcast %cst_31 : f32 to vector<1x8xf32>
    %36 = arith.mulf %29, %35 : vector<1x8xf32>
    %cst_32 = arith.constant 9.765625E-4 : f32
    %37 = vector.broadcast %cst_32 : f32 to vector<1x8xf32>
    %38 = arith.mulf %34, %37 : vector<1x8xf32>
    %39 = arith.mulf %36, %36 : vector<1x8xf32>
    %40 = arith.subf %38, %39 : vector<1x8xf32>
    %cst_33 = arith.constant 0.000000e+00 : f32
    %41 = vector.broadcast %cst_33 : f32 to vector<1x8xf32>
    %42 = arith.maximumf %40, %41 : vector<1x8xf32>
    %cst_34 = arith.constant 9.99999974E-6 : f32
    %43 = vector.broadcast %cst_34 : f32 to vector<1x8xf32>
    %44 = arith.addf %42, %43 : vector<1x8xf32>
    %45 = math.rsqrt %44 : vector<1x8xf32>
    %46 = vector.shape_cast %45 : vector<1x8xf32> to vector<1x8xf32>
    %47 = vector.broadcast %46 : vector<1x8xf32> to vector<8x8xf32>
    %cst_35 = arith.constant 0.000000e+00 : f32
    %48 = vector.broadcast %cst_35 : f32 to vector<1x8xf32>
    %49 = arith.subf %48, %36 : vector<1x8xf32>
    %50 = arith.mulf %49, %45 : vector<1x8xf32>
    %51 = vector.shape_cast %50 : vector<1x8xf32> to vector<1x8xf32>
    %52 = vector.broadcast %51 : vector<1x8xf32> to vector<8x8xf32>
    %c0_36 = arith.constant 0 : index
    %c0_37 = arith.constant 0 : index
    %53 = vector.load %arg6[%c0_36, %c0_37] : memref<8x128xf32, #tpu.memory_space<vmem>>, vector<8x128xf32>
    %cst_38 = arith.constant dense<0.000000e+00> : vector<8x128xf32>
    %54 = tpu.matmul %47, %53, %cst_38 {dimension_numbers = #tpu.dot_dimension_numbers<[1], [0], [0], [1], [0, 0, 1, 1], [], []>, precision = #tpu.contract_precision<fp32>} : vector<8x8xf32>, vector<8x128xf32>, vector<8x128xf32> -> vector<8x128xf32>
    %55 = vector.extract_strided_slice %54 {offsets = [0, 0], sizes = [1, 128], strides = [1, 1]} : vector<8x128xf32> to vector<1x128xf32>
    %c0_39 = arith.constant 0 : index
    %c0_40 = arith.constant 0 : index
    %56 = vector.load %arg6[%c0_39, %c0_40] : memref<8x128xf32, #tpu.memory_space<vmem>>, vector<8x128xf32>
    %cst_41 = arith.constant dense<0.000000e+00> : vector<8x128xf32>
    %57 = tpu.matmul %52, %56, %cst_41 {dimension_numbers = #tpu.dot_dimension_numbers<[1], [0], [0], [1], [0, 0, 1, 1], [], []>, precision = #tpu.contract_precision<fp32>} : vector<8x8xf32>, vector<8x128xf32>, vector<8x128xf32> -> vector<8x128xf32>
    %58 = vector.extract_strided_slice %57 {offsets = [0, 0], sizes = [1, 128], strides = [1, 1]} : vector<8x128xf32> to vector<1x128xf32>
    %59 = arith.mulf %18, %55 : vector<1x128xf32>
    %60 = arith.mulf %18, %58 : vector<1x128xf32>
    %61 = arith.addf %60, %19 : vector<1x128xf32>
    %62 = vector.broadcast %59 : vector<1x128xf32> to vector<64x128xf32>
    %63 = arith.mulf %15, %62 : vector<64x128xf32>
    %64 = vector.broadcast %61 : vector<1x128xf32> to vector<64x128xf32>
    %65 = arith.addf %63, %64 : vector<64x128xf32>
    %cst_42 = arith.constant 0.000000e+00 : f32
    %66 = vector.broadcast %cst_42 : f32 to vector<64x128xf32>
    %67 = arith.maximumf %65, %66 : vector<64x128xf32>
    %c0_43 = arith.constant 0 : index
    %c0_44 = arith.constant 0 : index
    %68 = vector.load %arg11[%c0_43, %c0_44] : memref<1x128xf32, #tpu.memory_space<vmem>>, vector<1x128xf32>
    %69 = arith.truncf %67 : vector<64x128xf32> to vector<64x128xbf16>
    %c16 = arith.constant 16 : index
    %c0_45 = arith.constant 0 : index
    %70 = vector.load %arg19[%c16, %c0_45] : memref<96x128xbf16, #tpu.memory_space<vmem>>, vector<64x128xbf16>
    tpu.vector_store %arg19[%c16, %c0_45], %69 {strides = array<i32>} : memref<96x128xbf16, #tpu.memory_space<vmem>>, vector<64x128xbf16>,
    %c7 = arith.constant 7 : index
    %c0_46 = arith.constant 0 : index
    %71 = vector.load %arg19[%c7, %c0_46] : memref<96x128xbf16, #tpu.memory_space<vmem>>, vector<64x128xbf16>
    %72 = vector.broadcast %4 : vector<64x1xbf16> to vector<64x128xbf16>
    %73 = arith.mulf %71, %72 : vector<64x128xbf16>
    %c0_47 = arith.constant 0 : index
    %c0_48 = arith.constant 0 : index
    %74 = vector.load %arg17[%c0_47, %c0_48] : memref<64x1152xbf16, #tpu.memory_space<vmem>>, vector<64x128xbf16>
    tpu.vector_store %arg17[%c0_47, %c0_48], %73 {strides = array<i32>} : memref<64x1152xbf16, #tpu.memory_space<vmem>>, vector<64x128xbf16>,
    %c8 = arith.constant 8 : index
    %c0_49 = arith.constant 0 : index
    %75 = vector.load %arg19[%c8, %c0_49] : memref<96x128xbf16, #tpu.memory_space<vmem>>, vector<64x128xbf16>
    %c0_50 = arith.constant 0 : index
    %c128 = arith.constant 128 : index
    %76 = vector.load %arg17[%c0_50, %c128] : memref<64x1152xbf16, #tpu.memory_space<vmem>>, vector<64x128xbf16>
    tpu.vector_store %arg17[%c0_50, %c128], %75 {strides = array<i32>} : memref<64x1152xbf16, #tpu.memory_space<vmem>>, vector<64x128xbf16>,
    %c9 = arith.constant 9 : index
    %c0_51 = arith.constant 0 : index
    %77 = vector.load %arg19[%c9, %c0_51] : memref<96x128xbf16, #tpu.memory_space<vmem>>, vector<64x128xbf16>
    %78 = vector.broadcast %5 : vector<64x1xbf16> to vector<64x128xbf16>
    %79 = arith.mulf %77, %78 : vector<64x128xbf16>
    %c0_52 = arith.constant 0 : index
    %c256 = arith.constant 256 : index
    %80 = vector.load %arg17[%c0_52, %c256] : memref<64x1152xbf16, #tpu.memory_space<vmem>>, vector<64x128xbf16>
    tpu.vector_store %arg17[%c0_52, %c256], %79 {strides = array<i32>} : memref<64x1152xbf16, #tpu.memory_space<vmem>>, vector<64x128xbf16>,
    %c15 = arith.constant 15 : index
    %c0_53 = arith.constant 0 : index
    %81 = vector.load %arg19[%c15, %c0_53] : memref<96x128xbf16, #tpu.memory_space<vmem>>, vector<64x128xbf16>
    %82 = vector.broadcast %4 : vector<64x1xbf16> to vector<64x128xbf16>
    %83 = arith.mulf %81, %82 : vector<64x128xbf16>
    %c0_54 = arith.constant 0 : index
    %c384 = arith.constant 384 : index
    %84 = vector.load %arg17[%c0_54, %c384] : memref<64x1152xbf16, #tpu.memory_space<vmem>>, vector<64x128xbf16>
    tpu.vector_store %arg17[%c0_54, %c384], %83 {strides = array<i32>} : memref<64x1152xbf16, #tpu.memory_space<vmem>>, vector<64x128xbf16>,
    %c16_55 = arith.constant 16 : index
    %c0_56 = arith.constant 0 : index
    %85 = vector.load %arg19[%c16_55, %c0_56] : memref<96x128xbf16, #tpu.memory_space<vmem>>, vector<64x128xbf16>
    %c0_57 = arith.constant 0 : index
    %c512 = arith.constant 512 : index
    %86 = vector.load %arg17[%c0_57, %c512] : memref<64x1152xbf16, #tpu.memory_space<vmem>>, vector<64x128xbf16>
    tpu.vector_store %arg17[%c0_57, %c512], %85 {strides = array<i32>} : memref<64x1152xbf16, #tpu.memory_space<vmem>>, vector<64x128xbf16>,
    %c17 = arith.constant 17 : index
    %c0_58 = arith.constant 0 : index
    %87 = vector.load %arg19[%c17, %c0_58] : memref<96x128xbf16, #tpu.memory_space<vmem>>, vector<64x128xbf16>
    %88 = vector.broadcast %5 : vector<64x1xbf16> to vector<64x128xbf16>
    %89 = arith.mulf %87, %88 : vector<64x128xbf16>
    %c0_59 = arith.constant 0 : index
    %c640 = arith.constant 640 : index
    %90 = vector.load %arg17[%c0_59, %c640] : memref<64x1152xbf16, #tpu.memory_space<vmem>>, vector<64x128xbf16>
    tpu.vector_store %arg17[%c0_59, %c640], %89 {strides = array<i32>} : memref<64x1152xbf16, #tpu.memory_space<vmem>>, vector<64x128xbf16>,
    %c23 = arith.constant 23 : index
    %c0_60 = arith.constant 0 : index
    %91 = vector.load %arg19[%c23, %c0_60] : memref<96x128xbf16, #tpu.memory_space<vmem>>, vector<64x128xbf16>
    %92 = vector.broadcast %4 : vector<64x1xbf16> to vector<64x128xbf16>
    %93 = arith.mulf %91, %92 : vector<64x128xbf16>
    %c0_61 = arith.constant 0 : index
    %c768 = arith.constant 768 : index
    %94 = vector.load %arg17[%c0_61, %c768] : memref<64x1152xbf16, #tpu.memory_space<vmem>>, vector<64x128xbf16>
    tpu.vector_store %arg17[%c0_61, %c768], %93 {strides = array<i32>} : memref<64x1152xbf16, #tpu.memory_space<vmem>>, vector<64x128xbf16>,
    %c24 = arith.constant 24 : index
    %c0_62 = arith.constant 0 : index
    %95 = vector.load %arg19[%c24, %c0_62] : memref<96x128xbf16, #tpu.memory_space<vmem>>, vector<64x128xbf16>
    %c0_63 = arith.constant 0 : index
    %c896 = arith.constant 896 : index
    %96 = vector.load %arg17[%c0_63, %c896] : memref<64x1152xbf16, #tpu.memory_space<vmem>>, vector<64x128xbf16>
    tpu.vector_store %arg17[%c0_63, %c896], %95 {strides = array<i32>} : memref<64x1152xbf16, #tpu.memory_space<vmem>>, vector<64x128xbf16>,
    %c25 = arith.constant 25 : index
    %c0_64 = arith.constant 0 : index
    %97 = vector.load %arg19[%c25, %c0_64] : memref<96x128xbf16, #tpu.memory_space<vmem>>, vector<64x128xbf16>
    %98 = vector.broadcast %5 : vector<64x1xbf16> to vector<64x128xbf16>
    %99 = arith.mulf %97, %98 : vector<64x128xbf16>
    %c0_65 = arith.constant 0 : index
    %c1024 = arith.constant 1024 : index
    %100 = vector.load %arg17[%c0_65, %c1024] : memref<64x1152xbf16, #tpu.memory_space<vmem>>, vector<64x128xbf16>
    tpu.vector_store %arg17[%c0_65, %c1024], %99 {strides = array<i32>} : memref<64x1152xbf16, #tpu.memory_space<vmem>>, vector<64x128xbf16>,
    %c0_66 = arith.constant 0 : index
    %c0_67 = arith.constant 0 : index
    %101 = vector.load %arg17[%c0_66, %c0_67] : memref<64x1152xbf16, #tpu.memory_space<vmem>>, vector<64x1152xbf16>
    %c0_68 = arith.constant 0 : index
    %c0_69 = arith.constant 0 : index
    %102 = vector.load %arg10[%c0_68, %c0_69] : memref<1152x128xbf16, #tpu.memory_space<vmem>>, vector<1152x128xbf16>
    %cst_70 = arith.constant dense<0.000000e+00> : vector<64x128xf32>
    %103 = tpu.matmul %101, %102, %cst_70 {dimension_numbers = #tpu.dot_dimension_numbers<[1], [0], [0], [1], [0, 0, 1, 1], [], []>} : vector<64x1152xbf16>, vector<1152x128xbf16>, vector<64x128xf32> -> vector<64x128xf32>
    %104 = vector.broadcast %68 : vector<1x128xf32> to vector<64x128xf32>
    %105 = arith.addf %103, %104 : vector<64x128xf32>
    %c0_71 = arith.constant 0 : index
    %c0_72 = arith.constant 0 : index
    %106 = vector.load %arg12[%c0_71, %c0_72] : memref<1x128xf32, #tpu.memory_space<vmem>>, vector<1x128xf32>
    %c0_73 = arith.constant 0 : index
    %c0_74 = arith.constant 0 : index
    %107 = vector.load %arg13[%c0_73, %c0_74] : memref<1x128xf32, #tpu.memory_space<vmem>>, vector<1x128xf32>
    %cst_75 = arith.constant dense<0.000000e+00> : vector<128xf32>
    %108 = vector.multi_reduction <add>, %105, %cst_75 [0] : vector<64x128xf32> to vector<128xf32>
    %109 = vector.shape_cast %108 : vector<128xf32> to vector<1x128xf32>
    %110 = arith.mulf %105, %105 : vector<64x128xf32>
    %cst_76 = arith.constant dense<0.000000e+00> : vector<128xf32>
    %111 = vector.multi_reduction <add>, %110, %cst_76 [0] : vector<64x128xf32> to vector<128xf32>
    %112 = vector.shape_cast %111 : vector<128xf32> to vector<1x128xf32>
    %113 = vector.shape_cast %109 : vector<1x128xf32> to vector<1x128xf32>
    %114 = vector.broadcast %113 : vector<1x128xf32> to vector<8x128xf32>
    %c0_77 = arith.constant 0 : index
    %c0_78 = arith.constant 0 : index
    %115 = vector.load %arg5[%c0_77, %c0_78] : memref<128x8xf32, #tpu.memory_space<vmem>>, vector<128x8xf32>
    %cst_79 = arith.constant dense<0.000000e+00> : vector<8x8xf32>
    %116 = tpu.matmul %114, %115, %cst_79 {dimension_numbers = #tpu.dot_dimension_numbers<[1], [0], [0], [1], [0, 0, 1, 1], [], []>, precision = #tpu.contract_precision<fp32>} : vector<8x128xf32>, vector<128x8xf32>, vector<8x8xf32> -> vector<8x8xf32>
    %117 = vector.extract_strided_slice %116 {offsets = [0, 0], sizes = [1, 8], strides = [1, 1]} : vector<8x8xf32> to vector<1x8xf32>
    %118 = vector.shape_cast %112 : vector<1x128xf32> to vector<1x128xf32>
    %119 = vector.broadcast %118 : vector<1x128xf32> to vector<8x128xf32>
    %c0_80 = arith.constant 0 : index
    %c0_81 = arith.constant 0 : index
    %120 = vector.load %arg5[%c0_80, %c0_81] : memref<128x8xf32, #tpu.memory_space<vmem>>, vector<128x8xf32>
    %cst_82 = arith.constant dense<0.000000e+00> : vector<8x8xf32>
    %121 = tpu.matmul %119, %120, %cst_82 {dimension_numbers = #tpu.dot_dimension_numbers<[1], [0], [0], [1], [0, 0, 1, 1], [], []>, precision = #tpu.contract_precision<fp32>} : vector<8x128xf32>, vector<128x8xf32>, vector<8x8xf32> -> vector<8x8xf32>
    %122 = vector.extract_strided_slice %121 {offsets = [0, 0], sizes = [1, 8], strides = [1, 1]} : vector<8x8xf32> to vector<1x8xf32>
    %cst_83 = arith.constant 9.765625E-4 : f32
    %123 = vector.broadcast %cst_83 : f32 to vector<1x8xf32>
    %124 = arith.mulf %117, %123 : vector<1x8xf32>
    %cst_84 = arith.constant 9.765625E-4 : f32
    %125 = vector.broadcast %cst_84 : f32 to vector<1x8xf32>
    %126 = arith.mulf %122, %125 : vector<1x8xf32>
    %127 = arith.mulf %124, %124 : vector<1x8xf32>
    %128 = arith.subf %126, %127 : vector<1x8xf32>
    %cst_85 = arith.constant 0.000000e+00 : f32
    %129 = vector.broadcast %cst_85 : f32 to vector<1x8xf32>
    %130 = arith.maximumf %128, %129 : vector<1x8xf32>
    %cst_86 = arith.constant 9.99999974E-6 : f32
    %131 = vector.broadcast %cst_86 : f32 to vector<1x8xf32>
    %132 = arith.addf %130, %131 : vector<1x8xf32>
    %133 = math.rsqrt %132 : vector<1x8xf32>
    %134 = vector.shape_cast %133 : vector<1x8xf32> to vector<1x8xf32>
    %135 = vector.broadcast %134 : vector<1x8xf32> to vector<8x8xf32>
    %cst_87 = arith.constant 0.000000e+00 : f32
    %136 = vector.broadcast %cst_87 : f32 to vector<1x8xf32>
    %137 = arith.subf %136, %124 : vector<1x8xf32>
    %138 = arith.mulf %137, %133 : vector<1x8xf32>
    %139 = vector.shape_cast %138 : vector<1x8xf32> to vector<1x8xf32>
    %140 = vector.broadcast %139 : vector<1x8xf32> to vector<8x8xf32>
    %c0_88 = arith.constant 0 : index
    %c0_89 = arith.constant 0 : index
    %141 = vector.load %arg6[%c0_88, %c0_89] : memref<8x128xf32, #tpu.memory_space<vmem>>, vector<8x128xf32>
    %cst_90 = arith.constant dense<0.000000e+00> : vector<8x128xf32>
    %142 = tpu.matmul %135, %141, %cst_90 {dimension_numbers = #tpu.dot_dimension_numbers<[1], [0], [0], [1], [0, 0, 1, 1], [], []>, precision = #tpu.contract_precision<fp32>} : vector<8x8xf32>, vector<8x128xf32>, vector<8x128xf32> -> vector<8x128xf32>
    %143 = vector.extract_strided_slice %142 {offsets = [0, 0], sizes = [1, 128], strides = [1, 1]} : vector<8x128xf32> to vector<1x128xf32>
    %c0_91 = arith.constant 0 : index
    %c0_92 = arith.constant 0 : index
    %144 = vector.load %arg6[%c0_91, %c0_92] : memref<8x128xf32, #tpu.memory_space<vmem>>, vector<8x128xf32>
    %cst_93 = arith.constant dense<0.000000e+00> : vector<8x128xf32>
    %145 = tpu.matmul %140, %144, %cst_93 {dimension_numbers = #tpu.dot_dimension_numbers<[1], [0], [0], [1], [0, 0, 1, 1], [], []>, precision = #tpu.contract_precision<fp32>} : vector<8x8xf32>, vector<8x128xf32>, vector<8x128xf32> -> vector<8x128xf32>
    %146 = vector.extract_strided_slice %145 {offsets = [0, 0], sizes = [1, 128], strides = [1, 1]} : vector<8x128xf32> to vector<1x128xf32>
    %147 = arith.mulf %106, %143 : vector<1x128xf32>
    %148 = arith.mulf %106, %146 : vector<1x128xf32>
    %149 = arith.addf %148, %107 : vector<1x128xf32>
    %150 = vector.broadcast %147 : vector<1x128xf32> to vector<64x128xf32>
    %151 = arith.mulf %105, %150 : vector<64x128xf32>
    %152 = vector.broadcast %149 : vector<1x128xf32> to vector<64x128xf32>
    %153 = arith.addf %151, %152 : vector<64x128xf32>
    %cst_94 = arith.constant 0.000000e+00 : f32
    %154 = vector.broadcast %cst_94 : f32 to vector<64x128xf32>
    %155 = arith.maximumf %153, %154 : vector<64x128xf32>
    %c0_95 = arith.constant 0 : index
    %c0_96 = arith.constant 0 : index
    %156 = vector.load %arg15[%c0_95, %c0_96] : memref<1x128xf32, #tpu.memory_space<vmem>>, vector<1x128xf32>
    %157 = arith.truncf %155 : vector<64x128xf32> to vector<64x128xbf16>
    %c16_97 = arith.constant 16 : index
    %c0_98 = arith.constant 0 : index
    %158 = vector.load %arg19[%c16_97, %c0_98] : memref<96x128xbf16, #tpu.memory_space<vmem>>, vector<64x128xbf16>
    tpu.vector_store %arg19[%c16_97, %c0_98], %157 {strides = array<i32>} : memref<96x128xbf16, #tpu.memory_space<vmem>>, vector<64x128xbf16>,
    %c7_99 = arith.constant 7 : index
    %c0_100 = arith.constant 0 : index
    %159 = vector.load %arg19[%c7_99, %c0_100] : memref<96x128xbf16, #tpu.memory_space<vmem>>, vector<64x128xbf16>
    %160 = vector.broadcast %4 : vector<64x1xbf16> to vector<64x128xbf16>
    %161 = arith.mulf %159, %160 : vector<64x128xbf16>
    %c0_101 = arith.constant 0 : index
    %c0_102 = arith.constant 0 : index
    %162 = vector.load %arg17[%c0_101, %c0_102] : memref<64x1152xbf16, #tpu.memory_space<vmem>>, vector<64x128xbf16>
    tpu.vector_store %arg17[%c0_101, %c0_102], %161 {strides = array<i32>} : memref<64x1152xbf16, #tpu.memory_space<vmem>>, vector<64x128xbf16>,
    %c8_103 = arith.constant 8 : index
    %c0_104 = arith.constant 0 : index
    %163 = vector.load %arg19[%c8_103, %c0_104] : memref<96x128xbf16, #tpu.memory_space<vmem>>, vector<64x128xbf16>
    %c0_105 = arith.constant 0 : index
    %c128_106 = arith.constant 128 : index
    %164 = vector.load %arg17[%c0_105, %c128_106] : memref<64x1152xbf16, #tpu.memory_space<vmem>>, vector<64x128xbf16>
    tpu.vector_store %arg17[%c0_105, %c128_106], %163 {strides = array<i32>} : memref<64x1152xbf16, #tpu.memory_space<vmem>>, vector<64x128xbf16>,
    %c9_107 = arith.constant 9 : index
    %c0_108 = arith.constant 0 : index
    %165 = vector.load %arg19[%c9_107, %c0_108] : memref<96x128xbf16, #tpu.memory_space<vmem>>, vector<64x128xbf16>
    %166 = vector.broadcast %5 : vector<64x1xbf16> to vector<64x128xbf16>
    %167 = arith.mulf %165, %166 : vector<64x128xbf16>
    %c0_109 = arith.constant 0 : index
    %c256_110 = arith.constant 256 : index
    %168 = vector.load %arg17[%c0_109, %c256_110] : memref<64x1152xbf16, #tpu.memory_space<vmem>>, vector<64x128xbf16>
    tpu.vector_store %arg17[%c0_109, %c256_110], %167 {strides = array<i32>} : memref<64x1152xbf16, #tpu.memory_space<vmem>>, vector<64x128xbf16>,
    %c15_111 = arith.constant 15 : index
    %c0_112 = arith.constant 0 : index
    %169 = vector.load %arg19[%c15_111, %c0_112] : memref<96x128xbf16, #tpu.memory_space<vmem>>, vector<64x128xbf16>
    %170 = vector.broadcast %4 : vector<64x1xbf16> to vector<64x128xbf16>
    %171 = arith.mulf %169, %170 : vector<64x128xbf16>
    %c0_113 = arith.constant 0 : index
    %c384_114 = arith.constant 384 : index
    %172 = vector.load %arg17[%c0_113, %c384_114] : memref<64x1152xbf16, #tpu.memory_space<vmem>>, vector<64x128xbf16>
    tpu.vector_store %arg17[%c0_113, %c384_114], %171 {strides = array<i32>} : memref<64x1152xbf16, #tpu.memory_space<vmem>>, vector<64x128xbf16>,
    %c16_115 = arith.constant 16 : index
    %c0_116 = arith.constant 0 : index
    %173 = vector.load %arg19[%c16_115, %c0_116] : memref<96x128xbf16, #tpu.memory_space<vmem>>, vector<64x128xbf16>
    %c0_117 = arith.constant 0 : index
    %c512_118 = arith.constant 512 : index
    %174 = vector.load %arg17[%c0_117, %c512_118] : memref<64x1152xbf16, #tpu.memory_space<vmem>>, vector<64x128xbf16>
    tpu.vector_store %arg17[%c0_117, %c512_118], %173 {strides = array<i32>} : memref<64x1152xbf16, #tpu.memory_space<vmem>>, vector<64x128xbf16>,
    %c17_119 = arith.constant 17 : index
    %c0_120 = arith.constant 0 : index
    %175 = vector.load %arg19[%c17_119, %c0_120] : memref<96x128xbf16, #tpu.memory_space<vmem>>, vector<64x128xbf16>
    %176 = vector.broadcast %5 : vector<64x1xbf16> to vector<64x128xbf16>
    %177 = arith.mulf %175, %176 : vector<64x128xbf16>
    %c0_121 = arith.constant 0 : index
    %c640_122 = arith.constant 640 : index
    %178 = vector.load %arg17[%c0_121, %c640_122] : memref<64x1152xbf16, #tpu.memory_space<vmem>>, vector<64x128xbf16>
    tpu.vector_store %arg17[%c0_121, %c640_122], %177 {strides = array<i32>} : memref<64x1152xbf16, #tpu.memory_space<vmem>>, vector<64x128xbf16>,
    %c23_123 = arith.constant 23 : index
    %c0_124 = arith.constant 0 : index
    %179 = vector.load %arg19[%c23_123, %c0_124] : memref<96x128xbf16, #tpu.memory_space<vmem>>, vector<64x128xbf16>
    %180 = vector.broadcast %4 : vector<64x1xbf16> to vector<64x128xbf16>
    %181 = arith.mulf %179, %180 : vector<64x128xbf16>
    %c0_125 = arith.constant 0 : index
    %c768_126 = arith.constant 768 : index
    %182 = vector.load %arg17[%c0_125, %c768_126] : memref<64x1152xbf16, #tpu.memory_space<vmem>>, vector<64x128xbf16>
    tpu.vector_store %arg17[%c0_125, %c768_126], %181 {strides = array<i32>} : memref<64x1152xbf16, #tpu.memory_space<vmem>>, vector<64x128xbf16>,
    %c24_127 = arith.constant 24 : index
    %c0_128 = arith.constant 0 : index
    %183 = vector.load %arg19[%c24_127, %c0_128] : memref<96x128xbf16, #tpu.memory_space<vmem>>, vector<64x128xbf16>
    %c0_129 = arith.constant 0 : index
    %c896_130 = arith.constant 896 : index
    %184 = vector.load %arg17[%c0_129, %c896_130] : memref<64x1152xbf16, #tpu.memory_space<vmem>>, vector<64x128xbf16>
    tpu.vector_store %arg17[%c0_129, %c896_130], %183 {strides = array<i32>} : memref<64x1152xbf16, #tpu.memory_space<vmem>>, vector<64x128xbf16>,
    %c25_131 = arith.constant 25 : index
    %c0_132 = arith.constant 0 : index
    %185 = vector.load %arg19[%c25_131, %c0_132] : memref<96x128xbf16, #tpu.memory_space<vmem>>, vector<64x128xbf16>
    %186 = vector.broadcast %5 : vector<64x1xbf16> to vector<64x128xbf16>
    %187 = arith.mulf %185, %186 : vector<64x128xbf16>
    %c0_133 = arith.constant 0 : index
    %c1024_134 = arith.constant 1024 : index
    %188 = vector.load %arg17[%c0_133, %c1024_134] : memref<64x1152xbf16, #tpu.memory_space<vmem>>, vector<64x128xbf16>
    tpu.vector_store %arg17[%c0_133, %c1024_134], %187 {strides = array<i32>} : memref<64x1152xbf16, #tpu.memory_space<vmem>>, vector<64x128xbf16>,
    %c0_135 = arith.constant 0 : index
    %c0_136 = arith.constant 0 : index
    %189 = vector.load %arg17[%c0_135, %c0_136] : memref<64x1152xbf16, #tpu.memory_space<vmem>>, vector<64x1152xbf16>
    %c0_137 = arith.constant 0 : index
    %c0_138 = arith.constant 0 : index
    %190 = vector.load %arg14[%c0_137, %c0_138] : memref<1152x128xbf16, #tpu.memory_space<vmem>>, vector<1152x128xbf16>
    %cst_139 = arith.constant dense<0.000000e+00> : vector<64x128xf32>
    %191 = tpu.matmul %189, %190, %cst_139 {dimension_numbers = #tpu.dot_dimension_numbers<[1], [0], [0], [1], [0, 0, 1, 1], [], []>} : vector<64x1152xbf16>, vector<1152x128xbf16>, vector<64x128xf32> -> vector<64x128xf32>
    %192 = vector.broadcast %156 : vector<1x128xf32> to vector<64x128xf32>
    %193 = arith.addf %191, %192 : vector<64x128xf32>
    %c0_140 = arith.constant 0 : index
    %c0_141 = arith.constant 0 : index
    %194 = vector.load %arg18[%c0_140, %c0_141] : memref<64x128xbf16, #tpu.memory_space<vmem>>, vector<64x128xbf16>
    %195 = arith.extf %194 : vector<64x128xbf16> to vector<64x128xf32>
    %196 = arith.addf %193, %195 : vector<64x128xf32>
    %c0_142 = arith.constant 0 : index
    %c0_143 = arith.constant 0 : index
    %c0_144 = arith.constant 0 : index
    %197 = vector.load %arg16[%c0_142, %c0_143, %c0_144] : memref<1x64x128xf32, #tpu.memory_space<vmem>>, vector<1x64x128xf32>
    %198 = vector.shape_cast %197 : vector<1x64x128xf32> to vector<64x128xf32>
    %199 = vector.shape_cast %196 : vector<64x128xf32> to vector<1x64x128xf32>
    tpu.vector_store %arg16[%c0_142, %c0_143, %c0_144], %199 {strides = array<i32>} : memref<1x64x128xf32, #tpu.memory_space<vmem>>, vector<1x64x128xf32>,
    return
  }
  func.func @transform_0(%arg0: i32) -> (i32, i32, i32) {
    %c0_i32 = arith.constant 0 : i32
    %c0_i32_0 = arith.constant 0 : i32
    %c0_i32_1 = arith.constant 0 : i32
    return %arg0, %c0_i32, %c0_i32_0 : i32, i32, i32
  }
  func.func @transform_1(%arg0: i32) -> (i32, i32) {
    %c0_i32 = arith.constant 0 : i32
    %c0_i32_0 = arith.constant 0 : i32
    %c0_i32_1 = arith.constant 0 : i32
    return %c0_i32, %c0_i32_0 : i32, i32
  }
  func.func @transform_2(%arg0: i32) -> (i32, i32) {
    %c0_i32 = arith.constant 0 : i32
    %c0_i32_0 = arith.constant 0 : i32
    %c0_i32_1 = arith.constant 0 : i32
    return %c0_i32, %c0_i32_0 : i32, i32
  }
  func.func @transform_3(%arg0: i32) -> (i32, i32) {
    %c0_i32 = arith.constant 0 : i32
    %c0_i32_0 = arith.constant 0 : i32
    %c0_i32_1 = arith.constant 0 : i32
    return %c0_i32, %c0_i32_0 : i32, i32
  }
  func.func @transform_4(%arg0: i32) -> (i32, i32) {
    %c0_i32 = arith.constant 0 : i32
    %c0_i32_0 = arith.constant 0 : i32
    %c0_i32_1 = arith.constant 0 : i32
    return %c0_i32, %c0_i32_0 : i32, i32
  }
  func.func @transform_5(%arg0: i32) -> (i32, i32) {
    %c0_i32 = arith.constant 0 : i32
    %c0_i32_0 = arith.constant 0 : i32
    %c0_i32_1 = arith.constant 0 : i32
    return %c0_i32, %c0_i32_0 : i32, i32
  }
  func.func @transform_6(%arg0: i32) -> (i32, i32) {
    %c0_i32 = arith.constant 0 : i32
    %c0_i32_0 = arith.constant 0 : i32
    %c0_i32_1 = arith.constant 0 : i32
    return %c0_i32, %c0_i32_0 : i32, i32
  }
  func.func @transform_7(%arg0: i32) -> (i32, i32) {
    %c0_i32 = arith.constant 0 : i32
    %c0_i32_0 = arith.constant 0 : i32
    %c0_i32_1 = arith.constant 0 : i32
    return %c0_i32, %c0_i32_0 : i32, i32
  }
  func.func @transform_8(%arg0: i32) -> (i32, i32) {
    %c0_i32 = arith.constant 0 : i32
    %c0_i32_0 = arith.constant 0 : i32
    %c0_i32_1 = arith.constant 0 : i32
    return %c0_i32, %c0_i32_0 : i32, i32
  }
  func.func @transform_9(%arg0: i32) -> (i32, i32) {
    %c0_i32 = arith.constant 0 : i32
    %c0_i32_0 = arith.constant 0 : i32
    %c0_i32_1 = arith.constant 0 : i32
    return %c0_i32, %c0_i32_0 : i32, i32
  }
  func.func @transform_10(%arg0: i32) -> (i32, i32) {
    %c0_i32 = arith.constant 0 : i32
    %c0_i32_0 = arith.constant 0 : i32
    %c0_i32_1 = arith.constant 0 : i32
    return %c0_i32, %c0_i32_0 : i32, i32
  }
  func.func @transform_11(%arg0: i32) -> (i32, i32) {
    %c0_i32 = arith.constant 0 : i32
    %c0_i32_0 = arith.constant 0 : i32
    %c0_i32_1 = arith.constant 0 : i32
    return %c0_i32, %c0_i32_0 : i32, i32
  }
  func.func @transform_12(%arg0: i32) -> (i32, i32) {
    %c0_i32 = arith.constant 0 : i32
    %c0_i32_0 = arith.constant 0 : i32
    %c0_i32_1 = arith.constant 0 : i32
    return %c0_i32, %c0_i32_0 : i32, i32
  }
  func.func @transform_13(%arg0: i32) -> (i32, i32) {
    %c0_i32 = arith.constant 0 : i32
    %c0_i32_0 = arith.constant 0 : i32
    %c0_i32_1 = arith.constant 0 : i32
    return %c0_i32, %c0_i32_0 : i32, i32
  }
  func.func @transform_14(%arg0: i32) -> (i32, i32) {
    %c0_i32 = arith.constant 0 : i32
    %c0_i32_0 = arith.constant 0 : i32
    %c0_i32_1 = arith.constant 0 : i32
    return %c0_i32, %c0_i32_0 : i32, i32
  }
  func.func @transform_15(%arg0: i32) -> (i32, i32, i32) {
    %c0_i32 = arith.constant 0 : i32
    %c0_i32_0 = arith.constant 0 : i32
    %c0_i32_1 = arith.constant 0 : i32
    return %arg0, %c0_i32, %c0_i32_0 : i32, i32, i32
  }
}

module attributes {stable_mosaic.version = 11 : i64} {
  func.func @_vae_decoder_kernel(%arg0: i32, %arg1: memref<1x16x128xbf16, #tpu.memory_space<vmem>>, %arg2: memref<128x128xbf16, #tpu.memory_space<vmem>>, %arg3: memref<64x16xbf16, #tpu.memory_space<vmem>>, %arg4: memref<1x128xf32, #tpu.memory_space<vmem>>, %arg5: memref<128x8xf32, #tpu.memory_space<vmem>>, %arg6: memref<8x128xf32, #tpu.memory_space<vmem>>, %arg7: memref<64x2xbf16, #tpu.memory_space<vmem>>, %arg8: memref<1x128xf32, #tpu.memory_space<vmem>>, %arg9: memref<1x128xf32, #tpu.memory_space<vmem>>, %arg10: memref<1152x128xbf16, #tpu.memory_space<vmem>>, %arg11: memref<1x128xf32, #tpu.memory_space<vmem>>, %arg12: memref<1x128xf32, #tpu.memory_space<vmem>>, %arg13: memref<1x128xf32, #tpu.memory_space<vmem>>, %arg14: memref<1152x128xbf16, #tpu.memory_space<vmem>>, %arg15: memref<1x128xf32, #tpu.memory_space<vmem>>, %arg16: memref<1x64x128xf32, #tpu.memory_space<vmem>>, %arg17: memref<64x1152xbf16, #tpu.memory_space<vmem>>, %arg18: memref<64x128xbf16, #tpu.memory_space<vmem>>, %arg19: memref<96x128xbf16, #tpu.memory_space<vmem>>) attributes {dimension_semantics = [#tpu.dimension_semantics<parallel>], iteration_bounds = array<i64: 2>, scalar_prefetch = 0 : i64, scratch_operands = 3 : i64, tpu.core_type = #tpu.core_type<tc>, window_params = [{transform_indices = @transform_0, window_bounds = array<i64: 1, 16, 128>}, {pipeline_mode = #tpu.pipeline_mode<synchronous>, transform_indices = @transform_1, window_bounds = array<i64: 128, 128>}, {pipeline_mode = #tpu.pipeline_mode<synchronous>, transform_indices = @transform_2, window_bounds = array<i64: 64, 16>}, {pipeline_mode = #tpu.pipeline_mode<synchronous>, transform_indices = @transform_3, window_bounds = array<i64: 1, 128>}, {pipeline_mode = #tpu.pipeline_mode<synchronous>, transform_indices = @transform_4, window_bounds = array<i64: 128, 8>}, {pipeline_mode = #tpu.pipeline_mode<synchronous>, transform_indices = @transform_5, window_bounds = array<i64: 8, 128>}, {pipeline_mode = #tpu.pipeline_mode<synchronous>, transform_indices = @transform_6, window_bounds = array<i64: 64, 2>}, {pipeline_mode = #tpu.pipeline_mode<synchronous>, transform_indices = @transform_7, window_bounds = array<i64: 1, 128>}, {pipeline_mode = #tpu.pipeline_mode<synchronous>, transform_indices = @transform_8, window_bounds = array<i64: 1, 128>}, {pipeline_mode = #tpu.pipeline_mode<synchronous>, transform_indices = @transform_9, window_bounds = array<i64: 1152, 128>}, {pipeline_mode = #tpu.pipeline_mode<synchronous>, transform_indices = @transform_10, window_bounds = array<i64: 1, 128>}, {pipeline_mode = #tpu.pipeline_mode<synchronous>, transform_indices = @transform_11, window_bounds = array<i64: 1, 128>}, {pipeline_mode = #tpu.pipeline_mode<synchronous>, transform_indices = @transform_12, window_bounds = array<i64: 1, 128>}, {pipeline_mode = #tpu.pipeline_mode<synchronous>, transform_indices = @transform_13, window_bounds = array<i64: 1152, 128>}, {pipeline_mode = #tpu.pipeline_mode<synchronous>, transform_indices = @transform_14, window_bounds = array<i64: 1, 128>}, {transform_indices = @transform_15, window_bounds = array<i64: 1, 64, 128>}]} {
    %cst = arith.constant 0.000000e+00 : bf16
    %0 = vector.broadcast %cst : bf16 to vector<16x128xbf16>
    %c0 = arith.constant 0 : index
    %c0_0 = arith.constant 0 : index
    %1 = vector.load %arg19[%c0, %c0_0] : memref<96x128xbf16, #tpu.memory_space<vmem>>, vector<16x128xbf16>
    tpu.vector_store %arg19[%c0, %c0_0], %0 {strides = array<i32>} : memref<96x128xbf16, #tpu.memory_space<vmem>>, vector<16x128xbf16>,
    %cst_1 = arith.constant 0.000000e+00 : bf16
    %2 = vector.broadcast %cst_1 : bf16 to vector<16x128xbf16>
    %c80 = arith.constant 80 : index
    %c0_2 = arith.constant 0 : index
    %3 = vector.load %arg19[%c80, %c0_2] : memref<96x128xbf16, #tpu.memory_space<vmem>>, vector<16x128xbf16>
    tpu.vector_store %arg19[%c80, %c0_2], %2 {strides = array<i32>} : memref<96x128xbf16, #tpu.memory_space<vmem>>, vector<16x128xbf16>,
    %c0_3 = arith.constant 0 : index
    %c0_4 = arith.constant 0 : index
    %4 = vector.load %arg7[%c0_3, %c0_4] : memref<64x2xbf16, #tpu.memory_space<vmem>>, vector<64x1xbf16>
    %c0_5 = arith.constant 0 : index
    %c1 = arith.constant 1 : index
    %5 = vector.load %arg7[%c0_5, %c1] : memref<64x2xbf16, #tpu.memory_space<vmem>>, vector<64x1xbf16>
    %c0_6 = arith.constant 0 : index
    %c0_7 = arith.constant 0 : index
    %c0_8 = arith.constant 0 : index
    %6 = vector.load %arg1[%c0_6, %c0_7, %c0_8] : memref<1x16x128xbf16, #tpu.memory_space<vmem>>, vector<1x16x128xbf16>
    %7 = vector.shape_cast %6 : vector<1x16x128xbf16> to vector<16x128xbf16>
    %c0_9 = arith.constant 0 : index
    %c0_10 = arith.constant 0 : index
    %8 = vector.load %arg2[%c0_9, %c0_10] : memref<128x128xbf16, #tpu.memory_space<vmem>>, vector<128x128xbf16>
    %cst_11 = arith.constant dense<0.000000e+00> : vector<16x128xf32>
    %9 = tpu.matmul %7, %8, %cst_11 {dimension_numbers = #tpu.dot_dimension_numbers<[1], [0], [0], [1], [0, 0, 1, 1], [], []>} : vector<16x128xbf16>, vector<128x128xbf16>, vector<16x128xf32> -> vector<16x128xf32>
    %c0_12 = arith.constant 0 : index
    %c0_13 = arith.constant 0 : index
    %10 = vector.load %arg3[%c0_12, %c0_13] : memref<64x16xbf16, #tpu.memory_space<vmem>>, vector<64x16xbf16>
    %11 = arith.truncf %9 : vector<16x128xf32> to vector<16x128xbf16>
    %cst_14 = arith.constant dense<0.000000e+00> : vector<64x128xf32>
    %12 = tpu.matmul %10, %11, %cst_14 {dimension_numbers = #tpu.dot_dimension_numbers<[1], [0], [0], [1], [0, 0, 1, 1], [], []>} : vector<64x16xbf16>, vector<16x128xbf16>, vector<64x128xf32> -> vector<64x128xf32>
    %c0_15 = arith.constant 0 : index
    %c0_16 = arith.constant 0 : index
    %13 = vector.load %arg4[%c0_15, %c0_16] : memref<1x128xf32, #tpu.memory_space<vmem>>, vector<1x128xf32>
    %14 = vector.broadcast %13 : vector<1x128xf32> to vector<64x128xf32>
    %15 = arith.addf %12, %14 : vector<64x128xf32>
    %16 = arith.truncf %15 : vector<64x128xf32> to vector<64x128xbf16>
    %c0_17 = arith.constant 0 : index
    %c0_18 = arith.constant 0 : index
    %17 = vector.load %arg18[%c0_17, %c0_18] : memref<64x128xbf16, #tpu.memory_space<vmem>>, vector<64x128xbf16>
    tpu.vector_store %arg18[%c0_17, %c0_18], %16 {strides = array<i32>} : memref<64x128xbf16, #tpu.memory_space<vmem>>, vector<64x128xbf16>,
    %c0_19 = arith.constant 0 : index
    %c0_20 = arith.constant 0 : index
    %18 = vector.load %arg8[%c0_19, %c0_20] : memref<1x128xf32, #tpu.memory_space<vmem>>, vector<1x128xf32>
    %c0_21 = arith.constant 0 : index
    %c0_22 = arith.constant 0 : index
    %19 = vector.load %arg9[%c0_21, %c0_22] : memref<1x128xf32, #tpu.memory_space<vmem>>, vector<1x128xf32>
    %cst_23 = arith.constant dense<0.000000e+00> : vector<128xf32>
    %20 = vector.multi_reduction <add>, %15, %cst_23 [0] : vector<64x128xf32> to vector<128xf32>
    %21 = vector.shape_cast %20 : vector<128xf32> to vector<1x128xf32>
    %22 = arith.mulf %15, %15 : vector<64x128xf32>
    %cst_24 = arith.constant dense<0.000000e+00> : vector<128xf32>
    %23 = vector.multi_reduction <add>, %22, %cst_24 [0] : vector<64x128xf32> to vector<128xf32>
    %24 = vector.shape_cast %23 : vector<128xf32> to vector<1x128xf32>
    %25 = vector.shape_cast %21 : vector<1x128xf32> to vector<1x128xf32>
    %26 = vector.broadcast %25 : vector<1x128xf32> to vector<8x128xf32>
    %c0_25 = arith.constant 0 : index
    %c0_26 = arith.constant 0 : index
    %27 = vector.load %arg5[%c0_25, %c0_26] : memref<128x8xf32, #tpu.memory_space<vmem>>, vector<128x8xf32>
    %cst_27 = arith.constant dense<0.000000e+00> : vector<8x8xf32>
    %28 = tpu.matmul %26, %27, %cst_27 {dimension_numbers = #tpu.dot_dimension_numbers<[1], [0], [0], [1], [0, 0, 1, 1], [], []>, precision = #tpu.contract_precision<fp32>} : vector<8x128xf32>, vector<128x8xf32>, vector<8x8xf32> -> vector<8x8xf32>
    %29 = vector.extract_strided_slice %28 {offsets = [0, 0], sizes = [1, 8], strides = [1, 1]} : vector<8x8xf32> to vector<1x8xf32>
    %30 = vector.shape_cast %24 : vector<1x128xf32> to vector<1x128xf32>
    %31 = vector.broadcast %30 : vector<1x128xf32> to vector<8x128xf32>
    %c0_28 = arith.constant 0 : index
    %c0_29 = arith.constant 0 : index
    %32 = vector.load %arg5[%c0_28, %c0_29] : memref<128x8xf32, #tpu.memory_space<vmem>>, vector<128x8xf32>
    %cst_30 = arith.constant dense<0.000000e+00> : vector<8x8xf32>
    %33 = tpu.matmul %31, %32, %cst_30 {dimension_numbers = #tpu.dot_dimension_numbers<[1], [0], [0], [1], [0, 0, 1, 1], [], []>, precision = #tpu.contract_precision<fp32>} : vector<8x128xf32>, vector<128x8xf32>, vector<8x8xf32> -> vector<8x8xf32>
    %34 = vector.extract_strided_slice %33 {offsets = [0, 0], sizes = [1, 8], strides = [1, 1]} : vector<8x8xf32> to vector<1x8xf32>
    %cst_31 = arith.constant 9.765625E-4 : f32
    %35 = vector.broadcast %cst_31 : f32 to vector<1x8xf32>
    %36 = arith.mulf %29, %35 : vector<1x8xf32>
    %cst_32 = arith.constant 9.765625E-4 : f32
    %37 = vector.broadcast %cst_32 : f32 to vector<1x8xf32>
    %38 = arith.mulf %34, %37 : vector<1x8xf32>
    %39 = arith.mulf %36, %36 : vector<1x8xf32>
    %40 = arith.subf %38, %39 : vector<1x8xf32>
    %cst_33 = arith.constant 0.000000e+00 : f32
    %41 = vector.broadcast %cst_33 : f32 to vector<1x8xf32>
    %42 = arith.maximumf %40, %41 : vector<1x8xf32>
    %cst_34 = arith.constant 9.99999974E-6 : f32
    %43 = vector.broadcast %cst_34 : f32 to vector<1x8xf32>
    %44 = arith.addf %42, %43 : vector<1x8xf32>
    %45 = math.rsqrt %44 : vector<1x8xf32>
    %46 = vector.shape_cast %45 : vector<1x8xf32> to vector<1x8xf32>
    %47 = vector.broadcast %46 : vector<1x8xf32> to vector<8x8xf32>
    %cst_35 = arith.constant 0.000000e+00 : f32
    %48 = vector.broadcast %cst_35 : f32 to vector<1x8xf32>
    %49 = arith.subf %48, %36 : vector<1x8xf32>
    %50 = arith.mulf %49, %45 : vector<1x8xf32>
    %51 = vector.shape_cast %50 : vector<1x8xf32> to vector<1x8xf32>
    %52 = vector.broadcast %51 : vector<1x8xf32> to vector<8x8xf32>
    %c0_36 = arith.constant 0 : index
    %c0_37 = arith.constant 0 : index
    %53 = vector.load %arg6[%c0_36, %c0_37] : memref<8x128xf32, #tpu.memory_space<vmem>>, vector<8x128xf32>
    %cst_38 = arith.constant dense<0.000000e+00> : vector<8x128xf32>
    %54 = tpu.matmul %47, %53, %cst_38 {dimension_numbers = #tpu.dot_dimension_numbers<[1], [0], [0], [1], [0, 0, 1, 1], [], []>, precision = #tpu.contract_precision<fp32>} : vector<8x8xf32>, vector<8x128xf32>, vector<8x128xf32> -> vector<8x128xf32>
    %55 = vector.extract_strided_slice %54 {offsets = [0, 0], sizes = [1, 128], strides = [1, 1]} : vector<8x128xf32> to vector<1x128xf32>
    %c0_39 = arith.constant 0 : index
    %c0_40 = arith.constant 0 : index
    %56 = vector.load %arg6[%c0_39, %c0_40] : memref<8x128xf32, #tpu.memory_space<vmem>>, vector<8x128xf32>
    %cst_41 = arith.constant dense<0.000000e+00> : vector<8x128xf32>
    %57 = tpu.matmul %52, %56, %cst_41 {dimension_numbers = #tpu.dot_dimension_numbers<[1], [0], [0], [1], [0, 0, 1, 1], [], []>, precision = #tpu.contract_precision<fp32>} : vector<8x8xf32>, vector<8x128xf32>, vector<8x128xf32> -> vector<8x128xf32>
    %58 = vector.extract_strided_slice %57 {offsets = [0, 0], sizes = [1, 128], strides = [1, 1]} : vector<8x128xf32> to vector<1x128xf32>
    %59 = arith.mulf %18, %55 : vector<1x128xf32>
    %60 = arith.mulf %18, %58 : vector<1x128xf32>
    %61 = arith.addf %60, %19 : vector<1x128xf32>
    %62 = vector.broadcast %59 : vector<1x128xf32> to vector<64x128xf32>
    %63 = arith.mulf %15, %62 : vector<64x128xf32>
    %64 = vector.broadcast %61 : vector<1x128xf32> to vector<64x128xf32>
    %65 = arith.addf %63, %64 : vector<64x128xf32>
    %cst_42 = arith.constant 0.000000e+00 : f32
    %66 = vector.broadcast %cst_42 : f32 to vector<64x128xf32>
    %67 = arith.maximumf %65, %66 : vector<64x128xf32>
    %c0_43 = arith.constant 0 : index
    %c0_44 = arith.constant 0 : index
    %68 = vector.load %arg11[%c0_43, %c0_44] : memref<1x128xf32, #tpu.memory_space<vmem>>, vector<1x128xf32>
    %69 = arith.truncf %67 : vector<64x128xf32> to vector<64x128xbf16>
    %c16 = arith.constant 16 : index
    %c0_45 = arith.constant 0 : index
    %70 = vector.load %arg19[%c16, %c0_45] : memref<96x128xbf16, #tpu.memory_space<vmem>>, vector<64x128xbf16>
    tpu.vector_store %arg19[%c16, %c0_45], %69 {strides = array<i32>} : memref<96x128xbf16, #tpu.memory_space<vmem>>, vector<64x128xbf16>,
    %c7 = arith.constant 7 : index
    %c0_46 = arith.constant 0 : index
    %71 = vector.load %arg19[%c7, %c0_46] : memref<96x128xbf16, #tpu.memory_space<vmem>>, vector<64x128xbf16>
    %72 = vector.broadcast %4 : vector<64x1xbf16> to vector<64x128xbf16>
    %73 = arith.mulf %71, %72 : vector<64x128xbf16>
    %c0_47 = arith.constant 0 : index
    %c0_48 = arith.constant 0 : index
    %74 = vector.load %arg17[%c0_47, %c0_48] : memref<64x1152xbf16, #tpu.memory_space<vmem>>, vector<64x128xbf16>
    tpu.vector_store %arg17[%c0_47, %c0_48], %73 {strides = array<i32>} : memref<64x1152xbf16, #tpu.memory_space<vmem>>, vector<64x128xbf16>,
    %c8 = arith.constant 8 : index
    %c0_49 = arith.constant 0 : index
    %75 = vector.load %arg19[%c8, %c0_49] : memref<96x128xbf16, #tpu.memory_space<vmem>>, vector<64x128xbf16>
    %c0_50 = arith.constant 0 : index
    %c128 = arith.constant 128 : index
    %76 = vector.load %arg17[%c0_50, %c128] : memref<64x1152xbf16, #tpu.memory_space<vmem>>, vector<64x128xbf16>
    tpu.vector_store %arg17[%c0_50, %c128], %75 {strides = array<i32>} : memref<64x1152xbf16, #tpu.memory_space<vmem>>, vector<64x128xbf16>,
    %c9 = arith.constant 9 : index
    %c0_51 = arith.constant 0 : index
    %77 = vector.load %arg19[%c9, %c0_51] : memref<96x128xbf16, #tpu.memory_space<vmem>>, vector<64x128xbf16>
    %78 = vector.broadcast %5 : vector<64x1xbf16> to vector<64x128xbf16>
    %79 = arith.mulf %77, %78 : vector<64x128xbf16>
    %c0_52 = arith.constant 0 : index
    %c256 = arith.constant 256 : index
    %80 = vector.load %arg17[%c0_52, %c256] : memref<64x1152xbf16, #tpu.memory_space<vmem>>, vector<64x128xbf16>
    tpu.vector_store %arg17[%c0_52, %c256], %79 {strides = array<i32>} : memref<64x1152xbf16, #tpu.memory_space<vmem>>, vector<64x128xbf16>,
    %c15 = arith.constant 15 : index
    %c0_53 = arith.constant 0 : index
    %81 = vector.load %arg19[%c15, %c0_53] : memref<96x128xbf16, #tpu.memory_space<vmem>>, vector<64x128xbf16>
    %82 = vector.broadcast %4 : vector<64x1xbf16> to vector<64x128xbf16>
    %83 = arith.mulf %81, %82 : vector<64x128xbf16>
    %c0_54 = arith.constant 0 : index
    %c384 = arith.constant 384 : index
    %84 = vector.load %arg17[%c0_54, %c384] : memref<64x1152xbf16, #tpu.memory_space<vmem>>, vector<64x128xbf16>
    tpu.vector_store %arg17[%c0_54, %c384], %83 {strides = array<i32>} : memref<64x1152xbf16, #tpu.memory_space<vmem>>, vector<64x128xbf16>,
    %c16_55 = arith.constant 16 : index
    %c0_56 = arith.constant 0 : index
    %85 = vector.load %arg19[%c16_55, %c0_56] : memref<96x128xbf16, #tpu.memory_space<vmem>>, vector<64x128xbf16>
    %c0_57 = arith.constant 0 : index
    %c512 = arith.constant 512 : index
    %86 = vector.load %arg17[%c0_57, %c512] : memref<64x1152xbf16, #tpu.memory_space<vmem>>, vector<64x128xbf16>
    tpu.vector_store %arg17[%c0_57, %c512], %85 {strides = array<i32>} : memref<64x1152xbf16, #tpu.memory_space<vmem>>, vector<64x128xbf16>,
    %c17 = arith.constant 17 : index
    %c0_58 = arith.constant 0 : index
    %87 = vector.load %arg19[%c17, %c0_58] : memref<96x128xbf16, #tpu.memory_space<vmem>>, vector<64x128xbf16>
    %88 = vector.broadcast %5 : vector<64x1xbf16> to vector<64x128xbf16>
    %89 = arith.mulf %87, %88 : vector<64x128xbf16>
    %c0_59 = arith.constant 0 : index
    %c640 = arith.constant 640 : index
    %90 = vector.load %arg17[%c0_59, %c640] : memref<64x1152xbf16, #tpu.memory_space<vmem>>, vector<64x128xbf16>
    tpu.vector_store %arg17[%c0_59, %c640], %89 {strides = array<i32>} : memref<64x1152xbf16, #tpu.memory_space<vmem>>, vector<64x128xbf16>,
    %c23 = arith.constant 23 : index
    %c0_60 = arith.constant 0 : index
    %91 = vector.load %arg19[%c23, %c0_60] : memref<96x128xbf16, #tpu.memory_space<vmem>>, vector<64x128xbf16>
    %92 = vector.broadcast %4 : vector<64x1xbf16> to vector<64x128xbf16>
    %93 = arith.mulf %91, %92 : vector<64x128xbf16>
    %c0_61 = arith.constant 0 : index
    %c768 = arith.constant 768 : index
    %94 = vector.load %arg17[%c0_61, %c768] : memref<64x1152xbf16, #tpu.memory_space<vmem>>, vector<64x128xbf16>
    tpu.vector_store %arg17[%c0_61, %c768], %93 {strides = array<i32>} : memref<64x1152xbf16, #tpu.memory_space<vmem>>, vector<64x128xbf16>,
    %c24 = arith.constant 24 : index
    %c0_62 = arith.constant 0 : index
    %95 = vector.load %arg19[%c24, %c0_62] : memref<96x128xbf16, #tpu.memory_space<vmem>>, vector<64x128xbf16>
    %c0_63 = arith.constant 0 : index
    %c896 = arith.constant 896 : index
    %96 = vector.load %arg17[%c0_63, %c896] : memref<64x1152xbf16, #tpu.memory_space<vmem>>, vector<64x128xbf16>
    tpu.vector_store %arg17[%c0_63, %c896], %95 {strides = array<i32>} : memref<64x1152xbf16, #tpu.memory_space<vmem>>, vector<64x128xbf16>,
    %c25 = arith.constant 25 : index
    %c0_64 = arith.constant 0 : index
    %97 = vector.load %arg19[%c25, %c0_64] : memref<96x128xbf16, #tpu.memory_space<vmem>>, vector<64x128xbf16>
    %98 = vector.broadcast %5 : vector<64x1xbf16> to vector<64x128xbf16>
    %99 = arith.mulf %97, %98 : vector<64x128xbf16>
    %c0_65 = arith.constant 0 : index
    %c1024 = arith.constant 1024 : index
    %100 = vector.load %arg17[%c0_65, %c1024] : memref<64x1152xbf16, #tpu.memory_space<vmem>>, vector<64x128xbf16>
    tpu.vector_store %arg17[%c0_65, %c1024], %99 {strides = array<i32>} : memref<64x1152xbf16, #tpu.memory_space<vmem>>, vector<64x128xbf16>,
    %c0_66 = arith.constant 0 : index
    %c0_67 = arith.constant 0 : index
    %101 = vector.load %arg17[%c0_66, %c0_67] : memref<64x1152xbf16, #tpu.memory_space<vmem>>, vector<64x1152xbf16>
    %c0_68 = arith.constant 0 : index
    %c0_69 = arith.constant 0 : index
    %102 = vector.load %arg10[%c0_68, %c0_69] : memref<1152x128xbf16, #tpu.memory_space<vmem>>, vector<1152x128xbf16>
    %cst_70 = arith.constant dense<0.000000e+00> : vector<64x128xf32>
    %103 = tpu.matmul %101, %102, %cst_70 {dimension_numbers = #tpu.dot_dimension_numbers<[1], [0], [0], [1], [0, 0, 1, 1], [], []>} : vector<64x1152xbf16>, vector<1152x128xbf16>, vector<64x128xf32> -> vector<64x128xf32>
    %104 = vector.broadcast %68 : vector<1x128xf32> to vector<64x128xf32>
    %105 = arith.addf %103, %104 : vector<64x128xf32>
    %c0_71 = arith.constant 0 : index
    %c0_72 = arith.constant 0 : index
    %106 = vector.load %arg12[%c0_71, %c0_72] : memref<1x128xf32, #tpu.memory_space<vmem>>, vector<1x128xf32>
    %c0_73 = arith.constant 0 : index
    %c0_74 = arith.constant 0 : index
    %107 = vector.load %arg13[%c0_73, %c0_74] : memref<1x128xf32, #tpu.memory_space<vmem>>, vector<1x128xf32>
    %cst_75 = arith.constant dense<0.000000e+00> : vector<128xf32>
    %108 = vector.multi_reduction <add>, %105, %cst_75 [0] : vector<64x128xf32> to vector<128xf32>
    %109 = vector.shape_cast %108 : vector<128xf32> to vector<1x128xf32>
    %110 = arith.mulf %105, %105 : vector<64x128xf32>
    %cst_76 = arith.constant dense<0.000000e+00> : vector<128xf32>
    %111 = vector.multi_reduction <add>, %110, %cst_76 [0] : vector<64x128xf32> to vector<128xf32>
    %112 = vector.shape_cast %111 : vector<128xf32> to vector<1x128xf32>
    %113 = vector.shape_cast %109 : vector<1x128xf32> to vector<1x128xf32>
    %114 = vector.broadcast %113 : vector<1x128xf32> to vector<8x128xf32>
    %c0_77 = arith.constant 0 : index
    %c0_78 = arith.constant 0 : index
    %115 = vector.load %arg5[%c0_77, %c0_78] : memref<128x8xf32, #tpu.memory_space<vmem>>, vector<128x8xf32>
    %cst_79 = arith.constant dense<0.000000e+00> : vector<8x8xf32>
    %116 = tpu.matmul %114, %115, %cst_79 {dimension_numbers = #tpu.dot_dimension_numbers<[1], [0], [0], [1], [0, 0, 1, 1], [], []>, precision = #tpu.contract_precision<fp32>} : vector<8x128xf32>, vector<128x8xf32>, vector<8x8xf32> -> vector<8x8xf32>
    %117 = vector.extract_strided_slice %116 {offsets = [0, 0], sizes = [1, 8], strides = [1, 1]} : vector<8x8xf32> to vector<1x8xf32>
    %118 = vector.shape_cast %112 : vector<1x128xf32> to vector<1x128xf32>
    %119 = vector.broadcast %118 : vector<1x128xf32> to vector<8x128xf32>
    %c0_80 = arith.constant 0 : index
    %c0_81 = arith.constant 0 : index
    %120 = vector.load %arg5[%c0_80, %c0_81] : memref<128x8xf32, #tpu.memory_space<vmem>>, vector<128x8xf32>
    %cst_82 = arith.constant dense<0.000000e+00> : vector<8x8xf32>
    %121 = tpu.matmul %119, %120, %cst_82 {dimension_numbers = #tpu.dot_dimension_numbers<[1], [0], [0], [1], [0, 0, 1, 1], [], []>, precision = #tpu.contract_precision<fp32>} : vector<8x128xf32>, vector<128x8xf32>, vector<8x8xf32> -> vector<8x8xf32>
    %122 = vector.extract_strided_slice %121 {offsets = [0, 0], sizes = [1, 8], strides = [1, 1]} : vector<8x8xf32> to vector<1x8xf32>
    %cst_83 = arith.constant 9.765625E-4 : f32
    %123 = vector.broadcast %cst_83 : f32 to vector<1x8xf32>
    %124 = arith.mulf %117, %123 : vector<1x8xf32>
    %cst_84 = arith.constant 9.765625E-4 : f32
    %125 = vector.broadcast %cst_84 : f32 to vector<1x8xf32>
    %126 = arith.mulf %122, %125 : vector<1x8xf32>
    %127 = arith.mulf %124, %124 : vector<1x8xf32>
    %128 = arith.subf %126, %127 : vector<1x8xf32>
    %cst_85 = arith.constant 0.000000e+00 : f32
    %129 = vector.broadcast %cst_85 : f32 to vector<1x8xf32>
    %130 = arith.maximumf %128, %129 : vector<1x8xf32>
    %cst_86 = arith.constant 9.99999974E-6 : f32
    %131 = vector.broadcast %cst_86 : f32 to vector<1x8xf32>
    %132 = arith.addf %130, %131 : vector<1x8xf32>
    %133 = math.rsqrt %132 : vector<1x8xf32>
    %134 = vector.shape_cast %133 : vector<1x8xf32> to vector<1x8xf32>
    %135 = vector.broadcast %134 : vector<1x8xf32> to vector<8x8xf32>
    %cst_87 = arith.constant 0.000000e+00 : f32
    %136 = vector.broadcast %cst_87 : f32 to vector<1x8xf32>
    %137 = arith.subf %136, %124 : vector<1x8xf32>
    %138 = arith.mulf %137, %133 : vector<1x8xf32>
    %139 = vector.shape_cast %138 : vector<1x8xf32> to vector<1x8xf32>
    %140 = vector.broadcast %139 : vector<1x8xf32> to vector<8x8xf32>
    %c0_88 = arith.constant 0 : index
    %c0_89 = arith.constant 0 : index
    %141 = vector.load %arg6[%c0_88, %c0_89] : memref<8x128xf32, #tpu.memory_space<vmem>>, vector<8x128xf32>
    %cst_90 = arith.constant dense<0.000000e+00> : vector<8x128xf32>
    %142 = tpu.matmul %135, %141, %cst_90 {dimension_numbers = #tpu.dot_dimension_numbers<[1], [0], [0], [1], [0, 0, 1, 1], [], []>, precision = #tpu.contract_precision<fp32>} : vector<8x8xf32>, vector<8x128xf32>, vector<8x128xf32> -> vector<8x128xf32>
    %143 = vector.extract_strided_slice %142 {offsets = [0, 0], sizes = [1, 128], strides = [1, 1]} : vector<8x128xf32> to vector<1x128xf32>
    %c0_91 = arith.constant 0 : index
    %c0_92 = arith.constant 0 : index
    %144 = vector.load %arg6[%c0_91, %c0_92] : memref<8x128xf32, #tpu.memory_space<vmem>>, vector<8x128xf32>
    %cst_93 = arith.constant dense<0.000000e+00> : vector<8x128xf32>
    %145 = tpu.matmul %140, %144, %cst_93 {dimension_numbers = #tpu.dot_dimension_numbers<[1], [0], [0], [1], [0, 0, 1, 1], [], []>, precision = #tpu.contract_precision<fp32>} : vector<8x8xf32>, vector<8x128xf32>, vector<8x128xf32> -> vector<8x128xf32>
    %146 = vector.extract_strided_slice %145 {offsets = [0, 0], sizes = [1, 128], strides = [1, 1]} : vector<8x128xf32> to vector<1x128xf32>
    %147 = arith.mulf %106, %143 : vector<1x128xf32>
    %148 = arith.mulf %106, %146 : vector<1x128xf32>
    %149 = arith.addf %148, %107 : vector<1x128xf32>
    %150 = vector.broadcast %147 : vector<1x128xf32> to vector<64x128xf32>
    %151 = arith.mulf %105, %150 : vector<64x128xf32>
    %152 = vector.broadcast %149 : vector<1x128xf32> to vector<64x128xf32>
    %153 = arith.addf %151, %152 : vector<64x128xf32>
    %cst_94 = arith.constant 0.000000e+00 : f32
    %154 = vector.broadcast %cst_94 : f32 to vector<64x128xf32>
    %155 = arith.maximumf %153, %154 : vector<64x128xf32>
    %c0_95 = arith.constant 0 : index
    %c0_96 = arith.constant 0 : index
    %156 = vector.load %arg15[%c0_95, %c0_96] : memref<1x128xf32, #tpu.memory_space<vmem>>, vector<1x128xf32>
    %157 = arith.truncf %155 : vector<64x128xf32> to vector<64x128xbf16>
    %c16_97 = arith.constant 16 : index
    %c0_98 = arith.constant 0 : index
    %158 = vector.load %arg19[%c16_97, %c0_98] : memref<96x128xbf16, #tpu.memory_space<vmem>>, vector<64x128xbf16>
    tpu.vector_store %arg19[%c16_97, %c0_98], %157 {strides = array<i32>} : memref<96x128xbf16, #tpu.memory_space<vmem>>, vector<64x128xbf16>,
    %c7_99 = arith.constant 7 : index
    %c0_100 = arith.constant 0 : index
    %159 = vector.load %arg19[%c7_99, %c0_100] : memref<96x128xbf16, #tpu.memory_space<vmem>>, vector<64x128xbf16>
    %160 = vector.broadcast %4 : vector<64x1xbf16> to vector<64x128xbf16>
    %161 = arith.mulf %159, %160 : vector<64x128xbf16>
    %c0_101 = arith.constant 0 : index
    %c0_102 = arith.constant 0 : index
    %162 = vector.load %arg17[%c0_101, %c0_102] : memref<64x1152xbf16, #tpu.memory_space<vmem>>, vector<64x128xbf16>
    tpu.vector_store %arg17[%c0_101, %c0_102], %161 {strides = array<i32>} : memref<64x1152xbf16, #tpu.memory_space<vmem>>, vector<64x128xbf16>,
    %c8_103 = arith.constant 8 : index
    %c0_104 = arith.constant 0 : index
    %163 = vector.load %arg19[%c8_103, %c0_104] : memref<96x128xbf16, #tpu.memory_space<vmem>>, vector<64x128xbf16>
    %c0_105 = arith.constant 0 : index
    %c128_106 = arith.constant 128 : index
    %164 = vector.load %arg17[%c0_105, %c128_106] : memref<64x1152xbf16, #tpu.memory_space<vmem>>, vector<64x128xbf16>
    tpu.vector_store %arg17[%c0_105, %c128_106], %163 {strides = array<i32>} : memref<64x1152xbf16, #tpu.memory_space<vmem>>, vector<64x128xbf16>,
    %c9_107 = arith.constant 9 : index
    %c0_108 = arith.constant 0 : index
    %165 = vector.load %arg19[%c9_107, %c0_108] : memref<96x128xbf16, #tpu.memory_space<vmem>>, vector<64x128xbf16>
    %166 = vector.broadcast %5 : vector<64x1xbf16> to vector<64x128xbf16>
    %167 = arith.mulf %165, %166 : vector<64x128xbf16>
    %c0_109 = arith.constant 0 : index
    %c256_110 = arith.constant 256 : index
    %168 = vector.load %arg17[%c0_109, %c256_110] : memref<64x1152xbf16, #tpu.memory_space<vmem>>, vector<64x128xbf16>
    tpu.vector_store %arg17[%c0_109, %c256_110], %167 {strides = array<i32>} : memref<64x1152xbf16, #tpu.memory_space<vmem>>, vector<64x128xbf16>,
    %c15_111 = arith.constant 15 : index
    %c0_112 = arith.constant 0 : index
    %169 = vector.load %arg19[%c15_111, %c0_112] : memref<96x128xbf16, #tpu.memory_space<vmem>>, vector<64x128xbf16>
    %170 = vector.broadcast %4 : vector<64x1xbf16> to vector<64x128xbf16>
    %171 = arith.mulf %169, %170 : vector<64x128xbf16>
    %c0_113 = arith.constant 0 : index
    %c384_114 = arith.constant 384 : index
    %172 = vector.load %arg17[%c0_113, %c384_114] : memref<64x1152xbf16, #tpu.memory_space<vmem>>, vector<64x128xbf16>
    tpu.vector_store %arg17[%c0_113, %c384_114], %171 {strides = array<i32>} : memref<64x1152xbf16, #tpu.memory_space<vmem>>, vector<64x128xbf16>,
    %c16_115 = arith.constant 16 : index
    %c0_116 = arith.constant 0 : index
    %173 = vector.load %arg19[%c16_115, %c0_116] : memref<96x128xbf16, #tpu.memory_space<vmem>>, vector<64x128xbf16>
    %c0_117 = arith.constant 0 : index
    %c512_118 = arith.constant 512 : index
    %174 = vector.load %arg17[%c0_117, %c512_118] : memref<64x1152xbf16, #tpu.memory_space<vmem>>, vector<64x128xbf16>
    tpu.vector_store %arg17[%c0_117, %c512_118], %173 {strides = array<i32>} : memref<64x1152xbf16, #tpu.memory_space<vmem>>, vector<64x128xbf16>,
    %c17_119 = arith.constant 17 : index
    %c0_120 = arith.constant 0 : index
    %175 = vector.load %arg19[%c17_119, %c0_120] : memref<96x128xbf16, #tpu.memory_space<vmem>>, vector<64x128xbf16>
    %176 = vector.broadcast %5 : vector<64x1xbf16> to vector<64x128xbf16>
    %177 = arith.mulf %175, %176 : vector<64x128xbf16>
    %c0_121 = arith.constant 0 : index
    %c640_122 = arith.constant 640 : index
    %178 = vector.load %arg17[%c0_121, %c640_122] : memref<64x1152xbf16, #tpu.memory_space<vmem>>, vector<64x128xbf16>
    tpu.vector_store %arg17[%c0_121, %c640_122], %177 {strides = array<i32>} : memref<64x1152xbf16, #tpu.memory_space<vmem>>, vector<64x128xbf16>,
    %c23_123 = arith.constant 23 : index
    %c0_124 = arith.constant 0 : index
    %179 = vector.load %arg19[%c23_123, %c0_124] : memref<96x128xbf16, #tpu.memory_space<vmem>>, vector<64x128xbf16>
    %180 = vector.broadcast %4 : vector<64x1xbf16> to vector<64x128xbf16>
    %181 = arith.mulf %179, %180 : vector<64x128xbf16>
    %c0_125 = arith.constant 0 : index
    %c768_126 = arith.constant 768 : index
    %182 = vector.load %arg17[%c0_125, %c768_126] : memref<64x1152xbf16, #tpu.memory_space<vmem>>, vector<64x128xbf16>
    tpu.vector_store %arg17[%c0_125, %c768_126], %181 {strides = array<i32>} : memref<64x1152xbf16, #tpu.memory_space<vmem>>, vector<64x128xbf16>,
    %c24_127 = arith.constant 24 : index
    %c0_128 = arith.constant 0 : index
    %183 = vector.load %arg19[%c24_127, %c0_128] : memref<96x128xbf16, #tpu.memory_space<vmem>>, vector<64x128xbf16>
    %c0_129 = arith.constant 0 : index
    %c896_130 = arith.constant 896 : index
    %184 = vector.load %arg17[%c0_129, %c896_130] : memref<64x1152xbf16, #tpu.memory_space<vmem>>, vector<64x128xbf16>
    tpu.vector_store %arg17[%c0_129, %c896_130], %183 {strides = array<i32>} : memref<64x1152xbf16, #tpu.memory_space<vmem>>, vector<64x128xbf16>,
    %c25_131 = arith.constant 25 : index
    %c0_132 = arith.constant 0 : index
    %185 = vector.load %arg19[%c25_131, %c0_132] : memref<96x128xbf16, #tpu.memory_space<vmem>>, vector<64x128xbf16>
    %186 = vector.broadcast %5 : vector<64x1xbf16> to vector<64x128xbf16>
    %187 = arith.mulf %185, %186 : vector<64x128xbf16>
    %c0_133 = arith.constant 0 : index
    %c1024_134 = arith.constant 1024 : index
    %188 = vector.load %arg17[%c0_133, %c1024_134] : memref<64x1152xbf16, #tpu.memory_space<vmem>>, vector<64x128xbf16>
    tpu.vector_store %arg17[%c0_133, %c1024_134], %187 {strides = array<i32>} : memref<64x1152xbf16, #tpu.memory_space<vmem>>, vector<64x128xbf16>,
    %c0_135 = arith.constant 0 : index
    %c0_136 = arith.constant 0 : index
    %189 = vector.load %arg17[%c0_135, %c0_136] : memref<64x1152xbf16, #tpu.memory_space<vmem>>, vector<64x1152xbf16>
    %c0_137 = arith.constant 0 : index
    %c0_138 = arith.constant 0 : index
    %190 = vector.load %arg14[%c0_137, %c0_138] : memref<1152x128xbf16, #tpu.memory_space<vmem>>, vector<1152x128xbf16>
    %cst_139 = arith.constant dense<0.000000e+00> : vector<64x128xf32>
    %191 = tpu.matmul %189, %190, %cst_139 {dimension_numbers = #tpu.dot_dimension_numbers<[1], [0], [0], [1], [0, 0, 1, 1], [], []>} : vector<64x1152xbf16>, vector<1152x128xbf16>, vector<64x128xf32> -> vector<64x128xf32>
    %192 = vector.broadcast %156 : vector<1x128xf32> to vector<64x128xf32>
    %193 = arith.addf %191, %192 : vector<64x128xf32>
    %c0_140 = arith.constant 0 : index
    %c0_141 = arith.constant 0 : index
    %194 = vector.load %arg18[%c0_140, %c0_141] : memref<64x128xbf16, #tpu.memory_space<vmem>>, vector<64x128xbf16>
    %195 = arith.extf %194 : vector<64x128xbf16> to vector<64x128xf32>
    %196 = arith.addf %193, %195 : vector<64x128xf32>
    %c0_142 = arith.constant 0 : index
    %c0_143 = arith.constant 0 : index
    %c0_144 = arith.constant 0 : index
    %197 = vector.load %arg16[%c0_142, %c0_143, %c0_144] : memref<1x64x128xf32, #tpu.memory_space<vmem>>, vector<1x64x128xf32>
    %198 = vector.shape_cast %197 : vector<1x64x128xf32> to vector<64x128xf32>
    %199 = vector.shape_cast %196 : vector<64x128xf32> to vector<1x64x128xf32>
    tpu.vector_store %arg16[%c0_142, %c0_143, %c0_144], %199 {strides = array<i32>} : memref<1x64x128xf32, #tpu.memory_space<vmem>>, vector<1x64x128xf32>,
    return
  }
  func.func @transform_0(%arg0: i32) -> (i32, i32, i32) {
    %c0_i32 = arith.constant 0 : i32
    %c0_i32_0 = arith.constant 0 : i32
    %c0_i32_1 = arith.constant 0 : i32
    return %arg0, %c0_i32, %c0_i32_0 : i32, i32, i32
  }
  func.func @transform_1(%arg0: i32) -> (i32, i32) {
    %c0_i32 = arith.constant 0 : i32
    %c0_i32_0 = arith.constant 0 : i32
    %c0_i32_1 = arith.constant 0 : i32
    return %c0_i32, %c0_i32_0 : i32, i32
  }
  func.func @transform_2(%arg0: i32) -> (i32, i32) {
    %c0_i32 = arith.constant 0 : i32
    %c0_i32_0 = arith.constant 0 : i32
    %c0_i32_1 = arith.constant 0 : i32
    return %c0_i32, %c0_i32_0 : i32, i32
  }
  func.func @transform_3(%arg0: i32) -> (i32, i32) {
    %c0_i32 = arith.constant 0 : i32
    %c0_i32_0 = arith.constant 0 : i32
    %c0_i32_1 = arith.constant 0 : i32
    return %c0_i32, %c0_i32_0 : i32, i32
  }
  func.func @transform_4(%arg0: i32) -> (i32, i32) {
    %c0_i32 = arith.constant 0 : i32
    %c0_i32_0 = arith.constant 0 : i32
    %c0_i32_1 = arith.constant 0 : i32
    return %c0_i32, %c0_i32_0 : i32, i32
  }
  func.func @transform_5(%arg0: i32) -> (i32, i32) {
    %c0_i32 = arith.constant 0 : i32
    %c0_i32_0 = arith.constant 0 : i32
    %c0_i32_1 = arith.constant 0 : i32
    return %c0_i32, %c0_i32_0 : i32, i32
  }
  func.func @transform_6(%arg0: i32) -> (i32, i32) {
    %c0_i32 = arith.constant 0 : i32
    %c0_i32_0 = arith.constant 0 : i32
    %c0_i32_1 = arith.constant 0 : i32
    return %c0_i32, %c0_i32_0 : i32, i32
  }
  func.func @transform_7(%arg0: i32) -> (i32, i32) {
    %c0_i32 = arith.constant 0 : i32
    %c0_i32_0 = arith.constant 0 : i32
    %c0_i32_1 = arith.constant 0 : i32
    return %c0_i32, %c0_i32_0 : i32, i32
  }
  func.func @transform_8(%arg0: i32) -> (i32, i32) {
    %c0_i32 = arith.constant 0 : i32
    %c0_i32_0 = arith.constant 0 : i32
    %c0_i32_1 = arith.constant 0 : i32
    return %c0_i32, %c0_i32_0 : i32, i32
  }
  func.func @transform_9(%arg0: i32) -> (i32, i32) {
    %c0_i32 = arith.constant 0 : i32
    %c0_i32_0 = arith.constant 0 : i32
    %c0_i32_1 = arith.constant 0 : i32
    return %c0_i32, %c0_i32_0 : i32, i32
  }
  func.func @transform_10(%arg0: i32) -> (i32, i32) {
    %c0_i32 = arith.constant 0 : i32
    %c0_i32_0 = arith.constant 0 : i32
    %c0_i32_1 = arith.constant 0 : i32
    return %c0_i32, %c0_i32_0 : i32, i32
  }
  func.func @transform_11(%arg0: i32) -> (i32, i32) {
    %c0_i32 = arith.constant 0 : i32
    %c0_i32_0 = arith.constant 0 : i32
    %c0_i32_1 = arith.constant 0 : i32
    return %c0_i32, %c0_i32_0 : i32, i32
  }
  func.func @transform_12(%arg0: i32) -> (i32, i32) {
    %c0_i32 = arith.constant 0 : i32
    %c0_i32_0 = arith.constant 0 : i32
    %c0_i32_1 = arith.constant 0 : i32
    return %c0_i32, %c0_i32_0 : i32, i32
  }
  func.func @transform_13(%arg0: i32) -> (i32, i32) {
    %c0_i32 = arith.constant 0 : i32
    %c0_i32_0 = arith.constant 0 : i32
    %c0_i32_1 = arith.constant 0 : i32
    return %c0_i32, %c0_i32_0 : i32, i32
  }
  func.func @transform_14(%arg0: i32) -> (i32, i32) {
    %c0_i32 = arith.constant 0 : i32
    %c0_i32_0 = arith.constant 0 : i32
    %c0_i32_1 = arith.constant 0 : i32
    return %c0_i32, %c0_i32_0 : i32, i32
  }
  func.func @transform_15(%arg0: i32) -> (i32, i32, i32) {
    %c0_i32 = arith.constant 0 : i32
    %c0_i32_0 = arith.constant 0 : i32
    %c0_i32_1 = arith.constant 0 : i32
    return %arg0, %c0_i32, %c0_i32_0 : i32, i32, i32
  }
}

</mosaic_0001>

<bundles_post_ra>
// kernel: tpu_custom_call.1
= control target key start
LH: loop header
LB: loop body
LE: loop exit
PB: predicated region body
PF: predicated region fallthrough
CT: control target
= control target key end

     0   :  { %s13811_s0 = inlined_call_operand.vmem [shape: bf16[2,16,128], index: 0, kind: input, shape index: {}]   ;;  %s13812_s1 = inlined_call_operand.vmem [shape: bf16[128,128], index: 1, kind: input, shape index: {}]   ;;  %s13813_s2 = inlined_call_operand.vmem [shape: bf16[64,16], index: 2, kind: input, shape index: {}]   ;;  %s13814_s3 = inlined_call_operand.vmem [shape: f32[1,128], index: 3, kind: input, shape index: {}]   ;;  %s13815_s4 = inlined_call_operand.vmem [shape: f32[128,8], index: 4, kind: input, shape index: {}]   ;;  %s13816_s5 = inlined_call_operand.vmem [shape: f32[8,128], index: 5, kind: input, shape index: {}]   ;;  %s13817_s6 = inlined_call_operand.vmem [shape: bf16[64,2], index: 6, kind: input, shape index: {}]   ;;  %s13818_s7 = inlined_call_operand.vmem [shape: f32[1,128], index: 7, kind: input, shape index: {}]   ;;  %s13819_s8 = inlined_call_operand.vmem [shape: f32[1,128], index: 8, kind: input, shape index: {}]   ;;  %s13820_s9 = inlined_call_operand.hbm [shape: bf16[1152,128], index: 9, kind: input, shape index: {}]   ;;  %s13821_s10 = inlined_call_operand.vmem [shape: f32[1,128], index: 10, kind: input, shape index: {}]   ;;  %s13822_s11 = inlined_call_operand.vmem [shape: f32[1,128], index: 11, kind: input, shape index: {}]   ;;  %s13823_s12 = inlined_call_operand.vmem [shape: f32[1,128], index: 12, kind: input, shape index: {}]   ;;  %s13824_s13 = inlined_call_operand.hbm [shape: bf16[1152,128], index: 13, kind: input, shape index: {}]   ;;  %s13825_s14 = inlined_call_operand.vmem [shape: f32[1,128], index: 14, kind: input, shape index: {}]   ;;  %s13826_s15 = inlined_call_operand.hbm [shape: f32[2,64,128], index: 15, kind: output, shape index: {}]  }
   0x1   :  { %13936 = sst [smem:[#allocation61_spill]] %s13826_s15 }
   0x2   :  { %20 = vsyncpa [#allocation6], 0 }
   0x3   :  { %21 = vsyncpa [#allocation9], 0 }
   0x4   :  { %22 = vsyncpa [#allocation7], 0 }
   0x5   :  { %24 = vsyncpa [#allocation7 + $0x1], 0  ;;  %s11709_s18 = smov 0   ;;  %s11711_s19 = smov 0  }
   0x6   :  { %s11713_s20 = smov 0   ;;  %s11715_s21 = smov 0  }
   0x7 LB: > { %13937 = sst [smem:[#allocation14_spill]] %s11602_s18  ;;  %s11730_s22 = sadd.s32 4294967295, %s11614_s21   ;;  %s11614_s21 = sphi %s11715_s21, %s14084_s21   ;;  %s11610_s20 = sphi %s11713_s20, %s14087_s20   ;;  %s11606_s19 = sphi %s11711_s19, %s14086_s19   ;;  %s11602_s18 = sphi %s11709_s18, %s14085_s18  }
   0x8   : > { %13938 = sst [smem:[#allocation15_spill]] %s11606_s19  ;;  %s8555_s23 = sadd.s32 4294967294, %s11614_s21  }
   0x9   : > { %13939 = sst [smem:[#allocation16_spill]] %s11610_s20  ;;  %s11734_s24 = sadd.s32 1, %s11614_s21  }
   0xa   : > { %13940 = sst [smem:[#allocation17_spill]] %s11614_s21  ;;  %s357_s25 = sadd.s32 1, %s11610_s20 }
   0xb   : > { %13941 = sst [smem:[#allocation18_spill]] %s11734_s24  ;;  %s354_s26 = ssub.s32 %s11614_s21, %s11734_s24 }
   0xc   : > { %p367_p0 = scmp.ne.s32.totalorder %s11610_s20, %s11606_s19  ;;  %p355_p1 = scmp.eq.s32.totalorder %s354_s26, 0 }
   0xd   : > { %p368_p2 = scmp.eq.s32.totalorder %s11730_s22, 1  ;;  %p373_p3 = scmp.ne.s32.totalorder %s11606_s19, %s11602_s18 }
   0xe   : > { %p374_p4 = scmp.eq.s32.totalorder %s8555_s23, 1  ;;  %p8556_p7 = scmp.ge.s32.totalorder %s11614_s21, 1 }
   0xf   : > { %s11745_s27 = scalar_select %p355_p1, %s11610_s20, %s357_s25  }
  0x10   : > { %p11747_p5 = por %p368_p2, %p367_p0  ;;  %p11751_p6 = por %p374_p4, %p373_p3 }
  0x11   : > { %13942 = sst [smem:[#allocation19_spill]] %s11745_s27  ;;  %p381_p8 = scmp.lt.s32.totalorder %s11614_s21, 3 }
  0x12   : > { %s13943_s28 = scalar_select %p11747_p5, 1, 0 }
  0x13   : > { %s13945_s29 = scalar_select %p11751_p6, 1, 0 }
  0x14   : > { %13944 = sst [smem:[#allocation20_spill]] %s13943_s28  ;;  %p13833_p9 = scmp.eq.s32.totalorder %s11730_s22, 0 }
  0x15   : > { %13946 = sst [smem:[#allocation21_spill]] %s13945_s29  ;;  %p11758_p10 = pnand %p8556_p7, %p381_p8 }
  0x16   : > { %s11616_s16 = smov [#allocation5]   ;;  %s11617_s25 = smov [#allocation8]  }
  0x17   : > { %s13947_s30 = scalar_select %p11758_p10, 1, 0 }
  0x18   : > { %s417_s17 = sshll.u32 %s11616_s16, 4  ;;  %p11263_p11 = pneg %p11758_p10  ;;  %s418_s17 = int_to_ptr.vmem [resolvable:$true] %s417_s17 }
  0x19   : > { %s439_s26 = sshll.u32 %s11617_s25, 4  ;;  %s11488_s24 = scalar_lea.hbm %s13820_s9, 9216  ;;  %s11770_s26 = int_to_ptr.vmem [resolvable:$true] %s439_s26 }
  0x1a   : > { %p11766_p12 = pnand %p13833_p9, %p11263_p11  ;;  %p11489_p13 = scmp.ne.s32.totalorder %s13820_s9, %s11488_s24 }
  0x1b   : > { %p11495_p3 = scmp.lt.u32.totalorder %s11488_s24, %s13820_s9 }
  0x1c   : > { %p11490_p0 = pneg %p11766_p12 }
  0x1e   : > { %p11491_p1 = pnand %p11490_p0, %p11489_p13 }
  0x20   : > { %p11492_p2 = pneg %p11491_p1 }
  0x22   : > { %p11497_p4 = pnand %p11495_p3, %p11492_p2 }
  0x24   : > { %11500 = shalt.err (!%p11497_p4)
}
  0x25   : > { %s11501_s25 = scalar_lea.vmem %s418_s17, 9216  ;;  %p11509_p9 = scmp.lt.s32.totalorder %s418_s17, %s418_s17 }
  0x26   : > { %p11502_p7 = scmp.ne.s32.totalorder %s418_s17, %s11501_s25  ;;  %p11510_p6 = scmp.lt.s32.totalorder %s11501_s25, %s11501_s25 }
  0x28   : > { %p11504_p8 = pnand %p11502_p7, %p11490_p0  ;;  %p11511_p5 = por %p11510_p6, %p11509_p9 }
  0x2a   : > { %p11505_p11 = pneg %p11504_p8 }
  0x2c   : > { %p11512_p10 = pnand %p11511_p5, %p11505_p11 }
  0x2e   : > { %11515 = shalt.err (!%p11512_p10)
}
  0x2f   : > { %s11618_s20 = smov 64   ;;  %s11619_s27 = smov 4  }
  0x30   : > { %11266 = dma.hbm_to_vmem [thread:$0]  (!%p11766_p12), %s13820_s9, 9216, %s418_s17, [#allocation6], %s11618_s20, %s11618_s20, %s11619_s27  }
  0x31   : > { %s11516_s16 = scalar_lea.hbm %s13824_s13, 9216 }
  0x32   : > { %p11517_p13 = scmp.ne.s32.totalorder %s13824_s13, %s11516_s16  ;;  %p11523_p9 = scmp.lt.u32.totalorder %s11516_s16, %s13824_s13 }
  0x34   : > { %p11519_p5 = pnand %p11517_p13, %p11490_p0 }
  0x36   : > { %p11520_p6 = pneg %p11519_p5 }
  0x38   : > { %p11525_p10 = pnand %p11523_p9, %p11520_p6 }
  0x3a   : > { %11528 = shalt.err (!%p11525_p10)
}
  0x3b   : > { %s11529_s17 = scalar_lea.vmem %s11770_s26, 9216  ;;  %p11537_p4 = scmp.lt.s32.totalorder %s11770_s26, %s11770_s26 }
  0x3c   : > { %p11530_p1 = scmp.ne.s32.totalorder %s11770_s26, %s11529_s17  ;;  %p11538_p7 = scmp.lt.s32.totalorder %s11529_s17, %s11529_s17 }
  0x3e   : > { %p11532_p2 = pnand %p11530_p1, %p11490_p0  ;;  %p11539_p8 = por %p11538_p7, %p11537_p4 }
  0x40   : > { %p11533_p3 = pneg %p11532_p2 }
  0x42   : > { %p11540_p11 = pnand %p11539_p8, %p11533_p3 }
  0x44   : > { %11543 = shalt.err (!%p11540_p11)
}
  0x45   : > { %11269 = dma.hbm_to_vmem [thread:$0]  (!%p11766_p12), %s13824_s13, 9216, %s11770_s26, [#allocation9], %s11618_s20, %s11618_s20, %s11619_s27  }
  0x46   : > { %p13949_p13 = scmp.ne.s32.totalorder %s13947_s30, 0 }
  0x48   : > { %466 = sbr.rel (%p13949_p13) target bundleno = 2619 (0xa3b), region = 80 }
  0x4f   : > { %p13950_p5 = scmp.eq.s32.totalorder %s11730_s22, 0 }
  0x51   : > { %11589 = dma.done.wait (%p13950_p5), [#allocation6], 9216   ;;  %p13951_p0 = pmov %p13950_p5 }
  0x53   : > { %11591 = vsyncadd (%p13951_p0), [#allocation6], 4294958080  ;;  %p13952_p6 = pmov %p13951_p0 }
  0x54   : > { %p13953_p9 = pmov %p13951_p0 }
  0x55   : > { %11593 = dma.done.wait (%p13952_p6), [#allocation9], 9216  }
  0x56   : > { %11595 = vsyncadd (%p13953_p9), [#allocation9], 4294958080  ;;  %v13859_v0 = vmov 0.0   ;;  %vm11621_vm0 = vmmov 0   ;;  %p518_p12 = scmp.lt.s32.totalorder %s11730_s22, 1  ;;  %v11327_v1 = vld [vmem:[%s13812_s1] sm:$0xff]  }
  0x57   : > { %9559 = vmatprep.subr.bf16.mxu0 %v13859_v0  ;;  %9575 = vmatprep.mubr.msk.bf16.mxu0 %vm11621_vm0, %v13859_v0  ;;  %v11328_v2 = vld [vmem:[%s13812_s1 + $0x8] sm:$0xff]   ;;  %v11329_v3 = vld [vmem:[%s13812_s1 + $0x10] sm:$0xff]   ;;  %v11330_v4 = vld [vmem:[%s13812_s1 + $0x18] sm:$0xff]   ;;  %vm683_vm1 = vcmask 130048   ;;  %v13857_v24 = vmov 0.0|0.0   ;;  %vm2121_vm2 = vcmask 64512  }
  0x58   : > { %s519_s23 = scalar_select %p518_p12, %s11730_s22, 1  ;;  %9560 = vmatpush3.bf16.msra.mxu0 %v11327_v1  ;;  %v11331_v5 = vld [vmem:[%s13812_s1 + $0x20] sm:$0xff]   ;;  %v11332_v6 = vld [vmem:[%s13812_s1 + $0x28] sm:$0xff]   ;;  %v11333_v7 = vld [vmem:[%s13812_s1 + $0x30] sm:$0xff]   ;;  %vm3531_vm3 = vsmask.f32 7424 }
  0x59   : > { %9561 = vmatprep.subr.bf16.mxu0 %v13859_v0  ;;  %v11334_v8 = vld [vmem:[%s13812_s1 + $0x38] sm:$0xff]   ;;  %v11336_v10 = vld [vmem:[%s13813_s2] sm:$0xff]   ;;  %v11337_v16 = vld [vmem:[%s13813_s2 + $0x8] sm:$0xff]   ;;  %vm3189_vm4 = vsmask.f32 3328  ;;  %vm3298_vm6 = vcmask 1043456  }
  0x5a   : > { %s8743_s27 = sshll.u32 %s519_s23, 3  ;;  %9581 = vmatprep.mubr.msk.bf16.mxu1 %vm683_vm1, %v11336_v10  ;;  %v11338_v17 = vld [vmem:[%s13813_s2 + $0x10] sm:$0xff]   ;;  %v11339_v18 = vld [vmem:[%s13813_s2 + $0x18] sm:$0xff]   ;;  %v11887_v19 = vld [vmem:[%s13815_s4] sm:$0xff]  ;;  %vm3235_vm5 = vsmask.f32 4352 }
  0x5b   : > { %s522_s16 = scalar_lea.vmem %s13811_s0, %s8743_s27  ;;  %v11892_v20 = vld [vmem:[%s13815_s4 + $0x8] sm:$0xff]  ;;  %v822_v21 = vand.u32 4294901760, %v11887_v19  ;;  %v11903_v25 = vld [vmem:[%s13815_s4 + $0x10] sm:$0xff]  ;;  %v11908_v26 = vld [vmem:[%s13815_s4 + $0x18] sm:$0xff]  ;;  %vm3553_vm7 = vsmask.f32 256 }
  0x5c   : > { %9562 = vmatpush3.bf16.msra.mxu0 %v11328_v2  ;;  %v11335_v9 = vld [vmem:[%s522_s16] sm:$0xff]   ;;  %v825_v22 = vand.u32 4294901760, %v11892_v20  ;;  %v828_v27 = vand.u32 4294901760, %v11903_v25  ;;  %v831_v28 = vand.u32 4294901760, %v11908_v26  ;;  %v11930_v31 = vld [vmem:[%s13815_s4 + $0x28] sm:$0xff]  ;;  %v11947_v35 = vld [vmem:[%s13815_s4 + $0x30] sm:$0xff] }
  0x5d   : > { %9563 = vmatprep.subr.bf16.mxu0 %v13859_v0  ;;  %v11925_v30 = vld [vmem:[%s13815_s4 + $0x20] sm:$0xff]  ;;  %v837_v33 = vand.u32 4294901760, %v11930_v31  ;;  %v11952_v36 = vld [vmem:[%s13815_s4 + $0x38] sm:$0xff]  ;;  %v840_v37 = vand.u32 4294901760, %v11947_v35  ;;  %v11974_v41 = vld [vmem:[%s13815_s4 + $0x48] sm:$0xff]  ;;  %v12043_v57 = vsub.f32 %v11887_v19, %v822_v21  ;;  %s14068_s21 = sld [smem:[#allocation15_spill]] }
  0x5e   : > { %v11896_v23 = vpack.c.bf16 %v825_v22, %v822_v21  ;;  %v11920_v29 = vpack.c.bf16 %v831_v28, %v828_v27  ;;  %v834_v32 = vand.u32 4294901760, %v11925_v30  ;;  %v843_v38 = vand.u32 4294901760, %v11952_v36  ;;  %v11969_v40 = vld [vmem:[%s13815_s4 + $0x40] sm:$0xff]  ;;  %v11991_v45 = vld [vmem:[%s13815_s4 + $0x50] sm:$0xff]  ;;  %v11996_v46 = vld [vmem:[%s13815_s4 + $0x58] sm:$0xff]  ;;  %s14077_s17 = sld [smem:[#allocation20_spill]] }
  0x5f   : > { %v846_v42 = vand.u32 4294901760, %v11969_v40  ;;  %v849_v43 = vand.u32 4294901760, %v11974_v41  ;;  %v852_v47 = vand.u32 4294901760, %v11991_v45  ;;  %v855_v48 = vand.u32 4294901760, %v11996_v46  ;;  %v12013_v50 = vld [vmem:[%s13815_s4 + $0x60] sm:$0xff]  ;;  %v12018_v51 = vld [vmem:[%s13815_s4 + $0x68] sm:$0xff] }
  0x60   : > { %9564 = vmatpush3.bf16.msra.mxu0 %v11329_v3  ;;  %v11942_v34 = vpack.c.bf16 %v837_v33, %v834_v32  ;;  %v11964_v39 = vpack.c.bf16 %v843_v38, %v840_v37  ;;  %v858_v52 = vand.u32 4294901760, %v12013_v50  ;;  %v861_v53 = vand.u32 4294901760, %v12018_v51  ;;  %v12035_v55 = vld [vmem:[%s13815_s4 + $0x70] sm:$0xff]  ;;  %v12040_v56 = vld [vmem:[%s13815_s4 + $0x78] sm:$0xff]  ;;  %s8744_s15 = sshll.u32 %s11730_s22, 10  ;;  %s14078_s30 = sld [smem:[#allocation61_spill]] }
  0x61   : > { %9565 = vmatprep.subr.bf16.mxu0 %v13859_v0  ;;  %v11986_v44 = vpack.c.bf16 %v849_v43, %v846_v42  ;;  %v12008_v49 = vpack.c.bf16 %v855_v48, %v852_v47  ;;  %v12046_v58 = vsub.f32 %v11892_v20, %v825_v22  ;;  %v864_v59 = vand.u32 4294901760, %v12035_v55  ;;  %s11626_s20 = smov [#allocation10]  }
  0x62   : > { %v12030_v54 = vpack.c.bf16 %v861_v53, %v858_v52  ;;  %v867_v60 = vand.u32 4294901760, %v12040_v56  ;;  %v13856_v61 = vand.u32 4294901760, %v12043_v57  ;;  %v12071_v3 = vsub.f32 %v11903_v25, %v828_v27  ;;  %s11548_s27 = sshll.u32 %s11626_s20, 4  ;;  %s11549_s27 = int_to_ptr.vmem [resolvable:$false] %s11548_s27 }
  0x63   : > { %v13855_v62 = vand.u32 4294901760, %v12046_v58  ;;  %v12115_v21 = vsub.f32 %v11947_v35, %v840_v37  ;;  %v12120_v22 = vsub.f32 %v11952_v36, %v843_v38  ;;  %s515_s24 = sand.u32 1, %s14068_s21   ;;  %s11550_s18 = scalar_lea.vmem %s11549_s27, 2048 }
  0x64   : > { %9566 = vmatpush3.bf16.msra.mxu0 %v11330_v4  ;;  %v12059_v63 = vpack.c.bf16 %v867_v60, %v864_v59  ;;  %v916_v1 = vsub.f32 %v12043_v57, %v13856_v61  ;;  %v12076_v4 = vsub.f32 %v11908_v26, %v831_v28  ;;  %s8563_s29 = sshll.u32 %s515_s24, 6  ;;  %s13770_s22 = scalar_lea.sflag [#allocation7], %s515_s24 }
  0x65   : > { %9567 = vmatprep.subr.bf16.mxu0 %v13859_v0  ;;  %v923_v2 = vsub.f32 %v12046_v58, %v13855_v62  ;;  %v13850_v27 = vand.u32 4294901760, %v12115_v21  ;;  %v13849_v28 = vand.u32 4294901760, %v12120_v22  ;;  %s13745_s16 = scalar_lea.vmem [#allocation10], %s8563_s29  ;;  %p14079_p1 = scmp.ne.s32.totalorder %s14077_s17, 0 }
  0x66   : > { %s8471_s25 = sshll.u32 %s13745_s16, 4  ;;  %s13764_s23 = scalar_lea.hbm %s14078_s30, %s8744_s15  ;;  %s13757_s25 = int_to_ptr.vmem [resolvable:$true] %s8471_s25 }
  0x67   : > { %v965_v35 = vsub.f32 %v12120_v22, %v13849_v28  ;;  %s11544_s26 = scalar_lea.vmem %s13757_s25, 1024  ;;  %p11551_p4 = scmp.lt.s32.totalorder %s13757_s25, %s11549_s27 }
  0x68   : > { %9568 = vmatpush3.bf16.msra.mxu0 %v11331_v5  ;;  %v917_v5 = vand.u32 4294901760, %v916_v1  ;;  %p11545_p10 = scmp.ne.s32.totalorder %s13757_s25, %s11544_s26  ;;  %p11552_p7 = scmp.lt.s32.totalorder %s11550_s18, %s11544_s26 }
  0x69   : > { %9569 = vmatprep.subr.bf16.mxu0 %v13859_v0  ;;  %v966_v1 = vand.u32 4294901760, %v965_v35 }
  0x6a   : > { %p11546_p2 = pnand %p11545_p10, %p14079_p1  ;;  %p11553_p8 = por %p11552_p7, %p11551_p4 }
  0x6c   : > { %9570 = vmatpush3.bf16.msra.mxu0 %v11332_v6  ;;  %v924_v6 = vand.u32 4294901760, %v923_v2  ;;  %p11547_p3 = pneg %p11546_p2 }
  0x6d   : > { %9571 = vmatprep.subr.bf16.mxu0 %v13859_v0 }
  0x6e   : > { %p11554_p11 = pnand %p11553_p8, %p11547_p3 }
  0x70   : > { %9572 = vmatpush3.bf16.msra.mxu0 %v11333_v7  ;;  %v13854_v7 = vand.u32 4294901760, %v12071_v3 }
  0x71   : > { %9573 = vmatprep.subr.bf16.mxu0 %v13859_v0 }
  0x72   : > { %v930_v10 = vsub.f32 %v12071_v3, %v13854_v7 }
  0x74   : > { %9574 = vmatpush3.bf16.msra.mxu0 %v11334_v8  ;;  %v13853_v8 = vand.u32 4294901760, %v12076_v4 }
  0x75   : > { %10741 = vmatprep.subr.bf16.mxu0 %v13857_v24 }
  0x77   : > { %9576 = vmatmul.mubr.bf16.vlgmr.msra.gmra.mrb[0].mxu0 %v11335_v9  ;;  %v12084_v9 = vpack.c.bf16 %v924_v6, %v917_v5 }
  0x78   : > { %9831 = vmatprep.mubr.msk.f32.mxu0 %vm11621_vm0, %v13859_v0  ;;  %10743 = vmatpush3.bf16.msra.mxu0 %v11896_v23 }
  0x79   : > { %10744 = vmatprep.subr.bf16.mxu0 %v13857_v24 }
  0x7c   : > { %10746 = vmatpush3.bf16.msra.mxu0 %v11920_v29 }
  0x7d   : > { %10747 = vmatprep.subr.bf16.mxu0 %v13857_v24 }
  0x80   : > { %10749 = vmatpush3.bf16.msra.mxu0 %v11942_v34 }
  0x81   : > { %10750 = vmatprep.subr.bf16.mxu0 %v13857_v24 }
  0x84   : > { %10752 = vmatpush3.bf16.msra.mxu0 %v11964_v39 }
  0x85   : > { %10753 = vmatprep.subr.bf16.mxu0 %v13857_v24 }
  0x88   : > { %10755 = vmatpush3.bf16.msra.mxu0 %v11986_v44 }
  0x89   : > { %10756 = vmatprep.subr.bf16.mxu0 %v13857_v24 }
  0x8c   : > { %10758 = vmatpush3.bf16.msra.mxu0 %v12008_v49 }
  0x8d   : > { %10759 = vmatprep.subr.bf16.mxu0 %v13857_v24 }
  0x90   : > { %10761 = vmatpush3.bf16.msra.mxu0 %v12030_v54 }
  0x91   : > { %10762 = vmatprep.subr.bf16.mxu0 %v13857_v24 }
  0x94   : > { %10764 = vmatpush3.bf16.msra.mxu0 %v12059_v63 }
  0x95   : > { %10765 = vmatprep.subr.bf16.mxu0 %v13857_v24 }
 0x14a   : > { %v640_v11 = vpop.f32.mrb[0].mxu0 }
 0x14b   : > { %v9577_v12 = vpop.f32.mrb[1].mxu0 }
 0x14c   : > { %v643_v13 = vpop.f32.mrb[2].mxu0  ;;  %v12095_v12 = vsub.f32 %v11925_v30, %v834_v32  ;;  %v12132_v32 = vsub.f32 %v11969_v40, %v846_v42 }
 0x14d   : > { %v655_v14 = vpack.c.bf16 %v643_v13, %v640_v11  ;;  %v9578_v15 = vpop.f32.mrb[3].mxu0  ;;  %v937_v11 = vsub.f32 %v12076_v4, %v13853_v8  ;;  %v12100_v13 = vsub.f32 %v11930_v31, %v837_v33  ;;  %v958_v31 = vsub.f32 %v12115_v21, %v13850_v27 }
 0x14e   : > { %v12137_v33 = vsub.f32 %v11974_v41, %v849_v43  ;;  %v13848_v37 = vand.u32 4294901760, %v12132_v32  ;;  %v12153_v41 = vsub.f32 %v11991_v45, %v852_v47  ;;  %v12158_v43 = vsub.f32 %v11996_v46, %v855_v48 }
 0x14f   : > { %9579 = vmatprep.subr.bf16.mxu1 %v655_v14  ;;  %v938_v15 = vand.u32 4294901760, %v937_v11  ;;  %v959_v36 = vand.u32 4294901760, %v958_v31  ;;  %v12175_v46 = vsub.f32 %v12013_v50, %v858_v52  ;;  %v12180_v48 = vsub.f32 %v12018_v51, %v861_v53 }
 0x150   : > { %9580 = vmatpush3.bf16.msra.mxu1 %v655_v14  ;;  %v931_v14 = vand.u32 4294901760, %v930_v10  ;;  %v13847_v38 = vand.u32 4294901760, %v12137_v33  ;;  %v972_v40 = vsub.f32 %v12132_v32, %v13848_v37  ;;  %v13846_v10 = vand.u32 4294901760, %v12153_v41 }
 0x151   : > { %10597 = vmatprep.subr.bf16.mxu1 %v13857_v24  ;;  %v12160_v2 = vpack.c.bf16 %v966_v1, %v959_v36  ;;  %v13845_v11 = vand.u32 4294901760, %v12158_v43  ;;  %v12192_v50 = vsub.f32 %v12035_v55, %v864_v59  ;;  %v12197_v51 = vsub.f32 %v12040_v56, %v867_v60 }
 0x152   : > { %v979_v42 = vsub.f32 %v12137_v33, %v13847_v38  ;;  %v973_v5 = vand.u32 4294901760, %v972_v40  ;;  %v986_v45 = vsub.f32 %v12153_v41, %v13846_v10 }
 0x153   : > { %9582 = vmatmul.mubr.msk.bf16.vlgmr.msra.gmra.mrb[0].mxu1 %vm683_vm1, %v11337_v16  ;;  %v13852_v16 = vand.u32 4294901760, %v12095_v12  ;;  %v993_v47 = vsub.f32 %v12158_v43, %v13845_v11  ;;  %v13842_v35 = vand.u32 4294901760, %v12192_v50  ;;  %v13841_v36 = vand.u32 4294901760, %v12197_v51 }
 0x154   : > { %9585 = vmatprep.mubr.msk.bf16.mxu1 %vm683_vm1, %v11338_v17  ;;  %10599 = vmatpush3.bf16.msra.mxu1 %v11896_v23  ;;  %v13851_v17 = vand.u32 4294901760, %v12100_v13  ;;  %v980_v6 = vand.u32 4294901760, %v979_v42 }
 0x155   : > { %10600 = vmatprep.subr.bf16.mxu1 %v13857_v24  ;;  %v944_v19 = vsub.f32 %v12095_v12, %v13852_v16  ;;  %v1014_v55 = vsub.f32 %v12192_v50, %v13842_v35  ;;  %v1021_v59 = vsub.f32 %v12197_v51, %v13841_v36 }
 0x156   : > { %v951_v20 = vsub.f32 %v12100_v13, %v13851_v17 }
 0x157   : > { %v945_v25 = vand.u32 4294901760, %v944_v19  ;;  %v994_v19 = vand.u32 4294901760, %v993_v47  ;;  %v1015_v60 = vand.u32 4294901760, %v1014_v55  ;;  %v1022_v40 = vand.u32 4294901760, %v1021_v59 }
 0x158   : > { %10602 = vmatpush3.bf16.msra.mxu1 %v11920_v29  ;;  %v952_v26 = vand.u32 4294901760, %v951_v20  ;;  %v13844_v20 = vand.u32 4294901760, %v12175_v46  ;;  %v12228_v47 = vpack.c.bf16 %v12120_v22, %v12115_v21 }
 0x159   : > { %10603 = vmatprep.subr.bf16.mxu1 %v13857_v24  ;;  %v12212_v42 = vpack.c.bf16 %v1022_v40, %v1015_v60 }
 0x15a   : > { %v12124_v30 = vpack.c.bf16 %v952_v26, %v945_v25  ;;  %v13843_v25 = vand.u32 4294901760, %v12180_v48  ;;  %v1000_v31 = vsub.f32 %v12175_v46, %v13844_v20 }
 0x15b   : > { %9586 = vmatmul.mubr.msk.bf16.gmra.mrb[4].mxu1 %vm683_vm1, %v11339_v18  ;;  %v12104_v18 = vpack.c.bf16 %v938_v15, %v931_v14  ;;  %v12164_v14 = vpack.c.bf16 %v980_v6, %v973_v5  ;;  %v987_v15 = vand.u32 4294901760, %v986_v45  ;;  %v12216_v5 = vpack.c.bf16 %v12046_v58, %v12043_v57 }
 0x15c   : > { %9621 = vmatprep.mubr.msk.f32.mxu1 %vm11621_vm0, %v13859_v0  ;;  %10605 = vmatpush3.bf16.msra.mxu1 %v11942_v34  ;;  %v1007_v52 = vsub.f32 %v12180_v48, %v13843_v25  ;;  %v1001_v53 = vand.u32 4294901760, %v1000_v31  ;;  %v12220_v6 = vpack.c.bf16 %v12076_v4, %v12071_v3  ;;  %v12224_v45 = vpack.c.bf16 %v12100_v13, %v12095_v12 }
 0x15d   : > { %10606 = vmatprep.subr.bf16.mxu1 %v13857_v24  ;;  %v12184_v26 = vpack.c.bf16 %v994_v19, %v987_v15  ;;  %v12232_v15 = vpack.c.bf16 %v12137_v33, %v12132_v32  ;;  %v12236_v19 = vpack.c.bf16 %v12158_v43, %v12153_v41  ;;  %v12240_v31 = vpack.c.bf16 %v12180_v48, %v12175_v46 }
 0x15e   : > { %v1008_v1 = vand.u32 4294901760, %v1007_v52  ;;  %v12244_v52 = vpack.c.bf16 %v12197_v51, %v12192_v50 }
 0x160   : > { %10608 = vmatpush3.bf16.msra.mxu1 %v11964_v39  ;;  %v12210_v56 = vpack.c.bf16 %v1008_v1, %v1001_v53  ;;  %v8575_v53 = vld [vmem:[%s13814_s3] ss:$0 sm:$0xff] }
 0x161   : > { %10609 = vmatprep.subr.bf16.mxu1 %v13857_v24 }
 0x164   : > { %10611 = vmatpush3.bf16.msra.mxu1 %v11986_v44 }
 0x165   : > { %10612 = vmatprep.subr.bf16.mxu1 %v13857_v24 }
 0x168   : > { %10614 = vmatpush3.bf16.msra.mxu1 %v12008_v49 }
 0x169   : > { %10615 = vmatprep.subr.bf16.mxu1 %v13857_v24 }
 0x16c   : > { %10617 = vmatpush3.bf16.msra.mxu1 %v12030_v54 }
 0x16d   : > { %10618 = vmatprep.subr.bf16.mxu1 %v13857_v24 }
 0x170   : > { %10620 = vmatpush3.bf16.msra.mxu1 %v12059_v63 }
 0x171   : > { %10621 = vmatprep.subr.bf16.mxu1 %v13857_v24 }
 0x226   : > { %v9583_v1 = vpop.f32.mrb[0].mxu1 }
 0x227   : > { %v730_v55 = vpop.f32.mrb[1].mxu1  ;;  %v12251_v36 = vadd.f32 %v9583_v1, %v8575_v53 }
 0x228   : > { %v12249_v59 = vadd.f32 %v8575_v53, %v730_v55  ;;  %v9584_v60 = vpop.f32.mrb[2].mxu1 }
 0x229   : > { %v733_v40 = vpop.f32.mrb[3].mxu1  ;;  %13955 = vst [vmem:[#allocation23_spill] sm:$0xff] %v12251_v36  ;;  %v12257_v20 = vadd.f32 %v9584_v60, %v8575_v53  ;;  %v786_v55 = vmul.f32 %v12251_v36, %v12251_v36 }
 0x22a   : > { %13954 = vst [vmem:[#allocation22_spill] sm:$0xff] %v12249_v59  ;;  %v12253_v35 = vadd.f32 %v8575_v53, %v733_v40  ;;  %v784_v25 = vmul.f32 %v12249_v59, %v12249_v59 }
 0x22b   : > { %13957 = vst [vmem:[#allocation25_spill] sm:$0xff] %v12257_v20  ;;  %v787_v28 = vmul.f32 %v12257_v20, %v12257_v20 }
 0x22c   : > { %13956 = vst [vmem:[#allocation24_spill] sm:$0xff] %v12253_v35  ;;  %v771_v11 = vadd.f32 %v12253_v35, %v12249_v59  ;;  %v785_v10 = vmul.f32 %v12253_v35, %v12253_v35 }
 0x22e   : > { %v772_v38 = vadd.f32 %v771_v11, %v12251_v36  ;;  %v792_v1 = vadd.f32 %v785_v10, %v784_v25  ;;  %v9587_v37 = vpop.f32.mrb[4].mxu1 }
 0x22f   : > { %v746_v40 = vpop.f32.mrb[5].mxu1  ;;  %v12271_v8 = vadd.f32 %v9587_v37, %v8575_v53 }
 0x230   : > { %v793_v27 = vadd.f32 %v792_v1, %v786_v55  ;;  %v12268_v60 = vadd.f32 %v8575_v53, %v746_v40  ;;  %v773_v17 = vadd.f32 %v772_v38, %v12257_v20  ;;  %v9588_v16 = vpop.f32.mrb[6].mxu1 }
 0x231   : > { %13959 = vst [vmem:[#allocation27_spill] sm:$0xff] %v12271_v8  ;;  %v749_v7 = vpop.f32.mrb[7].mxu1  ;;  %v12278_v24 = vadd.f32 %v9588_v16, %v8575_v53  ;;  %v790_v37 = vmul.f32 %v12271_v8, %v12271_v8 }
 0x232   : > { %13958 = vst [vmem:[#allocation26_spill] sm:$0xff] %v12268_v60  ;;  %v774_v62 = vadd.f32 %v773_v17, %v12268_v60  ;;  %v788_v11 = vmul.f32 %v12268_v60, %v12268_v60  ;;  %v794_v10 = vadd.f32 %v793_v27, %v787_v28  ;;  %v12276_v25 = vadd.f32 %v8575_v53, %v749_v7 }
 0x233   : > { %13961 = vst [vmem:[#allocation29_spill] sm:$0xff] %v12278_v24  ;;  %v791_v40 = vmul.f32 %v12278_v24, %v12278_v24 }
 0x234   : > { %13960 = vst [vmem:[#allocation28_spill] sm:$0xff] %v12276_v25  ;;  %v795_v61 = vadd.f32 %v794_v10, %v788_v11  ;;  %v775_v55 = vadd.f32 %v774_v62, %v12276_v25  ;;  %v789_v38 = vmul.f32 %v12276_v25, %v12276_v25 }
 0x236   : > { %v776_v1 = vadd.f32 %v775_v55, %v12271_v8  ;;  %v796_v17 = vadd.f32 %v795_v61, %v789_v38 }
 0x238   : > { %v777_v7 = vadd.f32 %v776_v1, %v12278_v24  ;;  %v797_v27 = vadd.f32 %v796_v17, %v790_v37 }
 0x23a   : > { %v778_v28 = vrot.slane %v777_v7, 4  ;;  %v798_v16 = vadd.f32 %v797_v27, %v791_v40 }
 0x23c   : > { %v779_v53 = vadd.f32 %v778_v28, %v777_v7  ;;  %v799_v11 = vrot.slane %v798_v16, 4 }
 0x23e   : > { %v780_v62 = vrot.slane %v779_v53, 2  ;;  %v800_v10 = vadd.f32 %v799_v11, %v798_v16  ;;  %v11624_v11 = vmov 1  }
 0x240   : > { %v781_v0 = vadd.f32 %v780_v62, %v779_v53  ;;  %v801_v25 = vrot.slane %v800_v10, 2  ;;  %v2110_v62 = vlaneseq }
 0x242   : > { %v782_v60 = vrot.slane %v781_v0, 1  ;;  %v802_v20 = vadd.f32 %v801_v25, %v800_v10  ;;  %v13963_v25 = vmov 0.0|0.0   ;;  %v12547_v10 = vshrl.u32 %v2110_v62, 7 }
 0x244   : > { %v783_v36 = vadd.f32 %v782_v60, %v781_v0  ;;  %v803_v35 = vrot.slane %v802_v20, 1 }
 0x246   : > { %v12289_v55 = vand.u32 4294901760, %v783_v36  ;;  %v804_v61 = vadd.f32 %v803_v35, %v802_v20 }
 0x248   : > { %v12292_v38 = vsub.f32 %v783_v36, %v12289_v55  ;;  %v12294_v1 = vand.u32 4294901760, %v804_v61  ;;  %v13962_v36 = vmov 0.0  }
 0x24a   : > { %v904_v37 = vand.u32 4294901760, %v12292_v38  ;;  %v12298_v17 = vsub.f32 %v804_v61, %v12294_v1 }
 0x24c   : > { %v905_v40 = vsub.f32 %v12292_v38, %v904_v37  ;;  %v1545_v0 = vand.u32 4294901760, %v12298_v17 }
 0x24e   : > { %v906_v60 = vand.u32 4294901760, %v905_v40  ;;  %v1546_v20 = vsub.f32 %v12298_v17, %v1545_v0 }
 0x250   : > { %9622 = vmatmul.mubr.f32.vlgmr.msra.gmra.mrb[8].mxu1 %v906_v60  ;;  %v1547_v35 = vand.u32 4294901760, %v1546_v20 }
 0x251   : > { %10623 = vmatpush3.bf16.msra.mxu1 %v12084_v9  ;;  %9656 = vmatprep.mubr.msk.f32.mxu1 %vm11621_vm0, %v13962_v36 }
 0x252   : > { %9832 = vmatmul.mubr.f32.vlgmr.msra.gmra.mrb[4].mxu0 %v1547_v35  ;;  %10624 = vmatprep.subr.bf16.mxu1 %v13963_v25 }
 0x253   : > { %10767 = vmatpush3.bf16.msra.mxu0 %v12084_v9  ;;  %9866 = vmatprep.mubr.msk.f32.mxu0 %vm11621_vm0, %v13962_v36  ;;  %v13964_v9 = vand.u32 4294901760, %v12043_v57  ;;  %v13968_v57 = vand.u32 4294901760, %v12095_v12  ;;  %v13972_v12 = vand.u32 4294901760, %v12132_v32  ;;  %v13976_v32 = vand.u32 4294901760, %v12175_v46  ;;  %v530_v46 = vld [vmem:[%s13817_s6 + $0x10] sm:$0xf] }
 0x254   : > { %10768 = vmatprep.subr.bf16.mxu0 %v13963_v25 }
 0x255   : > { %10626 = vmatpush3.bf16.msra.mxu1 %v12104_v18 }
 0x256   : > { %10627 = vmatprep.subr.bf16.mxu1 %v13963_v25 }
 0x257   : > { %10770 = vmatpush3.bf16.msra.mxu0 %v12104_v18  ;;  %v13965_v18 = vand.u32 4294901760, %v12046_v58  ;;  %v13969_v58 = vand.u32 4294901760, %v12100_v13  ;;  %v13973_v13 = vand.u32 4294901760, %v12137_v33  ;;  %v13977_v33 = vand.u32 4294901760, %v12180_v48 }
 0x258   : > { %10771 = vmatprep.subr.bf16.mxu0 %v13963_v25 }
 0x259   : > { %10629 = vmatpush3.bf16.msra.mxu1 %v12124_v30 }
 0x25a   : > { %10630 = vmatprep.subr.bf16.mxu1 %v13963_v25 }
 0x25b   : > { %10773 = vmatpush3.bf16.msra.mxu0 %v12124_v30  ;;  %v10694_v30 = vpack.c.bf16 %v13965_v18, %v13964_v9 }
 0x25c   : > { %10774 = vmatprep.subr.bf16.mxu0 %v13963_v25 }
 0x25d   : > { %10632 = vmatpush3.bf16.msra.mxu1 %v12160_v2 }
 0x25e   : > { %10633 = vmatprep.subr.bf16.mxu1 %v13963_v25 }
 0x25f   : > { %10776 = vmatpush3.bf16.msra.mxu0 %v12160_v2  ;;  %v13966_v2 = vand.u32 4294901760, %v12071_v3  ;;  %v10700_v3 = vpack.c.bf16 %v13969_v58, %v13968_v57 }
 0x260   : > { %10777 = vmatprep.subr.bf16.mxu0 %v13963_v25 }
 0x261   : > { %10635 = vmatpush3.bf16.msra.mxu1 %v12164_v14 }
 0x262   : > { %10636 = vmatprep.subr.bf16.mxu1 %v13963_v25 }
 0x263   : > { %10779 = vmatpush3.bf16.msra.mxu0 %v12164_v14  ;;  %v13967_v14 = vand.u32 4294901760, %v12076_v4  ;;  %v13970_v4 = vand.u32 4294901760, %v12115_v21  ;;  %v13974_v21 = vand.u32 4294901760, %v12153_v41  ;;  %v13978_v41 = vand.u32 4294901760, %v12192_v50 }
 0x264   : > { %10780 = vmatprep.subr.bf16.mxu0 %v13963_v25 }
 0x265   : > { %10638 = vmatpush3.bf16.msra.mxu1 %v12184_v26 }
 0x266   : > { %10639 = vmatprep.subr.bf16.mxu1 %v13963_v25 }
 0x267   : > { %10782 = vmatpush3.bf16.msra.mxu0 %v12184_v26  ;;  %v10697_v26 = vpack.c.bf16 %v13967_v14, %v13966_v2 }
 0x268   : > { %10783 = vmatprep.subr.bf16.mxu0 %v13963_v25 }
 0x269   : > { %10641 = vmatpush3.bf16.msra.mxu1 %v12210_v56 }
 0x26a   : > { %10642 = vmatprep.subr.bf16.mxu1 %v13963_v25 }
 0x26b   : > { %10785 = vmatpush3.bf16.msra.mxu0 %v12210_v56  ;;  %v13971_v56 = vand.u32 4294901760, %v12120_v22  ;;  %v13975_v22 = vand.u32 4294901760, %v12158_v43  ;;  %v13979_v43 = vand.u32 4294901760, %v12197_v51 }
 0x26c   : > { %10786 = vmatprep.subr.bf16.mxu0 %v13963_v25 }
 0x26d   : > { %10644 = vmatpush3.bf16.msra.mxu1 %v12212_v42 }
 0x26e   : > { %10645 = vmatprep.subr.bf16.mxu1 %v13963_v25 }
 0x26f   : > { %10788 = vmatpush3.bf16.msra.mxu0 %v12212_v42  ;;  %v10703_v42 = vpack.c.bf16 %v13971_v56, %v13970_v4 }
 0x270   : > { %9657 = vmatmul.mubr.f32.vlgmr.msra.gmra.mrb[8].mxu1 %v12289_v55  ;;  %10789 = vmatprep.subr.bf16.mxu0 %v13963_v25 }
 0x271   : > { %10647 = vmatpush3.bf16.msra.mxu1 %v12216_v5  ;;  %9691 = vmatprep.mubr.msk.f32.mxu1 %vm11621_vm0, %v13962_v36 }
 0x272   : > { %9867 = vmatmul.mubr.f32.vlgmr.msra.gmra.mrb[4].mxu0 %v12294_v1  ;;  %10648 = vmatprep.subr.bf16.mxu1 %v13963_v25 }
 0x273   : > { %10791 = vmatpush3.bf16.msra.mxu0 %v12216_v5  ;;  %9901 = vmatprep.mubr.msk.f32.mxu0 %vm11621_vm0, %v13962_v36  ;;  %v10706_v5 = vpack.c.bf16 %v13973_v13, %v13972_v12  ;;  %v11341_v12 = vld [vmem:[#allocation5] sm:$0xff]  }
 0x274   : > { %10792 = vmatprep.subr.bf16.mxu0 %v13963_v25  ;;  %v11342_v13 = vld [vmem:[#allocation5 + $0xc0] sm:$0xff]  }
 0x275   : > { %10650 = vmatpush3.bf16.msra.mxu1 %v12220_v6 }
 0x276   : > { %10651 = vmatprep.subr.bf16.mxu1 %v13963_v25 }
 0x277   : > { %10794 = vmatpush3.bf16.msra.mxu0 %v12220_v6  ;;  %v10709_v6 = vpack.c.bf16 %v13975_v22, %v13974_v21  ;;  %v11344_v21 = vld [vmem:[#allocation5 + $0x48] sm:$0xff]  }
 0x278   : > { %10795 = vmatprep.subr.bf16.mxu0 %v13963_v25  ;;  %v11345_v22 = vld [vmem:[#allocation5 + $0x8] sm:$0xff]  }
 0x279   : > { %10653 = vmatpush3.bf16.msra.mxu1 %v12224_v45 }
 0x27a   : > { %10654 = vmatprep.subr.bf16.mxu1 %v13963_v25 }
 0x27b   : > { %10797 = vmatpush3.bf16.msra.mxu0 %v12224_v45  ;;  %v10712_v45 = vpack.c.bf16 %v13977_v33, %v13976_v32  ;;  %v11347_v32 = vld [vmem:[#allocation5 + $0x88] sm:$0xff]   ;;  %v11348_v33 = vld [vmem:[#allocation5 + $0x50] sm:$0xff]  }
 0x27c   : > { %10798 = vmatprep.subr.bf16.mxu0 %v13963_v25 }
 0x27d   : > { %10656 = vmatpush3.bf16.msra.mxu1 %v12228_v47 }
 0x27e   : > { %10657 = vmatprep.subr.bf16.mxu1 %v13963_v25 }
 0x27f   : > { %10800 = vmatpush3.bf16.msra.mxu0 %v12228_v47  ;;  %v10715_v47 = vpack.c.bf16 %v13979_v43, %v13978_v41  ;;  %v11350_v41 = vld [vmem:[#allocation5 + $0xd0] sm:$0xff]  }
 0x280   : > { %10801 = vmatprep.subr.bf16.mxu0 %v13963_v25  ;;  %v11351_v43 = vld [vmem:[#allocation5 + $0x90] sm:$0xff]  }
 0x281   : > { %10659 = vmatpush3.bf16.msra.mxu1 %v12232_v15 }
 0x282   : > { %10660 = vmatprep.subr.bf16.mxu1 %v13963_v25 }
 0x283   : > { %10803 = vmatpush3.bf16.msra.mxu0 %v12232_v15 }
 0x284   : > { %10804 = vmatprep.subr.bf16.mxu0 %v13963_v25 }
 0x285   : > { %10662 = vmatpush3.bf16.msra.mxu1 %v12236_v19 }
 0x286   : > { %10663 = vmatprep.subr.bf16.mxu1 %v13963_v25 }
 0x287   : > { %10806 = vmatpush3.bf16.msra.mxu0 %v12236_v19  ;;  %v533_v19 = vld [vmem:[%s13817_s6 + $0x1c] sm:$0xf] }
 0x288   : > { %10807 = vmatprep.subr.bf16.mxu0 %v13963_v25 }
 0x289   : > { %10665 = vmatpush3.bf16.msra.mxu1 %v12240_v31 }
 0x28a   : > { %10666 = vmatprep.subr.bf16.mxu1 %v13963_v25 }
 0x28b   : > { %10809 = vmatpush3.bf16.msra.mxu0 %v12240_v31  ;;  %v532_v31 = vld [vmem:[%s13817_s6 + $0x18] sm:$0xf] }
 0x28c   : > { %10810 = vmatprep.subr.bf16.mxu0 %v13963_v25 }
 0x28d   : > { %10668 = vmatpush3.bf16.msra.mxu1 %v12244_v52 }
 0x28e   : > { %10669 = vmatprep.subr.bf16.mxu1 %v13963_v25 }
 0x28f   : > { %10812 = vmatpush3.bf16.msra.mxu0 %v12244_v52 }
 0x290   : > { %9692 = vmatmul.mubr.f32.vlgmr.msra.gmra.mrb[8].mxu1 %v12292_v38  ;;  %10813 = vmatprep.subr.bf16.mxu0 %v13963_v25 }
 0x291   : > { %10671 = vmatpush3.bf16.msra.mxu1 %v11896_v23  ;;  %9726 = vmatprep.mubr.msk.f32.mxu1 %vm11621_vm0, %v13962_v36 }
 0x292   : > { %9902 = vmatmul.mubr.f32.vlgmr.msra.gmra.mrb[4].mxu0 %v12298_v17  ;;  %10672 = vmatprep.subr.bf16.mxu1 %v13963_v25 }
 0x293   : > { %10815 = vmatpush3.bf16.msra.mxu0 %v11896_v23  ;;  %9936 = vmatprep.mubr.msk.f32.mxu0 %vm11621_vm0, %v13962_v36 }
 0x294   : > { %10816 = vmatprep.subr.bf16.mxu0 %v13963_v25 }
 0x295   : > { %10674 = vmatpush3.bf16.msra.mxu1 %v11920_v29 }
 0x296   : > { %10675 = vmatprep.subr.bf16.mxu1 %v13963_v25 }
 0x297   : > { %10818 = vmatpush3.bf16.msra.mxu0 %v11920_v29 }
 0x298   : > { %10819 = vmatprep.subr.bf16.mxu0 %v13963_v25 }
 0x299   : > { %10677 = vmatpush3.bf16.msra.mxu1 %v11942_v34 }
 0x29a   : > { %10678 = vmatprep.subr.bf16.mxu1 %v13963_v25 }
 0x29b   : > { %10821 = vmatpush3.bf16.msra.mxu0 %v11942_v34 }
 0x29c   : > { %10822 = vmatprep.subr.bf16.mxu0 %v13963_v25 }
 0x29d   : > { %10680 = vmatpush3.bf16.msra.mxu1 %v11964_v39 }
 0x29e   : > { %10681 = vmatprep.subr.bf16.mxu1 %v13963_v25 }
 0x29f   : > { %10824 = vmatpush3.bf16.msra.mxu0 %v11964_v39 }
 0x2a0   : > { %10825 = vmatprep.subr.bf16.mxu0 %v13963_v25 }
 0x2a1   : > { %10683 = vmatpush3.bf16.msra.mxu1 %v11986_v44 }
 0x2a2   : > { %10684 = vmatprep.subr.bf16.mxu1 %v13963_v25 }
 0x2a3   : > { %10827 = vmatpush3.bf16.msra.mxu0 %v11986_v44 }
 0x2a4   : > { %10828 = vmatprep.subr.bf16.mxu0 %v13963_v25 }
 0x2a5   : > { %10686 = vmatpush3.bf16.msra.mxu1 %v12008_v49 }
 0x2a6   : > { %10687 = vmatprep.subr.bf16.mxu1 %v13963_v25 }
 0x2a7   : > { %10830 = vmatpush3.bf16.msra.mxu0 %v12008_v49 }
 0x2a8   : > { %10831 = vmatprep.subr.bf16.mxu0 %v13963_v25 }
 0x2a9   : > { %10689 = vmatpush3.bf16.msra.mxu1 %v12030_v54 }
 0x2aa   : > { %10690 = vmatprep.subr.bf16.mxu1 %v13963_v25 }
 0x2ab   : > { %10833 = vmatpush3.bf16.msra.mxu0 %v12030_v54 }
 0x2ac   : > { %10834 = vmatprep.subr.bf16.mxu0 %v13963_v25 }
 0x2ad   : > { %10692 = vmatpush3.bf16.msra.mxu1 %v12059_v63 }
 0x2ae   : > { %10693 = vmatprep.subr.bf16.mxu1 %v13963_v25 }
 0x2af   : > { %10836 = vmatpush3.bf16.msra.mxu0 %v12059_v63 }
 0x2b0   : > { %9727 = vmatmul.mubr.f32.vlgmr.msra.gmra.mrb[8].mxu1 %v904_v37  ;;  %10837 = vmatprep.subr.bf16.mxu0 %v13963_v25 }
 0x2b1   : > { %10695 = vmatpush3.bf16.msra.mxu1 %v10694_v30  ;;  %9761 = vmatprep.mubr.msk.f32.mxu1 %vm11621_vm0, %v13962_v36 }
 0x2b2   : > { %9937 = vmatmul.mubr.f32.vlgmr.msra.gmra.mrb[4].mxu0 %v1545_v0  ;;  %10696 = vmatprep.subr.bf16.mxu1 %v13963_v25 }
 0x2b3   : > { %10839 = vmatpush3.bf16.msra.mxu0 %v10694_v30  ;;  %9971 = vmatprep.mubr.msk.f32.mxu0 %vm11621_vm0, %v13962_v36 }
 0x2b4   : > { %10840 = vmatprep.subr.bf16.mxu0 %v13963_v25 }
 0x2b5   : > { %10698 = vmatpush3.bf16.msra.mxu1 %v10697_v26 }
 0x2b6   : > { %10699 = vmatprep.subr.bf16.mxu1 %v13963_v25 }
 0x2b7   : > { %10842 = vmatpush3.bf16.msra.mxu0 %v10697_v26 }
 0x2b8   : > { %10843 = vmatprep.subr.bf16.mxu0 %v13963_v25 }
 0x2b9   : > { %10701 = vmatpush3.bf16.msra.mxu1 %v10700_v3 }
 0x2ba   : > { %10702 = vmatprep.subr.bf16.mxu1 %v13963_v25 }
 0x2bb   : > { %10845 = vmatpush3.bf16.msra.mxu0 %v10700_v3 }
 0x2bc   : > { %10846 = vmatprep.subr.bf16.mxu0 %v13963_v25 }
 0x2bd   : > { %10704 = vmatpush3.bf16.msra.mxu1 %v10703_v42 }
 0x2be   : > { %10705 = vmatprep.subr.bf16.mxu1 %v13963_v25 }
 0x2bf   : > { %10848 = vmatpush3.bf16.msra.mxu0 %v10703_v42  ;;  %v11340_v42 = vld [vmem:[#allocation5 + $0x40] sm:$0xff]  }
 0x2c0   : > { %10849 = vmatprep.subr.bf16.mxu0 %v13963_v25 }
 0x2c1   : > { %10707 = vmatpush3.bf16.msra.mxu1 %v10706_v5 }
 0x2c2   : > { %10708 = vmatprep.subr.bf16.mxu1 %v13963_v25 }
 0x2c3   : > { %10851 = vmatpush3.bf16.msra.mxu0 %v10706_v5  ;;  %v11343_v5 = vld [vmem:[#allocation5 + $0x80] sm:$0xff]  }
 0x2c4   : > { %10852 = vmatprep.subr.bf16.mxu0 %v13963_v25 }
 0x2c5   : > { %10710 = vmatpush3.bf16.msra.mxu1 %v10709_v6 }
 0x2c6   : > { %10711 = vmatprep.subr.bf16.mxu1 %v13963_v25 }
 0x2c7   : > { %10854 = vmatpush3.bf16.msra.mxu0 %v10709_v6  ;;  %v11346_v6 = vld [vmem:[#allocation5 + $0xc8] sm:$0xff]  }
 0x2c8   : > { %10855 = vmatprep.subr.bf16.mxu0 %v13963_v25 }
 0x2c9   : > { %10713 = vmatpush3.bf16.msra.mxu1 %v10712_v45 }
 0x2ca   : > { %10714 = vmatprep.subr.bf16.mxu1 %v13963_v25 }
 0x2cb   : > { %10857 = vmatpush3.bf16.msra.mxu0 %v10712_v45  ;;  %v11349_v45 = vld [vmem:[#allocation5 + $0x10] sm:$0xff]  }
 0x2cc   : > { %10858 = vmatprep.subr.bf16.mxu0 %v13963_v25 }
 0x2cd   : > { %10716 = vmatpush3.bf16.msra.mxu1 %v10715_v47 }
 0x2ce   : > { %10717 = vmatprep.subr.bf16.mxu1 %v13963_v25 }
 0x2cf   : > { %10860 = vmatpush3.bf16.msra.mxu0 %v10715_v47  ;;  %v11352_v47 = vld [vmem:[#allocation5 + $0x58] sm:$0xff]  }
 0x2d0   : > { %9762 = vmatmul.mubr.f32.vlgmr.msra.gmra.mrb[8].mxu1 %v12289_v55  ;;  %10861 = vmatprep.subr.bf16.mxu0 %v13963_v25 }
 0x2d1   : > { %10719 = vmatpush3.bf16.msra.mxu1 %v11896_v23  ;;  %9796 = vmatprep.mubr.msk.f32.mxu1 %vm11621_vm0, %v13962_v36 }
 0x2d2   : > { %9972 = vmatmul.mubr.f32.vlgmr.msra.gmra.mrb[4].mxu0 %v12294_v1  ;;  %10720 = vmatprep.subr.bf16.mxu1 %v13963_v25 }
 0x2d3   : > { %10863 = vmatpush3.bf16.msra.mxu0 %v11896_v23  ;;  %10006 = vmatprep.mubr.msk.f32.mxu0 %vm11621_vm0, %v13962_v36  ;;  %v2120_v23 = vld [vmem:[%s13816_s5] sm:$0xff] }
 0x2d4   : > { %10864 = vmatprep.subr.bf16.mxu0 %v13963_v25 }
 0x2d5   : > { %10722 = vmatpush3.bf16.msra.mxu1 %v11920_v29 }
 0x2d6   : > { %10723 = vmatprep.subr.bf16.mxu1 %v13963_v25 }
 0x2d7   : > { %10866 = vmatpush3.bf16.msra.mxu0 %v11920_v29  ;;  %v12519_v29 = vand.u32 4294901760, %v2120_v23 }
 0x2d8   : > { %10867 = vmatprep.subr.bf16.mxu0 %v13963_v25 }
 0x2d9   : > { %10725 = vmatpush3.bf16.msra.mxu1 %v11942_v34  ;;  %v2203_v38 = vsub.f32 %v2120_v23, %v12519_v29  ;;  %v11353_v23 = vld [vmem:[#allocation5 + $0x18] sm:$0xff]  }
 0x2da   : > { %10726 = vmatprep.subr.bf16.mxu1 %v13963_v25 }
 0x2db   : > { %10869 = vmatpush3.bf16.msra.mxu0 %v11942_v34  ;;  %v528_v34 = vld [vmem:[%s13817_s6 + $0x8] sm:$0xf]  ;;  %v2204_v0 = vand.u32 4294901760, %v2203_v38 }
 0x2dc   : > { %10870 = vmatprep.subr.bf16.mxu0 %v13963_v25 }
 0x2dd   : > { %10728 = vmatpush3.bf16.msra.mxu1 %v11964_v39  ;;  %v2205_v35 = vsub.f32 %v2203_v38, %v2204_v0 }
 0x2de   : > { %10729 = vmatprep.subr.bf16.mxu1 %v13963_v25 }
 0x2df   : > { %10872 = vmatpush3.bf16.msra.mxu0 %v11964_v39  ;;  %v526_v39 = vld [vmem:[%s13817_s6] sm:$0xf]  ;;  %v2206_v30 = vand.u32 4294901760, %v2205_v35 }
 0x2e0   : > { %10873 = vmatprep.subr.bf16.mxu0 %v13963_v25 }
 0x2e1   : > { %10731 = vmatpush3.bf16.msra.mxu1 %v11986_v44 }
 0x2e2   : > { %10732 = vmatprep.subr.bf16.mxu1 %v13963_v25 }
 0x2e3   : > { %10875 = vmatpush3.bf16.msra.mxu0 %v11986_v44  ;;  %v11623_v44 = vmov 0  }
 0x2e4   : > { %10876 = vmatprep.subr.bf16.mxu0 %v13963_v25  ;;  %11324 = vset.pattern.permute.xlu1 %v11623_v44  ;;  %524 = vst [vmem:[#allocation4] sm:$0xff] %v11623_v44  ;;  %525 = vst [vmem:[#allocation4 + $0x28] sm:$0xff] %v11623_v44 }
 0x2e5   : > { %10734 = vmatpush3.bf16.msra.mxu1 %v12008_v49  ;;  %11323 = vset.pattern.permute.xlu0 %v11623_v44  ;;  %v11357_v44 = vld [vmem:[#allocation5 + $0x20] sm:$0xff]  }
 0x2e6   : > { %10735 = vmatprep.subr.bf16.mxu1 %v13963_v25  ;;  %3099 = vperm.xlu1 %11324, %v528_v34  }
 0x2e7   : > { %10878 = vmatpush3.bf16.msra.mxu0 %v12008_v49  ;;  %3075 = vperm.xlu0 %11323, %v526_v39   ;;  %v529_v49 = vld [vmem:[%s13817_s6 + $0xc] sm:$0xf] }
 0x2e8   : > { %10879 = vmatprep.subr.bf16.mxu0 %v13963_v25 }
 0x2e9   : > { %10737 = vmatpush3.bf16.msra.mxu1 %v12030_v54 }
 0x2ea   : > { %10738 = vmatprep.subr.bf16.mxu1 %v13963_v25  ;;  %3111 = vperm.xlu1 %11324, %v529_v49  }
 0x2eb   : > { %10881 = vmatpush3.bf16.msra.mxu0 %v12030_v54  ;;  %v527_v54 = vld [vmem:[%s13817_s6 + $0x4] sm:$0xf] }
 0x2ec   : > { %10882 = vmatprep.subr.bf16.mxu0 %v13963_v25  ;;  %3087 = vperm.xlu0 %11323, %v527_v54  }
 0x2ed   : > { %10740 = vmatpush3.bf16.msra.mxu1 %v12059_v63 }
 0x2ee   : > { %10009 = vmatprep.subr.mxu1 %v13962_v36 }
 0x2ef   : > { %10884 = vmatpush3.bf16.msra.mxu0 %v12059_v63  ;;  %v531_v63 = vld [vmem:[%s13817_s6 + $0x14] sm:$0xf] }
 0x2f0   : > { %9797 = vmatmul.mubr.f32.vlgmr.msra.gmra.mrb[8].mxu1 %v12289_v55  ;;  %3135 = vperm.xlu1 %11324, %v531_v63   ;;  %v12550_v55 = vsub.s32 0, %v12547_v10 }
 0x2f1   : > { %10011 = vmatprep.mubr.msk.f32.mxu1 %vm11621_vm0, %v13962_v36  ;;  %10010 = vmatpush3.msra.mxu1 %v12519_v29 }
 0x2f2   : > { %10007 = vmatmul.mubr.f32.vlgmr.msra.gmra.mrb[4].mxu0 %v12294_v1  ;;  %10014 = vmatprep.subr.mxu1 %v13962_v36  ;;  %13980 = vst [vmem:[#allocation30_spill] sm:$0xff] %v12550_v55 }
 0x2f3   : > { %3123 = vperm.xlu0 %11323, %v530_v46   ;;  %8987 = vmatprep.subr.bf16.mxu0 %v11340_v42 }
 0x2f4   : > { %3159 = vperm.xlu1 %11324, %v533_v19   ;;  %8988 = vmatpush3.bf16.msra.mxu0 %v11341_v12 }
 0x2f5   : > { %8989 = vmatprep.subr.bf16.mxu0 %v11344_v21 }
 0x2f7   : > { %3147 = vperm.xlu0 %11323, %v532_v31  }
 0x2f8   : > { %11326 = vset.pattern.permute.xlu1 %v11624_v11  ;;  %8990 = vmatpush3.bf16.msra.mxu0 %v11345_v22 }
 0x2f9   : > { %3333 = vperm.xlu1 %11326, %v527_v54   ;;  %8991 = vmatprep.subr.bf16.mxu0 %v11348_v33  ;;  %v11359_v54 = vld [vmem:[#allocation5 + $0xa0] sm:$0xff]  }
 0x2fb   : > { %11325 = vset.pattern.permute.xlu0 %v11624_v11 }
 0x2fc   : > { %3322 = vperm.xlu0 %11325, %v526_v39   ;;  %8992 = vmatpush3.bf16.msra.mxu0 %v11349_v45  ;;  %v11356_v39 = vld [vmem:[#allocation5 + $0x60] sm:$0xff]  }
 0x2fd   : > { %3344 = vperm.xlu1 %11326, %v528_v34   ;;  %8993 = vmatprep.subr.bf16.mxu0 %v11352_v47  ;;  %v11355_v34 = vld [vmem:[#allocation5 + $0x98] sm:$0xff]  }
 0x300   : > { %3355 = vperm.xlu0 %11325, %v529_v49   ;;  %8994 = vmatpush3.bf16.msra.mxu0 %v11353_v23  ;;  %v11358_v49 = vld [vmem:[#allocation5 + $0xe0] sm:$0xff]  }
 0x301   : > { %3366 = vperm.xlu1 %11326, %v530_v46   ;;  %8995 = vmatprep.subr.bf16.mxu0 %v11356_v39  ;;  %v11361_v46 = vld [vmem:[#allocation5 + $0x28] sm:$0xff]  }
 0x304   : > { %3377 = vperm.xlu0 %11325, %v531_v63   ;;  %8996 = vmatpush3.bf16.msra.mxu0 %v11357_v44  ;;  %v11360_v63 = vld [vmem:[#allocation5 + $0x68] sm:$0xff]  }
 0x305   : > { %3388 = vperm.xlu1 %11326, %v532_v31   ;;  %8997 = vmatprep.subr.bf16.mxu0 %v11360_v63  ;;  %v11367_v31 = vld [vmem:[#allocation5 + $0xb0] sm:$0xff]  }
 0x308   : > { %3399 = vperm.xlu0 %11325, %v533_v19   ;;  %8998 = vmatpush3.bf16.msra.mxu0 %v11361_v46  ;;  %v11366_v19 = vld [vmem:[#allocation5 + $0xf0] sm:$0xff]  }
 0x365   : > { %v3100_v11 = vpop.permute.xlu1 %3099 }
 0x366   : > { %v3076_v62 = vpop.permute.xlu0 %3075 }
 0x3c3   : > { %v1458_v48 = vpop.f32.mrb[8].mxu1 }
 0x3c4   : > { %v2103_v50 = vmul.f32 0.0009765625, %v1458_v48  ;;  %v9798_v51 = vpop.f32.mrb[9].mxu1  ;;  %v11362_v48 = vld [vmem:[#allocation5 + $0xe8] sm:$0xff]  }
 0x3c5   : > { %v2099_v15 = vpop.f32.mrb[4].mxu0  ;;  %v11364_v51 = vld [vmem:[#allocation5 + $0x70] sm:$0xff]  }
 0x3c6   : > { %v2105_v52 = vmul.f32 %v2103_v50, %v2103_v50  ;;  %v2104_v7 = vmul.f32 0.0009765625, %v2099_v15  ;;  %v10008_v27 = vpop.f32.mrb[5].mxu0  ;;  %v2114_v61 = vsub.f32 0.0, %v2103_v50  ;;  %v11363_v50 = vld [vmem:[#allocation5 + $0xa8] sm:$0xff]   ;;  %v11365_v15 = vld [vmem:[#allocation5 + $0x30] sm:$0xff]   ;;  %8999 = vmatprep.subr.bf16.mxu0 %v11364_v51 }
 0x3c7   : > { %9000 = vmatpush3.bf16.msra.mxu0 %v11365_v15  ;;  %v11370_v27 = vld [vmem:[#allocation5 + $0xf8] sm:$0xff]  }
 0x3c8   : > { %v2106_v28 = vsub.f32 %v2104_v7, %v2105_v52  ;;  %v11368_v52 = vld [vmem:[#allocation5 + $0x78] sm:$0xff]  }
 0x3c9   : > { %v11369_v7 = vld [vmem:[#allocation5 + $0x38] sm:$0xff]   ;;  %9001 = vmatprep.subr.bf16.mxu0 %v11368_v52 }
 0x3ca   : > { %v2107_v16 = vmax.f32 %v2106_v28, 0.0  ;;  %v11371_v28 = vld [vmem:[#allocation5 + $0xb8] sm:$0xff]  }
 0x3cb   : > { %9002 = vmatpush3.bf16.msra.mxu0 %v11369_v7 }
 0x3cc   : > { %v2108_v53 = vadd.f32 1e-05, %v2107_v16  ;;  %v11372_v16 = vld [vmem:[#allocation5 + $0x140] sm:$0xff]  }
 0x3cd   : > { %9067 = vmatprep.subr.bf16.mxu0 %v11372_v16 }
 0x3ce   : > { %11484 = vrsqrt.f32 %v2108_v53  ;;  %v11374_v53 = vld [vmem:[#allocation5 + $0x1c0] sm:$0xff]  }
 0x3d8   : > { %v11485_v1 = vpop.eup %11484 }
 0x3d9   : > { %v2113_v37 = vrot.slane %v11485_v1, %v12550_v55  ;;  %v2115_v17 = vmul.f32 %v11485_v1, %v2114_v61  ;;  %v3112_v61 = vpop.permute.xlu1 %3111 }
 0x3db   : > { %v2123_v40 = vsel %vm2121_vm2, %v2113_v37, 0  ;;  %v2119_v14 = vrot.slane %v2115_v17, %v12550_v55 }
 0x3dc   : > { %v2191_v60 = vand.u32 4294901760, %v2123_v40 }
 0x3dd   : > { %v2572_v26 = vsel %vm2121_vm2, %v2119_v14, 0  ;;  %v3136_v1 = vpop.permute.xlu1 %3135 }
 0x3de   : > { %v2192_v20 = vsub.f32 %v2123_v40, %v2191_v60  ;;  %v2640_v57 = vand.u32 4294901760, %v2572_v26 }
 0x3e0   : > { %v2193_v9 = vand.u32 4294901760, %v2192_v20  ;;  %v2641_v58 = vsub.f32 %v2572_v26, %v2640_v57 }
 0x3e2   : > { %v2194_v18 = vsub.f32 %v2192_v20, %v2193_v9  ;;  %v2642_v3 = vand.u32 4294901760, %v2641_v58 }
 0x3e4   : > { %v2195_v2 = vand.u32 4294901760, %v2194_v18  ;;  %v2643_v4 = vsub.f32 %v2641_v58, %v2642_v3 }
 0x3e6   : > { %10012 = vmatmul.mubr.f32.vlgmr.msra.gmra.mrb[10].mxu1 %v2195_v2  ;;  %v2644_v56 = vand.u32 4294901760, %v2643_v4 }
 0x3e7   : > { %10015 = vmatpush3.msra.mxu1 %v2206_v30  ;;  %10016 = vmatprep.mubr.msk.f32.mxu1 %vm11621_vm0, %v13962_v36 }
 0x3e8   : > { %10019 = vmatprep.subr.mxu1 %v13962_v36 }
 0x3ee   : > { %10017 = vmatmul.mubr.f32.vlgmr.msra.gmra.mrb[10].mxu1 %v2191_v60 }
 0x3ef   : > { %10020 = vmatpush3.msra.mxu1 %v2203_v38  ;;  %10021 = vmatprep.mubr.msk.f32.mxu1 %vm11621_vm0, %v13962_v36 }
 0x3f0   : > { %10024 = vmatprep.subr.mxu1 %v13962_v36 }
 0x3f6   : > { %10022 = vmatmul.mubr.f32.vlgmr.msra.gmra.mrb[10].mxu1 %v2192_v20  ;;  %v11625_v20 = vmov 839922192  }
 0x3f7   : > { %10025 = vmatpush3.msra.mxu1 %v12519_v29  ;;  %10026 = vmatprep.mubr.msk.f32.mxu1 %vm11621_vm0, %v13962_v36  ;;  %v3079_v35 = vunpack.c.l.s4 %v11625_v20 }
 0x3f8   : > { %10029 = vmatprep.subr.mxu1 %v13962_v36 }
 0x3fe   : > { %10027 = vmatmul.mubr.f32.vlgmr.msra.gmra.mrb[10].mxu1 %v2193_v9 }
 0x3ff   : > { %10030 = vmatpush3.msra.mxu1 %v2204_v0  ;;  %10031 = vmatprep.mubr.msk.f32.mxu1 %vm11621_vm0, %v13962_v36 }
 0x400   : > { %10034 = vmatprep.subr.mxu1 %v13962_v36 }
 0x406   : > { %10032 = vmatmul.mubr.f32.vlgmr.msra.gmra.mrb[10].mxu1 %v2191_v60 }
 0x407   : > { %10035 = vmatpush3.msra.mxu1 %v12519_v29  ;;  %10036 = vmatprep.mubr.msk.f32.mxu1 %vm11621_vm0, %v13962_v36 }
 0x408   : > { %10039 = vmatprep.subr.mxu1 %v13962_v36 }
 0x40e   : > { %10037 = vmatmul.mubr.f32.vlgmr.msra.gmra.mrb[10].mxu1 %v2191_v60 }
 0x40f   : > { %10040 = vmatpush3.msra.mxu1 %v12519_v29  ;;  %10041 = vmatprep.mubr.msk.f32.mxu1 %vm11621_vm0, %v13962_v36 }
 0x410   : > { %10044 = vmatprep.subr.mxu1 %v13962_v36 }
 0x412   : > { %10042 = vmatmul.mubr.f32.vlgmr.msra.gmra.mrb[12].mxu1 %v2644_v56 }
 0x413   : > { %10045 = vmatpush3.msra.mxu1 %v2206_v30  ;;  %10046 = vmatprep.mubr.msk.f32.mxu1 %vm11621_vm0, %v13962_v36  ;;  %v3080_v30 = vunpack.c.0.s8 %v3079_v35 }
 0x414   : > { %10049 = vmatprep.subr.mxu1 %v13962_v36 }
 0x415   : > { %v3083_v2 = vsub.s32 %v3080_v30, %v12547_v10 }
 0x417   : > { %v3144_v56 = vrot.slane %v3136_v1, %v3083_v2 }
 0x41a   : > { %10047 = vmatmul.mubr.f32.vlgmr.msra.gmra.mrb[12].mxu1 %v2640_v57 }
 0x41b   : > { %10050 = vmatpush3.msra.mxu1 %v2203_v38  ;;  %10051 = vmatprep.mubr.msk.f32.mxu1 %vm11621_vm0, %v13962_v36  ;;  %v3088_v38 = vpop.permute.xlu0 %3087 }
 0x41c   : > { %10054 = vmatprep.subr.mxu1 %v13962_v36  ;;  %v3096_v4 = vrot.slane %v3088_v38, %v3083_v2 }
 0x41f   : > { %v3124_v37 = vpop.permute.xlu0 %3123 }
 0x420   : > { %v3132_v42 = vrot.slane %v3124_v37, %v3083_v2 }
 0x422   : > { %10052 = vmatmul.mubr.f32.vlgmr.msra.gmra.mrb[12].mxu1 %v2641_v58  ;;  %v3084_v58 = vrot.slane %v3076_v62, %v3083_v2  ;;  %v8586_v33 = vcombine.low %v3132_v42, %v3144_v56 }
 0x423   : > { %10055 = vmatpush3.msra.mxu1 %v12519_v29  ;;  %10056 = vmatprep.mubr.msk.f32.mxu1 %vm11621_vm0, %v13962_v36  ;;  %v3148_v60 = vpop.permute.xlu0 %3147 }
 0x424   : > { %10059 = vmatprep.subr.mxu1 %v13962_v36 }
 0x427   : > { %v3323_v18 = vpop.permute.xlu0 %3322 }
 0x42a   : > { %10057 = vmatmul.mubr.f32.vlgmr.msra.gmra.mrb[12].mxu1 %v2642_v3  ;;  %v3120_v3 = vrot.slane %v3112_v61, %v3083_v2 }
 0x42b   : > { %10060 = vmatpush3.msra.mxu1 %v2204_v0  ;;  %10061 = vmatprep.mubr.msk.f32.mxu1 %vm11621_vm0, %v13962_v36  ;;  %v3160_v0 = vpop.permute.xlu1 %3159  ;;  %v3356_v26 = vpop.permute.xlu0 %3355 }
 0x42c   : > { %10064 = vmatprep.subr.mxu1 %v13962_v36  ;;  %v3168_v45 = vrot.slane %v3160_v0, %v3083_v2 }
 0x42f   : > { %v3334_v9 = vpop.permute.xlu1 %3333  ;;  %v3378_v21 = vpop.permute.xlu0 %3377 }
 0x430   : > { %v3342_v12 = vrot.slane %v3334_v9, %v3083_v2  ;;  %v3386_v44 = vrot.slane %v3378_v21, %v3083_v2 }
 0x432   : > { %10062 = vmatmul.mubr.f32.vlgmr.msra.gmra.mrb[12].mxu1 %v2640_v57 }
 0x433   : > { %10065 = vmatpush3.msra.mxu1 %v12519_v29  ;;  %10066 = vmatprep.mubr.msk.f32.mxu1 %vm11621_vm0, %v13962_v36  ;;  %v11354_v29 = vld [vmem:[#allocation5 + $0xd8] sm:$0xff]   ;;  %v3345_v14 = vpop.permute.xlu1 %3344 }
 0x434   : > { %9027 = vmatprep.subr.bf16.mxu1 %v11342_v13  ;;  %v3331_v13 = vrot.slane %v3323_v18, %v3083_v2 }
 0x43a   : > { %10067 = vmatmul.mubr.f32.vlgmr.msra.gmra.mrb[12].mxu1 %v2640_v57  ;;  %v3108_v57 = vrot.slane %v3100_v11, %v3083_v2 }
 0x43b   : > { %9028 = vmatpush3.bf16.msra.mxu1 %v11343_v5  ;;  %v3367_v5 = vpop.permute.xlu1 %3366 }
 0x43c   : > { %9029 = vmatprep.subr.bf16.mxu1 %v11346_v6  ;;  %v8585_v22 = vcombine.low %v3108_v57, %v3120_v3  ;;  %v8584_v6 = vcombine.low %v3084_v58, %v3096_v4  ;;  %v3375_v39 = vrot.slane %v3367_v5, %v3083_v2 }
 0x43e   : > { %v3202_v10 = vshll.u32 %v8585_v22, 16  ;;  %v3191_v47 = vshrl.u32 %v8584_v6, 16  ;;  %v3194_v23 = vshll.u32 %v8584_v6, 16 }
 0x43f   : > { %9030 = vmatpush3.bf16.msra.mxu1 %v11347_v32  ;;  %v3199_v32 = vshrl.u32 %v8585_v22, 16 }
 0x440   : > { %9031 = vmatprep.subr.bf16.mxu1 %v11350_v41  ;;  %v3156_v41 = vrot.slane %v3148_v60, %v3083_v2  ;;  %v3204_v46 = vrot.slane %v3202_v10, 5  ;;  %v12601_v52 = vrot.slane %v3194_v23, 1  ;;  %v3196_v11 = vrot.slane %v3194_v23, 5 }
 0x441   : > { %v3201_v63 = vrot.slane %v3199_v32, 4 }
 0x442   : > { %v8587_v51 = vcombine.low %v3156_v41, %v3168_v45  ;;  %13981 = vst [vmem:[#allocation31_spill] sm:$0xff] %v12601_v52  ;;  %v3533_v35 = vor.u32 %v12601_v52, %v3191_v47 }
 0x443   : > { %9032 = vmatpush3.bf16.msra.mxu1 %v11351_v43  ;;  %v12597_v43 = vcombine.low %v3331_v13, %v3342_v12  ;;  %v3205_v60 = vor.u32 %v3204_v46, %v3201_v63  ;;  %v3068_v13 = vld [vmem:[#allocation4] sm:$0xf8] }
 0x444   : > { %9033 = vmatprep.subr.bf16.mxu1 %v11354_v29  ;;  %v3353_v29 = vrot.slane %v3345_v14, %v3083_v2  ;;  %v3217_v38 = vshrl.u32 %v8587_v51, 16  ;;  %v3220_v37 = vshll.u32 %v8587_v51, 16 }
 0x445   : > { %v3430_v15 = vshrl.u32 %v12597_v43, 16 }
 0x446   : > { %v3219_v3 = vrot.slane %v3217_v38, 4  ;;  %v3222_v4 = vrot.slane %v3220_v37, 5  ;;  %v3540_v42 = vrot.slane %v3220_v37, 1 }
 0x447   : > { %9034 = vmatpush3.bf16.msra.mxu1 %v11355_v34  ;;  %v3364_v34 = vrot.slane %v3356_v26, %v3083_v2  ;;  %v769_v26 = vld [vmem:[%s13818_s7] sm:$0x1] }
 0x448   : > { %9035 = vmatprep.subr.bf16.mxu1 %v11358_v49  ;;  %v3389_v49 = vpop.permute.xlu1 %3388  ;;  %v12631_v23 = vor.u32 %v3222_v4, %v3219_v3  ;;  %v12642_v63 = vor.u32 %v3540_v42, %v3217_v38 }
 0x449   : > { %v3397_v7 = vrot.slane %v3389_v49, %v3083_v2  ;;  %v12603_v16 = vcombine.low %v3353_v29, %v3364_v34  ;;  %v12633_v29 = vrot.slane %v3430_v15, 7 }
 0x44a   : > { %13987 = vst [vmem:[#allocation37_spill] sm:$0xff] %v12631_v23  ;;  %13989 = vst [vmem:[#allocation39_spill] sm:$0xff] %v12642_v63 }
 0x44b   : > { %9036 = vmatpush3.bf16.msra.mxu1 %v11359_v54  ;;  %v3400_v54 = vpop.permute.xlu0 %3399  ;;  %v3438_v18 = vshrl.u32 %v12603_v16, 16  ;;  %v3441_v30 = vshll.u32 %v12603_v16, 16 }
 0x44c   : > { %9037 = vmatprep.subr.bf16.mxu1 %v11362_v48  ;;  %v3208_v48 = vshrl.u32 %v8586_v33, 16 }
 0x44d   : > { %v3440_v45 = vrot.slane %v3438_v18, 3  ;;  %v3443_v41 = vrot.slane %v3441_v30, 4  ;;  %v12644_v46 = vrot.slane %v3438_v18, 7 }
 0x44e   : > { %v3210_v62 = vrot.slane %v3208_v48, 4 }
 0x44f   : > { %9038 = vmatpush3.bf16.msra.mxu1 %v11363_v50  ;;  %v3211_v50 = vshll.u32 %v8586_v33, 16  ;;  %v3316_v33 = vld [vmem:[#allocation4] sm:$0xf0]  ;;  %v3444_v51 = vor.u32 %v3443_v41, %v3440_v45 }
 0x450   : > { %9039 = vmatprep.subr.bf16.mxu1 %v11366_v19  ;;  %v3433_v19 = vshll.u32 %v12597_v43, 16 }
 0x451   : > { %v3213_v61 = vrot.slane %v3211_v50, 5  ;;  %v3537_v1 = vrot.slane %v3211_v50, 1 }
 0x452   : > { %v3435_v0 = vrot.slane %v3433_v19, 4 }
 0x453   : > { %9040 = vmatpush3.bf16.msra.mxu1 %v11367_v31  ;;  %v3534_v31 = vrot.slane %v3202_v10, 1  ;;  %v12617_v58 = vor.u32 %v3213_v61, %v3210_v62  ;;  %v3539_v56 = vor.u32 %v3537_v1, %v3208_v48  ;;  %v12659_v62 = vld [vmem:[#allocation4] sm:$0xf0] }
 0x454   : > { %9041 = vmatprep.subr.bf16.mxu1 %v11370_v27  ;;  %v3408_v27 = vrot.slane %v3400_v54, %v3083_v2 }
 0x455   : > { %v3536_v20 = vor.u32 %v3534_v31, %v3199_v32  ;;  %v12622_v5 = vsel %vm3531_vm3, %v3533_v35, %v3534_v31  ;;  %v3526_v32 = vld [vmem:[#allocation4] sm:$0x80] }
 0x456   : > { %v8591_v9 = vcombine.low %v3397_v7, %v3408_v27  ;;  %13984 = vst [vmem:[#allocation34_spill] sm:$0xff] %v12622_v5  ;;  %v3548_v49 = vmul.bf16 %v12601_v52, %v3526_v32  ;;  %v770_v27 = vld [vmem:[%s13819_s8] sm:$0x1] }
 0x457   : > { %9042 = vmatpush3.bf16.msra.mxu1 %v11371_v28  ;;  %v3193_v28 = vrot.slane %v3191_v47, 4  ;;  %v12625_v21 = vsel %vm3531_vm3, %v3536_v20, %v3537_v1  ;;  %v12629_v47 = vsel %vm3189_vm4, %v3205_v60, %v12617_v58 }
 0x458   : > { %9107 = vmatprep.subr.bf16.mxu1 %v11374_v53  ;;  %v12605_v53 = vcombine.low %v3375_v39, %v3386_v44  ;;  %13985 = vst [vmem:[#allocation35_spill] sm:$0xff] %v12625_v21  ;;  %v3456_v22 = vshrl.u32 %v8591_v9, 16  ;;  %v3459_v6 = vshll.u32 %v8591_v9, 16  ;;  %13986 = vst [vmem:[#allocation36_spill] sm:$0xff] %v12629_v47  ;;  %v12638_v44 = vsel %vm3531_vm3, %v3539_v56, %v3540_v42 }
 0x459   : > { %v12615_v57 = vor.u32 %v3196_v11, %v3193_v28  ;;  %13988 = vst [vmem:[#allocation38_spill] sm:$0xff] %v12638_v44  ;;  %v12661_v61 = vshrl.u32 %v3548_v49, 16 }
 0x45a   : > { %v3447_v2 = vshrl.u32 %v12605_v53, 16  ;;  %v3450_v14 = vshll.u32 %v12605_v53, 16  ;;  %v3458_v50 = vrot.slane %v3456_v22, 3  ;;  %v3461_v31 = vrot.slane %v3459_v6, 4 }
 0x45b   : > { %13982 = vst [vmem:[#allocation32_spill] sm:$0xff] %v12615_v57  ;;  %v3230_v34 = vmul.bf16 %v12615_v57, %v3068_v13  ;;  %v12650_v7 = vrot.slane %v3456_v22, 7  ;;  %v12671_v20 = vsel %vm3189_vm4, %v12615_v57, %v3205_v60  ;;  %v13996_v13 = vld [vmem:[#allocation24_spill] sm:$0xff] }
 0x45c   : > { %v3449_v43 = vrot.slane %v3447_v2, 3  ;;  %v3452_v10 = vrot.slane %v3450_v14, 4  ;;  %v12646_v48 = vrot.slane %v3447_v2, 7  ;;  %13992 = vst [vmem:[#allocation42_spill] sm:$0xff] %v12671_v20  ;;  %v12681_v18 = vor.u32 %v3461_v31, %v3458_v50 }
 0x45d   : > { %13990 = vst [vmem:[#allocation40_spill] sm:$0xff] %v12650_v7  ;;  %v3237_v28 = vshrl.u32 %v3230_v34, 16  ;;  %v3240_v16 = vshll.u32 %v3230_v34, 16  ;;  %v14000_v34 = vld [vmem:[#allocation28_spill] sm:$0xff] }
 0x45e   : > { %13995 = vst [vmem:[#allocation45_spill] sm:$0xff] %v12681_v18 }
 0x45f   : > { %v12689_v60 = vrot.slane %v3240_v16, 4 }
 0x4e1   : > { %v12594_v17 = vpop.f32.mrb[10].mxu1 }
 0x4e2   : > { %v10038_v40 = vpop.f32.mrb[11].mxu1  ;;  %v3020_v39 = vmul.f32 %v12594_v17, %v769_v26  ;;  %v12653_v17 = vor.u32 %v12633_v29, %v3433_v19  ;;  %v12664_v19 = vor.u32 %v12644_v46, %v3441_v30  ;;  %v12684_v30 = vor.u32 %v12650_v7, %v3459_v6  ;;  %v13997_v6 = vld [vmem:[#allocation23_spill] sm:$0xff] }
 0x4e3   : > { %v3432_v40 = vrot.slane %v3430_v15, 3  ;;  %v12648_v15 = vor.u32 %v3452_v10, %v3449_v43  ;;  %v13999_v43 = vld [vmem:[#allocation26_spill] sm:$0xff] }
 0x4e4   : > { %13991 = vst [vmem:[#allocation41_spill] sm:$0xff] %v12653_v17  ;;  %v3027_v53 = vrot.slane %v3020_v39, %v12550_v55 }
 0x4e5   : > { %v12619_v12 = vor.u32 %v3435_v0, %v3432_v40  ;;  %v12667_v0 = vor.u32 %v12646_v48, %v3450_v14  ;;  %v12679_v9 = vsel %vm3235_vm5, %v3444_v51, %v12648_v15  ;;  %v3299_v14 = vrot.slane %v12659_v62, 4 }
 0x4e6   : > { %13994 = vst [vmem:[#allocation44_spill] sm:$0xff] %v12679_v9  ;;  %v3029_v3 = vmul.f32 %v3027_v53, %v12249_v59  ;;  %v3030_v22 = vmul.f32 %v3027_v53, %v13996_v13  ;;  %v3031_v32 = vmul.f32 %v3027_v53, %v13997_v6  ;;  %v3033_v10 = vmul.f32 %v3027_v53, %v13999_v43 }
 0x4e7   : > { %13983 = vst [vmem:[#allocation33_spill] sm:$0xff] %v12619_v12  ;;  %v3469_v54 = vmul.bf16 %v12619_v12, %v3316_v33  ;;  %v12675_v35 = vsel %vm3235_vm5, %v12619_v12, %v3444_v51  ;;  %v13998_v33 = vld [vmem:[#allocation25_spill] sm:$0xff]  ;;  %v3034_v39 = vmul.f32 %v3027_v53, %v14000_v34  ;;  %v3035_v49 = vmul.f32 %v3027_v53, %v12271_v8 }
 0x4e8   : > { %13993 = vst [vmem:[#allocation43_spill] sm:$0xff] %v12675_v35  ;;  %v3032_v45 = vmul.f32 %v3027_v53, %v13998_v33 }
 0x4e9   : > { %v3475_v38 = vshrl.u32 %v3469_v54, 16  ;;  %v3478_v1 = vshll.u32 %v3469_v54, 16  ;;  %v3036_v54 = vmul.f32 %v3027_v53, %v12278_v24  ;;  %v11376_v24 = vld [vmem:[#allocation5 + $0x148] sm:$0xff]  }
 0x4eb   : > { %v12693_v56 = vrot.slane %v3475_v38, 4  ;;  %v12695_v42 = vrot.slane %v3478_v1, 5 }
 0x50d   : > { %v3016_v11 = vpop.f32.mrb[12].mxu1 }
 0x50e   : > { %v3021_v37 = vmul.f32 %v3016_v11, %v769_v26  ;;  %v10068_v40 = vpop.f32.mrb[13].mxu1  ;;  %v12687_v26 = vrot.slane %v3237_v28, 3 }
 0x510   : > { %v3022_v2 = vadd.f32 %v3021_v37, %v770_v27  ;;  %v3243_v53 = vor.u32 %v12689_v60, %v12687_v26 }
 0x512   : > { %v3041_v41 = vrot.slane %v3022_v2, %v12550_v55 }
 0x514   : > { %v3043_v50 = vadd.f32 %v3041_v41, %v3029_v3  ;;  %v3044_v51 = vadd.f32 %v3041_v41, %v3030_v22  ;;  %v3045_v31 = vadd.f32 %v3041_v41, %v3031_v32  ;;  %v3046_v27 = vadd.f32 %v3041_v41, %v3032_v45 }
 0x515   : > { %v3047_v28 = vadd.f32 %v3041_v41, %v3033_v10  ;;  %v3048_v16 = vadd.f32 %v3041_v41, %v3034_v39  ;;  %v3049_v11 = vadd.f32 %v3041_v41, %v3035_v49  ;;  %v3050_v62 = vadd.f32 %v3041_v41, %v3036_v54 }
 0x516   : > { %v3051_v38 = vmax.f32 %v3043_v50, 0.0  ;;  %v3052_v1 = vmax.f32 %v3044_v51, 0.0  ;;  %v3053_v37 = vmax.f32 %v3045_v31, 0.0  ;;  %v3054_v40 = vmax.f32 %v3046_v27, 0.0 }
 0x517   : > { %v3055_v2 = vmax.f32 %v3047_v28, 0.0  ;;  %v3056_v4 = vmax.f32 %v3048_v16, 0.0  ;;  %v3057_v43 = vmax.f32 %v3049_v11, 0.0  ;;  %v3058_v34 = vmax.f32 %v3050_v62, 0.0 }
 0x518   : > { %v12705_v13 = vpack.c.bf16 %v3052_v1, %v3051_v38  ;;  %v12707_v8 = vpack.c.bf16 %v3054_v40, %v3053_v37  ;;  %v12714_v3 = vsel %vm3189_vm4, %v12617_v58, %v12631_v23  ;;  %v3481_v45 = vor.u32 %v12695_v42, %v12693_v56 }
 0x519   : > { %14001 = vst [vmem:[#allocation46_spill] sm:$0xff] %v12714_v3  ;;  %v12716_v22 = vpack.c.bf16 %v3056_v4, %v3055_v2  ;;  %v12718_v32 = vpack.c.bf16 %v3058_v34, %v3057_v43  ;;  %v12725_v41 = vsel %vm3235_vm5, %v12648_v15, %v12681_v18  ;;  %v11373_v2 = vld [vmem:[#allocation5 + $0x100] sm:$0xff]  }
 0x51a   : > { %14002 = vst [vmem:[#allocation47_spill] sm:$0xff] %v12725_v41  ;;  %3064 = vst [vmem:[#allocation4 + $0x8] sm:$0xff] %v12705_v13  ;;  %v3300_v58 = vrot.slane %v12705_v13, 4  ;;  %v3231_v26 = vmul.bf16 %v12671_v20, %v12705_v13  ;;  %v3549_v60 = vmul.bf16 %v12622_v5, %v12705_v13  ;;  %v12735_v4 = vrot.slane %v12707_v8, 4 }
 0x51b   : > { %3065 = vst [vmem:[#allocation4 + $0x10] sm:$0xff] %v12707_v8  ;;  %3066 = vst [vmem:[#allocation4 + $0x18] sm:$0xff] %v12716_v22  ;;  %v3470_v15 = vmul.bf16 %v12675_v35, %v12705_v13  ;;  %v3550_v56 = vmul.bf16 %v12625_v21, %v12707_v8  ;;  %v3232_v42 = vmul.bf16 %v12629_v47, %v12707_v8  ;;  %v12746_v43 = vrot.slane %v12716_v22, 4 }
 0x51c   : > { %3067 = vst [vmem:[#allocation4 + $0x20] sm:$0xff] %v12718_v32  ;;  %v3301_v10 = vsel %vm3298_vm6, %v3299_v14, %v3300_v58  ;;  %v3245_v34 = vshrl.u32 %v3231_v26, 16  ;;  %v3248_v39 = vshll.u32 %v3231_v26, 16  ;;  %v3559_v49 = vshrl.u32 %v3549_v60, 16 }
 0x51d   : > { %4477 = vmatprep.mubr.bf16.mxu0 %v3301_v10  ;;  %v3562_v54 = vshll.u32 %v3549_v60, 16  ;;  %v3303_v50 = vsel %vm3298_vm6, %v3300_v58, %v12735_v4  ;;  %v3483_v51 = vshrl.u32 %v3470_v15, 16  ;;  %v3486_v31 = vshll.u32 %v3470_v15, 16 }
 0x51e   : > { %v3247_v27 = vrot.slane %v3245_v34, 3  ;;  %v3250_v28 = vrot.slane %v3248_v39, 4  ;;  %v3561_v16 = vrot.slane %v3559_v49, 7  ;;  %v3567_v11 = vshrl.u32 %v3550_v56, 16 }
 0x51f   : > { %v3485_v62 = vrot.slane %v3483_v51, 4  ;;  %v3488_v38 = vrot.slane %v3486_v31, 5  ;;  %v3570_v1 = vshll.u32 %v3550_v56, 16  ;;  %v3254_v37 = vshrl.u32 %v3232_v42, 16  ;;  %v11378_v31 = vld [vmem:[#allocation5 + $0x1c8] sm:$0xff]  }
 0x520   : > { %v3251_v40 = vor.u32 %v3250_v28, %v3247_v27  ;;  %v3564_v14 = vor.u32 %v3562_v54, %v3561_v16  ;;  %v12751_v26 = vrot.slane %v3567_v11, 7  ;;  %v3257_v10 = vshll.u32 %v3232_v42, 16  ;;  %v11375_v42 = vld [vmem:[#allocation5 + $0x180] sm:$0xff]  }
 0x521   : > { %v3489_v60 = vor.u32 %v3488_v38, %v3485_v62  ;;  %v3256_v59 = vrot.slane %v3254_v37, 3  ;;  %v12756_v58 = vsel %vm3298_vm6, %v12735_v4, %v12746_v43  ;;  %v3471_v15 = vmul.bf16 %v12679_v9, %v12707_v8  ;;  %v11380_v37 = vld [vmem:[#allocation5 + $0x150] sm:$0xff]  }
 0x522   : > { %v3252_v56 = vsel %vm3235_vm5, %v3243_v53, %v3251_v40  ;;  %v14003_v34 = vrot.slane %v12661_v61, 7  ;;  %v3572_v49 = vor.u32 %v3570_v1, %v12751_v26  ;;  %v3259_v54 = vrot.slane %v3257_v10, 4  ;;  %v11377_v53 = vld [vmem:[#allocation5 + $0x108] sm:$0xff]  }
 0x523   : > { %4478 = vmatmul.mubr.bf16.vlgmr.msra.gmra.mrb[8].mxu0 %v3252_v56  ;;  %v3490_v51 = vsel %vm3189_vm4, %v3481_v45, %v3489_v60  ;;  %v3492_v27 = vshrl.u32 %v3471_v15, 16  ;;  %v3495_v28 = vshll.u32 %v3471_v15, 16  ;;  %v3551_v11 = vmul.bf16 %v12638_v44, %v12716_v22  ;;  %v3072_v1 = vld [vmem:[#allocation4 + $0x20] sm:$0xf] }
 0x524   : > { %v3565_v39 = vsel %vm3553_vm7, %v14003_v34, %v3564_v14  ;;  %9068 = vmatpush3.bf16.msra.mxu0 %v11373_v2  ;;  %4485 = vmatprep.mubr.bf16.mxu0 %v3303_v50  ;;  %v3573_v61 = vsel %vm3553_vm7, %v3561_v16, %v3572_v49  ;;  %v3260_v62 = vor.u32 %v3259_v54, %v3256_v59  ;;  %v3320_v15 = vld [vmem:[#allocation4 + $0x20] sm:$0x1f]  ;;  %v11379_v50 = vld [vmem:[#allocation5 + $0x188] sm:$0xff]  }
 0x525   : > { %4542 = vmatprep.mubr.bf16.mxu1 %v3565_v39  ;;  %v3233_v38 = vmul.bf16 %v12714_v3, %v12716_v22  ;;  %9069 = vmatprep.subr.bf16.mxu0 %v11376_v24  ;;  %v3494_v45 = vrot.slane %v3492_v27, 4  ;;  %v3497_v14 = vrot.slane %v3495_v28, 5  ;;  %v3575_v10 = vshrl.u32 %v3551_v11, 16  ;;  %v11382_v39 = vld [vmem:[#allocation5 + $0x1d0] sm:$0xff]  }
 0x526   : > { %4543 = vmatmul.mubr.bf16.vlgmr.msra.gmra.mrb[16].mxu1 %v3490_v51  ;;  %v12774_v2 = vsel %vm3553_vm7, %v12633_v29, %v12664_v19  ;;  %v3261_v59 = vsel %vm3235_vm5, %v3251_v40, %v3260_v62  ;;  %v3578_v16 = vshll.u32 %v3551_v11, 16  ;;  %v3472_v54 = vmul.bf16 %v12725_v41, %v12716_v22  ;;  %v11381_v29 = vld [vmem:[#allocation5 + $0x110] sm:$0xff]   ;;  %v11384_v11 = vld [vmem:[#allocation5 + $0x158] sm:$0xff]  }
 0x527   : > { %14004 = vst [vmem:[#allocation48_spill] sm:$0xff] %v12774_v2  ;;  %4550 = vmatprep.mubr.bf16.mxu1 %v3573_v61  ;;  %9108 = vmatpush3.bf16.msra.mxu1 %v11375_v42  ;;  %v3263_v56 = vshrl.u32 %v3233_v38, 16  ;;  %v3266_v34 = vshll.u32 %v3233_v38, 16  ;;  %v3498_v24 = vor.u32 %v3497_v14, %v3494_v45  ;;  %v3577_v49 = vrot.slane %v3575_v10, 7  ;;  %v11383_v45 = vld [vmem:[#allocation5 + $0x190] sm:$0xff]  }
 0x528   : > { %9109 = vmatprep.subr.bf16.mxu1 %v11378_v31  ;;  %v3552_v51 = vmul.bf16 %v12642_v63, %v12718_v32  ;;  %9070 = vmatpush3.bf16.msra.mxu0 %v11377_v53  ;;  %v3234_v27 = vmul.bf16 %v12631_v23, %v3072_v1  ;;  %v3473_v40 = vmul.bf16 %v12681_v18, %v3320_v15  ;;  %v3501_v61 = vshrl.u32 %v3472_v54, 16  ;;  %v11386_v1 = vld [vmem:[#allocation5 + $0x1d8] sm:$0xff]  }
 0x529   : > { %v3265_v19 = vrot.slane %v3263_v56, 3  ;;  %v3268_v42 = vrot.slane %v3266_v34, 4  ;;  %9071 = vmatprep.subr.bf16.mxu0 %v11380_v37  ;;  %v3499_v31 = vsel %vm3189_vm4, %v3489_v60, %v3498_v24  ;;  %v3580_v28 = vor.u32 %v3578_v16, %v3577_v49  ;;  %v11385_v34 = vld [vmem:[#allocation5 + $0x118] sm:$0xff]  }
 0x52a   : > { %v3504_v38 = vshll.u32 %v3472_v54, 16  ;;  %v3583_v10 = vshrl.u32 %v3552_v51, 16  ;;  %v3272_v53 = vshrl.u32 %v3234_v27, 16  ;;  %v12789_v56 = vsel %vm3553_vm7, %v12644_v46, %v12667_v0 }
 0x52b   : > { %9110 = vmatpush3.bf16.msra.mxu1 %v11379_v50  ;;  %v12784_v14 = vor.u32 %v3268_v42, %v3265_v19  ;;  %14005 = vst [vmem:[#allocation49_spill] sm:$0xff] %v12789_v56  ;;  %4486 = vmatmul.mubr.bf16.gmra.mrb[12].mxu0 %v3261_v59  ;;  %v3581_v60 = vsel %vm3553_vm7, %v12751_v26, %v3580_v28  ;;  %v3503_v37 = vrot.slane %v3501_v61, 4  ;;  %v3275_v16 = vshll.u32 %v3234_v27, 16  ;;  %v3610_v50 = vld [vmem:[#allocation4 + $0x28] sm:$0x1]  ;;  %v11390_v61 = vld [vmem:[#allocation5 + $0x1e0] sm:$0xff]  }
 0x52c   : > { %9111 = vmatprep.subr.bf16.mxu1 %v11382_v39  ;;  %v3506_v15 = vrot.slane %v3504_v38, 5  ;;  %9072 = vmatpush3.bf16.msra.mxu0 %v11381_v29  ;;  %v3292_v19 = vld [vmem:[#allocation4 + $0x20] sm:$0xf]  ;;  %v3585_v46 = vrot.slane %v3583_v10, 7  ;;  %v3586_v0 = vshll.u32 %v3552_v51, 16  ;;  %v3510_v59 = vshrl.u32 %v3473_v40, 16 }
 0x52d   : > { %4493 = vmatprep.mubr.bf16.mxu0 %v12756_v58  ;;  %v3270_v54 = vsel %vm3235_vm5, %v3260_v62, %v12784_v14  ;;  %9073 = vmatprep.subr.bf16.mxu0 %v11384_v11  ;;  %v11388_v39 = vld [vmem:[#allocation5 + $0x160] sm:$0xff]   ;;  %v3513_v42 = vshll.u32 %v3473_v40, 16  ;;  %v3627_v27 = vmul.bf16 %v12653_v17, %v12705_v13  ;;  %v12803_v29 = vsel %vm3553_vm7, %v12646_v48, %v12684_v30  ;;  %v11387_v62 = vld [vmem:[#allocation5 + $0x198] sm:$0xff]  }
 0x52e   : > { %4551 = vmatmul.mubr.bf16.gmra.mrb[20].mxu1 %v3499_v31  ;;  %v12796_v26 = vor.u32 %v3506_v15, %v3503_v37  ;;  %14006 = vst [vmem:[#allocation50_spill] sm:$0xff] %v12803_v29  ;;  %v3588_v28 = vor.u32 %v3586_v0, %v3585_v46  ;;  %v3628_v51 = vmul.bf16 %v12774_v2, %v12707_v8  ;;  %v3306_v11 = vrot.slane %v3292_v19, 4  ;;  %v3676_v48 = vld [vmem:[#allocation4 + $0x8] sm:$0xf8]  ;;  %v11389_v30 = vld [vmem:[#allocation5 + $0x120] sm:$0xff]  }
 0x52f   : > { %4558 = vmatprep.mubr.bf16.mxu1 %v3581_v60  ;;  %9112 = vmatpush3.bf16.msra.mxu1 %v11383_v45  ;;  %v3631_v31 = vmul.bf16 %v12650_v7, %v3610_v50  ;;  %v12810_v38 = vrot.slane %v3272_v53, 3  ;;  %v12812_v10 = vrot.slane %v3275_v16, 4  ;;  %v12815_v60 = vrot.slane %v3510_v59, 4  ;;  %v11391_v16 = vld [vmem:[#allocation5 + $0x1a0] sm:$0xff]  }
 0x530   : > { %9113 = vmatprep.subr.bf16.mxu1 %v11386_v1  ;;  %v3508_v40 = vsel %vm3189_vm4, %v3498_v24, %v12796_v26  ;;  %9074 = vmatpush3.bf16.msra.mxu0 %v11385_v34  ;;  %v3589_v45 = vsel %vm3553_vm7, %v3577_v49, %v3588_v28  ;;  %v3635_v37 = vshll.u32 %v3627_v27, 16  ;;  %v3640_v15 = vshll.u32 %v3628_v51, 16  ;;  %v11392_v1 = vld [vmem:[#allocation5 + $0x168] sm:$0xff]  }
 0x531   : > { %9075 = vmatprep.subr.bf16.mxu0 %v11388_v39  ;;  %v12817_v50 = vrot.slane %v3513_v42, 5  ;;  %v3633_v19 = vshrl.u32 %v3627_v27, 16  ;;  %v3629_v24 = vmul.bf16 %v12789_v56, %v12716_v22  ;;  %v3644_v53 = vshrl.u32 %v3628_v51, 16  ;;  %v11394_v39 = vld [vmem:[#allocation5 + $0x1e8] sm:$0xff]  }
 0x532   : > { %v3637_v46 = vrot.slane %v3635_v37, 1  ;;  %v3642_v34 = vrot.slane %v3640_v15, 1  ;;  %v12822_v0 = vmul.bf16 %v3676_v48, %v12615_v57  ;;  %v3682_v49 = vmul.bf16 %v12671_v20, %v12707_v8  ;;  %v11393_v28 = vld [vmem:[#allocation5 + $0x128] sm:$0xff]  }
 0x533   : > { %9114 = vmatpush3.bf16.msra.mxu1 %v11387_v62  ;;  %4494 = vmatmul.mubr.bf16.gmra.mrb[16].mxu0 %v3270_v54  ;;  %v3307_v59 = vsel %vm3298_vm6, %v12746_v43, %v3306_v11  ;;  %v3648_v42 = vshll.u32 %v3629_v24, 16  ;;  %v3630_v27 = vmul.bf16 %v12803_v29, %v12718_v32  ;;  %v12830_v62 = vshll.u32 %v3631_v31, 16  ;;  %v11396_v11 = vld [vmem:[#allocation5 + $0x170] sm:$0xff]   ;;  %v11395_v32 = vld [vmem:[#allocation5 + $0x1a8] sm:$0xff]  }
 0x534   : > { %9115 = vmatprep.subr.bf16.mxu1 %v11390_v61  ;;  %9076 = vmatpush3.bf16.msra.mxu0 %v11389_v30  ;;  %v3278_v51 = vor.u32 %v12812_v10, %v12810_v38  ;;  %v3638_v48 = vor.u32 %v3637_v46, %v3633_v19  ;;  %v3646_v37 = vor.u32 %v3644_v53, %v3642_v34  ;;  %v3652_v54 = vshrl.u32 %v3629_v24, 16  ;;  %v11398_v10 = vld [vmem:[#allocation5 + $0x1f0] sm:$0xff]  }
 0x535   : > { %4501 = vmatprep.mubr.bf16.mxu0 %v3307_v59  ;;  %9077 = vmatprep.subr.bf16.mxu0 %v11392_v1  ;;  %v3650_v61 = vrot.slane %v3648_v42, 1  ;;  %v3695_v15 = vshrl.u32 %v3682_v49, 16  ;;  %v3698_v33 = vshll.u32 %v3682_v49, 16  ;;  %v3656_v6 = vshll.u32 %v3630_v27, 16  ;;  %v3738_v59 = vld [vmem:[#allocation4 + $0x8] sm:$0xf0] }
 0x536   : > { %4559 = vmatmul.mubr.bf16.gmra.mrb[24].mxu1 %v3508_v40  ;;  %v3516_v31 = vor.u32 %v12817_v50, %v12815_v60  ;;  %v3643_v30 = vsel %vm3531_vm3, %v3638_v48, %v3642_v34  ;;  %v3687_v38 = vshrl.u32 %v12822_v0, 16  ;;  %v3683_v40 = vmul.bf16 %v12629_v47, %v12716_v22  ;;  %v11397_v53 = vld [vmem:[#allocation5 + $0x130] sm:$0xff]   ;;  %v11400_v22 = vld [vmem:[#allocation5 + $0x178] sm:$0xff]  }
 0x537   : > { %4566 = vmatprep.mubr.bf16.mxu1 %v3589_v45  ;;  %9116 = vmatpush3.bf16.msra.mxu1 %v11391_v16  ;;  %v3651_v1 = vsel %vm3531_vm3, %v3646_v37, %v3650_v61  ;;  %v3697_v19 = vrot.slane %v3695_v15, 3  ;;  %v3700_v24 = vrot.slane %v3698_v33, 4  ;;  %v3654_v45 = vor.u32 %v3652_v54, %v3650_v61  ;;  %v11399_v48 = vld [vmem:[#allocation5 + $0x1b0] sm:$0xff]   ;;  %v11404_v15 = vld [vmem:[#allocation5 + $0x200] sm:$0xff]  }
 0x538   : > { %9117 = vmatprep.subr.bf16.mxu1 %v11394_v39  ;;  %9078 = vmatpush3.bf16.msra.mxu0 %v11393_v28  ;;  %v3690_v16 = vshll.u32 %v12822_v0, 16  ;;  %v3658_v60 = vrot.slane %v3656_v6, 1  ;;  %v3704_v50 = vshrl.u32 %v3683_v40, 16  ;;  %v3707_v46 = vshll.u32 %v3683_v40, 16  ;;  %v11402_v6 = vld [vmem:[#allocation5 + $0x1f8] sm:$0xff]  }
 0x539   : > { %9079 = vmatprep.subr.bf16.mxu0 %v11396_v11  ;;  %v3279_v34 = vsel %vm3235_vm5, %v12784_v14, %v3278_v51  ;;  %v3748_v49 = vrot.slane %v3738_v59, 4  ;;  %v3660_v39 = vshrl.u32 %v3630_v27, 16  ;;  %v3666_v42 = vrot.slane %v12830_v62, 1  ;;  %v11401_v51 = vld [vmem:[#allocation5 + $0x138] sm:$0xff]  }
 0x53a   : > { %v3701_v33 = vor.u32 %v3700_v24, %v3697_v19  ;;  %v3659_v28 = vsel %vm3531_vm3, %v3654_v45, %v3658_v60  ;;  %v3706_v37 = vrot.slane %v3704_v50, 3  ;;  %v3709_v54 = vrot.slane %v3707_v46, 4  ;;  %v11403_v59 = vld [vmem:[#allocation5 + $0x1b8] sm:$0xff]  }
 0x53b   : > { %9118 = vmatpush3.bf16.msra.mxu1 %v11395_v32  ;;  %4502 = vmatmul.mubr.bf16.gmra.mrb[20].mxu0 %v3279_v34  ;;  %v3662_v0 = vor.u32 %v3660_v39, %v3658_v60  ;;  %v3517_v14 = vsel %vm3189_vm4, %v12796_v26, %v3516_v31  ;;  %v3689_v27 = vrot.slane %v3687_v38, 3  ;;  %v3692_v11 = vrot.slane %v3690_v16, 4  ;;  %v12857_v38 = vld [vmem:[#allocation4 + $0x20] sm:$0xff]  ;;  %v3765_v19 = vld [vmem:[#allocation4 + $0x8] sm:$0xf0] }
 0x53c   : > { %9119 = vmatprep.subr.bf16.mxu1 %v11398_v10  ;;  %9080 = vmatpush3.bf16.msra.mxu0 %v11397_v53  ;;  %v12848_v62 = vor.u32 %v3709_v54, %v3706_v37  ;;  %v3750_v61 = vsel %vm3298_vm6, %v3748_v49, %v12735_v4  ;;  %v3684_v40 = vmul.bf16 %v12857_v38, %v12714_v3  ;;  %v11406_v10 = vld [vmem:[#allocation5 + $0x210] sm:$0xff]   ;;  %v3766_v53 = vld [vmem:[#allocation4 + $0x10] sm:$0xff]  ;;  %v11407_v16 = vld [vmem:[#allocation5 + $0x218] sm:$0xff]  }
 0x53d   : > { %4607 = vmatprep.mubr.bf16.mxu0 %v3643_v30  ;;  %9081 = vmatprep.subr.bf16.mxu0 %v11400_v22  ;;  %v12853_v32 = vsel %vm3531_vm3, %v3662_v0, %v3666_v42  ;;  %v3693_v31 = vor.u32 %v3692_v11, %v3689_v27  ;;  %v11405_v30 = vld [vmem:[#allocation5 + $0x208] sm:$0xff]   ;;  %v3680_v60 = vld [vmem:[#allocation4 + $0x28] sm:$0xf]  ;;  %v3771_v50 = vmul.bf16 %v3766_v53, %v12675_v35  ;;  %v11408_v49 = vld [vmem:[#allocation5 + $0x220] sm:$0xff]  }
 0x53e   : > { %4567 = vmatmul.mubr.bf16.gmra.mrb[28].mxu1 %v3517_v14  ;;  %v3711_v26 = vsel %vm3235_vm5, %v3701_v33, %v12848_v62  ;;  %v3713_v24 = vshrl.u32 %v3684_v40, 16  ;;  %v3716_v45 = vshll.u32 %v3684_v40, 16  ;;  %v3742_v22 = vld [vmem:[#allocation4 + $0x28] sm:$0xf]  ;;  %v3685_v39 = vmul.bf16 %v3680_v60, %v12631_v23 }
 0x53f   : > { %9120 = vmatpush3.bf16.msra.mxu1 %v11399_v48  ;;  %4672 = vmatprep.mubr.bf16.mxu1 %v3750_v61  ;;  %v3702_v4 = vsel %vm3235_vm5, %v3693_v31, %v3701_v33  ;;  %v3600_v48 = vld [vmem:[#allocation4 + $0x18] sm:$0xff]  ;;  %v3784_v33 = vshrl.u32 %v3771_v50, 16  ;;  %v3787_v37 = vshll.u32 %v3771_v50, 16  ;;  %v11410_v31 = vld [vmem:[#allocation5 + $0x230] sm:$0xff]  }
 0x540   : > { %9121 = vmatprep.subr.bf16.mxu1 %v11402_v6  ;;  %9082 = vmatpush3.bf16.msra.mxu0 %v11401_v51  ;;  %v3715_v46 = vrot.slane %v3713_v24, 3  ;;  %v11409_v6 = vld [vmem:[#allocation5 + $0x228] sm:$0xff]   ;;  %v3722_v0 = vshrl.u32 %v3685_v39, 16  ;;  %v3725_v14 = vshll.u32 %v3685_v39, 16 }
 0x541   : > { %10069 = vmatprep.subr.bf16.mxu0 %v11404_v15  ;;  %v3786_v11 = vrot.slane %v3784_v33, 4  ;;  %v3789_v61 = vrot.slane %v3787_v37, 5 }
 0x543   : > { %9122 = vmatpush3.bf16.msra.mxu1 %v11403_v59  ;;  %4608 = vmatmul.mubr.bf16.vlgmr.msra.gmra.mrb[24].mxu0 %v12705_v13  ;;  %v3753_v13 = vrot.slane %v12857_v38, 4  ;;  %v3790_v24 = vor.u32 %v3789_v61, %v3786_v11  ;;  %v4810_v11 = vld [vmem:[%s13815_s4 + $0x20] sm:$0xff] }
 0x544   : > { %10885 = vmatprep.subr.bf16.mxu1 %v13963_v25  ;;  %10070 = vmatpush3.bf16.msra.mxu0 %v11404_v15  ;;  %v3773_v15 = vmul.bf16 %v12857_v38, %v12725_v41 }
 0x545   : > { %4615 = vmatprep.mubr.bf16.mxu0 %v3651_v1  ;;  %10071 = vmatprep.subr.bf16.mxu0 %v11405_v30  ;;  %v3770_v1 = vmul.bf16 %v3765_v19, %v12619_v12  ;;  %v3754_v34 = vsel %vm3298_vm6, %v12746_v43, %v3753_v13  ;;  %v3772_v43 = vmul.bf16 %v3600_v48, %v12679_v9 }
 0x546   : > { %4673 = vmatmul.mubr.bf16.vlgmr.msra.gmra.mrb[32].mxu1 %v3702_v4  ;;  %v3727_v4 = vrot.slane %v3725_v14, 4  ;;  %v3805_v53 = vshll.u32 %v3773_v15, 16 }
 0x547   : > { %4680 = vmatprep.mubr.bf16.mxu1 %v12756_v58  ;;  %v3718_v58 = vrot.slane %v3716_v45, 4  ;;  %v3776_v42 = vshrl.u32 %v3770_v1, 16  ;;  %v3793_v40 = vshrl.u32 %v3772_v43, 16  ;;  %v3802_v45 = vshrl.u32 %v3773_v15, 16 }
 0x548   : > { %10072 = vmatpush3.bf16.msra.mxu0 %v11405_v30  ;;  %v3724_v30 = vrot.slane %v3722_v0, 3 }
 0x549   : > { %10073 = vmatprep.subr.bf16.mxu0 %v11406_v10  ;;  %v3719_v54 = vor.u32 %v3718_v58, %v3715_v46  ;;  %v3778_v51 = vrot.slane %v3776_v42, 4  ;;  %v3804_v46 = vrot.slane %v3802_v45, 4  ;;  %v3807_v58 = vrot.slane %v3805_v53, 5  ;;  %v12938_v45 = vld [vmem:[%s13815_s4 + $0x40] sm:$0xff]  ;;  %v12943_v53 = vld [vmem:[%s13815_s4 + $0x48] sm:$0xff] }
 0x54b   : > { %4616 = vmatmul.mubr.bf16.gmra.mrb[28].mxu0 %v12707_v8  ;;  %v3779_v8 = vshll.u32 %v3770_v1, 16  ;;  %v3720_v59 = vsel %vm3235_vm5, %v12848_v62, %v3719_v54  ;;  %v3728_v1 = vor.u32 %v3727_v4, %v3724_v30  ;;  %v3795_v62 = vrot.slane %v3793_v40, 4  ;;  %v12918_v30 = vld [vmem:[%s13815_s4 + $0x30] sm:$0xff]  ;;  %v12923_v4 = vld [vmem:[%s13815_s4 + $0x38] sm:$0xff] }
 0x54c   : > { %10074 = vmatpush3.bf16.msra.mxu0 %v11406_v10  ;;  %4623 = vmatprep.mubr.bf16.mxu0 %v3659_v28  ;;  %v3755_v28 = vrot.slane %v3742_v22, 4  ;;  %v3796_v10 = vshll.u32 %v3772_v43, 16  ;;  %v3808_v42 = vor.u32 %v3807_v58, %v3804_v46  ;;  %v4808_v43 = vld [vmem:[%s13815_s4 + $0x10] sm:$0xff] }
 0x54d   : > { %10075 = vmatprep.subr.bf16.mxu0 %v11407_v16  ;;  %v3781_v27 = vrot.slane %v3779_v8, 5  ;;  %v4829_v61 = vand.u32 4294901760, %v4808_v43 }
 0x54e   : > { %4681 = vmatmul.mubr.bf16.gmra.mrb[36].mxu1 %v3711_v26  ;;  %v3756_v26 = vsel %vm3298_vm6, %v3753_v13, %v3755_v28  ;;  %v3798_v60 = vrot.slane %v3796_v10, 5  ;;  %v4806_v28 = vld [vmem:[%s13815_s4] sm:$0xff] }
 0x54f   : > { %4688 = vmatprep.mubr.bf16.mxu1 %v3754_v34  ;;  %v3782_v19 = vor.u32 %v3781_v27, %v3778_v51  ;;  %v3729_v34 = vsel %vm3235_vm5, %v3719_v54, %v3728_v1  ;;  %v4823_v0 = vand.u32 4294901760, %v4806_v28  ;;  %v4809_v27 = vld [vmem:[%s13815_s4 + $0x18] sm:$0xff] }
 0x550   : > { %10076 = vmatpush3.bf16.msra.mxu0 %v11407_v16  ;;  %v3769_v16 = vld [vmem:[#allocation4 + $0x28] sm:$0x1f]  ;;  %v4832_v15 = vand.u32 4294901760, %v4809_v27 }
 0x551   : > { %10077 = vmatprep.subr.bf16.mxu0 %v11408_v49  ;;  %v3774_v13 = vmul.bf16 %v3769_v16, %v12681_v18  ;;  %v3791_v50 = vsel %vm3189_vm4, %v3782_v19, %v3790_v24  ;;  %v4841_v19 = vand.u32 4294901760, %v12918_v30  ;;  %v12945_v16 = vsub.f32 %v4806_v28, %v4823_v0 }
 0x552   : > { %v12925_v40 = vpack.c.bf16 %v4832_v15, %v4829_v61 }
 0x553   : > { %4624 = vmatmul.mubr.bf16.gmra.mrb[32].mxu0 %v3600_v48  ;;  %v3811_v22 = vshrl.u32 %v3774_v13, 16  ;;  %v3814_v39 = vshll.u32 %v3774_v13, 16  ;;  %v12958_v13 = vld [vmem:[%s13815_s4 + $0x50] sm:$0xff]  ;;  %v13877_v46 = vand.u32 4294901760, %v12945_v16 }
 0x554   : > { %10078 = vmatpush3.bf16.msra.mxu0 %v11408_v49  ;;  %4631 = vmatprep.mubr.bf16.mxu0 %v12853_v32  ;;  %v11411_v32 = vld [vmem:[#allocation5 + $0x238] sm:$0xff]   ;;  %v3799_v49 = vor.u32 %v3798_v60, %v3795_v62  ;;  %v4847_v62 = vand.u32 4294901760, %v12938_v45  ;;  %v4850_v60 = vand.u32 4294901760, %v12943_v53 }
 0x555   : > { %10079 = vmatprep.subr.bf16.mxu0 %v11409_v6  ;;  %v3813_v48 = vrot.slane %v3811_v22, 4  ;;  %v3816_v8 = vrot.slane %v3814_v39, 5  ;;  %v4853_v22 = vand.u32 4294901760, %v12958_v13 }
 0x556   : > { %4689 = vmatmul.mubr.bf16.gmra.mrb[40].mxu1 %v3720_v59  ;;  %v3809_v33 = vsel %vm3189_vm4, %v3799_v49, %v3808_v42  ;;  %v4811_v59 = vld [vmem:[%s13815_s4 + $0x28] sm:$0xff] }
 0x557   : > { %4696 = vmatprep.mubr.bf16.mxu1 %v3756_v26  ;;  %v3817_v37 = vor.u32 %v3816_v8, %v3813_v48  ;;  %v4835_v26 = vand.u32 4294901760, %v4810_v11  ;;  %v12983_v48 = vpack.c.bf16 %v4850_v60, %v4847_v62  ;;  %v12988_v8 = vld [vmem:[%s13815_s4 + $0x60] sm:$0xff] }
 0x558   : > { %10080 = vmatpush3.bf16.msra.mxu0 %v11409_v6  ;;  %v4807_v6 = vld [vmem:[%s13815_s4 + $0x8] sm:$0xff] }
 0x559   : > { %10081 = vmatprep.subr.bf16.mxu0 %v11410_v31  ;;  %v3818_v54 = vsel %vm3189_vm4, %v3808_v42, %v3817_v37  ;;  %v4826_v14 = vand.u32 4294901760, %v4807_v6  ;;  %v4917_v42 = vsub.f32 %v12945_v16, %v13877_v46 }
 0x55b   : > { %4632 = vmatmul.mubr.bf16.gmra.mrb[36].mxu0 %v12857_v38  ;;  %v3800_v38 = vsel %vm3189_vm4, %v3790_v24, %v3799_v49  ;;  %v12897_v51 = vpack.c.bf16 %v4826_v14, %v4823_v0  ;;  %v4844_v24 = vand.u32 4294901760, %v12923_v4  ;;  %v12971_v49 = vsub.f32 %v4809_v27, %v4832_v15 }
 0x55c   : > { %10082 = vmatpush3.bf16.msra.mxu0 %v11410_v31  ;;  %10085 = vmatprep.mubr.bf16.mxu0 %v3791_v50  ;;  %v4838_v31 = vand.u32 4294901760, %v4811_v59  ;;  %v12963_v50 = vld [vmem:[%s13815_s4 + $0x58] sm:$0xff]  ;;  %v4918_v28 = vand.u32 4294901760, %v4917_v42  ;;  %v4859_v15 = vand.u32 4294901760, %v12988_v8 }
 0x55d   : > { %10083 = vmatprep.subr.bf16.mxu0 %v11411_v32  ;;  %10887 = vmatpush3.bf16.msra.mxu1 %v12897_v51  ;;  %v12951_v1 = vpack.c.bf16 %v4844_v24, %v4841_v19  ;;  %v13878_v39 = vand.u32 4294901760, %v12963_v50 }
 0x55e   : > { %4697 = vmatmul.mubr.bf16.gmra.mrb[44].mxu1 %v3729_v34  ;;  %10888 = vmatprep.subr.bf16.mxu1 %v13963_v25  ;;  %v12929_v10 = vpack.c.bf16 %v4838_v31, %v4835_v26  ;;  %v12969_v34 = vsub.f32 %v4808_v43, %v4829_v61  ;;  %v13005_v43 = vsub.f32 %v4810_v11, %v4835_v26  ;;  %v13024_v11 = vld [vmem:[%s13815_s4 + $0x70] sm:$0xff] }
 0x55f   : > { %10125 = vmatprep.mubr.msk.f32.mxu1 %vm11621_vm0, %v13962_v36  ;;  %v13007_v27 = vsub.f32 %v4811_v59, %v4838_v31  ;;  %v13013_v61 = vpack.c.bf16 %v13878_v39, %v4853_v22  ;;  %v13029_v59 = vld [vmem:[%s13815_s4 + $0x78] sm:$0xff]  ;;  %v13049_v39 = vsub.f32 %v12923_v4, %v4844_v24 }
 0x560   : > { %10084 = vmatpush3.bf16.msra.mxu0 %v11411_v32  ;;  %v12947_v32 = vsub.f32 %v4807_v6, %v4826_v14  ;;  %v13875_v37 = vand.u32 4294901760, %v12969_v34  ;;  %v13883_v46 = vand.u32 4294901760, %v13029_v59 }
 0x561   : > { %11029 = vmatprep.subr.bf16.mxu0 %v13963_v25  ;;  %10890 = vmatpush3.bf16.msra.mxu1 %v12925_v40  ;;  %14008 = vst [vmem:[#allocation52_spill] sm:$0xff] %v13049_v39 }
 0x562   : > { %10891 = vmatprep.subr.bf16.mxu1 %v13963_v25  ;;  %v13876_v58 = vand.u32 4294901760, %v12947_v32  ;;  %v4931_v0 = vsub.f32 %v12969_v34, %v13875_v37 }
 0x563   : > { %10086 = vmatmul.mubr.bf16.vlgmr.msra.gmra.mrb[40].mxu0 %v3800_v38 }
 0x564   : > { %10089 = vmatprep.mubr.bf16.mxu0 %v3809_v33  ;;  %11031 = vmatpush3.bf16.msra.mxu0 %v12897_v51  ;;  %v4924_v38 = vsub.f32 %v12947_v32, %v13876_v58  ;;  %v12993_v33 = vld [vmem:[%s13815_s4 + $0x68] sm:$0xff]  ;;  %v4932_v26 = vand.u32 4294901760, %v4931_v0  ;;  %v13044_v0 = vsub.f32 %v12918_v30, %v4841_v19  ;;  %v13881_v19 = vand.u32 4294901760, %v13049_v39 }
 0x565   : > { %11032 = vmatprep.subr.bf16.mxu0 %v13963_v25  ;;  %10893 = vmatpush3.bf16.msra.mxu1 %v12929_v10  ;;  %v13887_v42 = vand.u32 4294901760, %v12993_v33  ;;  %v14015_v2 = vand.u32 4294901760, %v12993_v33 }
 0x566   : > { %10894 = vmatprep.subr.bf16.mxu1 %v13963_v25  ;;  %v4925_v6 = vand.u32 4294901760, %v4924_v38  ;;  %14007 = vst [vmem:[#allocation51_spill] sm:$0xff] %v13044_v0  ;;  %v13882_v30 = vand.u32 4294901760, %v13044_v0 }
 0x567   : > { %v13130_v17 = vsub.f32 %v12993_v33, %v14015_v2  ;;  %v14017_v33 = vand.u32 4294901760, %v13024_v11 }
 0x568   : > { %11034 = vmatpush3.bf16.msra.mxu0 %v12925_v40  ;;  %v13017_v38 = vpack.c.bf16 %v4925_v6, %v4918_v28  ;;  %v13879_v28 = vand.u32 4294901760, %v13007_v27  ;;  %v4959_v24 = vsub.f32 %v13044_v0, %v13882_v30  ;;  %v14012_v30 = vand.u32 4294901760, %v12963_v50 }
 0x569   : > { %11035 = vmatprep.subr.bf16.mxu0 %v13963_v25  ;;  %10896 = vmatpush3.bf16.msra.mxu1 %v12951_v1  ;;  %14016 = vst [vmem:[#allocation58_spill] sm:$0xff] %v13130_v17 }
 0x56a   : > { %10897 = vmatprep.subr.bf16.mxu1 %v13963_v25  ;;  %v4952_v58 = vsub.f32 %v13007_v27, %v13879_v28 }
 0x56b   : > { %10090 = vmatmul.mubr.bf16.gmra.mrb[44].mxu0 %v3818_v54  ;;  %v13874_v54 = vand.u32 4294901760, %v12971_v49 }
 0x56c   : > { %10335 = vmatprep.mubr.msk.f32.mxu0 %vm11621_vm0, %v13962_v36  ;;  %11037 = vmatpush3.bf16.msra.mxu0 %v12929_v10  ;;  %v4953_v28 = vand.u32 4294901760, %v4952_v58  ;;  %v4966_v58 = vsub.f32 %v13049_v39, %v13881_v19 }
 0x56d   : > { %11038 = vmatprep.subr.bf16.mxu0 %v13963_v25  ;;  %v4938_v14 = vsub.f32 %v12971_v49, %v13874_v54  ;;  %10899 = vmatpush3.bf16.msra.mxu1 %v12983_v48  ;;  %v13880_v54 = vand.u32 4294901760, %v13005_v43 }
 0x56e   : > { %10900 = vmatprep.subr.bf16.mxu1 %v13963_v25 }
 0x56f   : > { %v4939_v31 = vand.u32 4294901760, %v4938_v14  ;;  %v4945_v37 = vsub.f32 %v13005_v43, %v13880_v54  ;;  %v13884_v14 = vand.u32 4294901760, %v13024_v11  ;;  %v13067_v54 = vsub.f32 %v12938_v45, %v4847_v62 }
 0x570   : > { %11040 = vmatpush3.bf16.msra.mxu0 %v12951_v1  ;;  %v4967_v62 = vand.u32 4294901760, %v4966_v58 }
 0x571   : > { %11041 = vmatprep.subr.bf16.mxu0 %v13963_v25  ;;  %v13035_v6 = vpack.c.bf16 %v4939_v31, %v4932_v26  ;;  %10902 = vmatpush3.bf16.msra.mxu1 %v13013_v61  ;;  %v13055_v26 = vpack.c.bf16 %v13887_v42, %v4859_v15  ;;  %v4946_v31 = vand.u32 4294901760, %v4945_v37  ;;  %14009 = vst [vmem:[#allocation53_spill] sm:$0xff] %v13067_v54  ;;  %v13885_v45 = vand.u32 4294901760, %v13067_v54 }
 0x572   : > { %10903 = vmatprep.subr.bf16.mxu1 %v13963_v25  ;;  %v13070_v37 = vsub.f32 %v12943_v53, %v4850_v60 }
 0x573   : > { %v13061_v4 = vpack.c.bf16 %v4953_v28, %v4946_v31  ;;  %v13081_v28 = vpack.c.bf16 %v13883_v46, %v13884_v14  ;;  %v4960_v31 = vand.u32 4294901760, %v4959_v24  ;;  %v4973_v60 = vsub.f32 %v13067_v54, %v13885_v45 }
 0x574   : > { %11043 = vmatpush3.bf16.msra.mxu0 %v12983_v48  ;;  %14010 = vst [vmem:[#allocation54_spill] sm:$0xff] %v13070_v37  ;;  %v13886_v53 = vand.u32 4294901760, %v13070_v37  ;;  %v13096_v24 = vsub.f32 %v12958_v13, %v4853_v22  ;;  %v13101_v46 = vsub.f32 %v12963_v50, %v14012_v30  ;;  %v13114_v13 = vld [vmem:[%s13821_s10] ss:$0 sm:$0xff] }
 0x575   : > { %11044 = vmatprep.subr.bf16.mxu0 %v13963_v25  ;;  %10905 = vmatpush3.bf16.msra.mxu1 %v13055_v26  ;;  %v13103_v14 = vpack.c.bf16 %v4967_v62, %v4960_v31  ;;  %v4974_v58 = vand.u32 4294901760, %v4973_v60  ;;  %v13125_v31 = vsub.f32 %v12988_v8, %v4859_v15 }
 0x576   : > { %10906 = vmatprep.subr.bf16.mxu1 %v13963_v25  ;;  %v4980_v19 = vsub.f32 %v13070_v37, %v13886_v53  ;;  %14011 = vst [vmem:[#allocation55_spill] sm:$0xff] %v13096_v24  ;;  %14013 = vst [vmem:[#allocation56_spill] sm:$0xff] %v13101_v46  ;;  %v13896_v53 = vand.u32 4294901760, %v13096_v24  ;;  %v13898_v42 = vand.u32 4294901760, %v13101_v46 }
 0x577   : > { %14014 = vst [vmem:[#allocation57_spill] sm:$0xff] %v13125_v31  ;;  %v13212_v55 = vpack.c.bf16 %v13130_v17, %v13125_v31 }
 0x578   : > { %11046 = vmatpush3.bf16.msra.mxu0 %v13013_v61  ;;  %v4981_v45 = vand.u32 4294901760, %v4980_v19  ;;  %v4987_v30 = vsub.f32 %v13096_v24, %v13896_v53  ;;  %v4994_v19 = vsub.f32 %v13101_v46, %v13898_v42  ;;  %v13901_v53 = vand.u32 4294901760, %v13125_v31 }
 0x579   : > { %11047 = vmatprep.subr.bf16.mxu0 %v13963_v25  ;;  %10908 = vmatpush3.bf16.msra.mxu1 %v13081_v28 }
 0x57a   : > { %10909 = vmatprep.subr.bf16.mxu1 %v13963_v25  ;;  %v13116_v22 = vpack.c.bf16 %v4981_v45, %v4974_v58  ;;  %v4988_v18 = vand.u32 4294901760, %v4987_v30  ;;  %v4995_v23 = vand.u32 4294901760, %v4994_v19  ;;  %v5001_v2 = vsub.f32 %v13125_v31, %v13901_v53 }
 0x57b   : > { %v13143_v30 = vsub.f32 %v13024_v11, %v14017_v33  ;;  %v14019_v19 = vand.u32 4294901760, %v13029_v59 }
 0x57c   : > { %11049 = vmatpush3.bf16.msra.mxu0 %v13055_v26 }
 0x57d   : > { %11050 = vmatprep.subr.bf16.mxu0 %v13963_v25  ;;  %14018 = vst [vmem:[#allocation59_spill] sm:$0xff] %v13143_v30 }
 0x580   : > { %11052 = vmatpush3.bf16.msra.mxu0 %v13081_v28 }
 0x581   : > { %11053 = vmatprep.subr.bf16.mxu0 %v13963_v25 }
 0x5f6   : > { %v9003_v29 = vpop.f32.mrb[8].mxu0 }
 0x5f7   : > { %v9004_v50 = vpop.f32.mrb[9].mxu0 }
 0x5f8   : > { %v9005_v62 = vadd.f32 %v9004_v50, %v9003_v29  ;;  %v9006_v56 = vpop.f32.mrb[10].mxu0  ;;  %v13903_v29 = vand.u32 4294901760, %v13130_v17  ;;  %v13135_v50 = vpack.c.bf16 %v4995_v23, %v4988_v18 }
 0x5f9   : > { %v9043_v60 = vpop.f32.mrb[16].mxu1  ;;  %v9007_v58 = vpop.f32.mrb[11].mxu0 }
 0x5fa   : > { %v9044_v45 = vpop.f32.mrb[17].mxu1  ;;  %v4480_v63 = vadd.f32 %v9005_v62, %v13114_v13  ;;  %v9008_v41 = vadd.f32 %v9007_v58, %v9006_v56  ;;  %v13148_v62 = vsub.f32 %v13029_v59, %v14019_v19  ;;  %v5008_v18 = vsub.f32 %v13130_v17, %v13903_v29 }
 0x5fb   : > { %v9045_v42 = vadd.f32 %v9044_v45, %v9043_v60  ;;  %v9046_v8 = vpop.f32.mrb[18].mxu1  ;;  %v5002_v45 = vand.u32 4294901760, %v5001_v2  ;;  %v13906_v58 = vand.u32 4294901760, %v13143_v30  ;;  %v13170_v19 = vpack.c.bf16 %v12947_v32, %v12945_v16 }
 0x5fc   : > { %v9047_v15 = vpop.f32.mrb[19].mxu1  ;;  %14020 = vst [vmem:[#allocation60_spill] sm:$0xff] %v13148_v62  ;;  %v4483_v60 = vadd.f32 %v9008_v41, %v13114_v13  ;;  %v13912_v11 = vand.u32 4294901760, %v13148_v62  ;;  %v5009_v7 = vand.u32 4294901760, %v5008_v18 }
 0x5fd   : > { %v13150_v56 = vadd.f32 %v9045_v42, %v4480_v63  ;;  %v9048_v23 = vadd.f32 %v9047_v15, %v9046_v8  ;;  %v5015_v63 = vsub.f32 %v13143_v30, %v13906_v58 }
 0x5fe   : > { %v9009_v53 = vpop.f32.mrb[12].mxu0  ;;  %v5022_v41 = vsub.f32 %v13148_v62, %v13912_v11  ;;  %v13166_v2 = vpack.c.bf16 %v5009_v7, %v5002_v45  ;;  %v13177_v7 = vpack.c.bf16 %v12971_v49, %v12969_v34 }
 0x5ff   : > { %v13158_v33 = vadd.f32 %v9048_v23, %v4483_v60  ;;  %v9010_v59 = vpop.f32.mrb[13].mxu0  ;;  %v5016_v18 = vand.u32 4294901760, %v5015_v63 }
 0x600   : > { %v9011_v42 = vadd.f32 %v9010_v59, %v9009_v53  ;;  %v9012_v15 = vpop.f32.mrb[14].mxu0  ;;  %v5023_v29 = vand.u32 4294901760, %v5022_v41 }
 0x601   : > { %v9049_v8 = vpop.f32.mrb[20].mxu1  ;;  %v9013_v23 = vpop.f32.mrb[15].mxu0 }
 0x602   : > { %v9050_v60 = vpop.f32.mrb[21].mxu1  ;;  %v4488_v3 = vadd.f32 %v9011_v42, %v13114_v13  ;;  %v9014_v44 = vadd.f32 %v9013_v23, %v9012_v15  ;;  %v13173_v11 = vpack.c.bf16 %v5023_v29, %v5016_v18  ;;  %v13186_v42 = vpack.c.bf16 %v13007_v27, %v13005_v43 }
 0x603   : > { %v9051_v58 = vadd.f32 %v9050_v60, %v9049_v8  ;;  %v9052_v9 = vpop.f32.mrb[22].mxu1 }
 0x604   : > { %v9053_v47 = vpop.f32.mrb[23].mxu1  ;;  %v4491_v45 = vadd.f32 %v9014_v44, %v13114_v13 }
 0x605   : > { %v13179_v53 = vadd.f32 %v9051_v58, %v4488_v3  ;;  %v9054_v59 = vadd.f32 %v9053_v47, %v9052_v9  ;;  %v13191_v47 = vpack.c.bf16 %v13049_v39, %v13044_v0 }
 0x606   : > { %v9015_v63 = vpop.f32.mrb[16].mxu0 }
 0x607   : > { %v13182_v21 = vadd.f32 %v9054_v59, %v4491_v45  ;;  %v9016_v41 = vpop.f32.mrb[17].mxu0 }
 0x608   : > { %v9017_v8 = vadd.f32 %v9016_v41, %v9015_v63  ;;  %v9018_v15 = vpop.f32.mrb[18].mxu0 }
 0x609   : > { %v9055_v29 = vpop.f32.mrb[24].mxu1  ;;  %v9019_v23 = vpop.f32.mrb[19].mxu0 }
 0x60a   : > { %v9056_v60 = vpop.f32.mrb[25].mxu1  ;;  %v4496_v18 = vadd.f32 %v9017_v8, %v13114_v13  ;;  %v9020_v58 = vadd.f32 %v9019_v23, %v9018_v15  ;;  %v13200_v8 = vpack.c.bf16 %v13070_v37, %v13067_v54 }
 0x60b   : > { %v9057_v3 = vadd.f32 %v9056_v60, %v9055_v29  ;;  %v9058_v35 = vpop.f32.mrb[26].mxu1 }
 0x60c   : > { %v9059_v44 = vpop.f32.mrb[27].mxu1  ;;  %v4499_v45 = vadd.f32 %v9020_v58, %v13114_v13 }
 0x60d   : > { %v13193_v9 = vadd.f32 %v9057_v3, %v4496_v18  ;;  %v9060_v59 = vadd.f32 %v9059_v44, %v9058_v35  ;;  %v13205_v35 = vpack.c.bf16 %v13101_v46, %v13096_v24 }
 0x60e   : > { %v9021_v41 = vpop.f32.mrb[20].mxu0 }
 0x60f   : > { %v13196_v63 = vadd.f32 %v9060_v59, %v4499_v45  ;;  %v9022_v5 = vpop.f32.mrb[21].mxu0 }
 0x610   : > { %v9023_v29 = vadd.f32 %v9022_v5, %v9021_v41  ;;  %v9024_v60 = vpop.f32.mrb[22].mxu0 }
 0x611   : > { %v9061_v15 = vpop.f32.mrb[28].mxu1  ;;  %v9025_v20 = vpop.f32.mrb[23].mxu0 }
 0x612   : > { %v9062_v23 = vpop.f32.mrb[29].mxu1  ;;  %v4504_v52 = vadd.f32 %v9023_v29, %v13114_v13  ;;  %v9026_v3 = vadd.f32 %v9025_v20, %v9024_v60 }
 0x613   : > { %v9063_v18 = vadd.f32 %v9062_v23, %v9061_v15  ;;  %v9064_v12 = vpop.f32.mrb[30].mxu1 }
 0x614   : > { %v9065_v58 = vpop.f32.mrb[31].mxu1  ;;  %v4507_v45 = vadd.f32 %v9026_v3, %v13114_v13 }
 0x615   : > { %v4569_v44 = vadd.f32 %v9063_v18, %v4504_v52  ;;  %v9066_v59 = vadd.f32 %v9065_v58, %v9064_v12  ;;  %v13217_v12 = vpack.c.bf16 %v13148_v62, %v13143_v30 }
 0x616   : > { %v9083_v5 = vpop.f32.mrb[24].mxu0 }
 0x617   : > { %v13208_v57 = vadd.f32 %v9066_v59, %v4507_v45  ;;  %v9084_v41 = vpop.f32.mrb[25].mxu0 }
 0x618   : > { %v9085_v29 = vadd.f32 %v9084_v41, %v9083_v5  ;;  %v9086_v15 = vpop.f32.mrb[26].mxu0 }
 0x619   : > { %v9123_v20 = vpop.f32.mrb[32].mxu1  ;;  %v9087_v23 = vpop.f32.mrb[27].mxu0 }
 0x61a   : > { %v9124_v60 = vpop.f32.mrb[33].mxu1  ;;  %v4610_v46 = vadd.f32 %v9085_v29, %v13150_v56  ;;  %v9088_v52 = vadd.f32 %v9087_v23, %v9086_v15 }
 0x61b   : > { %v9125_v24 = vadd.f32 %v9124_v60, %v9123_v20  ;;  %v9126_v18 = vpop.f32.mrb[34].mxu1 }
 0x61c   : > { %v9127_v13 = vpop.f32.mrb[35].mxu1  ;;  %v4613_v3 = vadd.f32 %v9088_v52, %v13158_v33 }
 0x61d   : > { %v9128_v58 = vadd.f32 %v9127_v13, %v9126_v18  ;;  %v4675_v45 = vadd.f32 %v9125_v24, %v4610_v46 }
 0x61e   : > { %v9089_v59 = vpop.f32.mrb[28].mxu0 }
 0x61f   : > { %v4678_v5 = vadd.f32 %v9128_v58, %v4613_v3  ;;  %v9090_v41 = vpop.f32.mrb[29].mxu0 }
 0x620   : > { %v9091_v17 = vadd.f32 %v9090_v41, %v9089_v59  ;;  %v9092_v37 = vpop.f32.mrb[30].mxu0 }
 0x621   : > { %v9129_v31 = vpop.f32.mrb[36].mxu1  ;;  %v9093_v56 = vpop.f32.mrb[31].mxu0 }
 0x622   : > { %v9130_v54 = vpop.f32.mrb[37].mxu1  ;;  %v4618_v29 = vadd.f32 %v9091_v17, %v13179_v53  ;;  %v9094_v15 = vadd.f32 %v9093_v56, %v9092_v37 }
 0x623   : > { %v9131_v20 = vadd.f32 %v9130_v54, %v9129_v31  ;;  %v9132_v60 = vpop.f32.mrb[38].mxu1 }
 0x624   : > { %v9133_v23 = vpop.f32.mrb[39].mxu1  ;;  %v4621_v62 = vadd.f32 %v9094_v15, %v13182_v21 }
 0x625   : > { %v9134_v30 = vadd.f32 %v9133_v23, %v9132_v60  ;;  %v4683_v33 = vadd.f32 %v9131_v20, %v4618_v29 }
 0x626   : > { %v9095_v52 = vpop.f32.mrb[32].mxu0 }
 0x627   : > { %v4686_v46 = vadd.f32 %v9134_v30, %v4621_v62  ;;  %v9096_v24 = vpop.f32.mrb[33].mxu0 }
 0x628   : > { %v9097_v18 = vadd.f32 %v9096_v24, %v9095_v52  ;;  %v9098_v3 = vpop.f32.mrb[34].mxu0 }
 0x629   : > { %v9135_v13 = vpop.f32.mrb[40].mxu1  ;;  %v9099_v59 = vpop.f32.mrb[35].mxu0 }
 0x62a   : > { %v9136_v58 = vpop.f32.mrb[41].mxu1  ;;  %v4626_v41 = vadd.f32 %v9097_v18, %v13193_v9  ;;  %v9100_v17 = vadd.f32 %v9099_v59, %v9098_v3 }
 0x62b   : > { %v9137_v39 = vadd.f32 %v9136_v58, %v9135_v13  ;;  %v9138_v54 = vpop.f32.mrb[42].mxu1 }
 0x62c   : > { %v9139_v37 = vpop.f32.mrb[43].mxu1  ;;  %v4629_v31 = vadd.f32 %v9100_v17, %v13196_v63 }
 0x62d   : > { %v9140_v53 = vadd.f32 %v9139_v37, %v9138_v54  ;;  %v4691_v21 = vadd.f32 %v9137_v39, %v4626_v41 }
 0x62e   : > { %v9101_v56 = vpop.f32.mrb[36].mxu0 }
 0x62f   : > { %v4694_v29 = vadd.f32 %v9140_v53, %v4629_v31  ;;  %v9102_v20 = vpop.f32.mrb[37].mxu0 }
 0x630   : > { %v9103_v30 = vadd.f32 %v9102_v20, %v9101_v56  ;;  %v9104_v15 = vpop.f32.mrb[38].mxu0 }
 0x631   : > { %v9141_v62 = vpop.f32.mrb[44].mxu1  ;;  %v9105_v23 = vpop.f32.mrb[39].mxu0 }
 0x632   : > { %v9142_v60 = vpop.f32.mrb[45].mxu1  ;;  %v4634_v52 = vadd.f32 %v9103_v30, %v4569_v44  ;;  %v9106_v0 = vadd.f32 %v9105_v23, %v9104_v15 }
 0x633   : > { %v9143_v24 = vadd.f32 %v9142_v60, %v9141_v62  ;;  %v9144_v9 = vpop.f32.mrb[46].mxu1 }
 0x634   : > { %v9145_v18 = vpop.f32.mrb[47].mxu1  ;;  %v4637_v13 = vadd.f32 %v9106_v0, %v13208_v57 }
 0x635   : > { %v9146_v3 = vadd.f32 %v9145_v18, %v9144_v9  ;;  %v4699_v58 = vadd.f32 %v9143_v24, %v4634_v52 }
 0x636   : > { %v10087_v63 = vpop.f32.mrb[40].mxu0 }
 0x637   : > { %v4702_v59 = vadd.f32 %v9146_v3, %v4637_v13  ;;  %v13225_v39 = vadd.f32 %v10087_v63, %v4683_v33  ;;  %v4739_v41 = vpop.f32.mrb[41].mxu0 }
 0x638   : > { %v13227_v17 = vadd.f32 %v4739_v41, %v4675_v45  ;;  %v10088_v54 = vpop.f32.mrb[42].mxu0 }
 0x639   : > { %v13229_v37 = vadd.f32 %v10088_v54, %v4686_v46  ;;  %v4742_v31 = vpop.f32.mrb[43].mxu0  ;;  %v4787_v33 = vmul.f32 %v13225_v39, %v13225_v39 }
 0x63a   : > { %v13231_v44 = vadd.f32 %v4742_v31, %v4678_v5  ;;  %v4785_v53 = vmul.f32 %v13227_v17, %v13227_v17 }
 0x63b   : > { %v4788_v30 = vmul.f32 %v13229_v37, %v13229_v37 }
 0x63c   : > { %v4772_v57 = vadd.f32 %v13231_v44, %v13227_v17  ;;  %v4786_v0 = vmul.f32 %v13231_v44, %v13231_v44 }
 0x63e   : > { %v4773_v45 = vadd.f32 %v4772_v57, %v13225_v39  ;;  %v4793_v56 = vadd.f32 %v4786_v0, %v4785_v53  ;;  %v10091_v46 = vpop.f32.mrb[44].mxu0 }
 0x63f   : > { %v13242_v20 = vadd.f32 %v10091_v46, %v4699_v58  ;;  %v4755_v5 = vpop.f32.mrb[45].mxu0 }
 0x640   : > { %v4794_v62 = vadd.f32 %v4793_v56, %v4787_v33  ;;  %v13246_v15 = vadd.f32 %v4755_v5, %v4691_v21  ;;  %v4774_v60 = vadd.f32 %v4773_v45, %v13229_v37  ;;  %v10092_v23 = vpop.f32.mrb[46].mxu0 }
 0x641   : > { %v13249_v52 = vadd.f32 %v10092_v23, %v4702_v59  ;;  %v4758_v24 = vpop.f32.mrb[47].mxu0  ;;  %v4791_v41 = vmul.f32 %v13242_v20, %v13242_v20 }
 0x642   : > { %v4775_v9 = vadd.f32 %v4774_v60, %v13246_v15  ;;  %v4789_v18 = vmul.f32 %v13246_v15, %v13246_v15  ;;  %v4795_v13 = vadd.f32 %v4794_v62, %v4788_v30  ;;  %v13254_v3 = vadd.f32 %v4758_v24, %v4694_v29 }
 0x643   : > { %v4792_v31 = vmul.f32 %v13249_v52, %v13249_v52 }
 0x644   : > { %v4796_v58 = vadd.f32 %v4795_v13, %v4789_v18  ;;  %v4776_v63 = vadd.f32 %v4775_v9, %v13254_v3  ;;  %v4790_v21 = vmul.f32 %v13254_v3, %v13254_v3 }
 0x646   : > { %v4777_v59 = vadd.f32 %v4776_v63, %v13242_v20  ;;  %v4797_v54 = vadd.f32 %v4796_v58, %v4790_v21 }
 0x648   : > { %v4778_v53 = vadd.f32 %v4777_v59, %v13249_v52  ;;  %v4798_v57 = vadd.f32 %v4797_v54, %v4791_v41 }
 0x64a   : > { %v4779_v29 = vrot.slane %v4778_v53, 4  ;;  %v4799_v0 = vadd.f32 %v4798_v57, %v4792_v31 }
 0x64c   : > { %v4780_v33 = vadd.f32 %v4779_v29, %v4778_v53  ;;  %v4800_v45 = vrot.slane %v4799_v0, 4 }
 0x64e   : > { %v4781_v56 = vrot.slane %v4780_v33, 2  ;;  %v4801_v46 = vadd.f32 %v4800_v45, %v4799_v0  ;;  %v14039_v0 = vld [vmem:[#allocation57_spill] sm:$0xff]  ;;  %v14041_v45 = vld [vmem:[#allocation58_spill] sm:$0xff] }
 0x650   : > { %v4782_v5 = vadd.f32 %v4781_v56, %v4780_v33  ;;  %v4802_v30 = vrot.slane %v4801_v46, 2  ;;  %v14040_v33 = vand.u32 4294901760, %v14039_v0  ;;  %v14042_v56 = vand.u32 4294901760, %v14041_v45  ;;  %v11423_v0 = vld [vmem:[#allocation8 + $0x90] sm:$0xff]   ;;  %v11426_v45 = vld [vmem:[#allocation8 + $0xd8] sm:$0xff]  }
 0x652   : > { %v4783_v62 = vrot.slane %v4782_v5, 1  ;;  %v4803_v60 = vadd.f32 %v4802_v30, %v4801_v46  ;;  %v11000_v46 = vpack.c.bf16 %v14042_v56, %v14040_v33  ;;  %v11425_v33 = vld [vmem:[#allocation8 + $0x18] sm:$0xff]   ;;  %v11428_v56 = vld [vmem:[#allocation8 + $0x60] sm:$0xff]  }
 0x654   : > { %v4784_v23 = vadd.f32 %v4783_v62, %v4782_v5  ;;  %v4804_v24 = vrot.slane %v4803_v60, 1  ;;  %v14043_v5 = vld [vmem:[#allocation59_spill] sm:$0xff]  ;;  %v14045_v62 = vld [vmem:[#allocation60_spill] sm:$0xff] }
 0x655   : > { %v14044_v30 = vand.u32 4294901760, %v14043_v5  ;;  %v11429_v5 = vld [vmem:[#allocation8 + $0x20] sm:$0xff]  }
 0x656   : > { %v4805_v9 = vadd.f32 %v4804_v24, %v4803_v60  ;;  %v13265_v18 = vand.u32 4294901760, %v4784_v23  ;;  %v14046_v60 = vand.u32 4294901760, %v14045_v62  ;;  %v11432_v62 = vld [vmem:[#allocation8 + $0x68] sm:$0xff]  }
 0x658   : > { %v13267_v13 = vand.u32 4294901760, %v4805_v9  ;;  %v13270_v58 = vsub.f32 %v4784_v23, %v13265_v18  ;;  %v11003_v23 = vpack.c.bf16 %v14046_v60, %v14044_v30  ;;  %v11430_v30 = vld [vmem:[#allocation8 + $0xe0] sm:$0xff]  }
 0x659   : > { %v11431_v60 = vld [vmem:[#allocation8 + $0xa0] sm:$0xff]  }
 0x65a   : > { %v4905_v63 = vand.u32 4294901760, %v13270_v58  ;;  %v13274_v21 = vsub.f32 %v4805_v9, %v13267_v13 }
 0x65c   : > { %v4906_v41 = vsub.f32 %v13270_v58, %v4905_v63  ;;  %v5546_v59 = vand.u32 4294901760, %v13274_v21 }
 0x65e   : > { %v4907_v54 = vand.u32 4294901760, %v4906_v41  ;;  %v5547_v31 = vsub.f32 %v13274_v21, %v5546_v59 }
 0x660   : > { %10126 = vmatmul.mubr.f32.vlgmr.msra.gmra.mrb[14].mxu1 %v4907_v54  ;;  %v5548_v53 = vand.u32 4294901760, %v5547_v31 }
 0x661   : > { %10911 = vmatpush3.bf16.msra.mxu1 %v13017_v38  ;;  %10160 = vmatprep.mubr.msk.f32.mxu1 %vm11621_vm0, %v13962_v36 }
 0x662   : > { %10336 = vmatmul.mubr.f32.vlgmr.msra.gmra.mrb[6].mxu0 %v5548_v53  ;;  %10912 = vmatprep.subr.bf16.mxu1 %v13963_v25 }
 0x663   : > { %11055 = vmatpush3.bf16.msra.mxu0 %v13017_v38  ;;  %10370 = vmatprep.mubr.msk.f32.mxu0 %vm11621_vm0, %v13962_v36  ;;  %v14022_v38 = vand.u32 4294901760, %v12947_v32  ;;  %v14026_v32 = vand.u32 4294901760, %v13007_v27 }
 0x664   : > { %11056 = vmatprep.subr.bf16.mxu0 %v13963_v25 }
 0x665   : > { %10914 = vmatpush3.bf16.msra.mxu1 %v13035_v6 }
 0x666   : > { %10915 = vmatprep.subr.bf16.mxu1 %v13963_v25 }
 0x667   : > { %11058 = vmatpush3.bf16.msra.mxu0 %v13035_v6 }
 0x668   : > { %11059 = vmatprep.subr.bf16.mxu0 %v13963_v25 }
 0x669   : > { %10917 = vmatpush3.bf16.msra.mxu1 %v13061_v4 }
 0x66a   : > { %10918 = vmatprep.subr.bf16.mxu1 %v13963_v25 }
 0x66b   : > { %11061 = vmatpush3.bf16.msra.mxu0 %v13061_v4  ;;  %v14024_v4 = vand.u32 4294901760, %v12971_v49  ;;  %v14027_v49 = vld [vmem:[#allocation51_spill] sm:$0xff] }
 0x66c   : > { %11062 = vmatprep.subr.bf16.mxu0 %v13963_v25 }
 0x66d   : > { %10920 = vmatpush3.bf16.msra.mxu1 %v13103_v14 }
 0x66e   : > { %10921 = vmatprep.subr.bf16.mxu1 %v13963_v25 }
 0x66f   : > { %11064 = vmatpush3.bf16.msra.mxu0 %v13103_v14  ;;  %v14023_v14 = vand.u32 4294901760, %v12969_v34 }
 0x670   : > { %11065 = vmatprep.subr.bf16.mxu0 %v13963_v25 }
 0x671   : > { %10923 = vmatpush3.bf16.msra.mxu1 %v13116_v22 }
 0x672   : > { %10924 = vmatprep.subr.bf16.mxu1 %v13963_v25 }
 0x673   : > { %11067 = vmatpush3.bf16.msra.mxu0 %v13116_v22  ;;  %v10985_v22 = vpack.c.bf16 %v14024_v4, %v14023_v14 }
 0x674   : > { %11068 = vmatprep.subr.bf16.mxu0 %v13963_v25 }
 0x675   : > { %10926 = vmatpush3.bf16.msra.mxu1 %v13135_v50 }
 0x676   : > { %10927 = vmatprep.subr.bf16.mxu1 %v13963_v25 }
 0x677   : > { %11070 = vmatpush3.bf16.msra.mxu0 %v13135_v50  ;;  %v14028_v50 = vand.u32 4294901760, %v14027_v49 }
 0x678   : > { %11071 = vmatprep.subr.bf16.mxu0 %v13963_v25 }
 0x679   : > { %10929 = vmatpush3.bf16.msra.mxu1 %v13166_v2 }
 0x67a   : > { %10930 = vmatprep.subr.bf16.mxu1 %v13963_v25 }
 0x67b   : > { %11073 = vmatpush3.bf16.msra.mxu0 %v13166_v2 }
 0x67c   : > { %11074 = vmatprep.subr.bf16.mxu0 %v13963_v25 }
 0x67d   : > { %10932 = vmatpush3.bf16.msra.mxu1 %v13173_v11 }
 0x67e   : > { %10933 = vmatprep.subr.bf16.mxu1 %v13963_v25 }
 0x67f   : > { %11076 = vmatpush3.bf16.msra.mxu0 %v13173_v11  ;;  %v14029_v11 = vld [vmem:[#allocation52_spill] sm:$0xff] }
 0x680   : > { %10161 = vmatmul.mubr.f32.vlgmr.msra.gmra.mrb[14].mxu1 %v13265_v18  ;;  %11077 = vmatprep.subr.bf16.mxu0 %v13963_v25  ;;  %v14030_v2 = vand.u32 4294901760, %v14029_v11 }
 0x681   : > { %10935 = vmatpush3.bf16.msra.mxu1 %v13170_v19  ;;  %10195 = vmatprep.mubr.msk.f32.mxu1 %vm11621_vm0, %v13962_v36 }
 0x682   : > { %10371 = vmatmul.mubr.f32.vlgmr.msra.gmra.mrb[6].mxu0 %v13267_v13  ;;  %10936 = vmatprep.subr.bf16.mxu1 %v13963_v25 }
 0x683   : > { %11079 = vmatpush3.bf16.msra.mxu0 %v13170_v19  ;;  %10405 = vmatprep.mubr.msk.f32.mxu0 %vm11621_vm0, %v13962_v36  ;;  %v10991_v19 = vpack.c.bf16 %v14030_v2, %v14028_v50 }
 0x684   : > { %11080 = vmatprep.subr.bf16.mxu0 %v13963_v25 }
 0x685   : > { %10938 = vmatpush3.bf16.msra.mxu1 %v13177_v7 }
 0x686   : > { %10939 = vmatprep.subr.bf16.mxu1 %v13963_v25 }
 0x687   : > { %11082 = vmatpush3.bf16.msra.mxu0 %v13177_v7  ;;  %v14033_v7 = vld [vmem:[#allocation54_spill] sm:$0xff] }
 0x688   : > { %11083 = vmatprep.subr.bf16.mxu0 %v13963_v25 }
 0x689   : > { %10941 = vmatpush3.bf16.msra.mxu1 %v13186_v42 }
 0x68a   : > { %10942 = vmatprep.subr.bf16.mxu1 %v13963_v25 }
 0x68b   : > { %11085 = vmatpush3.bf16.msra.mxu0 %v13186_v42  ;;  %v14034_v42 = vand.u32 4294901760, %v14033_v7  ;;  %v11415_v7 = vld [vmem:[#allocation8 + $0x80] sm:$0xff]  }
 0x68c   : > { %11086 = vmatprep.subr.bf16.mxu0 %v13963_v25 }
 0x68d   : > { %10944 = vmatpush3.bf16.msra.mxu1 %v13191_v47 }
 0x68e   : > { %10945 = vmatprep.subr.bf16.mxu1 %v13963_v25 }
 0x68f   : > { %11088 = vmatpush3.bf16.msra.mxu0 %v13191_v47 }
 0x690   : > { %11089 = vmatprep.subr.bf16.mxu0 %v13963_v25 }
 0x691   : > { %10947 = vmatpush3.bf16.msra.mxu1 %v13200_v8 }
 0x692   : > { %10948 = vmatprep.subr.bf16.mxu1 %v13963_v25 }
 0x693   : > { %11091 = vmatpush3.bf16.msra.mxu0 %v13200_v8  ;;  %v14035_v8 = vld [vmem:[#allocation55_spill] sm:$0xff] }
 0x694   : > { %11092 = vmatprep.subr.bf16.mxu0 %v13963_v25 }
 0x695   : > { %10950 = vmatpush3.bf16.msra.mxu1 %v13205_v35 }
 0x696   : > { %10951 = vmatprep.subr.bf16.mxu1 %v13963_v25 }
 0x697   : > { %11094 = vmatpush3.bf16.msra.mxu0 %v13205_v35  ;;  %v14036_v35 = vand.u32 4294901760, %v14035_v8  ;;  %v11418_v8 = vld [vmem:[#allocation8 + $0xc8] sm:$0xff]  }
 0x698   : > { %11095 = vmatprep.subr.bf16.mxu0 %v13963_v25 }
 0x699   : > { %10953 = vmatpush3.bf16.msra.mxu1 %v13212_v55 }
 0x69a   : > { %10954 = vmatprep.subr.bf16.mxu1 %v13963_v25 }
 0x69b   : > { %11097 = vmatpush3.bf16.msra.mxu0 %v13212_v55  ;;  %v14021_v55 = vand.u32 4294901760, %v12945_v16  ;;  %v14025_v16 = vand.u32 4294901760, %v13005_v43  ;;  %v14031_v43 = vld [vmem:[#allocation53_spill] sm:$0xff] }
 0x69c   : > { %11098 = vmatprep.subr.bf16.mxu0 %v13963_v25  ;;  %v14032_v27 = vand.u32 4294901760, %v14031_v43  ;;  %v11413_v43 = vld [vmem:[#allocation8] sm:$0xff]  }
 0x69d   : > { %10956 = vmatpush3.bf16.msra.mxu1 %v13217_v12  ;;  %v10982_v6 = vpack.c.bf16 %v14022_v38, %v14021_v55  ;;  %v10988_v34 = vpack.c.bf16 %v14026_v32, %v14025_v16 }
 0x69e   : > { %10957 = vmatprep.subr.bf16.mxu1 %v13963_v25  ;;  %v10994_v47 = vpack.c.bf16 %v14034_v42, %v14032_v27  ;;  %v11414_v27 = vld [vmem:[#allocation8 + $0xc0] sm:$0xff]   ;;  %v11416_v42 = vld [vmem:[#allocation8 + $0x48] sm:$0xff]  }
 0x69f   : > { %11100 = vmatpush3.bf16.msra.mxu0 %v13217_v12  ;;  %v14037_v12 = vld [vmem:[#allocation56_spill] sm:$0xff] }
 0x6a0   : > { %10196 = vmatmul.mubr.f32.vlgmr.msra.gmra.mrb[14].mxu1 %v13270_v58  ;;  %11101 = vmatprep.subr.bf16.mxu0 %v13963_v25  ;;  %v14038_v57 = vand.u32 4294901760, %v14037_v12  ;;  %v11419_v12 = vld [vmem:[#allocation8 + $0x88] sm:$0xff]  }
 0x6a1   : > { %10959 = vmatpush3.bf16.msra.mxu1 %v12897_v51  ;;  %10230 = vmatprep.mubr.msk.f32.mxu1 %vm11621_vm0, %v13962_v36 }
 0x6a2   : > { %10406 = vmatmul.mubr.f32.vlgmr.msra.gmra.mrb[6].mxu0 %v13274_v21  ;;  %10960 = vmatprep.subr.bf16.mxu1 %v13963_v25  ;;  %v10997_v29 = vpack.c.bf16 %v14038_v57, %v14036_v35  ;;  %v14047_v21 = vld [vmem:[#allocation30_spill] sm:$0xff]  ;;  %v11420_v35 = vld [vmem:[#allocation8 + $0x50] sm:$0xff]  }
 0x6a3   : > { %11103 = vmatpush3.bf16.msra.mxu0 %v12897_v51  ;;  %10440 = vmatprep.mubr.msk.f32.mxu0 %vm11621_vm0, %v13962_v36  ;;  %v11421_v57 = vld [vmem:[#allocation8 + $0x10] sm:$0xff]  }
 0x6a4   : > { %11104 = vmatprep.subr.bf16.mxu0 %v13963_v25 }
 0x6a5   : > { %10962 = vmatpush3.bf16.msra.mxu1 %v12925_v40 }
 0x6a6   : > { %10963 = vmatprep.subr.bf16.mxu1 %v13963_v25 }
 0x6a7   : > { %11106 = vmatpush3.bf16.msra.mxu0 %v12925_v40 }
 0x6a8   : > { %11107 = vmatprep.subr.bf16.mxu0 %v13963_v25 }
 0x6a9   : > { %10965 = vmatpush3.bf16.msra.mxu1 %v12929_v10 }
 0x6aa   : > { %10966 = vmatprep.subr.bf16.mxu1 %v13963_v25 }
 0x6ab   : > { %11109 = vmatpush3.bf16.msra.mxu0 %v12929_v10 }
 0x6ac   : > { %11110 = vmatprep.subr.bf16.mxu0 %v13963_v25 }
 0x6ad   : > { %10968 = vmatpush3.bf16.msra.mxu1 %v12951_v1 }
 0x6ae   : > { %10969 = vmatprep.subr.bf16.mxu1 %v13963_v25 }
 0x6af   : > { %11112 = vmatpush3.bf16.msra.mxu0 %v12951_v1 }
 0x6b0   : > { %11113 = vmatprep.subr.bf16.mxu0 %v13963_v25 }
 0x6b1   : > { %10971 = vmatpush3.bf16.msra.mxu1 %v12983_v48 }
 0x6b2   : > { %10972 = vmatprep.subr.bf16.mxu1 %v13963_v25 }
 0x6b3   : > { %11115 = vmatpush3.bf16.msra.mxu0 %v12983_v48 }
 0x6b4   : > { %11116 = vmatprep.subr.bf16.mxu0 %v13963_v25 }
 0x6b5   : > { %10974 = vmatpush3.bf16.msra.mxu1 %v13013_v61 }
 0x6b6   : > { %10975 = vmatprep.subr.bf16.mxu1 %v13963_v25 }
 0x6b7   : > { %11118 = vmatpush3.bf16.msra.mxu0 %v13013_v61 }
 0x6b8   : > { %11119 = vmatprep.subr.bf16.mxu0 %v13963_v25 }
 0x6b9   : > { %10977 = vmatpush3.bf16.msra.mxu1 %v13055_v26 }
 0x6ba   : > { %10978 = vmatprep.subr.bf16.mxu1 %v13963_v25 }
 0x6bb   : > { %11121 = vmatpush3.bf16.msra.mxu0 %v13055_v26 }
 0x6bc   : > { %11122 = vmatprep.subr.bf16.mxu0 %v13963_v25 }
 0x6bd   : > { %10980 = vmatpush3.bf16.msra.mxu1 %v13081_v28 }
 0x6be   : > { %10981 = vmatprep.subr.bf16.mxu1 %v13963_v25 }
 0x6bf   : > { %11124 = vmatpush3.bf16.msra.mxu0 %v13081_v28 }
 0x6c0   : > { %10231 = vmatmul.mubr.f32.vlgmr.msra.gmra.mrb[14].mxu1 %v4905_v63  ;;  %11125 = vmatprep.subr.bf16.mxu0 %v13963_v25 }
 0x6c1   : > { %10983 = vmatpush3.bf16.msra.mxu1 %v10982_v6  ;;  %10265 = vmatprep.mubr.msk.f32.mxu1 %vm11621_vm0, %v13962_v36 }
 0x6c2   : > { %10441 = vmatmul.mubr.f32.vlgmr.msra.gmra.mrb[6].mxu0 %v5546_v59  ;;  %10984 = vmatprep.subr.bf16.mxu1 %v13963_v25 }
 0x6c3   : > { %11127 = vmatpush3.bf16.msra.mxu0 %v10982_v6  ;;  %10475 = vmatprep.mubr.msk.f32.mxu0 %vm11621_vm0, %v13962_v36 }
 0x6c4   : > { %11128 = vmatprep.subr.bf16.mxu0 %v13963_v25 }
 0x6c5   : > { %10986 = vmatpush3.bf16.msra.mxu1 %v10985_v22 }
 0x6c6   : > { %10987 = vmatprep.subr.bf16.mxu1 %v13963_v25 }
 0x6c7   : > { %11130 = vmatpush3.bf16.msra.mxu0 %v10985_v22 }
 0x6c8   : > { %11131 = vmatprep.subr.bf16.mxu0 %v13963_v25 }
 0x6c9   : > { %10989 = vmatpush3.bf16.msra.mxu1 %v10988_v34 }
 0x6ca   : > { %10990 = vmatprep.subr.bf16.mxu1 %v13963_v25 }
 0x6cb   : > { %11133 = vmatpush3.bf16.msra.mxu0 %v10988_v34 }
 0x6cc   : > { %11134 = vmatprep.subr.bf16.mxu0 %v13963_v25 }
 0x6cd   : > { %10992 = vmatpush3.bf16.msra.mxu1 %v10991_v19 }
 0x6ce   : > { %10993 = vmatprep.subr.bf16.mxu1 %v13963_v25 }
 0x6cf   : > { %11136 = vmatpush3.bf16.msra.mxu0 %v10991_v19  ;;  %v11412_v19 = vld [vmem:[#allocation8 + $0x40] sm:$0xff]  }
 0x6d0   : > { %11137 = vmatprep.subr.bf16.mxu0 %v13963_v25 }
 0x6d1   : > { %10995 = vmatpush3.bf16.msra.mxu1 %v10994_v47 }
 0x6d2   : > { %10996 = vmatprep.subr.bf16.mxu1 %v13963_v25 }
 0x6d3   : > { %11139 = vmatpush3.bf16.msra.mxu0 %v10994_v47  ;;  %v11417_v47 = vld [vmem:[#allocation8 + $0x8] sm:$0xff]  }
 0x6d4   : > { %11140 = vmatprep.subr.bf16.mxu0 %v13963_v25 }
 0x6d5   : > { %10998 = vmatpush3.bf16.msra.mxu1 %v10997_v29 }
 0x6d6   : > { %10999 = vmatprep.subr.bf16.mxu1 %v13963_v25 }
 0x6d7   : > { %11142 = vmatpush3.bf16.msra.mxu0 %v10997_v29  ;;  %v11422_v29 = vld [vmem:[#allocation8 + $0xd0] sm:$0xff]  }
 0x6d8   : > { %11143 = vmatprep.subr.bf16.mxu0 %v13963_v25 }
 0x6d9   : > { %11001 = vmatpush3.bf16.msra.mxu1 %v11000_v46 }
 0x6da   : > { %11002 = vmatprep.subr.bf16.mxu1 %v13963_v25 }
 0x6db   : > { %11145 = vmatpush3.bf16.msra.mxu0 %v11000_v46  ;;  %v11427_v46 = vld [vmem:[#allocation8 + $0x98] sm:$0xff]  }
 0x6dc   : > { %11146 = vmatprep.subr.bf16.mxu0 %v13963_v25 }
 0x6dd   : > { %11004 = vmatpush3.bf16.msra.mxu1 %v11003_v23 }
 0x6de   : > { %11005 = vmatprep.subr.bf16.mxu1 %v13963_v25 }
 0x6df   : > { %11148 = vmatpush3.bf16.msra.mxu0 %v11003_v23  ;;  %v11433_v23 = vld [vmem:[#allocation8 + $0x28] sm:$0xff]  }
 0x6e0   : > { %10266 = vmatmul.mubr.f32.vlgmr.msra.gmra.mrb[14].mxu1 %v13265_v18  ;;  %11149 = vmatprep.subr.bf16.mxu0 %v13963_v25 }
 0x6e1   : > { %11007 = vmatpush3.bf16.msra.mxu1 %v12897_v51  ;;  %10300 = vmatprep.mubr.msk.f32.mxu1 %vm11621_vm0, %v13962_v36 }
 0x6e2   : > { %10476 = vmatmul.mubr.f32.vlgmr.msra.gmra.mrb[6].mxu0 %v13267_v13  ;;  %11008 = vmatprep.subr.bf16.mxu1 %v13963_v25 }
 0x6e3   : > { %11151 = vmatpush3.bf16.msra.mxu0 %v12897_v51  ;;  %10510 = vmatprep.mubr.msk.f32.mxu0 %vm11621_vm0, %v13962_v36 }
 0x6e4   : > { %11152 = vmatprep.subr.bf16.mxu0 %v13963_v25 }
 0x6e5   : > { %11010 = vmatpush3.bf16.msra.mxu1 %v12925_v40 }
 0x6e6   : > { %11011 = vmatprep.subr.bf16.mxu1 %v13963_v25 }
 0x6e7   : > { %11154 = vmatpush3.bf16.msra.mxu0 %v12925_v40 }
 0x6e8   : > { %11155 = vmatprep.subr.bf16.mxu0 %v13963_v25 }
 0x6e9   : > { %11013 = vmatpush3.bf16.msra.mxu1 %v12929_v10 }
 0x6ea   : > { %11014 = vmatprep.subr.bf16.mxu1 %v13963_v25 }
 0x6eb   : > { %11157 = vmatpush3.bf16.msra.mxu0 %v12929_v10 }
 0x6ec   : > { %11158 = vmatprep.subr.bf16.mxu0 %v13963_v25 }
 0x6ed   : > { %11016 = vmatpush3.bf16.msra.mxu1 %v12951_v1 }
 0x6ee   : > { %11017 = vmatprep.subr.bf16.mxu1 %v13963_v25 }
 0x6ef   : > { %11160 = vmatpush3.bf16.msra.mxu0 %v12951_v1 }
 0x6f0   : > { %11161 = vmatprep.subr.bf16.mxu0 %v13963_v25 }
 0x6f1   : > { %11019 = vmatpush3.bf16.msra.mxu1 %v12983_v48 }
 0x6f2   : > { %11020 = vmatprep.subr.bf16.mxu1 %v13963_v25 }
 0x6f3   : > { %11163 = vmatpush3.bf16.msra.mxu0 %v12983_v48 }
 0x6f4   : > { %11164 = vmatprep.subr.bf16.mxu0 %v13963_v25 }
 0x6f5   : > { %11022 = vmatpush3.bf16.msra.mxu1 %v13013_v61 }
 0x6f6   : > { %11023 = vmatprep.subr.bf16.mxu1 %v13963_v25 }
 0x6f7   : > { %11166 = vmatpush3.bf16.msra.mxu0 %v13013_v61 }
 0x6f8   : > { %11167 = vmatprep.subr.bf16.mxu0 %v13963_v25 }
 0x6f9   : > { %11025 = vmatpush3.bf16.msra.mxu1 %v13055_v26 }
 0x6fa   : > { %11026 = vmatprep.subr.bf16.mxu1 %v13963_v25 }
 0x6fb   : > { %11169 = vmatpush3.bf16.msra.mxu0 %v13055_v26 }
 0x6fc   : > { %11170 = vmatprep.subr.bf16.mxu0 %v13963_v25  ;;  %v6121_v25 = vld [vmem:[%s13816_s5] sm:$0xff] }
 0x6fd   : > { %11028 = vmatpush3.bf16.msra.mxu1 %v13081_v28  ;;  %v13498_v51 = vand.u32 4294901760, %v6121_v25 }
 0x6fe   : > { %10513 = vmatprep.subr.mxu1 %v13962_v36 }
 0x6ff   : > { %11172 = vmatpush3.bf16.msra.mxu0 %v13081_v28  ;;  %v6203_v58 = vsub.f32 %v6121_v25, %v13498_v51  ;;  %v11434_v25 = vld [vmem:[#allocation8 + $0xe8] sm:$0xff]  }
 0x700   : > { %10301 = vmatmul.mubr.f32.vlgmr.msra.gmra.mrb[14].mxu1 %v13265_v18  ;;  %10543 = vmatprep.subr.mxu0 %v13962_v36 }
 0x701   : > { %10515 = vmatprep.mubr.msk.f32.mxu1 %vm11621_vm0, %v13962_v36  ;;  %10514 = vmatpush3.msra.mxu1 %v13498_v51  ;;  %v6204_v31 = vand.u32 4294901760, %v6203_v58 }
 0x702   : > { %10511 = vmatmul.mubr.f32.vlgmr.msra.gmra.mrb[6].mxu0 %v13267_v13  ;;  %10518 = vmatprep.subr.mxu1 %v13962_v36 }
 0x703   : > { %10545 = vmatprep.mubr.msk.f32.mxu0 %vm11621_vm0, %v13962_v36  ;;  %10544 = vmatpush3.msra.mxu0 %v13498_v51  ;;  %v6205_v4 = vsub.f32 %v6203_v58, %v6204_v31 }
 0x704   : > { %10548 = vmatprep.subr.mxu0 %v13962_v36 }
 0x705   : > { %v6206_v49 = vand.u32 4294901760, %v6205_v4 }
 0x7d3   : > { %v5459_v40 = vpop.f32.mrb[14].mxu1 }
 0x7d4   : > { %v6104_v10 = vmul.f32 0.0009765625, %v5459_v40  ;;  %v10302_v1 = vpop.f32.mrb[15].mxu1  ;;  %v11435_v40 = vld [vmem:[#allocation8 + $0xa8] sm:$0xff]  }
 0x7d5   : > { %v6100_v48 = vpop.f32.mrb[6].mxu0  ;;  %v11438_v1 = vld [vmem:[#allocation8 + $0xf0] sm:$0xff]  }
 0x7d6   : > { %v6106_v61 = vmul.f32 %v6104_v10, %v6104_v10  ;;  %v6105_v26 = vmul.f32 0.0009765625, %v6100_v48  ;;  %v10512_v28 = vpop.f32.mrb[7].mxu0  ;;  %v6115_v13 = vsub.f32 0.0, %v6104_v10  ;;  %v11437_v10 = vld [vmem:[#allocation8 + $0x30] sm:$0xff]   ;;  %v11440_v48 = vld [vmem:[#allocation8 + $0x78] sm:$0xff]  }
 0x7d7   : > { %v11442_v28 = vld [vmem:[#allocation8 + $0xf8] sm:$0xff]  }
 0x7d8   : > { %v6107_v24 = vsub.f32 %v6105_v26, %v6106_v61  ;;  %v11439_v61 = vld [vmem:[#allocation8 + $0xb0] sm:$0xff]   ;;  %v11441_v26 = vld [vmem:[#allocation8 + $0x38] sm:$0xff]  }
 0x7da   : > { %v6108_v9 = vmax.f32 %v6107_v24, 0.0  ;;  %v11444_v24 = vld [vmem:[#allocation8 + $0x140] sm:$0xff]  }
 0x7dc   : > { %v6109_v18 = vadd.f32 1e-05, %v6108_v9  ;;  %v11443_v9 = vld [vmem:[#allocation8 + $0xb8] sm:$0xff]  }
 0x7de   : > { %11486 = vrsqrt.f32 %v6109_v18  ;;  %v11446_v18 = vld [vmem:[#allocation8 + $0x1c0] sm:$0xff]  }
 0x7e8   : > { %v11487_v63 = vpop.eup %11486 }
 0x7e9   : > { %v6114_v41 = vrot.slane %v11487_v63, %v14047_v21  ;;  %v6116_v59 = vmul.f32 %v11487_v63, %v6115_v13  ;;  %v7068_v13 = vld [vmem:[#allocation4] sm:$0xf8]  ;;  %v4770_v63 = vld [vmem:[%s13822_s11] sm:$0x1] }
 0x7eb   : > { %v6123_v54 = vsel %vm2121_vm2, %v6114_v41, 0  ;;  %v6120_v53 = vrot.slane %v6116_v59, %v14047_v21  ;;  %v14048_v41 = vld [vmem:[#allocation32_spill] sm:$0xff] }
 0x7ec   : > { %v6191_v55 = vand.u32 4294901760, %v6123_v54  ;;  %v7073_v59 = vmul.bf16 %v7068_v13, %v14048_v41 }
 0x7ed   : > { %v6572_v38 = vsel %vm2121_vm2, %v6120_v53, 0  ;;  %v14049_v53 = vld [vmem:[#allocation33_spill] sm:$0xff] }
 0x7ee   : > { %v6192_v6 = vsub.f32 %v6123_v54, %v6191_v55  ;;  %v6640_v14 = vand.u32 4294901760, %v6572_v38 }
 0x7f0   : > { %v6193_v22 = vand.u32 4294901760, %v6192_v6  ;;  %v6641_v16 = vsub.f32 %v6572_v38, %v6640_v14 }
 0x7f2   : > { %v6194_v32 = vsub.f32 %v6192_v6, %v6193_v22  ;;  %v6642_v34 = vand.u32 4294901760, %v6641_v16 }
 0x7f4   : > { %v6195_v50 = vand.u32 4294901760, %v6194_v32  ;;  %v6643_v11 = vsub.f32 %v6641_v16, %v6642_v34  ;;  %v14050_v32 = vld [vmem:[#allocation31_spill] sm:$0xff] }
 0x7f6   : > { %10516 = vmatmul.mubr.f32.vlgmr.msra.gmra.mrb[48].mxu1 %v6195_v50  ;;  %v6644_v2 = vand.u32 4294901760, %v6643_v11  ;;  %v4771_v50 = vld [vmem:[%s13823_s12] sm:$0x1]  ;;  %v7082_v11 = vshll.u32 %v7073_v59, 16 }
 0x7f7   : > { %10519 = vmatpush3.msra.mxu1 %v6206_v49  ;;  %10520 = vmatprep.mubr.msk.f32.mxu1 %vm11621_vm0, %v13962_v36 }
 0x7f8   : > { %10546 = vmatmul.mubr.f32.vlgmr.msra.gmra.mrb[48].mxu0 %v6644_v2  ;;  %10523 = vmatprep.subr.mxu1 %v13962_v36 }
 0x7f9   : > { %10549 = vmatpush3.msra.mxu0 %v6206_v49  ;;  %10550 = vmatprep.mubr.msk.f32.mxu0 %vm11621_vm0, %v13962_v36 }
 0x7fa   : > { %10553 = vmatprep.subr.mxu0 %v13962_v36 }
 0x7fe   : > { %10521 = vmatmul.mubr.f32.vlgmr.msra.gmra.mrb[48].mxu1 %v6191_v55 }
 0x7ff   : > { %10524 = vmatpush3.msra.mxu1 %v6203_v58  ;;  %10525 = vmatprep.mubr.msk.f32.mxu1 %vm11621_vm0, %v13962_v36 }
 0x800   : > { %10551 = vmatmul.mubr.f32.vlgmr.msra.gmra.mrb[48].mxu0 %v6640_v14  ;;  %10528 = vmatprep.subr.mxu1 %v13962_v36 }
 0x801   : > { %10554 = vmatpush3.msra.mxu0 %v6203_v58  ;;  %10555 = vmatprep.mubr.msk.f32.mxu0 %vm11621_vm0, %v13962_v36  ;;  %v7157_v58 = vld [vmem:[#allocation4] sm:$0xf0] }
 0x802   : > { %10558 = vmatprep.subr.mxu0 %v13962_v36 }
 0x806   : > { %10526 = vmatmul.mubr.f32.vlgmr.msra.gmra.mrb[48].mxu1 %v6192_v6 }
 0x807   : > { %10529 = vmatpush3.msra.mxu1 %v13498_v51  ;;  %10530 = vmatprep.mubr.msk.f32.mxu1 %vm11621_vm0, %v13962_v36 }
 0x808   : > { %10556 = vmatmul.mubr.f32.vlgmr.msra.gmra.mrb[48].mxu0 %v6641_v16  ;;  %10533 = vmatprep.subr.mxu1 %v13962_v36  ;;  %v7079_v16 = vshrl.u32 %v7073_v59, 16 }
 0x809   : > { %10559 = vmatpush3.msra.mxu0 %v13498_v51  ;;  %10560 = vmatprep.mubr.msk.f32.mxu0 %vm11621_vm0, %v13962_v36 }
 0x80a   : > { %10563 = vmatprep.subr.mxu0 %v13962_v36 }
 0x80e   : > { %10531 = vmatmul.mubr.f32.vlgmr.msra.gmra.mrb[48].mxu1 %v6193_v22 }
 0x80f   : > { %10534 = vmatpush3.msra.mxu1 %v6204_v31  ;;  %10535 = vmatprep.mubr.msk.f32.mxu1 %vm11621_vm0, %v13962_v36 }
 0x810   : > { %10561 = vmatmul.mubr.f32.vlgmr.msra.gmra.mrb[48].mxu0 %v6642_v34  ;;  %10538 = vmatprep.subr.mxu1 %v13962_v36 }
 0x811   : > { %10564 = vmatpush3.msra.mxu0 %v6204_v31  ;;  %10565 = vmatprep.mubr.msk.f32.mxu0 %vm11621_vm0, %v13962_v36  ;;  %v7219_v31 = vld [vmem:[#allocation4] sm:$0x80] }
 0x812   : > { %10568 = vmatprep.subr.mxu0 %v13962_v36  ;;  %v7224_v34 = vmul.bf16 %v7219_v31, %v14050_v32 }
 0x816   : > { %10536 = vmatmul.mubr.f32.vlgmr.msra.gmra.mrb[48].mxu1 %v6191_v55 }
 0x817   : > { %10539 = vmatpush3.msra.mxu1 %v13498_v51  ;;  %10540 = vmatprep.mubr.msk.f32.mxu1 %vm11621_vm0, %v13962_v36 }
 0x818   : > { %10566 = vmatmul.mubr.f32.vlgmr.msra.gmra.mrb[48].mxu0 %v6640_v14  ;;  %9387 = vmatprep.subr.bf16.mxu1 %v11412_v19 }
 0x819   : > { %10569 = vmatpush3.msra.mxu0 %v13498_v51  ;;  %10570 = vmatprep.mubr.msk.f32.mxu0 %vm11621_vm0, %v13962_v36  ;;  %v11424_v36 = vld [vmem:[#allocation8 + $0x58] sm:$0xff]   ;;  %v11436_v51 = vld [vmem:[#allocation8 + $0x70] sm:$0xff]  }
 0x81a   : > { %9427 = vmatprep.subr.bf16.mxu0 %v11414_v27  ;;  %v13551_v27 = vrot.slane %v7079_v16, 3 }
 0x81e   : > { %10541 = vmatmul.mubr.f32.vlgmr.msra.gmra.mrb[48].mxu1 %v6191_v55  ;;  %v7162_v55 = vmul.bf16 %v7157_v58, %v14049_v53  ;;  %v14052_v58 = vld [vmem:[#allocation34_spill] sm:$0xff] }
 0x81f   : > { %9388 = vmatpush3.bf16.msra.mxu1 %v11413_v43 }
 0x820   : > { %10571 = vmatmul.mubr.f32.vlgmr.msra.gmra.mrb[48].mxu0 %v6640_v14  ;;  %9389 = vmatprep.subr.bf16.mxu1 %v11416_v42  ;;  %v7168_v2 = vshrl.u32 %v7162_v55, 16  ;;  %v7171_v19 = vshll.u32 %v7162_v55, 16  ;;  %v14054_v55 = vld [vmem:[#allocation35_spill] sm:$0xff] }
 0x821   : > { %9428 = vmatpush3.bf16.msra.mxu0 %v11415_v7  ;;  %v13553_v7 = vshrl.u32 %v7224_v34, 16 }
 0x822   : > { %9429 = vmatprep.subr.bf16.mxu0 %v11418_v8  ;;  %v13558_v8 = vrot.slane %v7168_v2, 4 }
 0x823   : > { %9390 = vmatpush3.bf16.msra.mxu1 %v11417_v47  ;;  %v13556_v47 = vrot.slane %v7082_v11, 4 }
 0x824   : > { %9391 = vmatprep.subr.bf16.mxu1 %v11420_v35  ;;  %v13560_v35 = vrot.slane %v7171_v19, 5 }
 0x825   : > { %9430 = vmatpush3.bf16.msra.mxu0 %v11419_v12 }
 0x826   : > { %9431 = vmatprep.subr.bf16.mxu0 %v11422_v29 }
 0x827   : > { %9392 = vmatpush3.bf16.msra.mxu1 %v11421_v57 }
 0x828   : > { %9393 = vmatprep.subr.bf16.mxu1 %v11424_v36 }
 0x829   : > { %9432 = vmatpush3.bf16.msra.mxu0 %v11423_v0 }
 0x82a   : > { %9433 = vmatprep.subr.bf16.mxu0 %v11426_v45 }
 0x82b   : > { %9394 = vmatpush3.bf16.msra.mxu1 %v11425_v33 }
 0x82c   : > { %9395 = vmatprep.subr.bf16.mxu1 %v11428_v56 }
 0x82d   : > { %9434 = vmatpush3.bf16.msra.mxu0 %v11427_v46 }
 0x82e   : > { %9435 = vmatprep.subr.bf16.mxu0 %v11430_v30 }
 0x82f   : > { %9396 = vmatpush3.bf16.msra.mxu1 %v11429_v5 }
 0x830   : > { %9397 = vmatprep.subr.bf16.mxu1 %v11432_v62 }
 0x831   : > { %9436 = vmatpush3.bf16.msra.mxu0 %v11431_v60 }
 0x832   : > { %9437 = vmatprep.subr.bf16.mxu0 %v11434_v25 }
 0x833   : > { %9398 = vmatpush3.bf16.msra.mxu1 %v11433_v23  ;;  %v7130_v23 = vld [vmem:[#allocation4] sm:$0xf0] }
 0x834   : > { %9399 = vmatprep.subr.bf16.mxu1 %v11436_v51 }
 0x835   : > { %9438 = vmatpush3.bf16.msra.mxu0 %v11435_v40 }
 0x836   : > { %9439 = vmatprep.subr.bf16.mxu0 %v11438_v1  ;;  %v7140_v1 = vrot.slane %v7130_v23, 4  ;;  %v7285_v23 = vld [vmem:[#allocation4 + $0x28] sm:$0x1] }
 0x837   : > { %9400 = vmatpush3.bf16.msra.mxu1 %v11437_v10 }
 0x838   : > { %9401 = vmatprep.subr.bf16.mxu1 %v11440_v48  ;;  %v7232_v48 = vrot.slane %v13553_v7, 7 }
 0x839   : > { %9440 = vmatpush3.bf16.msra.mxu0 %v11439_v61 }
 0x83a   : > { %9441 = vmatprep.subr.bf16.mxu0 %v11442_v28  ;;  %v7085_v28 = vor.u32 %v13556_v47, %v13551_v27 }
 0x83b   : > { %9402 = vmatpush3.bf16.msra.mxu1 %v11441_v26 }
 0x83c   : > { %9467 = vmatprep.subr.bf16.mxu1 %v11444_v24  ;;  %v7174_v24 = vor.u32 %v13560_v35, %v13558_v8 }
 0x83d   : > { %9442 = vmatpush3.bf16.msra.mxu0 %v11443_v9 }
 0x83e   : > { %9507 = vmatprep.subr.bf16.mxu0 %v11446_v18  ;;  %v14051_v18 = vld [vmem:[#allocation42_spill] sm:$0xff] }
 0x8f1   : > { %v6567_v54 = vpop.f32.mrb[48].mxu1 }
 0x8f2   : > { %v7020_v38 = vmul.f32 %v6567_v54, %v4770_v63  ;;  %v10542_v6 = vpop.f32.mrb[49].mxu1  ;;  %v14053_v54 = vld [vmem:[#allocation43_spill] sm:$0xff] }
 0x8f3   : > { %v7016_v14 = vpop.f32.mrb[48].mxu0  ;;  %v14055_v6 = vld [vmem:[#allocation36_spill] sm:$0xff] }
 0x8f4   : > { %v7021_v4 = vmul.f32 %v7016_v14, %v4770_v63  ;;  %v10572_v22 = vpop.f32.mrb[49].mxu0  ;;  %v7027_v49 = vrot.slane %v7020_v38, %v14047_v21 }
 0x8f6   : > { %v7022_v43 = vadd.f32 %v7021_v4, %v4771_v50  ;;  %v7029_v42 = vmul.f32 %v7027_v49, %v13227_v17  ;;  %v7030_v12 = vmul.f32 %v7027_v49, %v13231_v44  ;;  %v7031_v57 = vmul.f32 %v7027_v49, %v13225_v39 }
 0x8f7   : > { %v7032_v29 = vmul.f32 %v7027_v49, %v13229_v37  ;;  %v7033_v0 = vmul.f32 %v7027_v49, %v13246_v15  ;;  %v7034_v33 = vmul.f32 %v7027_v49, %v13254_v3  ;;  %v7035_v17 = vmul.f32 %v7027_v49, %v13242_v20 }
 0x8f8   : > { %v7041_v36 = vrot.slane %v7022_v43, %v14047_v21  ;;  %v7036_v45 = vmul.f32 %v7027_v49, %v13249_v52 }
 0x8fa   : > { %v7043_v56 = vadd.f32 %v7041_v36, %v7029_v42  ;;  %v7044_v46 = vadd.f32 %v7041_v36, %v7030_v12  ;;  %v7045_v5 = vadd.f32 %v7041_v36, %v7031_v57  ;;  %v7046_v30 = vadd.f32 %v7041_v36, %v7032_v29  ;;  %v11445_v29 = vld [vmem:[#allocation8 + $0x100] sm:$0xff]  }
 0x8fb   : > { %v7047_v62 = vadd.f32 %v7041_v36, %v7033_v0  ;;  %v7048_v44 = vadd.f32 %v7041_v36, %v7034_v33  ;;  %v7049_v60 = vadd.f32 %v7041_v36, %v7035_v17  ;;  %v7050_v39 = vadd.f32 %v7041_v36, %v7036_v45  ;;  %v11448_v17 = vld [vmem:[#allocation8 + $0x148] sm:$0xff]  }
 0x8fc   : > { %v7051_v37 = vmax.f32 %v7043_v56, 0.0  ;;  %v7052_v25 = vmax.f32 %v7044_v46, 0.0  ;;  %v7053_v21 = vmax.f32 %v7045_v5, 0.0  ;;  %v7054_v51 = vmax.f32 %v7046_v30, 0.0  ;;  %v14056_v46 = vld [vmem:[#allocation44_spill] sm:$0xff] }
 0x8fd   : > { %v7055_v15 = vmax.f32 %v7047_v62, 0.0  ;;  %v7056_v40 = vmax.f32 %v7048_v44, 0.0  ;;  %v7057_v3 = vmax.f32 %v7049_v60, 0.0  ;;  %v7058_v10 = vmax.f32 %v7050_v39, 0.0  ;;  %v11447_v60 = vld [vmem:[#allocation8 + $0x180] sm:$0xff]  }
 0x8fe   : > { %v13570_v20 = vpack.c.bf16 %v7052_v25, %v7051_v37  ;;  %v13572_v52 = vpack.c.bf16 %v7054_v51, %v7053_v21  ;;  %v11450_v25 = vld [vmem:[#allocation8 + $0x1c8] sm:$0xff]  }
 0x8ff   : > { %v13575_v61 = vpack.c.bf16 %v7056_v40, %v7055_v15  ;;  %v13577_v26 = vpack.c.bf16 %v7058_v10, %v7057_v3  ;;  %v14057_v15 = vld [vmem:[#allocation38_spill] sm:$0xff]  ;;  %v11449_v10 = vld [vmem:[#allocation8 + $0x108] sm:$0xff]  }
 0x900   : > { %7064 = vst [vmem:[#allocation4 + $0x8] sm:$0xff] %v13570_v20  ;;  %7065 = vst [vmem:[#allocation4 + $0x10] sm:$0xff] %v13572_v52  ;;  %v7141_v9 = vrot.slane %v13570_v20, 4  ;;  %v7074_v13 = vmul.bf16 %v13570_v20, %v14051_v18  ;;  %v7225_v63 = vmul.bf16 %v13570_v20, %v14052_v58  ;;  %v13591_v59 = vrot.slane %v13572_v52, 4 }
 0x901   : > { %7066 = vst [vmem:[#allocation4 + $0x18] sm:$0xff] %v13575_v61  ;;  %7067 = vst [vmem:[#allocation4 + $0x20] sm:$0xff] %v13577_v26  ;;  %v7163_v31 = vmul.bf16 %v13570_v20, %v14053_v54  ;;  %v7226_v38 = vmul.bf16 %v13572_v52, %v14054_v55  ;;  %v7075_v14 = vmul.bf16 %v13572_v52, %v14055_v6  ;;  %v13602_v4 = vrot.slane %v13575_v61, 4  ;;  %v14059_v55 = vld [vmem:[#allocation40_spill] sm:$0xff] }
 0x902   : > { %v7142_v22 = vsel %vm3298_vm6, %v7140_v1, %v7141_v9  ;;  %v7087_v16 = vshrl.u32 %v7074_v13, 16  ;;  %v7090_v32 = vshll.u32 %v7074_v13, 16  ;;  %v7234_v34 = vshrl.u32 %v7225_v63, 16  ;;  %v11452_v13 = vld [vmem:[#allocation8 + $0x150] sm:$0xff]  }
 0x903   : > { %8136 = vmatprep.mubr.bf16.mxu1 %v7142_v22  ;;  %v7237_v49 = vshll.u32 %v7225_v63, 16  ;;  %v7144_v50 = vsel %vm3298_vm6, %v7141_v9, %v13591_v59  ;;  %v7176_v11 = vshrl.u32 %v7163_v31, 16  ;;  %v7179_v2 = vshll.u32 %v7163_v31, 16 }
 0x904   : > { %v7089_v19 = vrot.slane %v7087_v16, 3  ;;  %v7092_v43 = vrot.slane %v7090_v32, 4  ;;  %v7236_v27 = vrot.slane %v7234_v34, 7  ;;  %v7242_v7 = vshrl.u32 %v7226_v38, 16 }
 0x905   : > { %v7178_v42 = vrot.slane %v7176_v11, 4  ;;  %v7181_v47 = vrot.slane %v7179_v2, 5  ;;  %v7245_v8 = vshll.u32 %v7226_v38, 16  ;;  %v7096_v35 = vshrl.u32 %v7075_v14, 16  ;;  %v14060_v2 = vld [vmem:[#allocation47_spill] sm:$0xff] }
 0x906   : > { %v7093_v12 = vor.u32 %v7092_v43, %v7089_v19  ;;  %v7239_v57 = vor.u32 %v7237_v49, %v7236_v27  ;;  %v13607_v36 = vrot.slane %v7242_v7, 7  ;;  %v7099_v0 = vshll.u32 %v7075_v14, 16  ;;  %v11451_v14 = vld [vmem:[#allocation8 + $0x188] sm:$0xff]   ;;  %v11453_v7 = vld [vmem:[#allocation8 + $0x110] sm:$0xff]  }
 0x907   : > { %v7182_v33 = vor.u32 %v7181_v47, %v7178_v42  ;;  %v7098_v45 = vrot.slane %v7096_v35, 3  ;;  %v13612_v56 = vsel %vm3298_vm6, %v13591_v59, %v13602_v4  ;;  %v7164_v5 = vmul.bf16 %v13572_v52, %v14056_v46  ;;  %v14061_v43 = vld [vmem:[#allocation39_spill] sm:$0xff] }
 0x908   : > { %v7094_v30 = vsel %vm3235_vm5, %v7085_v28, %v7093_v12  ;;  %v7240_v62 = vsel %vm3553_vm7, %v7232_v48, %v7239_v57  ;;  %v7247_v44 = vor.u32 %v7245_v8, %v13607_v36  ;;  %v7101_v39 = vrot.slane %v7099_v0, 4  ;;  %v14058_v48 = vld [vmem:[#allocation46_spill] sm:$0xff]  ;;  %v7072_v9 = vld [vmem:[#allocation4 + $0x20] sm:$0xf]  ;;  %v14062_v8 = vld [vmem:[#allocation37_spill] sm:$0xff] }
 0x909   : > { %8137 = vmatmul.mubr.bf16.vlgmr.msra.gmra.mrb[52].mxu1 %v7094_v30  ;;  %8201 = vmatprep.mubr.bf16.mxu0 %v7240_v62  ;;  %v7183_v37 = vsel %vm3189_vm4, %v7174_v24, %v7182_v33  ;;  %v7185_v21 = vshrl.u32 %v7164_v5, 16  ;;  %v7188_v51 = vshll.u32 %v7164_v5, 16  ;;  %v7227_v40 = vmul.bf16 %v13575_v61, %v14057_v15  ;;  %v7161_v31 = vld [vmem:[#allocation4 + $0x20] sm:$0x1f] }
 0x90a   : > { %9468 = vmatpush3.bf16.msra.mxu1 %v11445_v29  ;;  %8144 = vmatprep.mubr.bf16.mxu1 %v7144_v50  ;;  %v7248_v3 = vsel %vm3553_vm7, %v7236_v27, %v7247_v44  ;;  %v7102_v1 = vor.u32 %v7101_v39, %v7098_v45  ;;  %v7076_v28 = vmul.bf16 %v13575_v61, %v14058_v48  ;;  %v11454_v50 = vld [vmem:[#allocation8 + $0x1d0] sm:$0xff]  }
 0x90b   : > { %8202 = vmatmul.mubr.bf16.vlgmr.msra.gmra.mrb[52].mxu0 %v7183_v37  ;;  %9469 = vmatprep.subr.bf16.mxu1 %v11448_v17  ;;  %v7187_v24 = vrot.slane %v7185_v21, 4  ;;  %v7190_v58 = vrot.slane %v7188_v51, 5  ;;  %v7250_v63 = vshrl.u32 %v7227_v40, 16  ;;  %v7290_v38 = vmul.bf16 %v7285_v23, %v14059_v55  ;;  %v11456_v17 = vld [vmem:[#allocation8 + $0x158] sm:$0xff]   ;;  %v11455_v30 = vld [vmem:[#allocation8 + $0x190] sm:$0xff]  }
 0x90c   : > { %8209 = vmatprep.mubr.bf16.mxu0 %v7248_v3  ;;  %9508 = vmatpush3.bf16.msra.mxu0 %v11447_v60  ;;  %v7103_v22 = vsel %vm3235_vm5, %v7093_v12, %v7102_v1  ;;  %v7253_v16 = vshll.u32 %v7227_v40, 16  ;;  %v7105_v32 = vshrl.u32 %v7076_v28, 16  ;;  %v7108_v34 = vshll.u32 %v7076_v28, 16  ;;  %v14063_v12 = vld [vmem:[#allocation45_spill] sm:$0xff]  ;;  %v7134_v40 = vld [vmem:[#allocation4 + $0x20] sm:$0xf] }
 0x90d   : > { %9509 = vmatprep.subr.bf16.mxu0 %v11450_v25  ;;  %v7191_v49 = vor.u32 %v7190_v58, %v7187_v24  ;;  %v7252_v11 = vrot.slane %v7250_v63, 7  ;;  %v7165_v19 = vmul.bf16 %v13575_v61, %v14060_v2  ;;  %v7228_v27 = vmul.bf16 %v13577_v26, %v14061_v43  ;;  %v11458_v37 = vld [vmem:[#allocation8 + $0x1d8] sm:$0xff]   ;;  %v14065_v55 = vld [vmem:[#allocation48_spill] sm:$0xff] }
 0x90e   : > { %9470 = vmatpush3.bf16.msra.mxu1 %v11449_v10  ;;  %v7107_v42 = vrot.slane %v7105_v32, 3  ;;  %v7110_v47 = vrot.slane %v7108_v34, 4  ;;  %v7077_v35 = vmul.bf16 %v7072_v9, %v14062_v8  ;;  %v7166_v57 = vmul.bf16 %v7161_v31, %v14063_v12  ;;  %v11457_v51 = vld [vmem:[#allocation8 + $0x118] sm:$0xff]   ;;  %v11460_v9 = vld [vmem:[#allocation8 + $0x160] sm:$0xff]  }
 0x90f   : > { %9471 = vmatprep.subr.bf16.mxu1 %v11452_v13  ;;  %v7192_v29 = vsel %vm3189_vm4, %v7182_v33, %v7191_v49  ;;  %v7255_v0 = vor.u32 %v7253_v16, %v7252_v11  ;;  %v7194_v45 = vshrl.u32 %v7165_v19, 16  ;;  %v7197_v5 = vshll.u32 %v7165_v19, 16  ;;  %v14064_v24 = vld [vmem:[#allocation41_spill] sm:$0xff]  ;;  %v11462_v16 = vld [vmem:[#allocation8 + $0x1e0] sm:$0xff]  }
 0x910   : > { %9510 = vmatpush3.bf16.msra.mxu0 %v11451_v14  ;;  %v13634_v62 = vor.u32 %v7110_v47, %v7107_v42  ;;  %v7258_v44 = vshrl.u32 %v7228_v27, 16  ;;  %v7114_v60 = vshrl.u32 %v7077_v35, 16  ;;  %v13636_v39 = vshll.u32 %v7290_v38, 16  ;;  %v11459_v63 = vld [vmem:[#allocation8 + $0x198] sm:$0xff]   ;;  %v11461_v19 = vld [vmem:[#allocation8 + $0x120] sm:$0xff]  }
 0x911   : > { %8145 = vmatmul.mubr.bf16.gmra.mrb[56].mxu1 %v7103_v22  ;;  %9511 = vmatprep.subr.bf16.mxu0 %v11454_v50  ;;  %v7256_v23 = vsel %vm3553_vm7, %v13607_v36, %v7255_v0  ;;  %v7196_v25 = vrot.slane %v7194_v45, 4  ;;  %v7199_v33 = vrot.slane %v7197_v5, 5  ;;  %v7117_v21 = vshll.u32 %v7077_v35, 16  ;;  %v7335_v50 = vld [vmem:[#allocation4 + $0x8] sm:$0xf8]  ;;  %v11464_v35 = vld [vmem:[#allocation8 + $0x168] sm:$0xff]  }
 0x912   : > { %9472 = vmatpush3.bf16.msra.mxu1 %v11453_v7  ;;  %8152 = vmatprep.mubr.bf16.mxu1 %v13612_v56  ;;  %v7112_v15 = vsel %vm3235_vm5, %v7102_v1, %v13634_v62  ;;  %v7260_v3 = vrot.slane %v7258_v44, 7  ;;  %v7261_v10 = vshll.u32 %v7228_v27, 16  ;;  %v7203_v28 = vshrl.u32 %v7166_v57, 16  ;;  %v13659_v47 = vld [vmem:[#allocation4 + $0x8] sm:$0xf0]  ;;  %v11463_v45 = vld [vmem:[#allocation8 + $0x1a0] sm:$0xff]  }
 0x913   : > { %8210 = vmatmul.mubr.bf16.gmra.mrb[56].mxu0 %v7192_v29  ;;  %9473 = vmatprep.subr.bf16.mxu1 %v11456_v17  ;;  %v13643_v13 = vor.u32 %v7199_v33, %v7196_v25  ;;  %v7206_v36 = vshll.u32 %v7166_v57, 16  ;;  %v7286_v58 = vmul.bf16 %v13570_v20, %v14064_v24  ;;  %v7287_v1 = vmul.bf16 %v13572_v52, %v14065_v55  ;;  %v14066_v29 = vld [vmem:[#allocation49_spill] sm:$0xff]  ;;  %v14067_v33 = vld [vmem:[#allocation50_spill] sm:$0xff]  ;;  %v11467_v24 = vld [vmem:[#allocation8 + $0x1a8] sm:$0xff]  }
 0x914   : > { %8217 = vmatprep.mubr.bf16.mxu0 %v7256_v23  ;;  %9512 = vmatpush3.bf16.msra.mxu0 %v11455_v30  ;;  %v7263_v31 = vor.u32 %v7261_v10, %v7260_v3  ;;  %v7325_v38 = vrot.slane %v13636_v39, 1  ;;  %v7147_v14 = vrot.slane %v7134_v40, 4  ;;  %v13652_v32 = vrot.slane %v7114_v60, 3  ;;  %v11466_v23 = vld [vmem:[#allocation8 + $0x1e8] sm:$0xff]   ;;  %v11468_v3 = vld [vmem:[#allocation8 + $0x170] sm:$0xff]  }
 0x915   : > { %9513 = vmatprep.subr.bf16.mxu0 %v11458_v37  ;;  %v7201_v22 = vsel %vm3189_vm4, %v7191_v49, %v13643_v13  ;;  %v13654_v34 = vrot.slane %v7117_v21, 4  ;;  %v13657_v27 = vrot.slane %v7203_v28, 4  ;;  %v7294_v7 = vshll.u32 %v7286_v58, 16 }
 0x916   : > { %9474 = vmatpush3.bf16.msra.mxu1 %v11457_v51  ;;  %v7264_v43 = vsel %vm3553_vm7, %v7252_v11, %v7263_v31  ;;  %v7299_v42 = vshll.u32 %v7287_v1, 16  ;;  %v13661_v57 = vrot.slane %v7206_v36, 5  ;;  %v7292_v49 = vshrl.u32 %v7286_v58, 16  ;;  %v11465_v51 = vld [vmem:[#allocation8 + $0x128] sm:$0xff]  }
 0x917   : > { %9475 = vmatprep.subr.bf16.mxu1 %v11460_v9  ;;  %v7288_v0 = vmul.bf16 %v13575_v61, %v14066_v29  ;;  %v7303_v17 = vshrl.u32 %v7287_v1, 16  ;;  %v7296_v5 = vrot.slane %v7294_v7, 1  ;;  %v13666_v11 = vmul.bf16 %v7335_v50, %v14048_v41  ;;  %v11470_v1 = vld [vmem:[#allocation8 + $0x1f0] sm:$0xff]  }
 0x918   : > { %9514 = vmatpush3.bf16.msra.mxu0 %v11459_v63  ;;  %v7301_v30 = vrot.slane %v7299_v42, 1  ;;  %v7341_v44 = vmul.bf16 %v13572_v52, %v14051_v18  ;;  %v7148_v60 = vsel %vm3298_vm6, %v13602_v4, %v7147_v14  ;;  %v7407_v37 = vrot.slane %v13659_v47, 4  ;;  %v11472_v42 = vld [vmem:[#allocation8 + $0x178] sm:$0xff]   ;;  %v11478_v47 = vld [vmem:[#allocation8 + $0x210] sm:$0xff]  }
 0x919   : > { %8153 = vmatmul.mubr.bf16.gmra.mrb[60].mxu1 %v7112_v15  ;;  %9515 = vmatprep.subr.bf16.mxu0 %v11462_v16  ;;  %v7307_v25 = vshll.u32 %v7288_v0, 16  ;;  %v7289_v21 = vmul.bf16 %v13577_v26, %v14067_v33  ;;  %v7120_v41 = vor.u32 %v13654_v34, %v13652_v32  ;;  %v7297_v40 = vor.u32 %v7296_v5, %v7292_v49  ;;  %v11469_v34 = vld [vmem:[#allocation8 + $0x130] sm:$0xff]  }
 0x91a   : > { %9476 = vmatpush3.bf16.msra.mxu1 %v11461_v19  ;;  %8160 = vmatprep.mubr.bf16.mxu1 %v7148_v60  ;;  %v7305_v18 = vor.u32 %v7303_v17, %v7301_v30  ;;  %v7311_v15 = vshrl.u32 %v7288_v0, 16  ;;  %v7354_v28 = vshrl.u32 %v7341_v44, 16  ;;  %v7357_v9 = vshll.u32 %v7341_v44, 16  ;;  %v11471_v49 = vld [vmem:[#allocation8 + $0x1b0] sm:$0xff]   ;;  %v11473_v44 = vld [vmem:[#allocation8 + $0x138] sm:$0xff]  }
 0x91b   : > { %8218 = vmatmul.mubr.bf16.gmra.mrb[60].mxu0 %v7201_v22  ;;  %9477 = vmatprep.subr.bf16.mxu1 %v11464_v35  ;;  %v7309_v10 = vrot.slane %v7307_v25, 1  ;;  %v7315_v36 = vshll.u32 %v7289_v21, 16  ;;  %v7209_v58 = vor.u32 %v13661_v57, %v13657_v27  ;;  %v7302_v63 = vsel %vm3531_vm3, %v7297_v40, %v7301_v30 }
 0x91c   : > { %8225 = vmatprep.mubr.bf16.mxu0 %v7264_v43  ;;  %9516 = vmatpush3.bf16.msra.mxu0 %v11463_v45  ;;  %v7346_v31 = vshrl.u32 %v13666_v11, 16  ;;  %v7342_v55 = vmul.bf16 %v13575_v61, %v14055_v6  ;;  %v7356_v22 = vrot.slane %v7354_v28, 3  ;;  %v7359_v16 = vrot.slane %v7357_v9, 4  ;;  %v11479_v28 = vld [vmem:[#allocation8 + $0x218] sm:$0xff]  }
 0x91d   : > { %9517 = vmatprep.subr.bf16.mxu0 %v11466_v23  ;;  %v7310_v14 = vsel %vm3531_vm3, %v7305_v18, %v7309_v10  ;;  %v7313_v32 = vor.u32 %v7311_v15, %v7309_v10  ;;  %v7349_v50 = vshll.u32 %v13666_v11, 16  ;;  %v7317_v19 = vrot.slane %v7315_v36, 1  ;;  %v7425_v10 = vld [vmem:[#allocation4 + $0x10] sm:$0xff]  ;;  %v7339_v36 = vld [vmem:[#allocation4 + $0x28] sm:$0xf] }
 0x91e   : > { %9478 = vmatpush3.bf16.msra.mxu1 %v11465_v51  ;;  %v7363_v43 = vshrl.u32 %v7342_v55, 16  ;;  %v7366_v27 = vshll.u32 %v7342_v55, 16  ;;  %v7121_v7 = vsel %vm3235_vm5, %v13634_v62, %v7120_v41  ;;  %v7412_v6 = vrot.slane %v13577_v26, 4  ;;  %v11474_v62 = vld [vmem:[#allocation8 + $0x1f8] sm:$0xff]  }
 0x91f   : > { %9479 = vmatprep.subr.bf16.mxu1 %v11468_v3  ;;  %v7319_v35 = vshrl.u32 %v7289_v21, 16  ;;  %v7343_v57 = vmul.bf16 %v13577_v26, %v14058_v48  ;;  %v7360_v29 = vor.u32 %v7359_v16, %v7356_v22  ;;  %v7318_v0 = vsel %vm3531_vm3, %v7313_v32, %v7317_v19  ;;  %v11476_v21 = vld [vmem:[#allocation8 + $0x200] sm:$0xff]   ;;  %v11475_v41 = vld [vmem:[#allocation8 + $0x1b8] sm:$0xff]   ;;  %v11481_v22 = vld [vmem:[#allocation8 + $0x228] sm:$0xff]  }
 0x920   : > { %9518 = vmatpush3.bf16.msra.mxu0 %v11467_v24  ;;  %v7365_v17 = vrot.slane %v7363_v43, 3  ;;  %v7368_v45 = vrot.slane %v7366_v27, 4  ;;  %v7210_v5 = vsel %vm3189_vm4, %v13643_v13, %v7209_v58  ;;  %v7413_v30 = vsel %vm3298_vm6, %v13602_v4, %v7412_v6  ;;  %v11480_v24 = vld [vmem:[#allocation8 + $0x220] sm:$0xff]   ;;  %v7401_v58 = vld [vmem:[#allocation4 + $0x28] sm:$0xf] }
 0x921   : > { %8161 = vmatmul.mubr.bf16.gmra.mrb[64].mxu1 %v7121_v7  ;;  %9519 = vmatprep.subr.bf16.mxu0 %v11470_v1  ;;  %v7321_v11 = vor.u32 %v7319_v35, %v7317_v19  ;;  %v7372_v48 = vshrl.u32 %v7343_v57, 16  ;;  %v7348_v60 = vrot.slane %v7346_v31, 3  ;;  %v7351_v23 = vrot.slane %v7349_v50, 4  ;;  %v11482_v7 = vld [vmem:[#allocation8 + $0x230] sm:$0xff]  }
 0x922   : > { %9480 = vmatpush3.bf16.msra.mxu1 %v11469_v34  ;;  %8266 = vmatprep.mubr.bf16.mxu1 %v7302_v63  ;;  %v7369_v25 = vor.u32 %v7368_v45, %v7365_v17  ;;  %v7375_v33 = vshll.u32 %v7343_v57, 16  ;;  %v7409_v13 = vsel %vm3298_vm6, %v7407_v37, %v13591_v59  ;;  %v11477_v59 = vld [vmem:[#allocation8 + $0x208] sm:$0xff]   ;;  %v7424_v37 = vld [vmem:[#allocation4 + $0x8] sm:$0xf0] }
 0x923   : > { %8226 = vmatmul.mubr.bf16.gmra.mrb[64].mxu0 %v7210_v5  ;;  %9481 = vmatprep.subr.bf16.mxu1 %v11472_v42  ;;  %v7326_v4 = vsel %vm3531_vm3, %v7321_v11, %v7325_v38  ;;  %v7374_v51 = vrot.slane %v7372_v48, 3  ;;  %v7352_v15 = vor.u32 %v7351_v23, %v7348_v60  ;;  %v7429_v9 = vmul.bf16 %v7424_v37, %v14049_v53  ;;  %v7276_v53 = vld [vmem:[#allocation4 + $0x20] sm:$0xff]  ;;  %v7428_v17 = vld [vmem:[#allocation4 + $0x28] sm:$0x1f] }
 0x924   : > { %9520 = vmatpush3.bf16.msra.mxu0 %v11471_v49  ;;  %8331 = vmatprep.mubr.bf16.mxu0 %v7409_v13  ;;  %v7370_v40 = vsel %vm3235_vm5, %v7360_v29, %v7369_v25  ;;  %v7377_v18 = vrot.slane %v7375_v33, 4  ;;  %v7432_v43 = vmul.bf16 %v7276_v53, %v14060_v2  ;;  %v11483_v2 = vld [vmem:[#allocation8 + $0x238] sm:$0xff]   ;;  %v7433_v48 = vmul.bf16 %v7428_v17, %v14063_v12 }
 0x925   : > { %9521 = vmatprep.subr.bf16.mxu0 %v11474_v62  ;;  %v7361_v38 = vsel %vm3235_vm5, %v7352_v15, %v7360_v29  ;;  %v7435_v63 = vshrl.u32 %v7429_v9, 16  ;;  %v7438_v31 = vshll.u32 %v7429_v9, 16 }
 0x926   : > { %9482 = vmatpush3.bf16.msra.mxu1 %v11473_v44  ;;  %v13705_v3 = vor.u32 %v7377_v18, %v7374_v51  ;;  %v7461_v29 = vshrl.u32 %v7432_v43, 16  ;;  %v7470_v23 = vshrl.u32 %v7433_v48, 16 }
 0x927   : > { %10573 = vmatprep.subr.bf16.mxu1 %v11476_v21  ;;  %v7437_v32 = vrot.slane %v7435_v63, 4  ;;  %v7440_v50 = vrot.slane %v7438_v31, 5 }
 0x928   : > { %9522 = vmatpush3.bf16.msra.mxu0 %v11475_v41  ;;  %v7379_v39 = vsel %vm3235_vm5, %v7369_v25, %v13705_v3  ;;  %v7463_v62 = vrot.slane %v7461_v29, 4  ;;  %v7473_v25 = vshll.u32 %v7433_v48, 16 }
 0x929   : > { %8267 = vmatmul.mubr.bf16.vlgmr.msra.gmra.mrb[68].mxu1 %v13570_v20  ;;  %v7430_v20 = vmul.bf16 %v7425_v10, %v14053_v54 }
 0x92a   : > { %10574 = vmatpush3.bf16.msra.mxu1 %v11476_v21  ;;  %8274 = vmatprep.mubr.bf16.mxu1 %v7310_v14  ;;  %v7426_v14 = vld [vmem:[#allocation4 + $0x18] sm:$0xff]  ;;  %v7472_v21 = vrot.slane %v7470_v23, 4 }
 0x92b   : > { %8332 = vmatmul.mubr.bf16.vlgmr.msra.gmra.mrb[68].mxu0 %v7361_v38  ;;  %10575 = vmatprep.subr.bf16.mxu1 %v11477_v59  ;;  %v7443_v55 = vshrl.u32 %v7430_v20, 16  ;;  %v7446_v1 = vshll.u32 %v7430_v20, 16  ;;  %v7431_v34 = vmul.bf16 %v7426_v14, %v14056_v46 }
 0x92c   : > { %8339 = vmatprep.mubr.bf16.mxu0 %v13612_v56  ;;  %v7344_v56 = vmul.bf16 %v7339_v36, %v14062_v8 }
 0x92d   : > { %v7445_v19 = vrot.slane %v7443_v55, 4  ;;  %v7448_v8 = vrot.slane %v7446_v1, 5  ;;  %v7452_v46 = vshrl.u32 %v7431_v34, 16  ;;  %v7455_v57 = vshll.u32 %v7431_v34, 16 }
 0x92e   : > { %10576 = vmatpush3.bf16.msra.mxu1 %v11477_v59  ;;  %v7381_v54 = vshrl.u32 %v7344_v56, 16  ;;  %v7384_v16 = vshll.u32 %v7344_v56, 16 }
 0x92f   : > { %10577 = vmatprep.subr.bf16.mxu1 %v11478_v47  ;;  %v7449_v49 = vor.u32 %v7448_v8, %v7445_v19  ;;  %v7454_v5 = vrot.slane %v7452_v46, 4  ;;  %v7457_v26 = vrot.slane %v7455_v57, 5 }
 0x930   : > { %v7383_v42 = vrot.slane %v7381_v54, 3  ;;  %v7386_v35 = vrot.slane %v7384_v16, 4 }
 0x931   : > { %8275 = vmatmul.mubr.bf16.gmra.mrb[72].mxu1 %v13572_v52  ;;  %v7414_v52 = vrot.slane %v7401_v58, 4  ;;  %v7458_v44 = vor.u32 %v7457_v26, %v7454_v5 }
 0x932   : > { %10578 = vmatpush3.bf16.msra.mxu1 %v11478_v47  ;;  %8282 = vmatprep.mubr.bf16.mxu1 %v7318_v0  ;;  %v7464_v0 = vshll.u32 %v7432_v43, 16  ;;  %v7387_v45 = vor.u32 %v7386_v35, %v7383_v42 }
 0x933   : > { %8340 = vmatmul.mubr.bf16.gmra.mrb[72].mxu0 %v7370_v40  ;;  %10579 = vmatprep.subr.bf16.mxu1 %v11479_v28  ;;  %v7415_v27 = vsel %vm3298_vm6, %v7412_v6, %v7414_v52  ;;  %v7459_v33 = vsel %vm3189_vm4, %v7449_v49, %v7458_v44  ;;  %v8665_v40 = vld [vmem:[%s13825_s14] ss:$0 sm:$0xff] }
 0x934   : > { %8347 = vmatprep.mubr.bf16.mxu0 %v7413_v30  ;;  %v7466_v30 = vrot.slane %v7464_v0, 5  ;;  %v7388_v11 = vsel %vm3235_vm5, %v13705_v3, %v7387_v45 }
 0x936   : > { %10580 = vmatpush3.bf16.msra.mxu1 %v11479_v28  ;;  %v7467_v60 = vor.u32 %v7466_v30, %v7463_v62 }
 0x937   : > { %10581 = vmatprep.subr.bf16.mxu1 %v11480_v24 }
 0x938   : > { %v7468_v13 = vsel %vm3189_vm4, %v7458_v44, %v7467_v60 }
 0x939   : > { %8283 = vmatmul.mubr.bf16.gmra.mrb[76].mxu1 %v13575_v61  ;;  %v7441_v61 = vor.u32 %v7440_v50, %v7437_v32 }
 0x93a   : > { %10582 = vmatpush3.bf16.msra.mxu1 %v11480_v24  ;;  %8290 = vmatprep.mubr.bf16.mxu1 %v7326_v4  ;;  %v7475_v4 = vrot.slane %v7473_v25, 5 }
 0x93b   : > { %8348 = vmatmul.mubr.bf16.gmra.mrb[76].mxu0 %v7379_v39  ;;  %10583 = vmatprep.subr.bf16.mxu1 %v11481_v22  ;;  %v7450_v6 = vsel %vm3189_vm4, %v7441_v61, %v7449_v49 }
 0x93c   : > { %8355 = vmatprep.mubr.bf16.mxu0 %v7415_v27  ;;  %v7476_v51 = vor.u32 %v7475_v4, %v7472_v21 }
 0x93e   : > { %10584 = vmatpush3.bf16.msra.mxu1 %v11481_v22  ;;  %v7477_v41 = vsel %vm3189_vm4, %v7467_v60, %v7476_v51 }
 0x93f   : > { %10585 = vmatprep.subr.bf16.mxu1 %v11482_v7 }
 0x941   : > { %8291 = vmatmul.mubr.bf16.gmra.mrb[80].mxu1 %v7276_v53 }
 0x942   : > { %10586 = vmatpush3.bf16.msra.mxu1 %v11482_v7  ;;  %10589 = vmatprep.mubr.bf16.mxu1 %v7450_v6 }
 0x943   : > { %8356 = vmatmul.mubr.bf16.gmra.mrb[80].mxu0 %v7388_v11  ;;  %10587 = vmatprep.subr.bf16.mxu1 %v11483_v2 }
 0x946   : > { %10588 = vmatpush3.bf16.msra.mxu1 %v11483_v2 }
 0x949   : > { %10590 = vmatmul.mubr.bf16.vlgmr.msra.gmra.mrb[84].mxu1 %v7459_v33 }
 0x94a   : > { %10593 = vmatprep.mubr.bf16.mxu1 %v7468_v13 }
 0x951   : > { %10594 = vmatmul.mubr.bf16.gmra.mrb[88].mxu1 %v7477_v41 }
 0x9dc   : > { %v9403_v12 = vpop.f32.mrb[52].mxu1 }
 0x9dd   : > { %v9404_v18 = vpop.f32.mrb[53].mxu1 }
 0x9de   : > { %v9405_v15 = vadd.f32 %v9404_v18, %v9403_v12  ;;  %v9443_v3 = vpop.f32.mrb[52].mxu0  ;;  %v9406_v59 = vpop.f32.mrb[54].mxu1 }
 0x9df   : > { %v9444_v39 = vpop.f32.mrb[53].mxu0  ;;  %v9407_v38 = vpop.f32.mrb[55].mxu1 }
 0x9e0   : > { %v8139_v47 = vadd.f32 %v9405_v15, %v8665_v40  ;;  %v9445_v37 = vadd.f32 %v9444_v39, %v9443_v3  ;;  %v9408_v10 = vadd.f32 %v9407_v38, %v9406_v59  ;;  %v9446_v28 = vpop.f32.mrb[54].mxu0 }
 0x9e1   : > { %v9447_v9 = vpop.f32.mrb[55].mxu0 }
 0x9e2   : > { %v8204_v36 = vadd.f32 %v9445_v37, %v8139_v47  ;;  %v8142_v20 = vadd.f32 %v9408_v10, %v8665_v40  ;;  %v9448_v24 = vadd.f32 %v9447_v9, %v9446_v28 }
 0x9e4   : > { %v8207_v58 = vadd.f32 %v9448_v24, %v8142_v20  ;;  %v9409_v56 = vpop.f32.mrb[56].mxu1 }
 0x9e5   : > { %v9410_v63 = vpop.f32.mrb[57].mxu1 }
 0x9e6   : > { %v9411_v31 = vadd.f32 %v9410_v63, %v9409_v56  ;;  %v9449_v55 = vpop.f32.mrb[56].mxu0  ;;  %v9412_v1 = vpop.f32.mrb[58].mxu1 }
 0x9e7   : > { %v9450_v14 = vpop.f32.mrb[57].mxu0  ;;  %v9413_v53 = vpop.f32.mrb[59].mxu1 }
 0x9e8   : > { %v8147_v52 = vadd.f32 %v9411_v31, %v8665_v40  ;;  %v9451_v22 = vadd.f32 %v9450_v14, %v9449_v55  ;;  %v9414_v54 = vadd.f32 %v9413_v53, %v9412_v1  ;;  %v9452_v16 = vpop.f32.mrb[58].mxu0 }
 0x9e9   : > { %v9453_v32 = vpop.f32.mrb[59].mxu0 }
 0x9ea   : > { %v8212_v34 = vadd.f32 %v9451_v22, %v8147_v52  ;;  %v8150_v50 = vadd.f32 %v9414_v54, %v8665_v40  ;;  %v9454_v19 = vadd.f32 %v9453_v32, %v9452_v16 }
 0x9ec   : > { %v8215_v8 = vadd.f32 %v9454_v19, %v8150_v50  ;;  %v9415_v43 = vpop.f32.mrb[60].mxu1 }
 0x9ed   : > { %v9416_v27 = vpop.f32.mrb[61].mxu1 }
 0x9ee   : > { %v9417_v7 = vadd.f32 %v9416_v27, %v9415_v43  ;;  %v9455_v42 = vpop.f32.mrb[60].mxu0  ;;  %v9418_v35 = vpop.f32.mrb[62].mxu1 }
 0x9ef   : > { %v9456_v46 = vpop.f32.mrb[61].mxu0  ;;  %v9419_v57 = vpop.f32.mrb[63].mxu1 }
 0x9f0   : > { %v8155_v61 = vadd.f32 %v9417_v7, %v8665_v40  ;;  %v9457_v49 = vadd.f32 %v9456_v46, %v9455_v42  ;;  %v9420_v29 = vadd.f32 %v9419_v57, %v9418_v35  ;;  %v9458_v0 = vpop.f32.mrb[62].mxu0 }
 0x9f1   : > { %v9459_v2 = vpop.f32.mrb[63].mxu0 }
 0x9f2   : > { %v8220_v17 = vadd.f32 %v9457_v49, %v8155_v61  ;;  %v8158_v45 = vadd.f32 %v9420_v29, %v8665_v40  ;;  %v9460_v5 = vadd.f32 %v9459_v2, %v9458_v0 }
 0x9f4   : > { %v8223_v26 = vadd.f32 %v9460_v5, %v8158_v45  ;;  %v9421_v6 = vpop.f32.mrb[64].mxu1 }
 0x9f5   : > { %v9422_v62 = vpop.f32.mrb[65].mxu1 }
 0x9f6   : > { %v9423_v30 = vadd.f32 %v9422_v62, %v9421_v6  ;;  %v9461_v11 = vpop.f32.mrb[64].mxu0  ;;  %v9424_v48 = vpop.f32.mrb[66].mxu1 }
 0x9f7   : > { %v9462_v44 = vpop.f32.mrb[65].mxu0  ;;  %v9425_v60 = vpop.f32.mrb[67].mxu1 }
 0x9f8   : > { %v8163_v23 = vadd.f32 %v9423_v30, %v8665_v40  ;;  %v9463_v25 = vadd.f32 %v9462_v44, %v9461_v11  ;;  %v9426_v33 = vadd.f32 %v9425_v60, %v9424_v48  ;;  %v9464_v13 = vpop.f32.mrb[66].mxu0 }
 0x9f9   : > { %v9465_v21 = vpop.f32.mrb[67].mxu0 }
 0x9fa   : > { %v8228_v4 = vadd.f32 %v9463_v25, %v8163_v23  ;;  %v8166_v51 = vadd.f32 %v9426_v33, %v8665_v40  ;;  %v9466_v41 = vadd.f32 %v9465_v21, %v9464_v13 }
 0x9fc   : > { %v13732_v12 = vadd.f32 %v9466_v41, %v8166_v51  ;;  %v9483_v18 = vpop.f32.mrb[68].mxu1  ;;  %v14069_v41 = vld [vmem:[#allocation23_spill] sm:$0xff] }
 0x9fd   : > { %v9484_v15 = vpop.f32.mrb[69].mxu1 }
 0x9fe   : > { %v9485_v3 = vadd.f32 %v9484_v15, %v9483_v18  ;;  %v9523_v59 = vpop.f32.mrb[68].mxu0  ;;  %v9486_v39 = vpop.f32.mrb[70].mxu1  ;;  %v14070_v18 = vld [vmem:[#allocation25_spill] sm:$0xff] }
 0x9ff   : > { %v9524_v38 = vpop.f32.mrb[69].mxu0  ;;  %v9487_v47 = vpop.f32.mrb[71].mxu1 }
 0xa00   : > { %v8269_v37 = vadd.f32 %v9485_v3, %v8204_v36  ;;  %v9525_v10 = vadd.f32 %v9524_v38, %v9523_v59  ;;  %v9488_v28 = vadd.f32 %v9487_v47, %v9486_v39  ;;  %v9526_v9 = vpop.f32.mrb[70].mxu0  ;;  %v14071_v59 = vld [vmem:[#allocation22_spill] sm:$0xff]  ;;  %v14072_v39 = vld [vmem:[#allocation24_spill] sm:$0xff] }
 0xa01   : > { %v9527_v20 = vpop.f32.mrb[71].mxu0  ;;  %v761_v38 = vpack.c.bf16 %v14072_v39, %v14071_v59 }
 0xa02   : > { %v8272_v24 = vadd.f32 %v9488_v28, %v8207_v58  ;;  %v9528_v56 = vadd.f32 %v9527_v20, %v9526_v9  ;;  %v8334_v63 = vadd.f32 %v9525_v10, %v8269_v37 }
 0xa04   : > { %v9489_v31 = vpop.f32.mrb[72].mxu1  ;;  %v13734_v40 = vadd.f32 %v9528_v56, %v8272_v24  ;;  %v8433_v24 = vunpack.c.l.bf16 %v761_v38 }
 0xa05   : > { %v9490_v55 = vpop.f32.mrb[73].mxu1 }
 0xa06   : > { %v9491_v1 = vadd.f32 %v9490_v55, %v9489_v31  ;;  %v9529_v14 = vpop.f32.mrb[72].mxu0  ;;  %v9492_v53 = vpop.f32.mrb[74].mxu1 }
 0xa07   : > { %v9530_v52 = vpop.f32.mrb[73].mxu0  ;;  %v9493_v22 = vpop.f32.mrb[75].mxu1 }
 0xa08   : > { %v8277_v54 = vadd.f32 %v9491_v1, %v8212_v34  ;;  %v9531_v16 = vadd.f32 %v9530_v52, %v9529_v14  ;;  %v9494_v32 = vadd.f32 %v9493_v22, %v9492_v53  ;;  %v9532_v36 = vpop.f32.mrb[74].mxu0  ;;  %v8434_v52 = vunpack.c.h.bf16 %v761_v38 }
 0xa09   : > { %v9533_v50 = vpop.f32.mrb[75].mxu0 }
 0xa0a   : > { %v8280_v19 = vadd.f32 %v9494_v32, %v8215_v8  ;;  %v9534_v43 = vadd.f32 %v9533_v50, %v9532_v36  ;;  %v8342_v27 = vadd.f32 %v9531_v16, %v8277_v54  ;;  %v14074_v54 = vld [vmem:[#allocation29_spill] sm:$0xff]  ;;  %v14075_v36 = vld [vmem:[#allocation26_spill] sm:$0xff]  ;;  %v14076_v50 = vld [vmem:[#allocation28_spill] sm:$0xff] }
 0xa0c   : > { %v9495_v58 = vpop.f32.mrb[76].mxu1  ;;  %v8345_v7 = vadd.f32 %v9534_v43, %v8280_v19  ;;  %v763_v19 = vpack.c.bf16 %v14076_v50, %v14075_v36 }
 0xa0d   : > { %v9496_v42 = vpop.f32.mrb[77].mxu1 }
 0xa0e   : > { %v9497_v35 = vadd.f32 %v9496_v42, %v9495_v58  ;;  %v9535_v46 = vpop.f32.mrb[76].mxu0  ;;  %v9498_v57 = vpop.f32.mrb[78].mxu1  ;;  %v8437_v42 = vunpack.c.l.bf16 %v763_v19 }
 0xa0f   : > { %v9536_v61 = vpop.f32.mrb[77].mxu0  ;;  %v9499_v49 = vpop.f32.mrb[79].mxu1 }
 0xa10   : > { %v8285_v29 = vadd.f32 %v9497_v35, %v8220_v17  ;;  %v9537_v0 = vadd.f32 %v9536_v61, %v9535_v46  ;;  %v9500_v2 = vadd.f32 %v9499_v49, %v9498_v57  ;;  %v9538_v45 = vpop.f32.mrb[78].mxu0 }
 0xa11   : > { %v9539_v34 = vpop.f32.mrb[79].mxu0 }
 0xa12   : > { %v8288_v5 = vadd.f32 %v9500_v2, %v8223_v26  ;;  %v9540_v6 = vadd.f32 %v9539_v34, %v9538_v45  ;;  %v8350_v62 = vadd.f32 %v9537_v0, %v8285_v29  ;;  %v762_v26 = vpack.c.bf16 %v14070_v18, %v14069_v41 }
 0xa13   : > { %v8438_v2 = vunpack.c.h.bf16 %v763_v19 }
 0xa14   : > { %v9501_v8 = vpop.f32.mrb[80].mxu1  ;;  %v8353_v30 = vadd.f32 %v9540_v6, %v8288_v5  ;;  %v8435_v28 = vunpack.c.l.bf16 %v762_v26  ;;  %v8436_v1 = vunpack.c.h.bf16 %v762_v26 }
 0xa15   : > { %v9502_v11 = vpop.f32.mrb[81].mxu1 }
 0xa16   : > { %v9503_v48 = vadd.f32 %v9502_v11, %v9501_v8  ;;  %v9541_v44 = vpop.f32.mrb[80].mxu0  ;;  %v9504_v60 = vpop.f32.mrb[82].mxu1 }
 0xa17   : > { %v9542_v23 = vpop.f32.mrb[81].mxu0  ;;  %v9505_v25 = vpop.f32.mrb[83].mxu1 }
 0xa18   : > { %v8293_v33 = vadd.f32 %v9503_v48, %v8228_v4  ;;  %v9543_v13 = vadd.f32 %v9542_v23, %v9541_v44  ;;  %v9506_v17 = vadd.f32 %v9505_v25, %v9504_v60  ;;  %v9544_v21 = vpop.f32.mrb[82].mxu0 }
 0xa19   : > { %v9545_v51 = vpop.f32.mrb[83].mxu0 }
 0xa1a   : > { %v8296_v15 = vadd.f32 %v9506_v17, %v13732_v12  ;;  %v9546_v3 = vadd.f32 %v9545_v51, %v9544_v21  ;;  %v8358_v47 = vadd.f32 %v9543_v13, %v8293_v33 }
 0xa1c   : > { %v10591_v37 = vpop.f32.mrb[84].mxu1  ;;  %v8361_v10 = vadd.f32 %v9546_v3, %v8296_v15 }
 0xa1d   : > { %v8407_v4 = vadd.f32 %v10591_v37, %v8342_v27  ;;  %v8398_v9 = vpop.f32.mrb[85].mxu1 }
 0xa1e   : > { %v8399_v20 = vadd.f32 %v8398_v9, %v8334_v63  ;;  %v10592_v56 = vpop.f32.mrb[86].mxu1  ;;  %v14073_v63 = vld [vmem:[#allocation27_spill] sm:$0xff] }
 0xa1f   : > { %v8443_v31 = vadd.f32 %v8435_v28, %v8407_v4  ;;  %v8410_v55 = vadd.f32 %v10592_v56, %v8345_v7  ;;  %v8401_v14 = vpop.f32.mrb[87].mxu1  ;;  %v764_v16 = vpack.c.bf16 %v14074_v54, %v14073_v63 }
 0xa20   : > { %v8441_v12 = vadd.f32 %v8433_v24, %v8399_v20  ;;  %v8402_v53 = vadd.f32 %v8401_v14, %v13734_v40 }
 0xa21   : > { %8451 = vst [vmem:[%s13745_s16 + $0x10] sm:$0xff] %v8443_v31  ;;  %v8444_v22 = vadd.f32 %v8436_v1, %v8410_v55  ;;  %v8439_v27 = vunpack.c.l.bf16 %v764_v16  ;;  %v8440_v61 = vunpack.c.h.bf16 %v764_v16 }
 0xa22   : > { %8449 = vst [vmem:[%s13745_s16] sm:$0xff] %v8441_v12  ;;  %v8442_v32 = vadd.f32 %v8434_v52, %v8402_v53 }
 0xa23   : > { %8452 = vst [vmem:[%s13745_s16 + $0x18] sm:$0xff] %v8444_v22 }
 0xa24   : > { %8450 = vst [vmem:[%s13745_s16 + $0x8] sm:$0xff] %v8442_v32  ;;  %v10595_v40 = vpop.f32.mrb[88].mxu1 }
 0xa25   : > { %v8423_v43 = vadd.f32 %v10595_v40, %v8358_v47  ;;  %v8414_v58 = vpop.f32.mrb[89].mxu1 }
 0xa26   : > { %v8415_v7 = vadd.f32 %v8414_v58, %v8350_v62  ;;  %v10596_v35 = vpop.f32.mrb[90].mxu1 }
 0xa27   : > { %v8447_v46 = vadd.f32 %v8439_v27, %v8423_v43  ;;  %v8426_v57 = vadd.f32 %v10596_v35, %v8361_v10  ;;  %v8417_v49 = vpop.f32.mrb[91].mxu1 }
 0xa28   : > { %v8445_v29 = vadd.f32 %v8437_v42, %v8415_v7  ;;  %v8418_v0 = vadd.f32 %v8417_v49, %v8353_v30 }
 0xa29   : > { %8455 = vst [vmem:[%s13745_s16 + $0x30] sm:$0xff] %v8447_v46  ;;  %v8448_v45 = vadd.f32 %v8440_v61, %v8426_v57 }
 0xa2a   : > { %8453 = vst [vmem:[%s13745_s16 + $0x20] sm:$0xff] %v8445_v29  ;;  %v8446_v34 = vadd.f32 %v8438_v2, %v8418_v0 }
 0xa2b   : > { %8456 = vst [vmem:[%s13745_s16 + $0x38] sm:$0xff] %v8448_v45 }
 0xa2c   : > { %8454 = vst [vmem:[%s13745_s16 + $0x28] sm:$0xff] %v8446_v34 }
 0xa2d   : > { %11557 = shalt.err (!%p11554_p11)
}
 0xa2e   : > { %s11558_s21 = scalar_lea.hbm %s13764_s23, 1024  ;;  %s11562_s16 = scalar_lea.hbm %s14078_s30, 2048 }
 0xa2f   : > { %p11559_p13 = scmp.ne.s32.totalorder %s13764_s23, %s11558_s21  ;;  %p11563_p6 = scmp.lt.u32.totalorder %s13764_s23, %s14078_s30 }
 0xa30   : > { %p11564_p9 = scmp.lt.u32.totalorder %s11562_s16, %s11558_s21  ;;  %p11566_p10 = scmp.lt.u32.totalorder %s11558_s21, %s13764_s23 }
 0xa31   : > { %p11560_p5 = pnand %p11559_p13, %p14079_p1 }
 0xa32   : > { %p11565_p12 = por %p11564_p9, %p11563_p6 }
 0xa33   : > { %p11561_p0 = pneg %p11560_p5 }
 0xa34   : > { %p11567_p2 = por %p11566_p10, %p11565_p12 }
 0xa36   : > { %p11568_p3 = pnand %p11567_p2, %p11561_p0 }
 0xa38   : > { %11571 = shalt.err (!%p11568_p3)
}
 0xa39   : > { %s11627_s28 = smov 128   ;;  %s11628_s26 = smov 8  }
 0xa3a   : > { %11261 = dma.vmem_to_hbm [thread:$0]  (%p14079_p1), %s13757_s25, 1024, %s13764_s23, %s13770_s22, %s11627_s28, %s11627_s28, %s11628_s26  }
 0xa3b PF: > { %s14080_s20 = sld [smem:[#allocation17_spill]]  ;;  %s14081_s27 = sld [smem:[#allocation14_spill]] }
 0xa3c   : > { %s14082_s18 = sld [smem:[#allocation21_spill]] }
 0xa41   : > { %p11278_p4 = scmp.ge.s32.totalorder %s14080_s20, 2  ;;  %s8486_s24 = sand.u32 1, %s14081_s27  }
 0xa42   : > { %p14083_p7 = scmp.ne.s32.totalorder %s14082_s18, 0  ;;  %s8487_s21 = scalar_lea.sflag [#allocation7], %s8486_s24 }
 0xa44   : > { %p11271_p8 = pnand %p11278_p4, %p14083_p7 }
 0xa46   : > { %11597 = dma.done.wait (!%p11271_p8), %s8487_s21, 1024  }
 0xa47   : > { %11599 = vsyncadd (!%p11271_p8), %s8487_s21, 4294966272  ;;  %s14084_s21 = sld [smem:[#allocation18_spill]]  ;;  %s14085_s18 = sld [smem:[#allocation15_spill]] }
 0xa48   : > { %s14086_s19 = sld [smem:[#allocation16_spill]]  ;;  %s14087_s20 = sld [smem:[#allocation19_spill]] }
 0xa4d   : > { %p27_p11 = scmp.ge.s32.totalorder %s14084_s21, 4  }
 0xa4f   :  { %29 = sbr.rel (!%p27_p11) target bundleno = 7 (0x7), region = 124 }
 0xa56   :  { %8492 = vsyncpa [#allocation6], 1 }
 0xa57   :  { %8494 = vsyncpa [#allocation6 + $0x1], 1 }
 0xa58   :  { %8495 = vsyncpa [#allocation9], 1 }
 0xa59   :  { %8496 = vsyncpa [#allocation7], 1 }
 0xa5a   :  { %8498 = vsyncpa [#allocation7 + $0x1], 1 }

// kernel: tpu_custom_call.1
= control target key start
LH: loop header
LB: loop body
LE: loop exit
PB: predicated region body
PF: predicated region fallthrough
CT: control target
= control target key end

     0   :  { %s13811_s0 = inlined_call_operand.vmem [shape: bf16[2,16,128], index: 0, kind: input, shape index: {}]   ;;  %s13812_s1 = inlined_call_operand.vmem [shape: bf16[128,128], index: 1, kind: input, shape index: {}]   ;;  %s13813_s2 = inlined_call_operand.vmem [shape: bf16[64,16], index: 2, kind: input, shape index: {}]   ;;  %s13814_s3 = inlined_call_operand.vmem [shape: f32[1,128], index: 3, kind: input, shape index: {}]   ;;  %s13815_s4 = inlined_call_operand.vmem [shape: f32[128,8], index: 4, kind: input, shape index: {}]   ;;  %s13816_s5 = inlined_call_operand.vmem [shape: f32[8,128], index: 5, kind: input, shape index: {}]   ;;  %s13817_s6 = inlined_call_operand.vmem [shape: bf16[64,2], index: 6, kind: input, shape index: {}]   ;;  %s13818_s7 = inlined_call_operand.vmem [shape: f32[1,128], index: 7, kind: input, shape index: {}]   ;;  %s13819_s8 = inlined_call_operand.vmem [shape: f32[1,128], index: 8, kind: input, shape index: {}]   ;;  %s13820_s9 = inlined_call_operand.hbm [shape: bf16[1152,128], index: 9, kind: input, shape index: {}]   ;;  %s13821_s10 = inlined_call_operand.vmem [shape: f32[1,128], index: 10, kind: input, shape index: {}]   ;;  %s13822_s11 = inlined_call_operand.vmem [shape: f32[1,128], index: 11, kind: input, shape index: {}]   ;;  %s13823_s12 = inlined_call_operand.vmem [shape: f32[1,128], index: 12, kind: input, shape index: {}]   ;;  %s13824_s13 = inlined_call_operand.hbm [shape: bf16[1152,128], index: 13, kind: input, shape index: {}]   ;;  %s13825_s14 = inlined_call_operand.vmem [shape: f32[1,128], index: 14, kind: input, shape index: {}]   ;;  %s13826_s15 = inlined_call_operand.hbm [shape: f32[2,64,128], index: 15, kind: output, shape index: {}]  }
   0x1   :  { %13936 = sst [smem:[#allocation61_spill]] %s13826_s15 }
   0x2   :  { %20 = vsyncpa [#allocation6], 0 }
   0x3   :  { %21 = vsyncpa [#allocation9], 0 }
   0x4   :  { %22 = vsyncpa [#allocation7], 0 }
   0x5   :  { %24 = vsyncpa [#allocation7 + $0x1], 0  ;;  %s11709_s18 = smov 0   ;;  %s11711_s19 = smov 0  }
   0x6   :  { %s11713_s20 = smov 0   ;;  %s11715_s21 = smov 0  }
   0x7 LB: > { %13937 = sst [smem:[#allocation14_spill]] %s11602_s18  ;;  %s11730_s22 = sadd.s32 4294967295, %s11614_s21   ;;  %s11614_s21 = sphi %s11715_s21, %s14084_s21   ;;  %s11610_s20 = sphi %s11713_s20, %s14087_s20   ;;  %s11606_s19 = sphi %s11711_s19, %s14086_s19   ;;  %s11602_s18 = sphi %s11709_s18, %s14085_s18  }
   0x8   : > { %13938 = sst [smem:[#allocation15_spill]] %s11606_s19  ;;  %s8555_s23 = sadd.s32 4294967294, %s11614_s21  }
   0x9   : > { %13939 = sst [smem:[#allocation16_spill]] %s11610_s20  ;;  %s11734_s24 = sadd.s32 1, %s11614_s21  }
   0xa   : > { %13940 = sst [smem:[#allocation17_spill]] %s11614_s21  ;;  %s357_s25 = sadd.s32 1, %s11610_s20 }
   0xb   : > { %13941 = sst [smem:[#allocation18_spill]] %s11734_s24  ;;  %s354_s26 = ssub.s32 %s11614_s21, %s11734_s24 }
   0xc   : > { %p367_p0 = scmp.ne.s32.totalorder %s11610_s20, %s11606_s19  ;;  %p355_p1 = scmp.eq.s32.totalorder %s354_s26, 0 }
   0xd   : > { %p368_p2 = scmp.eq.s32.totalorder %s11730_s22, 1  ;;  %p373_p3 = scmp.ne.s32.totalorder %s11606_s19, %s11602_s18 }
   0xe   : > { %p374_p4 = scmp.eq.s32.totalorder %s8555_s23, 1  ;;  %p8556_p7 = scmp.ge.s32.totalorder %s11614_s21, 1 }
   0xf   : > { %s11745_s27 = scalar_select %p355_p1, %s11610_s20, %s357_s25  }
  0x10   : > { %p11747_p5 = por %p368_p2, %p367_p0  ;;  %p11751_p6 = por %p374_p4, %p373_p3 }
  0x11   : > { %13942 = sst [smem:[#allocation19_spill]] %s11745_s27  ;;  %p381_p8 = scmp.lt.s32.totalorder %s11614_s21, 3 }
  0x12   : > { %s13943_s28 = scalar_select %p11747_p5, 1, 0 }
  0x13   : > { %s13945_s29 = scalar_select %p11751_p6, 1, 0 }
  0x14   : > { %13944 = sst [smem:[#allocation20_spill]] %s13943_s28  ;;  %p13833_p9 = scmp.eq.s32.totalorder %s11730_s22, 0 }
  0x15   : > { %13946 = sst [smem:[#allocation21_spill]] %s13945_s29  ;;  %p11758_p10 = pnand %p8556_p7, %p381_p8 }
  0x16   : > { %s11616_s16 = smov [#allocation5]   ;;  %s11617_s25 = smov [#allocation8]  }
  0x17   : > { %s13947_s30 = scalar_select %p11758_p10, 1, 0 }
  0x18   : > { %s417_s17 = sshll.u32 %s11616_s16, 4  ;;  %p11263_p11 = pneg %p11758_p10  ;;  %s418_s17 = int_to_ptr.vmem [resolvable:$true] %s417_s17 }
  0x19   : > { %s439_s26 = sshll.u32 %s11617_s25, 4  ;;  %s11488_s24 = scalar_lea.hbm %s13820_s9, 9216  ;;  %s11770_s26 = int_to_ptr.vmem [resolvable:$true] %s439_s26 }
  0x1a   : > { %p11766_p12 = pnand %p13833_p9, %p11263_p11  ;;  %p11489_p13 = scmp.ne.s32.totalorder %s13820_s9, %s11488_s24 }
  0x1b   : > { %p11495_p3 = scmp.lt.u32.totalorder %s11488_s24, %s13820_s9 }
  0x1c   : > { %p11490_p0 = pneg %p11766_p12 }
  0x1e   : > { %p11491_p1 = pnand %p11490_p0, %p11489_p13 }
  0x20   : > { %p11492_p2 = pneg %p11491_p1 }
  0x22   : > { %p11497_p4 = pnand %p11495_p3, %p11492_p2 }
  0x24   : > { %11500 = shalt.err (!%p11497_p4)
}
  0x25   : > { %s11501_s25 = scalar_lea.vmem %s418_s17, 9216  ;;  %p11509_p9 = scmp.lt.s32.totalorder %s418_s17, %s418_s17 }
  0x26   : > { %p11502_p7 = scmp.ne.s32.totalorder %s418_s17, %s11501_s25  ;;  %p11510_p6 = scmp.lt.s32.totalorder %s11501_s25, %s11501_s25 }
  0x28   : > { %p11504_p8 = pnand %p11502_p7, %p11490_p0  ;;  %p11511_p5 = por %p11510_p6, %p11509_p9 }
  0x2a   : > { %p11505_p11 = pneg %p11504_p8 }
  0x2c   : > { %p11512_p10 = pnand %p11511_p5, %p11505_p11 }
  0x2e   : > { %11515 = shalt.err (!%p11512_p10)
}
  0x2f   : > { %s11618_s20 = smov 64   ;;  %s11619_s27 = smov 4  }
  0x30   : > { %11266 = dma.hbm_to_vmem [thread:$0]  (!%p11766_p12), %s13820_s9, 9216, %s418_s17, [#allocation6], %s11618_s20, %s11618_s20, %s11619_s27  }
  0x31   : > { %s11516_s16 = scalar_lea.hbm %s13824_s13, 9216 }
  0x32   : > { %p11517_p13 = scmp.ne.s32.totalorder %s13824_s13, %s11516_s16  ;;  %p11523_p9 = scmp.lt.u32.totalorder %s11516_s16, %s13824_s13 }
  0x34   : > { %p11519_p5 = pnand %p11517_p13, %p11490_p0 }
  0x36   : > { %p11520_p6 = pneg %p11519_p5 }
  0x38   : > { %p11525_p10 = pnand %p11523_p9, %p11520_p6 }
  0x3a   : > { %11528 = shalt.err (!%p11525_p10)
}
  0x3b   : > { %s11529_s17 = scalar_lea.vmem %s11770_s26, 9216  ;;  %p11537_p4 = scmp.lt.s32.totalorder %s11770_s26, %s11770_s26 }
  0x3c   : > { %p11530_p1 = scmp.ne.s32.totalorder %s11770_s26, %s11529_s17  ;;  %p11538_p7 = scmp.lt.s32.totalorder %s11529_s17, %s11529_s17 }
  0x3e   : > { %p11532_p2 = pnand %p11530_p1, %p11490_p0  ;;  %p11539_p8 = por %p11538_p7, %p11537_p4 }
  0x40   : > { %p11533_p3 = pneg %p11532_p2 }
  0x42   : > { %p11540_p11 = pnand %p11539_p8, %p11533_p3 }
  0x44   : > { %11543 = shalt.err (!%p11540_p11)
}
  0x45   : > { %11269 = dma.hbm_to_vmem [thread:$0]  (!%p11766_p12), %s13824_s13, 9216, %s11770_s26, [#allocation9], %s11618_s20, %s11618_s20, %s11619_s27  }
  0x46   : > { %p13949_p13 = scmp.ne.s32.totalorder %s13947_s30, 0 }
  0x48   : > { %466 = sbr.rel (%p13949_p13) target bundleno = 2619 (0xa3b), region = 80 }
  0x4f   : > { %p13950_p5 = scmp.eq.s32.totalorder %s11730_s22, 0 }
  0x51   : > { %11589 = dma.done.wait (%p13950_p5), [#allocation6], 9216   ;;  %p13951_p0 = pmov %p13950_p5 }
  0x53   : > { %11591 = vsyncadd (%p13951_p0), [#allocation6], 4294958080  ;;  %p13952_p6 = pmov %p13951_p0 }
  0x54   : > { %p13953_p9 = pmov %p13951_p0 }
  0x55   : > { %11593 = dma.done.wait (%p13952_p6), [#allocation9], 9216  }
  0x56   : > { %11595 = vsyncadd (%p13953_p9), [#allocation9], 4294958080  ;;  %v13859_v0 = vmov 0.0   ;;  %vm11621_vm0 = vmmov 0   ;;  %p518_p12 = scmp.lt.s32.totalorder %s11730_s22, 1  ;;  %v11327_v1 = vld [vmem:[%s13812_s1] sm:$0xff]  }
  0x57   : > { %9559 = vmatprep.subr.bf16.mxu0 %v13859_v0  ;;  %9575 = vmatprep.mubr.msk.bf16.mxu0 %vm11621_vm0, %v13859_v0  ;;  %v11328_v2 = vld [vmem:[%s13812_s1 + $0x8] sm:$0xff]   ;;  %v11329_v3 = vld [vmem:[%s13812_s1 + $0x10] sm:$0xff]   ;;  %v11330_v4 = vld [vmem:[%s13812_s1 + $0x18] sm:$0xff]   ;;  %vm683_vm1 = vcmask 130048   ;;  %v13857_v24 = vmov 0.0|0.0   ;;  %vm2121_vm2 = vcmask 64512  }
  0x58   : > { %s519_s23 = scalar_select %p518_p12, %s11730_s22, 1  ;;  %9560 = vmatpush3.bf16.msra.mxu0 %v11327_v1  ;;  %v11331_v5 = vld [vmem:[%s13812_s1 + $0x20] sm:$0xff]   ;;  %v11332_v6 = vld [vmem:[%s13812_s1 + $0x28] sm:$0xff]   ;;  %v11333_v7 = vld [vmem:[%s13812_s1 + $0x30] sm:$0xff]   ;;  %vm3531_vm3 = vsmask.f32 7424 }
  0x59   : > { %9561 = vmatprep.subr.bf16.mxu0 %v13859_v0  ;;  %v11334_v8 = vld [vmem:[%s13812_s1 + $0x38] sm:$0xff]   ;;  %v11336_v10 = vld [vmem:[%s13813_s2] sm:$0xff]   ;;  %v11337_v16 = vld [vmem:[%s13813_s2 + $0x8] sm:$0xff]   ;;  %vm3189_vm4 = vsmask.f32 3328  ;;  %vm3298_vm6 = vcmask 1043456  }
  0x5a   : > { %s8743_s27 = sshll.u32 %s519_s23, 3  ;;  %9581 = vmatprep.mubr.msk.bf16.mxu1 %vm683_vm1, %v11336_v10  ;;  %v11338_v17 = vld [vmem:[%s13813_s2 + $0x10] sm:$0xff]   ;;  %v11339_v18 = vld [vmem:[%s13813_s2 + $0x18] sm:$0xff]   ;;  %v11887_v19 = vld [vmem:[%s13815_s4] sm:$0xff]  ;;  %vm3235_vm5 = vsmask.f32 4352 }
  0x5b   : > { %s522_s16 = scalar_lea.vmem %s13811_s0, %s8743_s27  ;;  %v11892_v20 = vld [vmem:[%s13815_s4 + $0x8] sm:$0xff]  ;;  %v822_v21 = vand.u32 4294901760, %v11887_v19  ;;  %v11903_v25 = vld [vmem:[%s13815_s4 + $0x10] sm:$0xff]  ;;  %v11908_v26 = vld [vmem:[%s13815_s4 + $0x18] sm:$0xff]  ;;  %vm3553_vm7 = vsmask.f32 256 }
  0x5c   : > { %9562 = vmatpush3.bf16.msra.mxu0 %v11328_v2  ;;  %v11335_v9 = vld [vmem:[%s522_s16] sm:$0xff]   ;;  %v825_v22 = vand.u32 4294901760, %v11892_v20  ;;  %v828_v27 = vand.u32 4294901760, %v11903_v25  ;;  %v831_v28 = vand.u32 4294901760, %v11908_v26  ;;  %v11930_v31 = vld [vmem:[%s13815_s4 + $0x28] sm:$0xff]  ;;  %v11947_v35 = vld [vmem:[%s13815_s4 + $0x30] sm:$0xff] }
  0x5d   : > { %9563 = vmatprep.subr.bf16.mxu0 %v13859_v0  ;;  %v11925_v30 = vld [vmem:[%s13815_s4 + $0x20] sm:$0xff]  ;;  %v837_v33 = vand.u32 4294901760, %v11930_v31  ;;  %v11952_v36 = vld [vmem:[%s13815_s4 + $0x38] sm:$0xff]  ;;  %v840_v37 = vand.u32 4294901760, %v11947_v35  ;;  %v11974_v41 = vld [vmem:[%s13815_s4 + $0x48] sm:$0xff]  ;;  %v12043_v57 = vsub.f32 %v11887_v19, %v822_v21  ;;  %s14068_s21 = sld [smem:[#allocation15_spill]] }
  0x5e   : > { %v11896_v23 = vpack.c.bf16 %v825_v22, %v822_v21  ;;  %v11920_v29 = vpack.c.bf16 %v831_v28, %v828_v27  ;;  %v834_v32 = vand.u32 4294901760, %v11925_v30  ;;  %v843_v38 = vand.u32 4294901760, %v11952_v36  ;;  %v11969_v40 = vld [vmem:[%s13815_s4 + $0x40] sm:$0xff]  ;;  %v11991_v45 = vld [vmem:[%s13815_s4 + $0x50] sm:$0xff]  ;;  %v11996_v46 = vld [vmem:[%s13815_s4 + $0x58] sm:$0xff]  ;;  %s14077_s17 = sld [smem:[#allocation20_spill]] }
  0x5f   : > { %v846_v42 = vand.u32 4294901760, %v11969_v40  ;;  %v849_v43 = vand.u32 4294901760, %v11974_v41  ;;  %v852_v47 = vand.u32 4294901760, %v11991_v45  ;;  %v855_v48 = vand.u32 4294901760, %v11996_v46  ;;  %v12013_v50 = vld [vmem:[%s13815_s4 + $0x60] sm:$0xff]  ;;  %v12018_v51 = vld [vmem:[%s13815_s4 + $0x68] sm:$0xff] }
  0x60   : > { %9564 = vmatpush3.bf16.msra.mxu0 %v11329_v3  ;;  %v11942_v34 = vpack.c.bf16 %v837_v33, %v834_v32  ;;  %v11964_v39 = vpack.c.bf16 %v843_v38, %v840_v37  ;;  %v858_v52 = vand.u32 4294901760, %v12013_v50  ;;  %v861_v53 = vand.u32 4294901760, %v12018_v51  ;;  %v12035_v55 = vld [vmem:[%s13815_s4 + $0x70] sm:$0xff]  ;;  %v12040_v56 = vld [vmem:[%s13815_s4 + $0x78] sm:$0xff]  ;;  %s8744_s15 = sshll.u32 %s11730_s22, 10  ;;  %s14078_s30 = sld [smem:[#allocation61_spill]] }
  0x61   : > { %9565 = vmatprep.subr.bf16.mxu0 %v13859_v0  ;;  %v11986_v44 = vpack.c.bf16 %v849_v43, %v846_v42  ;;  %v12008_v49 = vpack.c.bf16 %v855_v48, %v852_v47  ;;  %v12046_v58 = vsub.f32 %v11892_v20, %v825_v22  ;;  %v864_v59 = vand.u32 4294901760, %v12035_v55  ;;  %s11626_s20 = smov [#allocation10]  }
  0x62   : > { %v12030_v54 = vpack.c.bf16 %v861_v53, %v858_v52  ;;  %v867_v60 = vand.u32 4294901760, %v12040_v56  ;;  %v13856_v61 = vand.u32 4294901760, %v12043_v57  ;;  %v12071_v3 = vsub.f32 %v11903_v25, %v828_v27  ;;  %s11548_s27 = sshll.u32 %s11626_s20, 4  ;;  %s11549_s27 = int_to_ptr.vmem [resolvable:$false] %s11548_s27 }
  0x63   : > { %v13855_v62 = vand.u32 4294901760, %v12046_v58  ;;  %v12115_v21 = vsub.f32 %v11947_v35, %v840_v37  ;;  %v12120_v22 = vsub.f32 %v11952_v36, %v843_v38  ;;  %s515_s24 = sand.u32 1, %s14068_s21   ;;  %s11550_s18 = scalar_lea.vmem %s11549_s27, 2048 }
  0x64   : > { %9566 = vmatpush3.bf16.msra.mxu0 %v11330_v4  ;;  %v12059_v63 = vpack.c.bf16 %v867_v60, %v864_v59  ;;  %v916_v1 = vsub.f32 %v12043_v57, %v13856_v61  ;;  %v12076_v4 = vsub.f32 %v11908_v26, %v831_v28  ;;  %s8563_s29 = sshll.u32 %s515_s24, 6  ;;  %s13770_s22 = scalar_lea.sflag [#allocation7], %s515_s24 }
  0x65   : > { %9567 = vmatprep.subr.bf16.mxu0 %v13859_v0  ;;  %v923_v2 = vsub.f32 %v12046_v58, %v13855_v62  ;;  %v13850_v27 = vand.u32 4294901760, %v12115_v21  ;;  %v13849_v28 = vand.u32 4294901760, %v12120_v22  ;;  %s13745_s16 = scalar_lea.vmem [#allocation10], %s8563_s29  ;;  %p14079_p1 = scmp.ne.s32.totalorder %s14077_s17, 0 }
  0x66   : > { %s8471_s25 = sshll.u32 %s13745_s16, 4  ;;  %s13764_s23 = scalar_lea.hbm %s14078_s30, %s8744_s15  ;;  %s13757_s25 = int_to_ptr.vmem [resolvable:$true] %s8471_s25 }
  0x67   : > { %v965_v35 = vsub.f32 %v12120_v22, %v13849_v28  ;;  %s11544_s26 = scalar_lea.vmem %s13757_s25, 1024  ;;  %p11551_p4 = scmp.lt.s32.totalorder %s13757_s25, %s11549_s27 }
  0x68   : > { %9568 = vmatpush3.bf16.msra.mxu0 %v11331_v5  ;;  %v917_v5 = vand.u32 4294901760, %v916_v1  ;;  %p11545_p10 = scmp.ne.s32.totalorder %s13757_s25, %s11544_s26  ;;  %p11552_p7 = scmp.lt.s32.totalorder %s11550_s18, %s11544_s26 }
  0x69   : > { %9569 = vmatprep.subr.bf16.mxu0 %v13859_v0  ;;  %v966_v1 = vand.u32 4294901760, %v965_v35 }
  0x6a   : > { %p11546_p2 = pnand %p11545_p10, %p14079_p1  ;;  %p11553_p8 = por %p11552_p7, %p11551_p4 }
  0x6c   : > { %9570 = vmatpush3.bf16.msra.mxu0 %v11332_v6  ;;  %v924_v6 = vand.u32 4294901760, %v923_v2  ;;  %p11547_p3 = pneg %p11546_p2 }
  0x6d   : > { %9571 = vmatprep.subr.bf16.mxu0 %v13859_v0 }
  0x6e   : > { %p11554_p11 = pnand %p11553_p8, %p11547_p3 }
  0x70   : > { %9572 = vmatpush3.bf16.msra.mxu0 %v11333_v7  ;;  %v13854_v7 = vand.u32 4294901760, %v12071_v3 }
  0x71   : > { %9573 = vmatprep.subr.bf16.mxu0 %v13859_v0 }
  0x72   : > { %v930_v10 = vsub.f32 %v12071_v3, %v13854_v7 }
  0x74   : > { %9574 = vmatpush3.bf16.msra.mxu0 %v11334_v8  ;;  %v13853_v8 = vand.u32 4294901760, %v12076_v4 }
  0x75   : > { %10741 = vmatprep.subr.bf16.mxu0 %v13857_v24 }
  0x77   : > { %9576 = vmatmul.mubr.bf16.vlgmr.msra.gmra.mrb[0].mxu0 %v11335_v9  ;;  %v12084_v9 = vpack.c.bf16 %v924_v6, %v917_v5 }
  0x78   : > { %9831 = vmatprep.mubr.msk.f32.mxu0 %vm11621_vm0, %v13859_v0  ;;  %10743 = vmatpush3.bf16.msra.mxu0 %v11896_v23 }
  0x79   : > { %10744 = vmatprep.subr.bf16.mxu0 %v13857_v24 }
  0x7c   : > { %10746 = vmatpush3.bf16.msra.mxu0 %v11920_v29 }
  0x7d   : > { %10747 = vmatprep.subr.bf16.mxu0 %v13857_v24 }
  0x80   : > { %10749 = vmatpush3.bf16.msra.mxu0 %v11942_v34 }
  0x81   : > { %10750 = vmatprep.subr.bf16.mxu0 %v13857_v24 }
  0x84   : > { %10752 = vmatpush3.bf16.msra.mxu0 %v11964_v39 }
  0x85   : > { %10753 = vmatprep.subr.bf16.mxu0 %v13857_v24 }
  0x88   : > { %10755 = vmatpush3.bf16.msra.mxu0 %v11986_v44 }
  0x89   : > { %10756 = vmatprep.subr.bf16.mxu0 %v13857_v24 }
  0x8c   : > { %10758 = vmatpush3.bf16.msra.mxu0 %v12008_v49 }
  0x8d   : > { %10759 = vmatprep.subr.bf16.mxu0 %v13857_v24 }
  0x90   : > { %10761 = vmatpush3.bf16.msra.mxu0 %v12030_v54 }
  0x91   : > { %10762 = vmatprep.subr.bf16.mxu0 %v13857_v24 }
  0x94   : > { %10764 = vmatpush3.bf16.msra.mxu0 %v12059_v63 }
  0x95   : > { %10765 = vmatprep.subr.bf16.mxu0 %v13857_v24 }
 0x14a   : > { %v640_v11 = vpop.f32.mrb[0].mxu0 }
 0x14b   : > { %v9577_v12 = vpop.f32.mrb[1].mxu0 }
 0x14c   : > { %v643_v13 = vpop.f32.mrb[2].mxu0  ;;  %v12095_v12 = vsub.f32 %v11925_v30, %v834_v32  ;;  %v12132_v32 = vsub.f32 %v11969_v40, %v846_v42 }
 0x14d   : > { %v655_v14 = vpack.c.bf16 %v643_v13, %v640_v11  ;;  %v9578_v15 = vpop.f32.mrb[3].mxu0  ;;  %v937_v11 = vsub.f32 %v12076_v4, %v13853_v8  ;;  %v12100_v13 = vsub.f32 %v11930_v31, %v837_v33  ;;  %v958_v31 = vsub.f32 %v12115_v21, %v13850_v27 }
 0x14e   : > { %v12137_v33 = vsub.f32 %v11974_v41, %v849_v43  ;;  %v13848_v37 = vand.u32 4294901760, %v12132_v32  ;;  %v12153_v41 = vsub.f32 %v11991_v45, %v852_v47  ;;  %v12158_v43 = vsub.f32 %v11996_v46, %v855_v48 }
 0x14f   : > { %9579 = vmatprep.subr.bf16.mxu1 %v655_v14  ;;  %v938_v15 = vand.u32 4294901760, %v937_v11  ;;  %v959_v36 = vand.u32 4294901760, %v958_v31  ;;  %v12175_v46 = vsub.f32 %v12013_v50, %v858_v52  ;;  %v12180_v48 = vsub.f32 %v12018_v51, %v861_v53 }
 0x150   : > { %9580 = vmatpush3.bf16.msra.mxu1 %v655_v14  ;;  %v931_v14 = vand.u32 4294901760, %v930_v10  ;;  %v13847_v38 = vand.u32 4294901760, %v12137_v33  ;;  %v972_v40 = vsub.f32 %v12132_v32, %v13848_v37  ;;  %v13846_v10 = vand.u32 4294901760, %v12153_v41 }
 0x151   : > { %10597 = vmatprep.subr.bf16.mxu1 %v13857_v24  ;;  %v12160_v2 = vpack.c.bf16 %v966_v1, %v959_v36  ;;  %v13845_v11 = vand.u32 4294901760, %v12158_v43  ;;  %v12192_v50 = vsub.f32 %v12035_v55, %v864_v59  ;;  %v12197_v51 = vsub.f32 %v12040_v56, %v867_v60 }
 0x152   : > { %v979_v42 = vsub.f32 %v12137_v33, %v13847_v38  ;;  %v973_v5 = vand.u32 4294901760, %v972_v40  ;;  %v986_v45 = vsub.f32 %v12153_v41, %v13846_v10 }
 0x153   : > { %9582 = vmatmul.mubr.msk.bf16.vlgmr.msra.gmra.mrb[0].mxu1 %vm683_vm1, %v11337_v16  ;;  %v13852_v16 = vand.u32 4294901760, %v12095_v12  ;;  %v993_v47 = vsub.f32 %v12158_v43, %v13845_v11  ;;  %v13842_v35 = vand.u32 4294901760, %v12192_v50  ;;  %v13841_v36 = vand.u32 4294901760, %v12197_v51 }
 0x154   : > { %9585 = vmatprep.mubr.msk.bf16.mxu1 %vm683_vm1, %v11338_v17  ;;  %10599 = vmatpush3.bf16.msra.mxu1 %v11896_v23  ;;  %v13851_v17 = vand.u32 4294901760, %v12100_v13  ;;  %v980_v6 = vand.u32 4294901760, %v979_v42 }
 0x155   : > { %10600 = vmatprep.subr.bf16.mxu1 %v13857_v24  ;;  %v944_v19 = vsub.f32 %v12095_v12, %v13852_v16  ;;  %v1014_v55 = vsub.f32 %v12192_v50, %v13842_v35  ;;  %v1021_v59 = vsub.f32 %v12197_v51, %v13841_v36 }
 0x156   : > { %v951_v20 = vsub.f32 %v12100_v13, %v13851_v17 }
 0x157   : > { %v945_v25 = vand.u32 4294901760, %v944_v19  ;;  %v994_v19 = vand.u32 4294901760, %v993_v47  ;;  %v1015_v60 = vand.u32 4294901760, %v1014_v55  ;;  %v1022_v40 = vand.u32 4294901760, %v1021_v59 }
 0x158   : > { %10602 = vmatpush3.bf16.msra.mxu1 %v11920_v29  ;;  %v952_v26 = vand.u32 4294901760, %v951_v20  ;;  %v13844_v20 = vand.u32 4294901760, %v12175_v46  ;;  %v12228_v47 = vpack.c.bf16 %v12120_v22, %v12115_v21 }
 0x159   : > { %10603 = vmatprep.subr.bf16.mxu1 %v13857_v24  ;;  %v12212_v42 = vpack.c.bf16 %v1022_v40, %v1015_v60 }
 0x15a   : > { %v12124_v30 = vpack.c.bf16 %v952_v26, %v945_v25  ;;  %v13843_v25 = vand.u32 4294901760, %v12180_v48  ;;  %v1000_v31 = vsub.f32 %v12175_v46, %v13844_v20 }
 0x15b   : > { %9586 = vmatmul.mubr.msk.bf16.gmra.mrb[4].mxu1 %vm683_vm1, %v11339_v18  ;;  %v12104_v18 = vpack.c.bf16 %v938_v15, %v931_v14  ;;  %v12164_v14 = vpack.c.bf16 %v980_v6, %v973_v5  ;;  %v987_v15 = vand.u32 4294901760, %v986_v45  ;;  %v12216_v5 = vpack.c.bf16 %v12046_v58, %v12043_v57 }
 0x15c   : > { %9621 = vmatprep.mubr.msk.f32.mxu1 %vm11621_vm0, %v13859_v0  ;;  %10605 = vmatpush3.bf16.msra.mxu1 %v11942_v34  ;;  %v1007_v52 = vsub.f32 %v12180_v48, %v13843_v25  ;;  %v1001_v53 = vand.u32 4294901760, %v1000_v31  ;;  %v12220_v6 = vpack.c.bf16 %v12076_v4, %v12071_v3  ;;  %v12224_v45 = vpack.c.bf16 %v12100_v13, %v12095_v12 }
 0x15d   : > { %10606 = vmatprep.subr.bf16.mxu1 %v13857_v24  ;;  %v12184_v26 = vpack.c.bf16 %v994_v19, %v987_v15  ;;  %v12232_v15 = vpack.c.bf16 %v12137_v33, %v12132_v32  ;;  %v12236_v19 = vpack.c.bf16 %v12158_v43, %v12153_v41  ;;  %v12240_v31 = vpack.c.bf16 %v12180_v48, %v12175_v46 }
 0x15e   : > { %v1008_v1 = vand.u32 4294901760, %v1007_v52  ;;  %v12244_v52 = vpack.c.bf16 %v12197_v51, %v12192_v50 }
 0x160   : > { %10608 = vmatpush3.bf16.msra.mxu1 %v11964_v39  ;;  %v12210_v56 = vpack.c.bf16 %v1008_v1, %v1001_v53  ;;  %v8575_v53 = vld [vmem:[%s13814_s3] ss:$0 sm:$0xff] }
 0x161   : > { %10609 = vmatprep.subr.bf16.mxu1 %v13857_v24 }
 0x164   : > { %10611 = vmatpush3.bf16.msra.mxu1 %v11986_v44 }
 0x165   : > { %10612 = vmatprep.subr.bf16.mxu1 %v13857_v24 }
 0x168   : > { %10614 = vmatpush3.bf16.msra.mxu1 %v12008_v49 }
 0x169   : > { %10615 = vmatprep.subr.bf16.mxu1 %v13857_v24 }
 0x16c   : > { %10617 = vmatpush3.bf16.msra.mxu1 %v12030_v54 }
 0x16d   : > { %10618 = vmatprep.subr.bf16.mxu1 %v13857_v24 }
 0x170   : > { %10620 = vmatpush3.bf16.msra.mxu1 %v12059_v63 }
 0x171   : > { %10621 = vmatprep.subr.bf16.mxu1 %v13857_v24 }
 0x226   : > { %v9583_v1 = vpop.f32.mrb[0].mxu1 }
 0x227   : > { %v730_v55 = vpop.f32.mrb[1].mxu1  ;;  %v12251_v36 = vadd.f32 %v9583_v1, %v8575_v53 }
 0x228   : > { %v12249_v59 = vadd.f32 %v8575_v53, %v730_v55  ;;  %v9584_v60 = vpop.f32.mrb[2].mxu1 }
 0x229   : > { %v733_v40 = vpop.f32.mrb[3].mxu1  ;;  %13955 = vst [vmem:[#allocation23_spill] sm:$0xff] %v12251_v36  ;;  %v12257_v20 = vadd.f32 %v9584_v60, %v8575_v53  ;;  %v786_v55 = vmul.f32 %v12251_v36, %v12251_v36 }
 0x22a   : > { %13954 = vst [vmem:[#allocation22_spill] sm:$0xff] %v12249_v59  ;;  %v12253_v35 = vadd.f32 %v8575_v53, %v733_v40  ;;  %v784_v25 = vmul.f32 %v12249_v59, %v12249_v59 }
 0x22b   : > { %13957 = vst [vmem:[#allocation25_spill] sm:$0xff] %v12257_v20  ;;  %v787_v28 = vmul.f32 %v12257_v20, %v12257_v20 }
 0x22c   : > { %13956 = vst [vmem:[#allocation24_spill] sm:$0xff] %v12253_v35  ;;  %v771_v11 = vadd.f32 %v12253_v35, %v12249_v59  ;;  %v785_v10 = vmul.f32 %v12253_v35, %v12253_v35 }
 0x22e   : > { %v772_v38 = vadd.f32 %v771_v11, %v12251_v36  ;;  %v792_v1 = vadd.f32 %v785_v10, %v784_v25  ;;  %v9587_v37 = vpop.f32.mrb[4].mxu1 }
 0x22f   : > { %v746_v40 = vpop.f32.mrb[5].mxu1  ;;  %v12271_v8 = vadd.f32 %v9587_v37, %v8575_v53 }
 0x230   : > { %v793_v27 = vadd.f32 %v792_v1, %v786_v55  ;;  %v12268_v60 = vadd.f32 %v8575_v53, %v746_v40  ;;  %v773_v17 = vadd.f32 %v772_v38, %v12257_v20  ;;  %v9588_v16 = vpop.f32.mrb[6].mxu1 }
 0x231   : > { %13959 = vst [vmem:[#allocation27_spill] sm:$0xff] %v12271_v8  ;;  %v749_v7 = vpop.f32.mrb[7].mxu1  ;;  %v12278_v24 = vadd.f32 %v9588_v16, %v8575_v53  ;;  %v790_v37 = vmul.f32 %v12271_v8, %v12271_v8 }
 0x232   : > { %13958 = vst [vmem:[#allocation26_spill] sm:$0xff] %v12268_v60  ;;  %v774_v62 = vadd.f32 %v773_v17, %v12268_v60  ;;  %v788_v11 = vmul.f32 %v12268_v60, %v12268_v60  ;;  %v794_v10 = vadd.f32 %v793_v27, %v787_v28  ;;  %v12276_v25 = vadd.f32 %v8575_v53, %v749_v7 }
 0x233   : > { %13961 = vst [vmem:[#allocation29_spill] sm:$0xff] %v12278_v24  ;;  %v791_v40 = vmul.f32 %v12278_v24, %v12278_v24 }
 0x234   : > { %13960 = vst [vmem:[#allocation28_spill] sm:$0xff] %v12276_v25  ;;  %v795_v61 = vadd.f32 %v794_v10, %v788_v11  ;;  %v775_v55 = vadd.f32 %v774_v62, %v12276_v25  ;;  %v789_v38 = vmul.f32 %v12276_v25, %v12276_v25 }
 0x236   : > { %v776_v1 = vadd.f32 %v775_v55, %v12271_v8  ;;  %v796_v17 = vadd.f32 %v795_v61, %v789_v38 }
 0x238   : > { %v777_v7 = vadd.f32 %v776_v1, %v12278_v24  ;;  %v797_v27 = vadd.f32 %v796_v17, %v790_v37 }
 0x23a   : > { %v778_v28 = vrot.slane %v777_v7, 4  ;;  %v798_v16 = vadd.f32 %v797_v27, %v791_v40 }
 0x23c   : > { %v779_v53 = vadd.f32 %v778_v28, %v777_v7  ;;  %v799_v11 = vrot.slane %v798_v16, 4 }
 0x23e   : > { %v780_v62 = vrot.slane %v779_v53, 2  ;;  %v800_v10 = vadd.f32 %v799_v11, %v798_v16  ;;  %v11624_v11 = vmov 1  }
 0x240   : > { %v781_v0 = vadd.f32 %v780_v62, %v779_v53  ;;  %v801_v25 = vrot.slane %v800_v10, 2  ;;  %v2110_v62 = vlaneseq }
 0x242   : > { %v782_v60 = vrot.slane %v781_v0, 1  ;;  %v802_v20 = vadd.f32 %v801_v25, %v800_v10  ;;  %v13963_v25 = vmov 0.0|0.0   ;;  %v12547_v10 = vshrl.u32 %v2110_v62, 7 }
 0x244   : > { %v783_v36 = vadd.f32 %v782_v60, %v781_v0  ;;  %v803_v35 = vrot.slane %v802_v20, 1 }
 0x246   : > { %v12289_v55 = vand.u32 4294901760, %v783_v36  ;;  %v804_v61 = vadd.f32 %v803_v35, %v802_v20 }
 0x248   : > { %v12292_v38 = vsub.f32 %v783_v36, %v12289_v55  ;;  %v12294_v1 = vand.u32 4294901760, %v804_v61  ;;  %v13962_v36 = vmov 0.0  }
 0x24a   : > { %v904_v37 = vand.u32 4294901760, %v12292_v38  ;;  %v12298_v17 = vsub.f32 %v804_v61, %v12294_v1 }
 0x24c   : > { %v905_v40 = vsub.f32 %v12292_v38, %v904_v37  ;;  %v1545_v0 = vand.u32 4294901760, %v12298_v17 }
 0x24e   : > { %v906_v60 = vand.u32 4294901760, %v905_v40  ;;  %v1546_v20 = vsub.f32 %v12298_v17, %v1545_v0 }
 0x250   : > { %9622 = vmatmul.mubr.f32.vlgmr.msra.gmra.mrb[8].mxu1 %v906_v60  ;;  %v1547_v35 = vand.u32 4294901760, %v1546_v20 }
 0x251   : > { %10623 = vmatpush3.bf16.msra.mxu1 %v12084_v9  ;;  %9656 = vmatprep.mubr.msk.f32.mxu1 %vm11621_vm0, %v13962_v36 }
 0x252   : > { %9832 = vmatmul.mubr.f32.vlgmr.msra.gmra.mrb[4].mxu0 %v1547_v35  ;;  %10624 = vmatprep.subr.bf16.mxu1 %v13963_v25 }
 0x253   : > { %10767 = vmatpush3.bf16.msra.mxu0 %v12084_v9  ;;  %9866 = vmatprep.mubr.msk.f32.mxu0 %vm11621_vm0, %v13962_v36  ;;  %v13964_v9 = vand.u32 4294901760, %v12043_v57  ;;  %v13968_v57 = vand.u32 4294901760, %v12095_v12  ;;  %v13972_v12 = vand.u32 4294901760, %v12132_v32  ;;  %v13976_v32 = vand.u32 4294901760, %v12175_v46  ;;  %v530_v46 = vld [vmem:[%s13817_s6 + $0x10] sm:$0xf] }
 0x254   : > { %10768 = vmatprep.subr.bf16.mxu0 %v13963_v25 }
 0x255   : > { %10626 = vmatpush3.bf16.msra.mxu1 %v12104_v18 }
 0x256   : > { %10627 = vmatprep.subr.bf16.mxu1 %v13963_v25 }
 0x257   : > { %10770 = vmatpush3.bf16.msra.mxu0 %v12104_v18  ;;  %v13965_v18 = vand.u32 4294901760, %v12046_v58  ;;  %v13969_v58 = vand.u32 4294901760, %v12100_v13  ;;  %v13973_v13 = vand.u32 4294901760, %v12137_v33  ;;  %v13977_v33 = vand.u32 4294901760, %v12180_v48 }
 0x258   : > { %10771 = vmatprep.subr.bf16.mxu0 %v13963_v25 }
 0x259   : > { %10629 = vmatpush3.bf16.msra.mxu1 %v12124_v30 }
 0x25a   : > { %10630 = vmatprep.subr.bf16.mxu1 %v13963_v25 }
 0x25b   : > { %10773 = vmatpush3.bf16.msra.mxu0 %v12124_v30  ;;  %v10694_v30 = vpack.c.bf16 %v13965_v18, %v13964_v9 }
 0x25c   : > { %10774 = vmatprep.subr.bf16.mxu0 %v13963_v25 }
 0x25d   : > { %10632 = vmatpush3.bf16.msra.mxu1 %v12160_v2 }
 0x25e   : > { %10633 = vmatprep.subr.bf16.mxu1 %v13963_v25 }
 0x25f   : > { %10776 = vmatpush3.bf16.msra.mxu0 %v12160_v2  ;;  %v13966_v2 = vand.u32 4294901760, %v12071_v3  ;;  %v10700_v3 = vpack.c.bf16 %v13969_v58, %v13968_v57 }
 0x260   : > { %10777 = vmatprep.subr.bf16.mxu0 %v13963_v25 }
 0x261   : > { %10635 = vmatpush3.bf16.msra.mxu1 %v12164_v14 }
 0x262   : > { %10636 = vmatprep.subr.bf16.mxu1 %v13963_v25 }
 0x263   : > { %10779 = vmatpush3.bf16.msra.mxu0 %v12164_v14  ;;  %v13967_v14 = vand.u32 4294901760, %v12076_v4  ;;  %v13970_v4 = vand.u32 4294901760, %v12115_v21  ;;  %v13974_v21 = vand.u32 4294901760, %v12153_v41  ;;  %v13978_v41 = vand.u32 4294901760, %v12192_v50 }
 0x264   : > { %10780 = vmatprep.subr.bf16.mxu0 %v13963_v25 }
 0x265   : > { %10638 = vmatpush3.bf16.msra.mxu1 %v12184_v26 }
 0x266   : > { %10639 = vmatprep.subr.bf16.mxu1 %v13963_v25 }
 0x267   : > { %10782 = vmatpush3.bf16.msra.mxu0 %v12184_v26  ;;  %v10697_v26 = vpack.c.bf16 %v13967_v14, %v13966_v2 }
 0x268   : > { %10783 = vmatprep.subr.bf16.mxu0 %v13963_v25 }
 0x269   : > { %10641 = vmatpush3.bf16.msra.mxu1 %v12210_v56 }
 0x26a   : > { %10642 = vmatprep.subr.bf16.mxu1 %v13963_v25 }
 0x26b   : > { %10785 = vmatpush3.bf16.msra.mxu0 %v12210_v56  ;;  %v13971_v56 = vand.u32 4294901760, %v12120_v22  ;;  %v13975_v22 = vand.u32 4294901760, %v12158_v43  ;;  %v13979_v43 = vand.u32 4294901760, %v12197_v51 }
 0x26c   : > { %10786 = vmatprep.subr.bf16.mxu0 %v13963_v25 }
 0x26d   : > { %10644 = vmatpush3.bf16.msra.mxu1 %v12212_v42 }
 0x26e   : > { %10645 = vmatprep.subr.bf16.mxu1 %v13963_v25 }
 0x26f   : > { %10788 = vmatpush3.bf16.msra.mxu0 %v12212_v42  ;;  %v10703_v42 = vpack.c.bf16 %v13971_v56, %v13970_v4 }
 0x270   : > { %9657 = vmatmul.mubr.f32.vlgmr.msra.gmra.mrb[8].mxu1 %v12289_v55  ;;  %10789 = vmatprep.subr.bf16.mxu0 %v13963_v25 }
 0x271   : > { %10647 = vmatpush3.bf16.msra.mxu1 %v12216_v5  ;;  %9691 = vmatprep.mubr.msk.f32.mxu1 %vm11621_vm0, %v13962_v36 }
 0x272   : > { %9867 = vmatmul.mubr.f32.vlgmr.msra.gmra.mrb[4].mxu0 %v12294_v1  ;;  %10648 = vmatprep.subr.bf16.mxu1 %v13963_v25 }
 0x273   : > { %10791 = vmatpush3.bf16.msra.mxu0 %v12216_v5  ;;  %9901 = vmatprep.mubr.msk.f32.mxu0 %vm11621_vm0, %v13962_v36  ;;  %v10706_v5 = vpack.c.bf16 %v13973_v13, %v13972_v12  ;;  %v11341_v12 = vld [vmem:[#allocation5] sm:$0xff]  }
 0x274   : > { %10792 = vmatprep.subr.bf16.mxu0 %v13963_v25  ;;  %v11342_v13 = vld [vmem:[#allocation5 + $0xc0] sm:$0xff]  }
 0x275   : > { %10650 = vmatpush3.bf16.msra.mxu1 %v12220_v6 }
 0x276   : > { %10651 = vmatprep.subr.bf16.mxu1 %v13963_v25 }
 0x277   : > { %10794 = vmatpush3.bf16.msra.mxu0 %v12220_v6  ;;  %v10709_v6 = vpack.c.bf16 %v13975_v22, %v13974_v21  ;;  %v11344_v21 = vld [vmem:[#allocation5 + $0x48] sm:$0xff]  }
 0x278   : > { %10795 = vmatprep.subr.bf16.mxu0 %v13963_v25  ;;  %v11345_v22 = vld [vmem:[#allocation5 + $0x8] sm:$0xff]  }
 0x279   : > { %10653 = vmatpush3.bf16.msra.mxu1 %v12224_v45 }
 0x27a   : > { %10654 = vmatprep.subr.bf16.mxu1 %v13963_v25 }
 0x27b   : > { %10797 = vmatpush3.bf16.msra.mxu0 %v12224_v45  ;;  %v10712_v45 = vpack.c.bf16 %v13977_v33, %v13976_v32  ;;  %v11347_v32 = vld [vmem:[#allocation5 + $0x88] sm:$0xff]   ;;  %v11348_v33 = vld [vmem:[#allocation5 + $0x50] sm:$0xff]  }
 0x27c   : > { %10798 = vmatprep.subr.bf16.mxu0 %v13963_v25 }
 0x27d   : > { %10656 = vmatpush3.bf16.msra.mxu1 %v12228_v47 }
 0x27e   : > { %10657 = vmatprep.subr.bf16.mxu1 %v13963_v25 }
 0x27f   : > { %10800 = vmatpush3.bf16.msra.mxu0 %v12228_v47  ;;  %v10715_v47 = vpack.c.bf16 %v13979_v43, %v13978_v41  ;;  %v11350_v41 = vld [vmem:[#allocation5 + $0xd0] sm:$0xff]  }
 0x280   : > { %10801 = vmatprep.subr.bf16.mxu0 %v13963_v25  ;;  %v11351_v43 = vld [vmem:[#allocation5 + $0x90] sm:$0xff]  }
 0x281   : > { %10659 = vmatpush3.bf16.msra.mxu1 %v12232_v15 }
 0x282   : > { %10660 = vmatprep.subr.bf16.mxu1 %v13963_v25 }
 0x283   : > { %10803 = vmatpush3.bf16.msra.mxu0 %v12232_v15 }
 0x284   : > { %10804 = vmatprep.subr.bf16.mxu0 %v13963_v25 }
 0x285   : > { %10662 = vmatpush3.bf16.msra.mxu1 %v12236_v19 }
 0x286   : > { %10663 = vmatprep.subr.bf16.mxu1 %v13963_v25 }
 0x287   : > { %10806 = vmatpush3.bf16.msra.mxu0 %v12236_v19  ;;  %v533_v19 = vld [vmem:[%s13817_s6 + $0x1c] sm:$0xf] }
 0x288   : > { %10807 = vmatprep.subr.bf16.mxu0 %v13963_v25 }
 0x289   : > { %10665 = vmatpush3.bf16.msra.mxu1 %v12240_v31 }
 0x28a   : > { %10666 = vmatprep.subr.bf16.mxu1 %v13963_v25 }
 0x28b   : > { %10809 = vmatpush3.bf16.msra.mxu0 %v12240_v31  ;;  %v532_v31 = vld [vmem:[%s13817_s6 + $0x18] sm:$0xf] }
 0x28c   : > { %10810 = vmatprep.subr.bf16.mxu0 %v13963_v25 }
 0x28d   : > { %10668 = vmatpush3.bf16.msra.mxu1 %v12244_v52 }
 0x28e   : > { %10669 = vmatprep.subr.bf16.mxu1 %v13963_v25 }
 0x28f   : > { %10812 = vmatpush3.bf16.msra.mxu0 %v12244_v52 }
 0x290   : > { %9692 = vmatmul.mubr.f32.vlgmr.msra.gmra.mrb[8].mxu1 %v12292_v38  ;;  %10813 = vmatprep.subr.bf16.mxu0 %v13963_v25 }
 0x291   : > { %10671 = vmatpush3.bf16.msra.mxu1 %v11896_v23  ;;  %9726 = vmatprep.mubr.msk.f32.mxu1 %vm11621_vm0, %v13962_v36 }
 0x292   : > { %9902 = vmatmul.mubr.f32.vlgmr.msra.gmra.mrb[4].mxu0 %v12298_v17  ;;  %10672 = vmatprep.subr.bf16.mxu1 %v13963_v25 }
 0x293   : > { %10815 = vmatpush3.bf16.msra.mxu0 %v11896_v23  ;;  %9936 = vmatprep.mubr.msk.f32.mxu0 %vm11621_vm0, %v13962_v36 }
 0x294   : > { %10816 = vmatprep.subr.bf16.mxu0 %v13963_v25 }
 0x295   : > { %10674 = vmatpush3.bf16.msra.mxu1 %v11920_v29 }
 0x296   : > { %10675 = vmatprep.subr.bf16.mxu1 %v13963_v25 }
 0x297   : > { %10818 = vmatpush3.bf16.msra.mxu0 %v11920_v29 }
 0x298   : > { %10819 = vmatprep.subr.bf16.mxu0 %v13963_v25 }
 0x299   : > { %10677 = vmatpush3.bf16.msra.mxu1 %v11942_v34 }
 0x29a   : > { %10678 = vmatprep.subr.bf16.mxu1 %v13963_v25 }
 0x29b   : > { %10821 = vmatpush3.bf16.msra.mxu0 %v11942_v34 }
 0x29c   : > { %10822 = vmatprep.subr.bf16.mxu0 %v13963_v25 }
 0x29d   : > { %10680 = vmatpush3.bf16.msra.mxu1 %v11964_v39 }
 0x29e   : > { %10681 = vmatprep.subr.bf16.mxu1 %v13963_v25 }
 0x29f   : > { %10824 = vmatpush3.bf16.msra.mxu0 %v11964_v39 }
 0x2a0   : > { %10825 = vmatprep.subr.bf16.mxu0 %v13963_v25 }
 0x2a1   : > { %10683 = vmatpush3.bf16.msra.mxu1 %v11986_v44 }
 0x2a2   : > { %10684 = vmatprep.subr.bf16.mxu1 %v13963_v25 }
 0x2a3   : > { %10827 = vmatpush3.bf16.msra.mxu0 %v11986_v44 }
 0x2a4   : > { %10828 = vmatprep.subr.bf16.mxu0 %v13963_v25 }
 0x2a5   : > { %10686 = vmatpush3.bf16.msra.mxu1 %v12008_v49 }
 0x2a6   : > { %10687 = vmatprep.subr.bf16.mxu1 %v13963_v25 }
 0x2a7   : > { %10830 = vmatpush3.bf16.msra.mxu0 %v12008_v49 }
 0x2a8   : > { %10831 = vmatprep.subr.bf16.mxu0 %v13963_v25 }
 0x2a9   : > { %10689 = vmatpush3.bf16.msra.mxu1 %v12030_v54 }
 0x2aa   : > { %10690 = vmatprep.subr.bf16.mxu1 %v13963_v25 }
 0x2ab   : > { %10833 = vmatpush3.bf16.msra.mxu0 %v12030_v54 }
 0x2ac   : > { %10834 = vmatprep.subr.bf16.mxu0 %v13963_v25 }
 0x2ad   : > { %10692 = vmatpush3.bf16.msra.mxu1 %v12059_v63 }
 0x2ae   : > { %10693 = vmatprep.subr.bf16.mxu1 %v13963_v25 }
 0x2af   : > { %10836 = vmatpush3.bf16.msra.mxu0 %v12059_v63 }
 0x2b0   : > { %9727 = vmatmul.mubr.f32.vlgmr.msra.gmra.mrb[8].mxu1 %v904_v37  ;;  %10837 = vmatprep.subr.bf16.mxu0 %v13963_v25 }
 0x2b1   : > { %10695 = vmatpush3.bf16.msra.mxu1 %v10694_v30  ;;  %9761 = vmatprep.mubr.msk.f32.mxu1 %vm11621_vm0, %v13962_v36 }
 0x2b2   : > { %9937 = vmatmul.mubr.f32.vlgmr.msra.gmra.mrb[4].mxu0 %v1545_v0  ;;  %10696 = vmatprep.subr.bf16.mxu1 %v13963_v25 }
 0x2b3   : > { %10839 = vmatpush3.bf16.msra.mxu0 %v10694_v30  ;;  %9971 = vmatprep.mubr.msk.f32.mxu0 %vm11621_vm0, %v13962_v36 }
 0x2b4   : > { %10840 = vmatprep.subr.bf16.mxu0 %v13963_v25 }
 0x2b5   : > { %10698 = vmatpush3.bf16.msra.mxu1 %v10697_v26 }
 0x2b6   : > { %10699 = vmatprep.subr.bf16.mxu1 %v13963_v25 }
 0x2b7   : > { %10842 = vmatpush3.bf16.msra.mxu0 %v10697_v26 }
 0x2b8   : > { %10843 = vmatprep.subr.bf16.mxu0 %v13963_v25 }
 0x2b9   : > { %10701 = vmatpush3.bf16.msra.mxu1 %v10700_v3 }
 0x2ba   : > { %10702 = vmatprep.subr.bf16.mxu1 %v13963_v25 }
 0x2bb   : > { %10845 = vmatpush3.bf16.msra.mxu0 %v10700_v3 }
 0x2bc   : > { %10846 = vmatprep.subr.bf16.mxu0 %v13963_v25 }
 0x2bd   : > { %10704 = vmatpush3.bf16.msra.mxu1 %v10703_v42 }
 0x2be   : > { %10705 = vmatprep.subr.bf16.mxu1 %v13963_v25 }
 0x2bf   : > { %10848 = vmatpush3.bf16.msra.mxu0 %v10703_v42  ;;  %v11340_v42 = vld [vmem:[#allocation5 + $0x40] sm:$0xff]  }
 0x2c0   : > { %10849 = vmatprep.subr.bf16.mxu0 %v13963_v25 }
 0x2c1   : > { %10707 = vmatpush3.bf16.msra.mxu1 %v10706_v5 }
 0x2c2   : > { %10708 = vmatprep.subr.bf16.mxu1 %v13963_v25 }
 0x2c3   : > { %10851 = vmatpush3.bf16.msra.mxu0 %v10706_v5  ;;  %v11343_v5 = vld [vmem:[#allocation5 + $0x80] sm:$0xff]  }
 0x2c4   : > { %10852 = vmatprep.subr.bf16.mxu0 %v13963_v25 }
 0x2c5   : > { %10710 = vmatpush3.bf16.msra.mxu1 %v10709_v6 }
 0x2c6   : > { %10711 = vmatprep.subr.bf16.mxu1 %v13963_v25 }
 0x2c7   : > { %10854 = vmatpush3.bf16.msra.mxu0 %v10709_v6  ;;  %v11346_v6 = vld [vmem:[#allocation5 + $0xc8] sm:$0xff]  }
 0x2c8   : > { %10855 = vmatprep.subr.bf16.mxu0 %v13963_v25 }
 0x2c9   : > { %10713 = vmatpush3.bf16.msra.mxu1 %v10712_v45 }
 0x2ca   : > { %10714 = vmatprep.subr.bf16.mxu1 %v13963_v25 }
 0x2cb   : > { %10857 = vmatpush3.bf16.msra.mxu0 %v10712_v45  ;;  %v11349_v45 = vld [vmem:[#allocation5 + $0x10] sm:$0xff]  }
 0x2cc   : > { %10858 = vmatprep.subr.bf16.mxu0 %v13963_v25 }
 0x2cd   : > { %10716 = vmatpush3.bf16.msra.mxu1 %v10715_v47 }
 0x2ce   : > { %10717 = vmatprep.subr.bf16.mxu1 %v13963_v25 }
 0x2cf   : > { %10860 = vmatpush3.bf16.msra.mxu0 %v10715_v47  ;;  %v11352_v47 = vld [vmem:[#allocation5 + $0x58] sm:$0xff]  }
 0x2d0   : > { %9762 = vmatmul.mubr.f32.vlgmr.msra.gmra.mrb[8].mxu1 %v12289_v55  ;;  %10861 = vmatprep.subr.bf16.mxu0 %v13963_v25 }
 0x2d1   : > { %10719 = vmatpush3.bf16.msra.mxu1 %v11896_v23  ;;  %9796 = vmatprep.mubr.msk.f32.mxu1 %vm11621_vm0, %v13962_v36 }
 0x2d2   : > { %9972 = vmatmul.mubr.f32.vlgmr.msra.gmra.mrb[4].mxu0 %v12294_v1  ;;  %10720 = vmatprep.subr.bf16.mxu1 %v13963_v25 }
 0x2d3   : > { %10863 = vmatpush3.bf16.msra.mxu0 %v11896_v23  ;;  %10006 = vmatprep.mubr.msk.f32.mxu0 %vm11621_vm0, %v13962_v36  ;;  %v2120_v23 = vld [vmem:[%s13816_s5] sm:$0xff] }
 0x2d4   : > { %10864 = vmatprep.subr.bf16.mxu0 %v13963_v25 }
 0x2d5   : > { %10722 = vmatpush3.bf16.msra.mxu1 %v11920_v29 }
 0x2d6   : > { %10723 = vmatprep.subr.bf16.mxu1 %v13963_v25 }
 0x2d7   : > { %10866 = vmatpush3.bf16.msra.mxu0 %v11920_v29  ;;  %v12519_v29 = vand.u32 4294901760, %v2120_v23 }
 0x2d8   : > { %10867 = vmatprep.subr.bf16.mxu0 %v13963_v25 }
 0x2d9   : > { %10725 = vmatpush3.bf16.msra.mxu1 %v11942_v34  ;;  %v2203_v38 = vsub.f32 %v2120_v23, %v12519_v29  ;;  %v11353_v23 = vld [vmem:[#allocation5 + $0x18] sm:$0xff]  }
 0x2da   : > { %10726 = vmatprep.subr.bf16.mxu1 %v13963_v25 }
 0x2db   : > { %10869 = vmatpush3.bf16.msra.mxu0 %v11942_v34  ;;  %v528_v34 = vld [vmem:[%s13817_s6 + $0x8] sm:$0xf]  ;;  %v2204_v0 = vand.u32 4294901760, %v2203_v38 }
 0x2dc   : > { %10870 = vmatprep.subr.bf16.mxu0 %v13963_v25 }
 0x2dd   : > { %10728 = vmatpush3.bf16.msra.mxu1 %v11964_v39  ;;  %v2205_v35 = vsub.f32 %v2203_v38, %v2204_v0 }
 0x2de   : > { %10729 = vmatprep.subr.bf16.mxu1 %v13963_v25 }
 0x2df   : > { %10872 = vmatpush3.bf16.msra.mxu0 %v11964_v39  ;;  %v526_v39 = vld [vmem:[%s13817_s6] sm:$0xf]  ;;  %v2206_v30 = vand.u32 4294901760, %v2205_v35 }
 0x2e0   : > { %10873 = vmatprep.subr.bf16.mxu0 %v13963_v25 }
 0x2e1   : > { %10731 = vmatpush3.bf16.msra.mxu1 %v11986_v44 }
 0x2e2   : > { %10732 = vmatprep.subr.bf16.mxu1 %v13963_v25 }
 0x2e3   : > { %10875 = vmatpush3.bf16.msra.mxu0 %v11986_v44  ;;  %v11623_v44 = vmov 0  }
 0x2e4   : > { %10876 = vmatprep.subr.bf16.mxu0 %v13963_v25  ;;  %11324 = vset.pattern.permute.xlu1 %v11623_v44  ;;  %524 = vst [vmem:[#allocation4] sm:$0xff] %v11623_v44  ;;  %525 = vst [vmem:[#allocation4 + $0x28] sm:$0xff] %v11623_v44 }
 0x2e5   : > { %10734 = vmatpush3.bf16.msra.mxu1 %v12008_v49  ;;  %11323 = vset.pattern.permute.xlu0 %v11623_v44  ;;  %v11357_v44 = vld [vmem:[#allocation5 + $0x20] sm:$0xff]  }
 0x2e6   : > { %10735 = vmatprep.subr.bf16.mxu1 %v13963_v25  ;;  %3099 = vperm.xlu1 %11324, %v528_v34  }
 0x2e7   : > { %10878 = vmatpush3.bf16.msra.mxu0 %v12008_v49  ;;  %3075 = vperm.xlu0 %11323, %v526_v39   ;;  %v529_v49 = vld [vmem:[%s13817_s6 + $0xc] sm:$0xf] }
 0x2e8   : > { %10879 = vmatprep.subr.bf16.mxu0 %v13963_v25 }
 0x2e9   : > { %10737 = vmatpush3.bf16.msra.mxu1 %v12030_v54 }
 0x2ea   : > { %10738 = vmatprep.subr.bf16.mxu1 %v13963_v25  ;;  %3111 = vperm.xlu1 %11324, %v529_v49  }
 0x2eb   : > { %10881 = vmatpush3.bf16.msra.mxu0 %v12030_v54  ;;  %v527_v54 = vld [vmem:[%s13817_s6 + $0x4] sm:$0xf] }
 0x2ec   : > { %10882 = vmatprep.subr.bf16.mxu0 %v13963_v25  ;;  %3087 = vperm.xlu0 %11323, %v527_v54  }
 0x2ed   : > { %10740 = vmatpush3.bf16.msra.mxu1 %v12059_v63 }
 0x2ee   : > { %10009 = vmatprep.subr.mxu1 %v13962_v36 }
 0x2ef   : > { %10884 = vmatpush3.bf16.msra.mxu0 %v12059_v63  ;;  %v531_v63 = vld [vmem:[%s13817_s6 + $0x14] sm:$0xf] }
 0x2f0   : > { %9797 = vmatmul.mubr.f32.vlgmr.msra.gmra.mrb[8].mxu1 %v12289_v55  ;;  %3135 = vperm.xlu1 %11324, %v531_v63   ;;  %v12550_v55 = vsub.s32 0, %v12547_v10 }
 0x2f1   : > { %10011 = vmatprep.mubr.msk.f32.mxu1 %vm11621_vm0, %v13962_v36  ;;  %10010 = vmatpush3.msra.mxu1 %v12519_v29 }
 0x2f2   : > { %10007 = vmatmul.mubr.f32.vlgmr.msra.gmra.mrb[4].mxu0 %v12294_v1  ;;  %10014 = vmatprep.subr.mxu1 %v13962_v36  ;;  %13980 = vst [vmem:[#allocation30_spill] sm:$0xff] %v12550_v55 }
 0x2f3   : > { %3123 = vperm.xlu0 %11323, %v530_v46   ;;  %8987 = vmatprep.subr.bf16.mxu0 %v11340_v42 }
 0x2f4   : > { %3159 = vperm.xlu1 %11324, %v533_v19   ;;  %8988 = vmatpush3.bf16.msra.mxu0 %v11341_v12 }
 0x2f5   : > { %8989 = vmatprep.subr.bf16.mxu0 %v11344_v21 }
 0x2f7   : > { %3147 = vperm.xlu0 %11323, %v532_v31  }
 0x2f8   : > { %11326 = vset.pattern.permute.xlu1 %v11624_v11  ;;  %8990 = vmatpush3.bf16.msra.mxu0 %v11345_v22 }
 0x2f9   : > { %3333 = vperm.xlu1 %11326, %v527_v54   ;;  %8991 = vmatprep.subr.bf16.mxu0 %v11348_v33  ;;  %v11359_v54 = vld [vmem:[#allocation5 + $0xa0] sm:$0xff]  }
 0x2fb   : > { %11325 = vset.pattern.permute.xlu0 %v11624_v11 }
 0x2fc   : > { %3322 = vperm.xlu0 %11325, %v526_v39   ;;  %8992 = vmatpush3.bf16.msra.mxu0 %v11349_v45  ;;  %v11356_v39 = vld [vmem:[#allocation5 + $0x60] sm:$0xff]  }
 0x2fd   : > { %3344 = vperm.xlu1 %11326, %v528_v34   ;;  %8993 = vmatprep.subr.bf16.mxu0 %v11352_v47  ;;  %v11355_v34 = vld [vmem:[#allocation5 + $0x98] sm:$0xff]  }
 0x300   : > { %3355 = vperm.xlu0 %11325, %v529_v49   ;;  %8994 = vmatpush3.bf16.msra.mxu0 %v11353_v23  ;;  %v11358_v49 = vld [vmem:[#allocation5 + $0xe0] sm:$0xff]  }
 0x301   : > { %3366 = vperm.xlu1 %11326, %v530_v46   ;;  %8995 = vmatprep.subr.bf16.mxu0 %v11356_v39  ;;  %v11361_v46 = vld [vmem:[#allocation5 + $0x28] sm:$0xff]  }
 0x304   : > { %3377 = vperm.xlu0 %11325, %v531_v63   ;;  %8996 = vmatpush3.bf16.msra.mxu0 %v11357_v44  ;;  %v11360_v63 = vld [vmem:[#allocation5 + $0x68] sm:$0xff]  }
 0x305   : > { %3388 = vperm.xlu1 %11326, %v532_v31   ;;  %8997 = vmatprep.subr.bf16.mxu0 %v11360_v63  ;;  %v11367_v31 = vld [vmem:[#allocation5 + $0xb0] sm:$0xff]  }
 0x308   : > { %3399 = vperm.xlu0 %11325, %v533_v19   ;;  %8998 = vmatpush3.bf16.msra.mxu0 %v11361_v46  ;;  %v11366_v19 = vld [vmem:[#allocation5 + $0xf0] sm:$0xff]  }
 0x365   : > { %v3100_v11 = vpop.permute.xlu1 %3099 }
 0x366   : > { %v3076_v62 = vpop.permute.xlu0 %3075 }
 0x3c3   : > { %v1458_v48 = vpop.f32.mrb[8].mxu1 }
 0x3c4   : > { %v2103_v50 = vmul.f32 0.0009765625, %v1458_v48  ;;  %v9798_v51 = vpop.f32.mrb[9].mxu1  ;;  %v11362_v48 = vld [vmem:[#allocation5 + $0xe8] sm:$0xff]  }
 0x3c5   : > { %v2099_v15 = vpop.f32.mrb[4].mxu0  ;;  %v11364_v51 = vld [vmem:[#allocation5 + $0x70] sm:$0xff]  }
 0x3c6   : > { %v2105_v52 = vmul.f32 %v2103_v50, %v2103_v50  ;;  %v2104_v7 = vmul.f32 0.0009765625, %v2099_v15  ;;  %v10008_v27 = vpop.f32.mrb[5].mxu0  ;;  %v2114_v61 = vsub.f32 0.0, %v2103_v50  ;;  %v11363_v50 = vld [vmem:[#allocation5 + $0xa8] sm:$0xff]   ;;  %v11365_v15 = vld [vmem:[#allocation5 + $0x30] sm:$0xff]   ;;  %8999 = vmatprep.subr.bf16.mxu0 %v11364_v51 }
 0x3c7   : > { %9000 = vmatpush3.bf16.msra.mxu0 %v11365_v15  ;;  %v11370_v27 = vld [vmem:[#allocation5 + $0xf8] sm:$0xff]  }
 0x3c8   : > { %v2106_v28 = vsub.f32 %v2104_v7, %v2105_v52  ;;  %v11368_v52 = vld [vmem:[#allocation5 + $0x78] sm:$0xff]  }
 0x3c9   : > { %v11369_v7 = vld [vmem:[#allocation5 + $0x38] sm:$0xff]   ;;  %9001 = vmatprep.subr.bf16.mxu0 %v11368_v52 }
 0x3ca   : > { %v2107_v16 = vmax.f32 %v2106_v28, 0.0  ;;  %v11371_v28 = vld [vmem:[#allocation5 + $0xb8] sm:$0xff]  }
 0x3cb   : > { %9002 = vmatpush3.bf16.msra.mxu0 %v11369_v7 }
 0x3cc   : > { %v2108_v53 = vadd.f32 1e-05, %v2107_v16  ;;  %v11372_v16 = vld [vmem:[#allocation5 + $0x140] sm:$0xff]  }
 0x3cd   : > { %9067 = vmatprep.subr.bf16.mxu0 %v11372_v16 }
 0x3ce   : > { %11484 = vrsqrt.f32 %v2108_v53  ;;  %v11374_v53 = vld [vmem:[#allocation5 + $0x1c0] sm:$0xff]  }
 0x3d8   : > { %v11485_v1 = vpop.eup %11484 }
 0x3d9   : > { %v2113_v37 = vrot.slane %v11485_v1, %v12550_v55  ;;  %v2115_v17 = vmul.f32 %v11485_v1, %v2114_v61  ;;  %v3112_v61 = vpop.permute.xlu1 %3111 }
 0x3db   : > { %v2123_v40 = vsel %vm2121_vm2, %v2113_v37, 0  ;;  %v2119_v14 = vrot.slane %v2115_v17, %v12550_v55 }
 0x3dc   : > { %v2191_v60 = vand.u32 4294901760, %v2123_v40 }
 0x3dd   : > { %v2572_v26 = vsel %vm2121_vm2, %v2119_v14, 0  ;;  %v3136_v1 = vpop.permute.xlu1 %3135 }
 0x3de   : > { %v2192_v20 = vsub.f32 %v2123_v40, %v2191_v60  ;;  %v2640_v57 = vand.u32 4294901760, %v2572_v26 }
 0x3e0   : > { %v2193_v9 = vand.u32 4294901760, %v2192_v20  ;;  %v2641_v58 = vsub.f32 %v2572_v26, %v2640_v57 }
 0x3e2   : > { %v2194_v18 = vsub.f32 %v2192_v20, %v2193_v9  ;;  %v2642_v3 = vand.u32 4294901760, %v2641_v58 }
 0x3e4   : > { %v2195_v2 = vand.u32 4294901760, %v2194_v18  ;;  %v2643_v4 = vsub.f32 %v2641_v58, %v2642_v3 }
 0x3e6   : > { %10012 = vmatmul.mubr.f32.vlgmr.msra.gmra.mrb[10].mxu1 %v2195_v2  ;;  %v2644_v56 = vand.u32 4294901760, %v2643_v4 }
 0x3e7   : > { %10015 = vmatpush3.msra.mxu1 %v2206_v30  ;;  %10016 = vmatprep.mubr.msk.f32.mxu1 %vm11621_vm0, %v13962_v36 }
 0x3e8   : > { %10019 = vmatprep.subr.mxu1 %v13962_v36 }
 0x3ee   : > { %10017 = vmatmul.mubr.f32.vlgmr.msra.gmra.mrb[10].mxu1 %v2191_v60 }
 0x3ef   : > { %10020 = vmatpush3.msra.mxu1 %v2203_v38  ;;  %10021 = vmatprep.mubr.msk.f32.mxu1 %vm11621_vm0, %v13962_v36 }
 0x3f0   : > { %10024 = vmatprep.subr.mxu1 %v13962_v36 }
 0x3f6   : > { %10022 = vmatmul.mubr.f32.vlgmr.msra.gmra.mrb[10].mxu1 %v2192_v20  ;;  %v11625_v20 = vmov 839922192  }
 0x3f7   : > { %10025 = vmatpush3.msra.mxu1 %v12519_v29  ;;  %10026 = vmatprep.mubr.msk.f32.mxu1 %vm11621_vm0, %v13962_v36  ;;  %v3079_v35 = vunpack.c.l.s4 %v11625_v20 }
 0x3f8   : > { %10029 = vmatprep.subr.mxu1 %v13962_v36 }
 0x3fe   : > { %10027 = vmatmul.mubr.f32.vlgmr.msra.gmra.mrb[10].mxu1 %v2193_v9 }
 0x3ff   : > { %10030 = vmatpush3.msra.mxu1 %v2204_v0  ;;  %10031 = vmatprep.mubr.msk.f32.mxu1 %vm11621_vm0, %v13962_v36 }
 0x400   : > { %10034 = vmatprep.subr.mxu1 %v13962_v36 }
 0x406   : > { %10032 = vmatmul.mubr.f32.vlgmr.msra.gmra.mrb[10].mxu1 %v2191_v60 }
 0x407   : > { %10035 = vmatpush3.msra.mxu1 %v12519_v29  ;;  %10036 = vmatprep.mubr.msk.f32.mxu1 %vm11621_vm0, %v13962_v36 }
 0x408   : > { %10039 = vmatprep.subr.mxu1 %v13962_v36 }
 0x40e   : > { %10037 = vmatmul.mubr.f32.vlgmr.msra.gmra.mrb[10].mxu1 %v2191_v60 }
 0x40f   : > { %10040 = vmatpush3.msra.mxu1 %v12519_v29  ;;  %10041 = vmatprep.mubr.msk.f32.mxu1 %vm11621_vm0, %v13962_v36 }
 0x410   : > { %10044 = vmatprep.subr.mxu1 %v13962_v36 }
 0x412   : > { %10042 = vmatmul.mubr.f32.vlgmr.msra.gmra.mrb[12].mxu1 %v2644_v56 }
 0x413   : > { %10045 = vmatpush3.msra.mxu1 %v2206_v30  ;;  %10046 = vmatprep.mubr.msk.f32.mxu1 %vm11621_vm0, %v13962_v36  ;;  %v3080_v30 = vunpack.c.0.s8 %v3079_v35 }
 0x414   : > { %10049 = vmatprep.subr.mxu1 %v13962_v36 }
 0x415   : > { %v3083_v2 = vsub.s32 %v3080_v30, %v12547_v10 }
 0x417   : > { %v3144_v56 = vrot.slane %v3136_v1, %v3083_v2 }
 0x41a   : > { %10047 = vmatmul.mubr.f32.vlgmr.msra.gmra.mrb[12].mxu1 %v2640_v57 }
 0x41b   : > { %10050 = vmatpush3.msra.mxu1 %v2203_v38  ;;  %10051 = vmatprep.mubr.msk.f32.mxu1 %vm11621_vm0, %v13962_v36  ;;  %v3088_v38 = vpop.permute.xlu0 %3087 }
 0x41c   : > { %10054 = vmatprep.subr.mxu1 %v13962_v36  ;;  %v3096_v4 = vrot.slane %v3088_v38, %v3083_v2 }
 0x41f   : > { %v3124_v37 = vpop.permute.xlu0 %3123 }
 0x420   : > { %v3132_v42 = vrot.slane %v3124_v37, %v3083_v2 }
 0x422   : > { %10052 = vmatmul.mubr.f32.vlgmr.msra.gmra.mrb[12].mxu1 %v2641_v58  ;;  %v3084_v58 = vrot.slane %v3076_v62, %v3083_v2  ;;  %v8586_v33 = vcombine.low %v3132_v42, %v3144_v56 }
 0x423   : > { %10055 = vmatpush3.msra.mxu1 %v12519_v29  ;;  %10056 = vmatprep.mubr.msk.f32.mxu1 %vm11621_vm0, %v13962_v36  ;;  %v3148_v60 = vpop.permute.xlu0 %3147 }
 0x424   : > { %10059 = vmatprep.subr.mxu1 %v13962_v36 }
 0x427   : > { %v3323_v18 = vpop.permute.xlu0 %3322 }
 0x42a   : > { %10057 = vmatmul.mubr.f32.vlgmr.msra.gmra.mrb[12].mxu1 %v2642_v3  ;;  %v3120_v3 = vrot.slane %v3112_v61, %v3083_v2 }
 0x42b   : > { %10060 = vmatpush3.msra.mxu1 %v2204_v0  ;;  %10061 = vmatprep.mubr.msk.f32.mxu1 %vm11621_vm0, %v13962_v36  ;;  %v3160_v0 = vpop.permute.xlu1 %3159  ;;  %v3356_v26 = vpop.permute.xlu0 %3355 }
 0x42c   : > { %10064 = vmatprep.subr.mxu1 %v13962_v36  ;;  %v3168_v45 = vrot.slane %v3160_v0, %v3083_v2 }
 0x42f   : > { %v3334_v9 = vpop.permute.xlu1 %3333  ;;  %v3378_v21 = vpop.permute.xlu0 %3377 }
 0x430   : > { %v3342_v12 = vrot.slane %v3334_v9, %v3083_v2  ;;  %v3386_v44 = vrot.slane %v3378_v21, %v3083_v2 }
 0x432   : > { %10062 = vmatmul.mubr.f32.vlgmr.msra.gmra.mrb[12].mxu1 %v2640_v57 }
 0x433   : > { %10065 = vmatpush3.msra.mxu1 %v12519_v29  ;;  %10066 = vmatprep.mubr.msk.f32.mxu1 %vm11621_vm0, %v13962_v36  ;;  %v11354_v29 = vld [vmem:[#allocation5 + $0xd8] sm:$0xff]   ;;  %v3345_v14 = vpop.permute.xlu1 %3344 }
 0x434   : > { %9027 = vmatprep.subr.bf16.mxu1 %v11342_v13  ;;  %v3331_v13 = vrot.slane %v3323_v18, %v3083_v2 }
 0x43a   : > { %10067 = vmatmul.mubr.f32.vlgmr.msra.gmra.mrb[12].mxu1 %v2640_v57  ;;  %v3108_v57 = vrot.slane %v3100_v11, %v3083_v2 }
 0x43b   : > { %9028 = vmatpush3.bf16.msra.mxu1 %v11343_v5  ;;  %v3367_v5 = vpop.permute.xlu1 %3366 }
 0x43c   : > { %9029 = vmatprep.subr.bf16.mxu1 %v11346_v6  ;;  %v8585_v22 = vcombine.low %v3108_v57, %v3120_v3  ;;  %v8584_v6 = vcombine.low %v3084_v58, %v3096_v4  ;;  %v3375_v39 = vrot.slane %v3367_v5, %v3083_v2 }
 0x43e   : > { %v3202_v10 = vshll.u32 %v8585_v22, 16  ;;  %v3191_v47 = vshrl.u32 %v8584_v6, 16  ;;  %v3194_v23 = vshll.u32 %v8584_v6, 16 }
 0x43f   : > { %9030 = vmatpush3.bf16.msra.mxu1 %v11347_v32  ;;  %v3199_v32 = vshrl.u32 %v8585_v22, 16 }
 0x440   : > { %9031 = vmatprep.subr.bf16.mxu1 %v11350_v41  ;;  %v3156_v41 = vrot.slane %v3148_v60, %v3083_v2  ;;  %v3204_v46 = vrot.slane %v3202_v10, 5  ;;  %v12601_v52 = vrot.slane %v3194_v23, 1  ;;  %v3196_v11 = vrot.slane %v3194_v23, 5 }
 0x441   : > { %v3201_v63 = vrot.slane %v3199_v32, 4 }
 0x442   : > { %v8587_v51 = vcombine.low %v3156_v41, %v3168_v45  ;;  %13981 = vst [vmem:[#allocation31_spill] sm:$0xff] %v12601_v52  ;;  %v3533_v35 = vor.u32 %v12601_v52, %v3191_v47 }
 0x443   : > { %9032 = vmatpush3.bf16.msra.mxu1 %v11351_v43  ;;  %v12597_v43 = vcombine.low %v3331_v13, %v3342_v12  ;;  %v3205_v60 = vor.u32 %v3204_v46, %v3201_v63  ;;  %v3068_v13 = vld [vmem:[#allocation4] sm:$0xf8] }
 0x444   : > { %9033 = vmatprep.subr.bf16.mxu1 %v11354_v29  ;;  %v3353_v29 = vrot.slane %v3345_v14, %v3083_v2  ;;  %v3217_v38 = vshrl.u32 %v8587_v51, 16  ;;  %v3220_v37 = vshll.u32 %v8587_v51, 16 }
 0x445   : > { %v3430_v15 = vshrl.u32 %v12597_v43, 16 }
 0x446   : > { %v3219_v3 = vrot.slane %v3217_v38, 4  ;;  %v3222_v4 = vrot.slane %v3220_v37, 5  ;;  %v3540_v42 = vrot.slane %v3220_v37, 1 }
 0x447   : > { %9034 = vmatpush3.bf16.msra.mxu1 %v11355_v34  ;;  %v3364_v34 = vrot.slane %v3356_v26, %v3083_v2  ;;  %v769_v26 = vld [vmem:[%s13818_s7] sm:$0x1] }
 0x448   : > { %9035 = vmatprep.subr.bf16.mxu1 %v11358_v49  ;;  %v3389_v49 = vpop.permute.xlu1 %3388  ;;  %v12631_v23 = vor.u32 %v3222_v4, %v3219_v3  ;;  %v12642_v63 = vor.u32 %v3540_v42, %v3217_v38 }
 0x449   : > { %v3397_v7 = vrot.slane %v3389_v49, %v3083_v2  ;;  %v12603_v16 = vcombine.low %v3353_v29, %v3364_v34  ;;  %v12633_v29 = vrot.slane %v3430_v15, 7 }
 0x44a   : > { %13987 = vst [vmem:[#allocation37_spill] sm:$0xff] %v12631_v23  ;;  %13989 = vst [vmem:[#allocation39_spill] sm:$0xff] %v12642_v63 }
 0x44b   : > { %9036 = vmatpush3.bf16.msra.mxu1 %v11359_v54  ;;  %v3400_v54 = vpop.permute.xlu0 %3399  ;;  %v3438_v18 = vshrl.u32 %v12603_v16, 16  ;;  %v3441_v30 = vshll.u32 %v12603_v16, 16 }
 0x44c   : > { %9037 = vmatprep.subr.bf16.mxu1 %v11362_v48  ;;  %v3208_v48 = vshrl.u32 %v8586_v33, 16 }
 0x44d   : > { %v3440_v45 = vrot.slane %v3438_v18, 3  ;;  %v3443_v41 = vrot.slane %v3441_v30, 4  ;;  %v12644_v46 = vrot.slane %v3438_v18, 7 }
 0x44e   : > { %v3210_v62 = vrot.slane %v3208_v48, 4 }
 0x44f   : > { %9038 = vmatpush3.bf16.msra.mxu1 %v11363_v50  ;;  %v3211_v50 = vshll.u32 %v8586_v33, 16  ;;  %v3316_v33 = vld [vmem:[#allocation4] sm:$0xf0]  ;;  %v3444_v51 = vor.u32 %v3443_v41, %v3440_v45 }
 0x450   : > { %9039 = vmatprep.subr.bf16.mxu1 %v11366_v19  ;;  %v3433_v19 = vshll.u32 %v12597_v43, 16 }
 0x451   : > { %v3213_v61 = vrot.slane %v3211_v50, 5  ;;  %v3537_v1 = vrot.slane %v3211_v50, 1 }
 0x452   : > { %v3435_v0 = vrot.slane %v3433_v19, 4 }
 0x453   : > { %9040 = vmatpush3.bf16.msra.mxu1 %v11367_v31  ;;  %v3534_v31 = vrot.slane %v3202_v10, 1  ;;  %v12617_v58 = vor.u32 %v3213_v61, %v3210_v62  ;;  %v3539_v56 = vor.u32 %v3537_v1, %v3208_v48  ;;  %v12659_v62 = vld [vmem:[#allocation4] sm:$0xf0] }
 0x454   : > { %9041 = vmatprep.subr.bf16.mxu1 %v11370_v27  ;;  %v3408_v27 = vrot.slane %v3400_v54, %v3083_v2 }
 0x455   : > { %v3536_v20 = vor.u32 %v3534_v31, %v3199_v32  ;;  %v12622_v5 = vsel %vm3531_vm3, %v3533_v35, %v3534_v31  ;;  %v3526_v32 = vld [vmem:[#allocation4] sm:$0x80] }
 0x456   : > { %v8591_v9 = vcombine.low %v3397_v7, %v3408_v27  ;;  %13984 = vst [vmem:[#allocation34_spill] sm:$0xff] %v12622_v5  ;;  %v3548_v49 = vmul.bf16 %v12601_v52, %v3526_v32  ;;  %v770_v27 = vld [vmem:[%s13819_s8] sm:$0x1] }
 0x457   : > { %9042 = vmatpush3.bf16.msra.mxu1 %v11371_v28  ;;  %v3193_v28 = vrot.slane %v3191_v47, 4  ;;  %v12625_v21 = vsel %vm3531_vm3, %v3536_v20, %v3537_v1  ;;  %v12629_v47 = vsel %vm3189_vm4, %v3205_v60, %v12617_v58 }
 0x458   : > { %9107 = vmatprep.subr.bf16.mxu1 %v11374_v53  ;;  %v12605_v53 = vcombine.low %v3375_v39, %v3386_v44  ;;  %13985 = vst [vmem:[#allocation35_spill] sm:$0xff] %v12625_v21  ;;  %v3456_v22 = vshrl.u32 %v8591_v9, 16  ;;  %v3459_v6 = vshll.u32 %v8591_v9, 16  ;;  %13986 = vst [vmem:[#allocation36_spill] sm:$0xff] %v12629_v47  ;;  %v12638_v44 = vsel %vm3531_vm3, %v3539_v56, %v3540_v42 }
 0x459   : > { %v12615_v57 = vor.u32 %v3196_v11, %v3193_v28  ;;  %13988 = vst [vmem:[#allocation38_spill] sm:$0xff] %v12638_v44  ;;  %v12661_v61 = vshrl.u32 %v3548_v49, 16 }
 0x45a   : > { %v3447_v2 = vshrl.u32 %v12605_v53, 16  ;;  %v3450_v14 = vshll.u32 %v12605_v53, 16  ;;  %v3458_v50 = vrot.slane %v3456_v22, 3  ;;  %v3461_v31 = vrot.slane %v3459_v6, 4 }
 0x45b   : > { %13982 = vst [vmem:[#allocation32_spill] sm:$0xff] %v12615_v57  ;;  %v3230_v34 = vmul.bf16 %v12615_v57, %v3068_v13  ;;  %v12650_v7 = vrot.slane %v3456_v22, 7  ;;  %v12671_v20 = vsel %vm3189_vm4, %v12615_v57, %v3205_v60  ;;  %v13996_v13 = vld [vmem:[#allocation24_spill] sm:$0xff] }
 0x45c   : > { %v3449_v43 = vrot.slane %v3447_v2, 3  ;;  %v3452_v10 = vrot.slane %v3450_v14, 4  ;;  %v12646_v48 = vrot.slane %v3447_v2, 7  ;;  %13992 = vst [vmem:[#allocation42_spill] sm:$0xff] %v12671_v20  ;;  %v12681_v18 = vor.u32 %v3461_v31, %v3458_v50 }
 0x45d   : > { %13990 = vst [vmem:[#allocation40_spill] sm:$0xff] %v12650_v7  ;;  %v3237_v28 = vshrl.u32 %v3230_v34, 16  ;;  %v3240_v16 = vshll.u32 %v3230_v34, 16  ;;  %v14000_v34 = vld [vmem:[#allocation28_spill] sm:$0xff] }
 0x45e   : > { %13995 = vst [vmem:[#allocation45_spill] sm:$0xff] %v12681_v18 }
 0x45f   : > { %v12689_v60 = vrot.slane %v3240_v16, 4 }
 0x4e1   : > { %v12594_v17 = vpop.f32.mrb[10].mxu1 }
 0x4e2   : > { %v10038_v40 = vpop.f32.mrb[11].mxu1  ;;  %v3020_v39 = vmul.f32 %v12594_v17, %v769_v26  ;;  %v12653_v17 = vor.u32 %v12633_v29, %v3433_v19  ;;  %v12664_v19 = vor.u32 %v12644_v46, %v3441_v30  ;;  %v12684_v30 = vor.u32 %v12650_v7, %v3459_v6  ;;  %v13997_v6 = vld [vmem:[#allocation23_spill] sm:$0xff] }
 0x4e3   : > { %v3432_v40 = vrot.slane %v3430_v15, 3  ;;  %v12648_v15 = vor.u32 %v3452_v10, %v3449_v43  ;;  %v13999_v43 = vld [vmem:[#allocation26_spill] sm:$0xff] }
 0x4e4   : > { %13991 = vst [vmem:[#allocation41_spill] sm:$0xff] %v12653_v17  ;;  %v3027_v53 = vrot.slane %v3020_v39, %v12550_v55 }
 0x4e5   : > { %v12619_v12 = vor.u32 %v3435_v0, %v3432_v40  ;;  %v12667_v0 = vor.u32 %v12646_v48, %v3450_v14  ;;  %v12679_v9 = vsel %vm3235_vm5, %v3444_v51, %v12648_v15  ;;  %v3299_v14 = vrot.slane %v12659_v62, 4 }
 0x4e6   : > { %13994 = vst [vmem:[#allocation44_spill] sm:$0xff] %v12679_v9  ;;  %v3029_v3 = vmul.f32 %v3027_v53, %v12249_v59  ;;  %v3030_v22 = vmul.f32 %v3027_v53, %v13996_v13  ;;  %v3031_v32 = vmul.f32 %v3027_v53, %v13997_v6  ;;  %v3033_v10 = vmul.f32 %v3027_v53, %v13999_v43 }
 0x4e7   : > { %13983 = vst [vmem:[#allocation33_spill] sm:$0xff] %v12619_v12  ;;  %v3469_v54 = vmul.bf16 %v12619_v12, %v3316_v33  ;;  %v12675_v35 = vsel %vm3235_vm5, %v12619_v12, %v3444_v51  ;;  %v13998_v33 = vld [vmem:[#allocation25_spill] sm:$0xff]  ;;  %v3034_v39 = vmul.f32 %v3027_v53, %v14000_v34  ;;  %v3035_v49 = vmul.f32 %v3027_v53, %v12271_v8 }
 0x4e8   : > { %13993 = vst [vmem:[#allocation43_spill] sm:$0xff] %v12675_v35  ;;  %v3032_v45 = vmul.f32 %v3027_v53, %v13998_v33 }
 0x4e9   : > { %v3475_v38 = vshrl.u32 %v3469_v54, 16  ;;  %v3478_v1 = vshll.u32 %v3469_v54, 16  ;;  %v3036_v54 = vmul.f32 %v3027_v53, %v12278_v24  ;;  %v11376_v24 = vld [vmem:[#allocation5 + $0x148] sm:$0xff]  }
 0x4eb   : > { %v12693_v56 = vrot.slane %v3475_v38, 4  ;;  %v12695_v42 = vrot.slane %v3478_v1, 5 }
 0x50d   : > { %v3016_v11 = vpop.f32.mrb[12].mxu1 }
 0x50e   : > { %v3021_v37 = vmul.f32 %v3016_v11, %v769_v26  ;;  %v10068_v40 = vpop.f32.mrb[13].mxu1  ;;  %v12687_v26 = vrot.slane %v3237_v28, 3 }
 0x510   : > { %v3022_v2 = vadd.f32 %v3021_v37, %v770_v27  ;;  %v3243_v53 = vor.u32 %v12689_v60, %v12687_v26 }
 0x512   : > { %v3041_v41 = vrot.slane %v3022_v2, %v12550_v55 }
 0x514   : > { %v3043_v50 = vadd.f32 %v3041_v41, %v3029_v3  ;;  %v3044_v51 = vadd.f32 %v3041_v41, %v3030_v22  ;;  %v3045_v31 = vadd.f32 %v3041_v41, %v3031_v32  ;;  %v3046_v27 = vadd.f32 %v3041_v41, %v3032_v45 }
 0x515   : > { %v3047_v28 = vadd.f32 %v3041_v41, %v3033_v10  ;;  %v3048_v16 = vadd.f32 %v3041_v41, %v3034_v39  ;;  %v3049_v11 = vadd.f32 %v3041_v41, %v3035_v49  ;;  %v3050_v62 = vadd.f32 %v3041_v41, %v3036_v54 }
 0x516   : > { %v3051_v38 = vmax.f32 %v3043_v50, 0.0  ;;  %v3052_v1 = vmax.f32 %v3044_v51, 0.0  ;;  %v3053_v37 = vmax.f32 %v3045_v31, 0.0  ;;  %v3054_v40 = vmax.f32 %v3046_v27, 0.0 }
 0x517   : > { %v3055_v2 = vmax.f32 %v3047_v28, 0.0  ;;  %v3056_v4 = vmax.f32 %v3048_v16, 0.0  ;;  %v3057_v43 = vmax.f32 %v3049_v11, 0.0  ;;  %v3058_v34 = vmax.f32 %v3050_v62, 0.0 }
 0x518   : > { %v12705_v13 = vpack.c.bf16 %v3052_v1, %v3051_v38  ;;  %v12707_v8 = vpack.c.bf16 %v3054_v40, %v3053_v37  ;;  %v12714_v3 = vsel %vm3189_vm4, %v12617_v58, %v12631_v23  ;;  %v3481_v45 = vor.u32 %v12695_v42, %v12693_v56 }
 0x519   : > { %14001 = vst [vmem:[#allocation46_spill] sm:$0xff] %v12714_v3  ;;  %v12716_v22 = vpack.c.bf16 %v3056_v4, %v3055_v2  ;;  %v12718_v32 = vpack.c.bf16 %v3058_v34, %v3057_v43  ;;  %v12725_v41 = vsel %vm3235_vm5, %v12648_v15, %v12681_v18  ;;  %v11373_v2 = vld [vmem:[#allocation5 + $0x100] sm:$0xff]  }
 0x51a   : > { %14002 = vst [vmem:[#allocation47_spill] sm:$0xff] %v12725_v41  ;;  %3064 = vst [vmem:[#allocation4 + $0x8] sm:$0xff] %v12705_v13  ;;  %v3300_v58 = vrot.slane %v12705_v13, 4  ;;  %v3231_v26 = vmul.bf16 %v12671_v20, %v12705_v13  ;;  %v3549_v60 = vmul.bf16 %v12622_v5, %v12705_v13  ;;  %v12735_v4 = vrot.slane %v12707_v8, 4 }
 0x51b   : > { %3065 = vst [vmem:[#allocation4 + $0x10] sm:$0xff] %v12707_v8  ;;  %3066 = vst [vmem:[#allocation4 + $0x18] sm:$0xff] %v12716_v22  ;;  %v3470_v15 = vmul.bf16 %v12675_v35, %v12705_v13  ;;  %v3550_v56 = vmul.bf16 %v12625_v21, %v12707_v8  ;;  %v3232_v42 = vmul.bf16 %v12629_v47, %v12707_v8  ;;  %v12746_v43 = vrot.slane %v12716_v22, 4 }
 0x51c   : > { %3067 = vst [vmem:[#allocation4 + $0x20] sm:$0xff] %v12718_v32  ;;  %v3301_v10 = vsel %vm3298_vm6, %v3299_v14, %v3300_v58  ;;  %v3245_v34 = vshrl.u32 %v3231_v26, 16  ;;  %v3248_v39 = vshll.u32 %v3231_v26, 16  ;;  %v3559_v49 = vshrl.u32 %v3549_v60, 16 }
 0x51d   : > { %4477 = vmatprep.mubr.bf16.mxu0 %v3301_v10  ;;  %v3562_v54 = vshll.u32 %v3549_v60, 16  ;;  %v3303_v50 = vsel %vm3298_vm6, %v3300_v58, %v12735_v4  ;;  %v3483_v51 = vshrl.u32 %v3470_v15, 16  ;;  %v3486_v31 = vshll.u32 %v3470_v15, 16 }
 0x51e   : > { %v3247_v27 = vrot.slane %v3245_v34, 3  ;;  %v3250_v28 = vrot.slane %v3248_v39, 4  ;;  %v3561_v16 = vrot.slane %v3559_v49, 7  ;;  %v3567_v11 = vshrl.u32 %v3550_v56, 16 }
 0x51f   : > { %v3485_v62 = vrot.slane %v3483_v51, 4  ;;  %v3488_v38 = vrot.slane %v3486_v31, 5  ;;  %v3570_v1 = vshll.u32 %v3550_v56, 16  ;;  %v3254_v37 = vshrl.u32 %v3232_v42, 16  ;;  %v11378_v31 = vld [vmem:[#allocation5 + $0x1c8] sm:$0xff]  }
 0x520   : > { %v3251_v40 = vor.u32 %v3250_v28, %v3247_v27  ;;  %v3564_v14 = vor.u32 %v3562_v54, %v3561_v16  ;;  %v12751_v26 = vrot.slane %v3567_v11, 7  ;;  %v3257_v10 = vshll.u32 %v3232_v42, 16  ;;  %v11375_v42 = vld [vmem:[#allocation5 + $0x180] sm:$0xff]  }
 0x521   : > { %v3489_v60 = vor.u32 %v3488_v38, %v3485_v62  ;;  %v3256_v59 = vrot.slane %v3254_v37, 3  ;;  %v12756_v58 = vsel %vm3298_vm6, %v12735_v4, %v12746_v43  ;;  %v3471_v15 = vmul.bf16 %v12679_v9, %v12707_v8  ;;  %v11380_v37 = vld [vmem:[#allocation5 + $0x150] sm:$0xff]  }
 0x522   : > { %v3252_v56 = vsel %vm3235_vm5, %v3243_v53, %v3251_v40  ;;  %v14003_v34 = vrot.slane %v12661_v61, 7  ;;  %v3572_v49 = vor.u32 %v3570_v1, %v12751_v26  ;;  %v3259_v54 = vrot.slane %v3257_v10, 4  ;;  %v11377_v53 = vld [vmem:[#allocation5 + $0x108] sm:$0xff]  }
 0x523   : > { %4478 = vmatmul.mubr.bf16.vlgmr.msra.gmra.mrb[8].mxu0 %v3252_v56  ;;  %v3490_v51 = vsel %vm3189_vm4, %v3481_v45, %v3489_v60  ;;  %v3492_v27 = vshrl.u32 %v3471_v15, 16  ;;  %v3495_v28 = vshll.u32 %v3471_v15, 16  ;;  %v3551_v11 = vmul.bf16 %v12638_v44, %v12716_v22  ;;  %v3072_v1 = vld [vmem:[#allocation4 + $0x20] sm:$0xf] }
 0x524   : > { %v3565_v39 = vsel %vm3553_vm7, %v14003_v34, %v3564_v14  ;;  %9068 = vmatpush3.bf16.msra.mxu0 %v11373_v2  ;;  %4485 = vmatprep.mubr.bf16.mxu0 %v3303_v50  ;;  %v3573_v61 = vsel %vm3553_vm7, %v3561_v16, %v3572_v49  ;;  %v3260_v62 = vor.u32 %v3259_v54, %v3256_v59  ;;  %v3320_v15 = vld [vmem:[#allocation4 + $0x20] sm:$0x1f]  ;;  %v11379_v50 = vld [vmem:[#allocation5 + $0x188] sm:$0xff]  }
 0x525   : > { %4542 = vmatprep.mubr.bf16.mxu1 %v3565_v39  ;;  %v3233_v38 = vmul.bf16 %v12714_v3, %v12716_v22  ;;  %9069 = vmatprep.subr.bf16.mxu0 %v11376_v24  ;;  %v3494_v45 = vrot.slane %v3492_v27, 4  ;;  %v3497_v14 = vrot.slane %v3495_v28, 5  ;;  %v3575_v10 = vshrl.u32 %v3551_v11, 16  ;;  %v11382_v39 = vld [vmem:[#allocation5 + $0x1d0] sm:$0xff]  }
 0x526   : > { %4543 = vmatmul.mubr.bf16.vlgmr.msra.gmra.mrb[16].mxu1 %v3490_v51  ;;  %v12774_v2 = vsel %vm3553_vm7, %v12633_v29, %v12664_v19  ;;  %v3261_v59 = vsel %vm3235_vm5, %v3251_v40, %v3260_v62  ;;  %v3578_v16 = vshll.u32 %v3551_v11, 16  ;;  %v3472_v54 = vmul.bf16 %v12725_v41, %v12716_v22  ;;  %v11381_v29 = vld [vmem:[#allocation5 + $0x110] sm:$0xff]   ;;  %v11384_v11 = vld [vmem:[#allocation5 + $0x158] sm:$0xff]  }
 0x527   : > { %14004 = vst [vmem:[#allocation48_spill] sm:$0xff] %v12774_v2  ;;  %4550 = vmatprep.mubr.bf16.mxu1 %v3573_v61  ;;  %9108 = vmatpush3.bf16.msra.mxu1 %v11375_v42  ;;  %v3263_v56 = vshrl.u32 %v3233_v38, 16  ;;  %v3266_v34 = vshll.u32 %v3233_v38, 16  ;;  %v3498_v24 = vor.u32 %v3497_v14, %v3494_v45  ;;  %v3577_v49 = vrot.slane %v3575_v10, 7  ;;  %v11383_v45 = vld [vmem:[#allocation5 + $0x190] sm:$0xff]  }
 0x528   : > { %9109 = vmatprep.subr.bf16.mxu1 %v11378_v31  ;;  %v3552_v51 = vmul.bf16 %v12642_v63, %v12718_v32  ;;  %9070 = vmatpush3.bf16.msra.mxu0 %v11377_v53  ;;  %v3234_v27 = vmul.bf16 %v12631_v23, %v3072_v1  ;;  %v3473_v40 = vmul.bf16 %v12681_v18, %v3320_v15  ;;  %v3501_v61 = vshrl.u32 %v3472_v54, 16  ;;  %v11386_v1 = vld [vmem:[#allocation5 + $0x1d8] sm:$0xff]  }
 0x529   : > { %v3265_v19 = vrot.slane %v3263_v56, 3  ;;  %v3268_v42 = vrot.slane %v3266_v34, 4  ;;  %9071 = vmatprep.subr.bf16.mxu0 %v11380_v37  ;;  %v3499_v31 = vsel %vm3189_vm4, %v3489_v60, %v3498_v24  ;;  %v3580_v28 = vor.u32 %v3578_v16, %v3577_v49  ;;  %v11385_v34 = vld [vmem:[#allocation5 + $0x118] sm:$0xff]  }
 0x52a   : > { %v3504_v38 = vshll.u32 %v3472_v54, 16  ;;  %v3583_v10 = vshrl.u32 %v3552_v51, 16  ;;  %v3272_v53 = vshrl.u32 %v3234_v27, 16  ;;  %v12789_v56 = vsel %vm3553_vm7, %v12644_v46, %v12667_v0 }
 0x52b   : > { %9110 = vmatpush3.bf16.msra.mxu1 %v11379_v50  ;;  %v12784_v14 = vor.u32 %v3268_v42, %v3265_v19  ;;  %14005 = vst [vmem:[#allocation49_spill] sm:$0xff] %v12789_v56  ;;  %4486 = vmatmul.mubr.bf16.gmra.mrb[12].mxu0 %v3261_v59  ;;  %v3581_v60 = vsel %vm3553_vm7, %v12751_v26, %v3580_v28  ;;  %v3503_v37 = vrot.slane %v3501_v61, 4  ;;  %v3275_v16 = vshll.u32 %v3234_v27, 16  ;;  %v3610_v50 = vld [vmem:[#allocation4 + $0x28] sm:$0x1]  ;;  %v11390_v61 = vld [vmem:[#allocation5 + $0x1e0] sm:$0xff]  }
 0x52c   : > { %9111 = vmatprep.subr.bf16.mxu1 %v11382_v39  ;;  %v3506_v15 = vrot.slane %v3504_v38, 5  ;;  %9072 = vmatpush3.bf16.msra.mxu0 %v11381_v29  ;;  %v3292_v19 = vld [vmem:[#allocation4 + $0x20] sm:$0xf]  ;;  %v3585_v46 = vrot.slane %v3583_v10, 7  ;;  %v3586_v0 = vshll.u32 %v3552_v51, 16  ;;  %v3510_v59 = vshrl.u32 %v3473_v40, 16 }
 0x52d   : > { %4493 = vmatprep.mubr.bf16.mxu0 %v12756_v58  ;;  %v3270_v54 = vsel %vm3235_vm5, %v3260_v62, %v12784_v14  ;;  %9073 = vmatprep.subr.bf16.mxu0 %v11384_v11  ;;  %v11388_v39 = vld [vmem:[#allocation5 + $0x160] sm:$0xff]   ;;  %v3513_v42 = vshll.u32 %v3473_v40, 16  ;;  %v3627_v27 = vmul.bf16 %v12653_v17, %v12705_v13  ;;  %v12803_v29 = vsel %vm3553_vm7, %v12646_v48, %v12684_v30  ;;  %v11387_v62 = vld [vmem:[#allocation5 + $0x198] sm:$0xff]  }
 0x52e   : > { %4551 = vmatmul.mubr.bf16.gmra.mrb[20].mxu1 %v3499_v31  ;;  %v12796_v26 = vor.u32 %v3506_v15, %v3503_v37  ;;  %14006 = vst [vmem:[#allocation50_spill] sm:$0xff] %v12803_v29  ;;  %v3588_v28 = vor.u32 %v3586_v0, %v3585_v46  ;;  %v3628_v51 = vmul.bf16 %v12774_v2, %v12707_v8  ;;  %v3306_v11 = vrot.slane %v3292_v19, 4  ;;  %v3676_v48 = vld [vmem:[#allocation4 + $0x8] sm:$0xf8]  ;;  %v11389_v30 = vld [vmem:[#allocation5 + $0x120] sm:$0xff]  }
 0x52f   : > { %4558 = vmatprep.mubr.bf16.mxu1 %v3581_v60  ;;  %9112 = vmatpush3.bf16.msra.mxu1 %v11383_v45  ;;  %v3631_v31 = vmul.bf16 %v12650_v7, %v3610_v50  ;;  %v12810_v38 = vrot.slane %v3272_v53, 3  ;;  %v12812_v10 = vrot.slane %v3275_v16, 4  ;;  %v12815_v60 = vrot.slane %v3510_v59, 4  ;;  %v11391_v16 = vld [vmem:[#allocation5 + $0x1a0] sm:$0xff]  }
 0x530   : > { %9113 = vmatprep.subr.bf16.mxu1 %v11386_v1  ;;  %v3508_v40 = vsel %vm3189_vm4, %v3498_v24, %v12796_v26  ;;  %9074 = vmatpush3.bf16.msra.mxu0 %v11385_v34  ;;  %v3589_v45 = vsel %vm3553_vm7, %v3577_v49, %v3588_v28  ;;  %v3635_v37 = vshll.u32 %v3627_v27, 16  ;;  %v3640_v15 = vshll.u32 %v3628_v51, 16  ;;  %v11392_v1 = vld [vmem:[#allocation5 + $0x168] sm:$0xff]  }
 0x531   : > { %9075 = vmatprep.subr.bf16.mxu0 %v11388_v39  ;;  %v12817_v50 = vrot.slane %v3513_v42, 5  ;;  %v3633_v19 = vshrl.u32 %v3627_v27, 16  ;;  %v3629_v24 = vmul.bf16 %v12789_v56, %v12716_v22  ;;  %v3644_v53 = vshrl.u32 %v3628_v51, 16  ;;  %v11394_v39 = vld [vmem:[#allocation5 + $0x1e8] sm:$0xff]  }
 0x532   : > { %v3637_v46 = vrot.slane %v3635_v37, 1  ;;  %v3642_v34 = vrot.slane %v3640_v15, 1  ;;  %v12822_v0 = vmul.bf16 %v3676_v48, %v12615_v57  ;;  %v3682_v49 = vmul.bf16 %v12671_v20, %v12707_v8  ;;  %v11393_v28 = vld [vmem:[#allocation5 + $0x128] sm:$0xff]  }
 0x533   : > { %9114 = vmatpush3.bf16.msra.mxu1 %v11387_v62  ;;  %4494 = vmatmul.mubr.bf16.gmra.mrb[16].mxu0 %v3270_v54  ;;  %v3307_v59 = vsel %vm3298_vm6, %v12746_v43, %v3306_v11  ;;  %v3648_v42 = vshll.u32 %v3629_v24, 16  ;;  %v3630_v27 = vmul.bf16 %v12803_v29, %v12718_v32  ;;  %v12830_v62 = vshll.u32 %v3631_v31, 16  ;;  %v11396_v11 = vld [vmem:[#allocation5 + $0x170] sm:$0xff]   ;;  %v11395_v32 = vld [vmem:[#allocation5 + $0x1a8] sm:$0xff]  }
 0x534   : > { %9115 = vmatprep.subr.bf16.mxu1 %v11390_v61  ;;  %9076 = vmatpush3.bf16.msra.mxu0 %v11389_v30  ;;  %v3278_v51 = vor.u32 %v12812_v10, %v12810_v38  ;;  %v3638_v48 = vor.u32 %v3637_v46, %v3633_v19  ;;  %v3646_v37 = vor.u32 %v3644_v53, %v3642_v34  ;;  %v3652_v54 = vshrl.u32 %v3629_v24, 16  ;;  %v11398_v10 = vld [vmem:[#allocation5 + $0x1f0] sm:$0xff]  }
 0x535   : > { %4501 = vmatprep.mubr.bf16.mxu0 %v3307_v59  ;;  %9077 = vmatprep.subr.bf16.mxu0 %v11392_v1  ;;  %v3650_v61 = vrot.slane %v3648_v42, 1  ;;  %v3695_v15 = vshrl.u32 %v3682_v49, 16  ;;  %v3698_v33 = vshll.u32 %v3682_v49, 16  ;;  %v3656_v6 = vshll.u32 %v3630_v27, 16  ;;  %v3738_v59 = vld [vmem:[#allocation4 + $0x8] sm:$0xf0] }
 0x536   : > { %4559 = vmatmul.mubr.bf16.gmra.mrb[24].mxu1 %v3508_v40  ;;  %v3516_v31 = vor.u32 %v12817_v50, %v12815_v60  ;;  %v3643_v30 = vsel %vm3531_vm3, %v3638_v48, %v3642_v34  ;;  %v3687_v38 = vshrl.u32 %v12822_v0, 16  ;;  %v3683_v40 = vmul.bf16 %v12629_v47, %v12716_v22  ;;  %v11397_v53 = vld [vmem:[#allocation5 + $0x130] sm:$0xff]   ;;  %v11400_v22 = vld [vmem:[#allocation5 + $0x178] sm:$0xff]  }
 0x537   : > { %4566 = vmatprep.mubr.bf16.mxu1 %v3589_v45  ;;  %9116 = vmatpush3.bf16.msra.mxu1 %v11391_v16  ;;  %v3651_v1 = vsel %vm3531_vm3, %v3646_v37, %v3650_v61  ;;  %v3697_v19 = vrot.slane %v3695_v15, 3  ;;  %v3700_v24 = vrot.slane %v3698_v33, 4  ;;  %v3654_v45 = vor.u32 %v3652_v54, %v3650_v61  ;;  %v11399_v48 = vld [vmem:[#allocation5 + $0x1b0] sm:$0xff]   ;;  %v11404_v15 = vld [vmem:[#allocation5 + $0x200] sm:$0xff]  }
 0x538   : > { %9117 = vmatprep.subr.bf16.mxu1 %v11394_v39  ;;  %9078 = vmatpush3.bf16.msra.mxu0 %v11393_v28  ;;  %v3690_v16 = vshll.u32 %v12822_v0, 16  ;;  %v3658_v60 = vrot.slane %v3656_v6, 1  ;;  %v3704_v50 = vshrl.u32 %v3683_v40, 16  ;;  %v3707_v46 = vshll.u32 %v3683_v40, 16  ;;  %v11402_v6 = vld [vmem:[#allocation5 + $0x1f8] sm:$0xff]  }
 0x539   : > { %9079 = vmatprep.subr.bf16.mxu0 %v11396_v11  ;;  %v3279_v34 = vsel %vm3235_vm5, %v12784_v14, %v3278_v51  ;;  %v3748_v49 = vrot.slane %v3738_v59, 4  ;;  %v3660_v39 = vshrl.u32 %v3630_v27, 16  ;;  %v3666_v42 = vrot.slane %v12830_v62, 1  ;;  %v11401_v51 = vld [vmem:[#allocation5 + $0x138] sm:$0xff]  }
 0x53a   : > { %v3701_v33 = vor.u32 %v3700_v24, %v3697_v19  ;;  %v3659_v28 = vsel %vm3531_vm3, %v3654_v45, %v3658_v60  ;;  %v3706_v37 = vrot.slane %v3704_v50, 3  ;;  %v3709_v54 = vrot.slane %v3707_v46, 4  ;;  %v11403_v59 = vld [vmem:[#allocation5 + $0x1b8] sm:$0xff]  }
 0x53b   : > { %9118 = vmatpush3.bf16.msra.mxu1 %v11395_v32  ;;  %4502 = vmatmul.mubr.bf16.gmra.mrb[20].mxu0 %v3279_v34  ;;  %v3662_v0 = vor.u32 %v3660_v39, %v3658_v60  ;;  %v3517_v14 = vsel %vm3189_vm4, %v12796_v26, %v3516_v31  ;;  %v3689_v27 = vrot.slane %v3687_v38, 3  ;;  %v3692_v11 = vrot.slane %v3690_v16, 4  ;;  %v12857_v38 = vld [vmem:[#allocation4 + $0x20] sm:$0xff]  ;;  %v3765_v19 = vld [vmem:[#allocation4 + $0x8] sm:$0xf0] }
 0x53c   : > { %9119 = vmatprep.subr.bf16.mxu1 %v11398_v10  ;;  %9080 = vmatpush3.bf16.msra.mxu0 %v11397_v53  ;;  %v12848_v62 = vor.u32 %v3709_v54, %v3706_v37  ;;  %v3750_v61 = vsel %vm3298_vm6, %v3748_v49, %v12735_v4  ;;  %v3684_v40 = vmul.bf16 %v12857_v38, %v12714_v3  ;;  %v11406_v10 = vld [vmem:[#allocation5 + $0x210] sm:$0xff]   ;;  %v3766_v53 = vld [vmem:[#allocation4 + $0x10] sm:$0xff]  ;;  %v11407_v16 = vld [vmem:[#allocation5 + $0x218] sm:$0xff]  }
 0x53d   : > { %4607 = vmatprep.mubr.bf16.mxu0 %v3643_v30  ;;  %9081 = vmatprep.subr.bf16.mxu0 %v11400_v22  ;;  %v12853_v32 = vsel %vm3531_vm3, %v3662_v0, %v3666_v42  ;;  %v3693_v31 = vor.u32 %v3692_v11, %v3689_v27  ;;  %v11405_v30 = vld [vmem:[#allocation5 + $0x208] sm:$0xff]   ;;  %v3680_v60 = vld [vmem:[#allocation4 + $0x28] sm:$0xf]  ;;  %v3771_v50 = vmul.bf16 %v3766_v53, %v12675_v35  ;;  %v11408_v49 = vld [vmem:[#allocation5 + $0x220] sm:$0xff]  }
 0x53e   : > { %4567 = vmatmul.mubr.bf16.gmra.mrb[28].mxu1 %v3517_v14  ;;  %v3711_v26 = vsel %vm3235_vm5, %v3701_v33, %v12848_v62  ;;  %v3713_v24 = vshrl.u32 %v3684_v40, 16  ;;  %v3716_v45 = vshll.u32 %v3684_v40, 16  ;;  %v3742_v22 = vld [vmem:[#allocation4 + $0x28] sm:$0xf]  ;;  %v3685_v39 = vmul.bf16 %v3680_v60, %v12631_v23 }
 0x53f   : > { %9120 = vmatpush3.bf16.msra.mxu1 %v11399_v48  ;;  %4672 = vmatprep.mubr.bf16.mxu1 %v3750_v61  ;;  %v3702_v4 = vsel %vm3235_vm5, %v3693_v31, %v3701_v33  ;;  %v3600_v48 = vld [vmem:[#allocation4 + $0x18] sm:$0xff]  ;;  %v3784_v33 = vshrl.u32 %v3771_v50, 16  ;;  %v3787_v37 = vshll.u32 %v3771_v50, 16  ;;  %v11410_v31 = vld [vmem:[#allocation5 + $0x230] sm:$0xff]  }
 0x540   : > { %9121 = vmatprep.subr.bf16.mxu1 %v11402_v6  ;;  %9082 = vmatpush3.bf16.msra.mxu0 %v11401_v51  ;;  %v3715_v46 = vrot.slane %v3713_v24, 3  ;;  %v11409_v6 = vld [vmem:[#allocation5 + $0x228] sm:$0xff]   ;;  %v3722_v0 = vshrl.u32 %v3685_v39, 16  ;;  %v3725_v14 = vshll.u32 %v3685_v39, 16 }
 0x541   : > { %10069 = vmatprep.subr.bf16.mxu0 %v11404_v15  ;;  %v3786_v11 = vrot.slane %v3784_v33, 4  ;;  %v3789_v61 = vrot.slane %v3787_v37, 5 }
 0x543   : > { %9122 = vmatpush3.bf16.msra.mxu1 %v11403_v59  ;;  %4608 = vmatmul.mubr.bf16.vlgmr.msra.gmra.mrb[24].mxu0 %v12705_v13  ;;  %v3753_v13 = vrot.slane %v12857_v38, 4  ;;  %v3790_v24 = vor.u32 %v3789_v61, %v3786_v11  ;;  %v4810_v11 = vld [vmem:[%s13815_s4 + $0x20] sm:$0xff] }
 0x544   : > { %10885 = vmatprep.subr.bf16.mxu1 %v13963_v25  ;;  %10070 = vmatpush3.bf16.msra.mxu0 %v11404_v15  ;;  %v3773_v15 = vmul.bf16 %v12857_v38, %v12725_v41 }
 0x545   : > { %4615 = vmatprep.mubr.bf16.mxu0 %v3651_v1  ;;  %10071 = vmatprep.subr.bf16.mxu0 %v11405_v30  ;;  %v3770_v1 = vmul.bf16 %v3765_v19, %v12619_v12  ;;  %v3754_v34 = vsel %vm3298_vm6, %v12746_v43, %v3753_v13  ;;  %v3772_v43 = vmul.bf16 %v3600_v48, %v12679_v9 }
 0x546   : > { %4673 = vmatmul.mubr.bf16.vlgmr.msra.gmra.mrb[32].mxu1 %v3702_v4  ;;  %v3727_v4 = vrot.slane %v3725_v14, 4  ;;  %v3805_v53 = vshll.u32 %v3773_v15, 16 }
 0x547   : > { %4680 = vmatprep.mubr.bf16.mxu1 %v12756_v58  ;;  %v3718_v58 = vrot.slane %v3716_v45, 4  ;;  %v3776_v42 = vshrl.u32 %v3770_v1, 16  ;;  %v3793_v40 = vshrl.u32 %v3772_v43, 16  ;;  %v3802_v45 = vshrl.u32 %v3773_v15, 16 }
 0x548   : > { %10072 = vmatpush3.bf16.msra.mxu0 %v11405_v30  ;;  %v3724_v30 = vrot.slane %v3722_v0, 3 }
 0x549   : > { %10073 = vmatprep.subr.bf16.mxu0 %v11406_v10  ;;  %v3719_v54 = vor.u32 %v3718_v58, %v3715_v46  ;;  %v3778_v51 = vrot.slane %v3776_v42, 4  ;;  %v3804_v46 = vrot.slane %v3802_v45, 4  ;;  %v3807_v58 = vrot.slane %v3805_v53, 5  ;;  %v12938_v45 = vld [vmem:[%s13815_s4 + $0x40] sm:$0xff]  ;;  %v12943_v53 = vld [vmem:[%s13815_s4 + $0x48] sm:$0xff] }
 0x54b   : > { %4616 = vmatmul.mubr.bf16.gmra.mrb[28].mxu0 %v12707_v8  ;;  %v3779_v8 = vshll.u32 %v3770_v1, 16  ;;  %v3720_v59 = vsel %vm3235_vm5, %v12848_v62, %v3719_v54  ;;  %v3728_v1 = vor.u32 %v3727_v4, %v3724_v30  ;;  %v3795_v62 = vrot.slane %v3793_v40, 4  ;;  %v12918_v30 = vld [vmem:[%s13815_s4 + $0x30] sm:$0xff]  ;;  %v12923_v4 = vld [vmem:[%s13815_s4 + $0x38] sm:$0xff] }
 0x54c   : > { %10074 = vmatpush3.bf16.msra.mxu0 %v11406_v10  ;;  %4623 = vmatprep.mubr.bf16.mxu0 %v3659_v28  ;;  %v3755_v28 = vrot.slane %v3742_v22, 4  ;;  %v3796_v10 = vshll.u32 %v3772_v43, 16  ;;  %v3808_v42 = vor.u32 %v3807_v58, %v3804_v46  ;;  %v4808_v43 = vld [vmem:[%s13815_s4 + $0x10] sm:$0xff] }
 0x54d   : > { %10075 = vmatprep.subr.bf16.mxu0 %v11407_v16  ;;  %v3781_v27 = vrot.slane %v3779_v8, 5  ;;  %v4829_v61 = vand.u32 4294901760, %v4808_v43 }
 0x54e   : > { %4681 = vmatmul.mubr.bf16.gmra.mrb[36].mxu1 %v3711_v26  ;;  %v3756_v26 = vsel %vm3298_vm6, %v3753_v13, %v3755_v28  ;;  %v3798_v60 = vrot.slane %v3796_v10, 5  ;;  %v4806_v28 = vld [vmem:[%s13815_s4] sm:$0xff] }
 0x54f   : > { %4688 = vmatprep.mubr.bf16.mxu1 %v3754_v34  ;;  %v3782_v19 = vor.u32 %v3781_v27, %v3778_v51  ;;  %v3729_v34 = vsel %vm3235_vm5, %v3719_v54, %v3728_v1  ;;  %v4823_v0 = vand.u32 4294901760, %v4806_v28  ;;  %v4809_v27 = vld [vmem:[%s13815_s4 + $0x18] sm:$0xff] }
 0x550   : > { %10076 = vmatpush3.bf16.msra.mxu0 %v11407_v16  ;;  %v3769_v16 = vld [vmem:[#allocation4 + $0x28] sm:$0x1f]  ;;  %v4832_v15 = vand.u32 4294901760, %v4809_v27 }
 0x551   : > { %10077 = vmatprep.subr.bf16.mxu0 %v11408_v49  ;;  %v3774_v13 = vmul.bf16 %v3769_v16, %v12681_v18  ;;  %v3791_v50 = vsel %vm3189_vm4, %v3782_v19, %v3790_v24  ;;  %v4841_v19 = vand.u32 4294901760, %v12918_v30  ;;  %v12945_v16 = vsub.f32 %v4806_v28, %v4823_v0 }
 0x552   : > { %v12925_v40 = vpack.c.bf16 %v4832_v15, %v4829_v61 }
 0x553   : > { %4624 = vmatmul.mubr.bf16.gmra.mrb[32].mxu0 %v3600_v48  ;;  %v3811_v22 = vshrl.u32 %v3774_v13, 16  ;;  %v3814_v39 = vshll.u32 %v3774_v13, 16  ;;  %v12958_v13 = vld [vmem:[%s13815_s4 + $0x50] sm:$0xff]  ;;  %v13877_v46 = vand.u32 4294901760, %v12945_v16 }
 0x554   : > { %10078 = vmatpush3.bf16.msra.mxu0 %v11408_v49  ;;  %4631 = vmatprep.mubr.bf16.mxu0 %v12853_v32  ;;  %v11411_v32 = vld [vmem:[#allocation5 + $0x238] sm:$0xff]   ;;  %v3799_v49 = vor.u32 %v3798_v60, %v3795_v62  ;;  %v4847_v62 = vand.u32 4294901760, %v12938_v45  ;;  %v4850_v60 = vand.u32 4294901760, %v12943_v53 }
 0x555   : > { %10079 = vmatprep.subr.bf16.mxu0 %v11409_v6  ;;  %v3813_v48 = vrot.slane %v3811_v22, 4  ;;  %v3816_v8 = vrot.slane %v3814_v39, 5  ;;  %v4853_v22 = vand.u32 4294901760, %v12958_v13 }
 0x556   : > { %4689 = vmatmul.mubr.bf16.gmra.mrb[40].mxu1 %v3720_v59  ;;  %v3809_v33 = vsel %vm3189_vm4, %v3799_v49, %v3808_v42  ;;  %v4811_v59 = vld [vmem:[%s13815_s4 + $0x28] sm:$0xff] }
 0x557   : > { %4696 = vmatprep.mubr.bf16.mxu1 %v3756_v26  ;;  %v3817_v37 = vor.u32 %v3816_v8, %v3813_v48  ;;  %v4835_v26 = vand.u32 4294901760, %v4810_v11  ;;  %v12983_v48 = vpack.c.bf16 %v4850_v60, %v4847_v62  ;;  %v12988_v8 = vld [vmem:[%s13815_s4 + $0x60] sm:$0xff] }
 0x558   : > { %10080 = vmatpush3.bf16.msra.mxu0 %v11409_v6  ;;  %v4807_v6 = vld [vmem:[%s13815_s4 + $0x8] sm:$0xff] }
 0x559   : > { %10081 = vmatprep.subr.bf16.mxu0 %v11410_v31  ;;  %v3818_v54 = vsel %vm3189_vm4, %v3808_v42, %v3817_v37  ;;  %v4826_v14 = vand.u32 4294901760, %v4807_v6  ;;  %v4917_v42 = vsub.f32 %v12945_v16, %v13877_v46 }
 0x55b   : > { %4632 = vmatmul.mubr.bf16.gmra.mrb[36].mxu0 %v12857_v38  ;;  %v3800_v38 = vsel %vm3189_vm4, %v3790_v24, %v3799_v49  ;;  %v12897_v51 = vpack.c.bf16 %v4826_v14, %v4823_v0  ;;  %v4844_v24 = vand.u32 4294901760, %v12923_v4  ;;  %v12971_v49 = vsub.f32 %v4809_v27, %v4832_v15 }
 0x55c   : > { %10082 = vmatpush3.bf16.msra.mxu0 %v11410_v31  ;;  %10085 = vmatprep.mubr.bf16.mxu0 %v3791_v50  ;;  %v4838_v31 = vand.u32 4294901760, %v4811_v59  ;;  %v12963_v50 = vld [vmem:[%s13815_s4 + $0x58] sm:$0xff]  ;;  %v4918_v28 = vand.u32 4294901760, %v4917_v42  ;;  %v4859_v15 = vand.u32 4294901760, %v12988_v8 }
 0x55d   : > { %10083 = vmatprep.subr.bf16.mxu0 %v11411_v32  ;;  %10887 = vmatpush3.bf16.msra.mxu1 %v12897_v51  ;;  %v12951_v1 = vpack.c.bf16 %v4844_v24, %v4841_v19  ;;  %v13878_v39 = vand.u32 4294901760, %v12963_v50 }
 0x55e   : > { %4697 = vmatmul.mubr.bf16.gmra.mrb[44].mxu1 %v3729_v34  ;;  %10888 = vmatprep.subr.bf16.mxu1 %v13963_v25  ;;  %v12929_v10 = vpack.c.bf16 %v4838_v31, %v4835_v26  ;;  %v12969_v34 = vsub.f32 %v4808_v43, %v4829_v61  ;;  %v13005_v43 = vsub.f32 %v4810_v11, %v4835_v26  ;;  %v13024_v11 = vld [vmem:[%s13815_s4 + $0x70] sm:$0xff] }
 0x55f   : > { %10125 = vmatprep.mubr.msk.f32.mxu1 %vm11621_vm0, %v13962_v36  ;;  %v13007_v27 = vsub.f32 %v4811_v59, %v4838_v31  ;;  %v13013_v61 = vpack.c.bf16 %v13878_v39, %v4853_v22  ;;  %v13029_v59 = vld [vmem:[%s13815_s4 + $0x78] sm:$0xff]  ;;  %v13049_v39 = vsub.f32 %v12923_v4, %v4844_v24 }
 0x560   : > { %10084 = vmatpush3.bf16.msra.mxu0 %v11411_v32  ;;  %v12947_v32 = vsub.f32 %v4807_v6, %v4826_v14  ;;  %v13875_v37 = vand.u32 4294901760, %v12969_v34  ;;  %v13883_v46 = vand.u32 4294901760, %v13029_v59 }
 0x561   : > { %11029 = vmatprep.subr.bf16.mxu0 %v13963_v25  ;;  %10890 = vmatpush3.bf16.msra.mxu1 %v12925_v40  ;;  %14008 = vst [vmem:[#allocation52_spill] sm:$0xff] %v13049_v39 }
 0x562   : > { %10891 = vmatprep.subr.bf16.mxu1 %v13963_v25  ;;  %v13876_v58 = vand.u32 4294901760, %v12947_v32  ;;  %v4931_v0 = vsub.f32 %v12969_v34, %v13875_v37 }
 0x563   : > { %10086 = vmatmul.mubr.bf16.vlgmr.msra.gmra.mrb[40].mxu0 %v3800_v38 }
 0x564   : > { %10089 = vmatprep.mubr.bf16.mxu0 %v3809_v33  ;;  %11031 = vmatpush3.bf16.msra.mxu0 %v12897_v51  ;;  %v4924_v38 = vsub.f32 %v12947_v32, %v13876_v58  ;;  %v12993_v33 = vld [vmem:[%s13815_s4 + $0x68] sm:$0xff]  ;;  %v4932_v26 = vand.u32 4294901760, %v4931_v0  ;;  %v13044_v0 = vsub.f32 %v12918_v30, %v4841_v19  ;;  %v13881_v19 = vand.u32 4294901760, %v13049_v39 }
 0x565   : > { %11032 = vmatprep.subr.bf16.mxu0 %v13963_v25  ;;  %10893 = vmatpush3.bf16.msra.mxu1 %v12929_v10  ;;  %v13887_v42 = vand.u32 4294901760, %v12993_v33  ;;  %v14015_v2 = vand.u32 4294901760, %v12993_v33 }
 0x566   : > { %10894 = vmatprep.subr.bf16.mxu1 %v13963_v25  ;;  %v4925_v6 = vand.u32 4294901760, %v4924_v38  ;;  %14007 = vst [vmem:[#allocation51_spill] sm:$0xff] %v13044_v0  ;;  %v13882_v30 = vand.u32 4294901760, %v13044_v0 }
 0x567   : > { %v13130_v17 = vsub.f32 %v12993_v33, %v14015_v2  ;;  %v14017_v33 = vand.u32 4294901760, %v13024_v11 }
 0x568   : > { %11034 = vmatpush3.bf16.msra.mxu0 %v12925_v40  ;;  %v13017_v38 = vpack.c.bf16 %v4925_v6, %v4918_v28  ;;  %v13879_v28 = vand.u32 4294901760, %v13007_v27  ;;  %v4959_v24 = vsub.f32 %v13044_v0, %v13882_v30  ;;  %v14012_v30 = vand.u32 4294901760, %v12963_v50 }
 0x569   : > { %11035 = vmatprep.subr.bf16.mxu0 %v13963_v25  ;;  %10896 = vmatpush3.bf16.msra.mxu1 %v12951_v1  ;;  %14016 = vst [vmem:[#allocation58_spill] sm:$0xff] %v13130_v17 }
 0x56a   : > { %10897 = vmatprep.subr.bf16.mxu1 %v13963_v25  ;;  %v4952_v58 = vsub.f32 %v13007_v27, %v13879_v28 }
 0x56b   : > { %10090 = vmatmul.mubr.bf16.gmra.mrb[44].mxu0 %v3818_v54  ;;  %v13874_v54 = vand.u32 4294901760, %v12971_v49 }
 0x56c   : > { %10335 = vmatprep.mubr.msk.f32.mxu0 %vm11621_vm0, %v13962_v36  ;;  %11037 = vmatpush3.bf16.msra.mxu0 %v12929_v10  ;;  %v4953_v28 = vand.u32 4294901760, %v4952_v58  ;;  %v4966_v58 = vsub.f32 %v13049_v39, %v13881_v19 }
 0x56d   : > { %11038 = vmatprep.subr.bf16.mxu0 %v13963_v25  ;;  %v4938_v14 = vsub.f32 %v12971_v49, %v13874_v54  ;;  %10899 = vmatpush3.bf16.msra.mxu1 %v12983_v48  ;;  %v13880_v54 = vand.u32 4294901760, %v13005_v43 }
 0x56e   : > { %10900 = vmatprep.subr.bf16.mxu1 %v13963_v25 }
 0x56f   : > { %v4939_v31 = vand.u32 4294901760, %v4938_v14  ;;  %v4945_v37 = vsub.f32 %v13005_v43, %v13880_v54  ;;  %v13884_v14 = vand.u32 4294901760, %v13024_v11  ;;  %v13067_v54 = vsub.f32 %v12938_v45, %v4847_v62 }
 0x570   : > { %11040 = vmatpush3.bf16.msra.mxu0 %v12951_v1  ;;  %v4967_v62 = vand.u32 4294901760, %v4966_v58 }
 0x571   : > { %11041 = vmatprep.subr.bf16.mxu0 %v13963_v25  ;;  %v13035_v6 = vpack.c.bf16 %v4939_v31, %v4932_v26  ;;  %10902 = vmatpush3.bf16.msra.mxu1 %v13013_v61  ;;  %v13055_v26 = vpack.c.bf16 %v13887_v42, %v4859_v15  ;;  %v4946_v31 = vand.u32 4294901760, %v4945_v37  ;;  %14009 = vst [vmem:[#allocation53_spill] sm:$0xff] %v13067_v54  ;;  %v13885_v45 = vand.u32 4294901760, %v13067_v54 }
 0x572   : > { %10903 = vmatprep.subr.bf16.mxu1 %v13963_v25  ;;  %v13070_v37 = vsub.f32 %v12943_v53, %v4850_v60 }
 0x573   : > { %v13061_v4 = vpack.c.bf16 %v4953_v28, %v4946_v31  ;;  %v13081_v28 = vpack.c.bf16 %v13883_v46, %v13884_v14  ;;  %v4960_v31 = vand.u32 4294901760, %v4959_v24  ;;  %v4973_v60 = vsub.f32 %v13067_v54, %v13885_v45 }
 0x574   : > { %11043 = vmatpush3.bf16.msra.mxu0 %v12983_v48  ;;  %14010 = vst [vmem:[#allocation54_spill] sm:$0xff] %v13070_v37  ;;  %v13886_v53 = vand.u32 4294901760, %v13070_v37  ;;  %v13096_v24 = vsub.f32 %v12958_v13, %v4853_v22  ;;  %v13101_v46 = vsub.f32 %v12963_v50, %v14012_v30  ;;  %v13114_v13 = vld [vmem:[%s13821_s10] ss:$0 sm:$0xff] }
 0x575   : > { %11044 = vmatprep.subr.bf16.mxu0 %v13963_v25  ;;  %10905 = vmatpush3.bf16.msra.mxu1 %v13055_v26  ;;  %v13103_v14 = vpack.c.bf16 %v4967_v62, %v4960_v31  ;;  %v4974_v58 = vand.u32 4294901760, %v4973_v60  ;;  %v13125_v31 = vsub.f32 %v12988_v8, %v4859_v15 }
 0x576   : > { %10906 = vmatprep.subr.bf16.mxu1 %v13963_v25  ;;  %v4980_v19 = vsub.f32 %v13070_v37, %v13886_v53  ;;  %14011 = vst [vmem:[#allocation55_spill] sm:$0xff] %v13096_v24  ;;  %14013 = vst [vmem:[#allocation56_spill] sm:$0xff] %v13101_v46  ;;  %v13896_v53 = vand.u32 4294901760, %v13096_v24  ;;  %v13898_v42 = vand.u32 4294901760, %v13101_v46 }
 0x577   : > { %14014 = vst [vmem:[#allocation57_spill] sm:$0xff] %v13125_v31  ;;  %v13212_v55 = vpack.c.bf16 %v13130_v17, %v13125_v31 }
 0x578   : > { %11046 = vmatpush3.bf16.msra.mxu0 %v13013_v61  ;;  %v4981_v45 = vand.u32 4294901760, %v4980_v19  ;;  %v4987_v30 = vsub.f32 %v13096_v24, %v13896_v53  ;;  %v4994_v19 = vsub.f32 %v13101_v46, %v13898_v42  ;;  %v13901_v53 = vand.u32 4294901760, %v13125_v31 }
 0x579   : > { %11047 = vmatprep.subr.bf16.mxu0 %v13963_v25  ;;  %10908 = vmatpush3.bf16.msra.mxu1 %v13081_v28 }
 0x57a   : > { %10909 = vmatprep.subr.bf16.mxu1 %v13963_v25  ;;  %v13116_v22 = vpack.c.bf16 %v4981_v45, %v4974_v58  ;;  %v4988_v18 = vand.u32 4294901760, %v4987_v30  ;;  %v4995_v23 = vand.u32 4294901760, %v4994_v19  ;;  %v5001_v2 = vsub.f32 %v13125_v31, %v13901_v53 }
 0x57b   : > { %v13143_v30 = vsub.f32 %v13024_v11, %v14017_v33  ;;  %v14019_v19 = vand.u32 4294901760, %v13029_v59 }
 0x57c   : > { %11049 = vmatpush3.bf16.msra.mxu0 %v13055_v26 }
 0x57d   : > { %11050 = vmatprep.subr.bf16.mxu0 %v13963_v25  ;;  %14018 = vst [vmem:[#allocation59_spill] sm:$0xff] %v13143_v30 }
 0x580   : > { %11052 = vmatpush3.bf16.msra.mxu0 %v13081_v28 }
 0x581   : > { %11053 = vmatprep.subr.bf16.mxu0 %v13963_v25 }
 0x5f6   : > { %v9003_v29 = vpop.f32.mrb[8].mxu0 }
 0x5f7   : > { %v9004_v50 = vpop.f32.mrb[9].mxu0 }
 0x5f8   : > { %v9005_v62 = vadd.f32 %v9004_v50, %v9003_v29  ;;  %v9006_v56 = vpop.f32.mrb[10].mxu0  ;;  %v13903_v29 = vand.u32 4294901760, %v13130_v17  ;;  %v13135_v50 = vpack.c.bf16 %v4995_v23, %v4988_v18 }
 0x5f9   : > { %v9043_v60 = vpop.f32.mrb[16].mxu1  ;;  %v9007_v58 = vpop.f32.mrb[11].mxu0 }
 0x5fa   : > { %v9044_v45 = vpop.f32.mrb[17].mxu1  ;;  %v4480_v63 = vadd.f32 %v9005_v62, %v13114_v13  ;;  %v9008_v41 = vadd.f32 %v9007_v58, %v9006_v56  ;;  %v13148_v62 = vsub.f32 %v13029_v59, %v14019_v19  ;;  %v5008_v18 = vsub.f32 %v13130_v17, %v13903_v29 }
 0x5fb   : > { %v9045_v42 = vadd.f32 %v9044_v45, %v9043_v60  ;;  %v9046_v8 = vpop.f32.mrb[18].mxu1  ;;  %v5002_v45 = vand.u32 4294901760, %v5001_v2  ;;  %v13906_v58 = vand.u32 4294901760, %v13143_v30  ;;  %v13170_v19 = vpack.c.bf16 %v12947_v32, %v12945_v16 }
 0x5fc   : > { %v9047_v15 = vpop.f32.mrb[19].mxu1  ;;  %14020 = vst [vmem:[#allocation60_spill] sm:$0xff] %v13148_v62  ;;  %v4483_v60 = vadd.f32 %v9008_v41, %v13114_v13  ;;  %v13912_v11 = vand.u32 4294901760, %v13148_v62  ;;  %v5009_v7 = vand.u32 4294901760, %v5008_v18 }
 0x5fd   : > { %v13150_v56 = vadd.f32 %v9045_v42, %v4480_v63  ;;  %v9048_v23 = vadd.f32 %v9047_v15, %v9046_v8  ;;  %v5015_v63 = vsub.f32 %v13143_v30, %v13906_v58 }
 0x5fe   : > { %v9009_v53 = vpop.f32.mrb[12].mxu0  ;;  %v5022_v41 = vsub.f32 %v13148_v62, %v13912_v11  ;;  %v13166_v2 = vpack.c.bf16 %v5009_v7, %v5002_v45  ;;  %v13177_v7 = vpack.c.bf16 %v12971_v49, %v12969_v34 }
 0x5ff   : > { %v13158_v33 = vadd.f32 %v9048_v23, %v4483_v60  ;;  %v9010_v59 = vpop.f32.mrb[13].mxu0  ;;  %v5016_v18 = vand.u32 4294901760, %v5015_v63 }
 0x600   : > { %v9011_v42 = vadd.f32 %v9010_v59, %v9009_v53  ;;  %v9012_v15 = vpop.f32.mrb[14].mxu0  ;;  %v5023_v29 = vand.u32 4294901760, %v5022_v41 }
 0x601   : > { %v9049_v8 = vpop.f32.mrb[20].mxu1  ;;  %v9013_v23 = vpop.f32.mrb[15].mxu0 }
 0x602   : > { %v9050_v60 = vpop.f32.mrb[21].mxu1  ;;  %v4488_v3 = vadd.f32 %v9011_v42, %v13114_v13  ;;  %v9014_v44 = vadd.f32 %v9013_v23, %v9012_v15  ;;  %v13173_v11 = vpack.c.bf16 %v5023_v29, %v5016_v18  ;;  %v13186_v42 = vpack.c.bf16 %v13007_v27, %v13005_v43 }
 0x603   : > { %v9051_v58 = vadd.f32 %v9050_v60, %v9049_v8  ;;  %v9052_v9 = vpop.f32.mrb[22].mxu1 }
 0x604   : > { %v9053_v47 = vpop.f32.mrb[23].mxu1  ;;  %v4491_v45 = vadd.f32 %v9014_v44, %v13114_v13 }
 0x605   : > { %v13179_v53 = vadd.f32 %v9051_v58, %v4488_v3  ;;  %v9054_v59 = vadd.f32 %v9053_v47, %v9052_v9  ;;  %v13191_v47 = vpack.c.bf16 %v13049_v39, %v13044_v0 }
 0x606   : > { %v9015_v63 = vpop.f32.mrb[16].mxu0 }
 0x607   : > { %v13182_v21 = vadd.f32 %v9054_v59, %v4491_v45  ;;  %v9016_v41 = vpop.f32.mrb[17].mxu0 }
 0x608   : > { %v9017_v8 = vadd.f32 %v9016_v41, %v9015_v63  ;;  %v9018_v15 = vpop.f32.mrb[18].mxu0 }
 0x609   : > { %v9055_v29 = vpop.f32.mrb[24].mxu1  ;;  %v9019_v23 = vpop.f32.mrb[19].mxu0 }
 0x60a   : > { %v9056_v60 = vpop.f32.mrb[25].mxu1  ;;  %v4496_v18 = vadd.f32 %v9017_v8, %v13114_v13  ;;  %v9020_v58 = vadd.f32 %v9019_v23, %v9018_v15  ;;  %v13200_v8 = vpack.c.bf16 %v13070_v37, %v13067_v54 }
 0x60b   : > { %v9057_v3 = vadd.f32 %v9056_v60, %v9055_v29  ;;  %v9058_v35 = vpop.f32.mrb[26].mxu1 }
 0x60c   : > { %v9059_v44 = vpop.f32.mrb[27].mxu1  ;;  %v4499_v45 = vadd.f32 %v9020_v58, %v13114_v13 }
 0x60d   : > { %v13193_v9 = vadd.f32 %v9057_v3, %v4496_v18  ;;  %v9060_v59 = vadd.f32 %v9059_v44, %v9058_v35  ;;  %v13205_v35 = vpack.c.bf16 %v13101_v46, %v13096_v24 }
 0x60e   : > { %v9021_v41 = vpop.f32.mrb[20].mxu0 }
 0x60f   : > { %v13196_v63 = vadd.f32 %v9060_v59, %v4499_v45  ;;  %v9022_v5 = vpop.f32.mrb[21].mxu0 }
 0x610   : > { %v9023_v29 = vadd.f32 %v9022_v5, %v9021_v41  ;;  %v9024_v60 = vpop.f32.mrb[22].mxu0 }
 0x611   : > { %v9061_v15 = vpop.f32.mrb[28].mxu1  ;;  %v9025_v20 = vpop.f32.mrb[23].mxu0 }
 0x612   : > { %v9062_v23 = vpop.f32.mrb[29].mxu1  ;;  %v4504_v52 = vadd.f32 %v9023_v29, %v13114_v13  ;;  %v9026_v3 = vadd.f32 %v9025_v20, %v9024_v60 }
 0x613   : > { %v9063_v18 = vadd.f32 %v9062_v23, %v9061_v15  ;;  %v9064_v12 = vpop.f32.mrb[30].mxu1 }
 0x614   : > { %v9065_v58 = vpop.f32.mrb[31].mxu1  ;;  %v4507_v45 = vadd.f32 %v9026_v3, %v13114_v13 }
 0x615   : > { %v4569_v44 = vadd.f32 %v9063_v18, %v4504_v52  ;;  %v9066_v59 = vadd.f32 %v9065_v58, %v9064_v12  ;;  %v13217_v12 = vpack.c.bf16 %v13148_v62, %v13143_v30 }
 0x616   : > { %v9083_v5 = vpop.f32.mrb[24].mxu0 }
 0x617   : > { %v13208_v57 = vadd.f32 %v9066_v59, %v4507_v45  ;;  %v9084_v41 = vpop.f32.mrb[25].mxu0 }
 0x618   : > { %v9085_v29 = vadd.f32 %v9084_v41, %v9083_v5  ;;  %v9086_v15 = vpop.f32.mrb[26].mxu0 }
 0x619   : > { %v9123_v20 = vpop.f32.mrb[32].mxu1  ;;  %v9087_v23 = vpop.f32.mrb[27].mxu0 }
 0x61a   : > { %v9124_v60 = vpop.f32.mrb[33].mxu1  ;;  %v4610_v46 = vadd.f32 %v9085_v29, %v13150_v56  ;;  %v9088_v52 = vadd.f32 %v9087_v23, %v9086_v15 }
 0x61b   : > { %v9125_v24 = vadd.f32 %v9124_v60, %v9123_v20  ;;  %v9126_v18 = vpop.f32.mrb[34].mxu1 }
 0x61c   : > { %v9127_v13 = vpop.f32.mrb[35].mxu1  ;;  %v4613_v3 = vadd.f32 %v9088_v52, %v13158_v33 }
 0x61d   : > { %v9128_v58 = vadd.f32 %v9127_v13, %v9126_v18  ;;  %v4675_v45 = vadd.f32 %v9125_v24, %v4610_v46 }
 0x61e   : > { %v9089_v59 = vpop.f32.mrb[28].mxu0 }
 0x61f   : > { %v4678_v5 = vadd.f32 %v9128_v58, %v4613_v3  ;;  %v9090_v41 = vpop.f32.mrb[29].mxu0 }
 0x620   : > { %v9091_v17 = vadd.f32 %v9090_v41, %v9089_v59  ;;  %v9092_v37 = vpop.f32.mrb[30].mxu0 }
 0x621   : > { %v9129_v31 = vpop.f32.mrb[36].mxu1  ;;  %v9093_v56 = vpop.f32.mrb[31].mxu0 }
 0x622   : > { %v9130_v54 = vpop.f32.mrb[37].mxu1  ;;  %v4618_v29 = vadd.f32 %v9091_v17, %v13179_v53  ;;  %v9094_v15 = vadd.f32 %v9093_v56, %v9092_v37 }
 0x623   : > { %v9131_v20 = vadd.f32 %v9130_v54, %v9129_v31  ;;  %v9132_v60 = vpop.f32.mrb[38].mxu1 }
 0x624   : > { %v9133_v23 = vpop.f32.mrb[39].mxu1  ;;  %v4621_v62 = vadd.f32 %v9094_v15, %v13182_v21 }
 0x625   : > { %v9134_v30 = vadd.f32 %v9133_v23, %v9132_v60  ;;  %v4683_v33 = vadd.f32 %v9131_v20, %v4618_v29 }
 0x626   : > { %v9095_v52 = vpop.f32.mrb[32].mxu0 }
 0x627   : > { %v4686_v46 = vadd.f32 %v9134_v30, %v4621_v62  ;;  %v9096_v24 = vpop.f32.mrb[33].mxu0 }
 0x628   : > { %v9097_v18 = vadd.f32 %v9096_v24, %v9095_v52  ;;  %v9098_v3 = vpop.f32.mrb[34].mxu0 }
 0x629   : > { %v9135_v13 = vpop.f32.mrb[40].mxu1  ;;  %v9099_v59 = vpop.f32.mrb[35].mxu0 }
 0x62a   : > { %v9136_v58 = vpop.f32.mrb[41].mxu1  ;;  %v4626_v41 = vadd.f32 %v9097_v18, %v13193_v9  ;;  %v9100_v17 = vadd.f32 %v9099_v59, %v9098_v3 }
 0x62b   : > { %v9137_v39 = vadd.f32 %v9136_v58, %v9135_v13  ;;  %v9138_v54 = vpop.f32.mrb[42].mxu1 }
 0x62c   : > { %v9139_v37 = vpop.f32.mrb[43].mxu1  ;;  %v4629_v31 = vadd.f32 %v9100_v17, %v13196_v63 }
 0x62d   : > { %v9140_v53 = vadd.f32 %v9139_v37, %v9138_v54  ;;  %v4691_v21 = vadd.f32 %v9137_v39, %v4626_v41 }
 0x62e   : > { %v9101_v56 = vpop.f32.mrb[36].mxu0 }
 0x62f   : > { %v4694_v29 = vadd.f32 %v9140_v53, %v4629_v31  ;;  %v9102_v20 = vpop.f32.mrb[37].mxu0 }
 0x630   : > { %v9103_v30 = vadd.f32 %v9102_v20, %v9101_v56  ;;  %v9104_v15 = vpop.f32.mrb[38].mxu0 }
 0x631   : > { %v9141_v62 = vpop.f32.mrb[44].mxu1  ;;  %v9105_v23 = vpop.f32.mrb[39].mxu0 }
 0x632   : > { %v9142_v60 = vpop.f32.mrb[45].mxu1  ;;  %v4634_v52 = vadd.f32 %v9103_v30, %v4569_v44  ;;  %v9106_v0 = vadd.f32 %v9105_v23, %v9104_v15 }
 0x633   : > { %v9143_v24 = vadd.f32 %v9142_v60, %v9141_v62  ;;  %v9144_v9 = vpop.f32.mrb[46].mxu1 }
 0x634   : > { %v9145_v18 = vpop.f32.mrb[47].mxu1  ;;  %v4637_v13 = vadd.f32 %v9106_v0, %v13208_v57 }
 0x635   : > { %v9146_v3 = vadd.f32 %v9145_v18, %v9144_v9  ;;  %v4699_v58 = vadd.f32 %v9143_v24, %v4634_v52 }
 0x636   : > { %v10087_v63 = vpop.f32.mrb[40].mxu0 }
 0x637   : > { %v4702_v59 = vadd.f32 %v9146_v3, %v4637_v13  ;;  %v13225_v39 = vadd.f32 %v10087_v63, %v4683_v33  ;;  %v4739_v41 = vpop.f32.mrb[41].mxu0 }
 0x638   : > { %v13227_v17 = vadd.f32 %v4739_v41, %v4675_v45  ;;  %v10088_v54 = vpop.f32.mrb[42].mxu0 }
 0x639   : > { %v13229_v37 = vadd.f32 %v10088_v54, %v4686_v46  ;;  %v4742_v31 = vpop.f32.mrb[43].mxu0  ;;  %v4787_v33 = vmul.f32 %v13225_v39, %v13225_v39 }
 0x63a   : > { %v13231_v44 = vadd.f32 %v4742_v31, %v4678_v5  ;;  %v4785_v53 = vmul.f32 %v13227_v17, %v13227_v17 }
 0x63b   : > { %v4788_v30 = vmul.f32 %v13229_v37, %v13229_v37 }
 0x63c   : > { %v4772_v57 = vadd.f32 %v13231_v44, %v13227_v17  ;;  %v4786_v0 = vmul.f32 %v13231_v44, %v13231_v44 }
 0x63e   : > { %v4773_v45 = vadd.f32 %v4772_v57, %v13225_v39  ;;  %v4793_v56 = vadd.f32 %v4786_v0, %v4785_v53  ;;  %v10091_v46 = vpop.f32.mrb[44].mxu0 }
 0x63f   : > { %v13242_v20 = vadd.f32 %v10091_v46, %v4699_v58  ;;  %v4755_v5 = vpop.f32.mrb[45].mxu0 }
 0x640   : > { %v4794_v62 = vadd.f32 %v4793_v56, %v4787_v33  ;;  %v13246_v15 = vadd.f32 %v4755_v5, %v4691_v21  ;;  %v4774_v60 = vadd.f32 %v4773_v45, %v13229_v37  ;;  %v10092_v23 = vpop.f32.mrb[46].mxu0 }
 0x641   : > { %v13249_v52 = vadd.f32 %v10092_v23, %v4702_v59  ;;  %v4758_v24 = vpop.f32.mrb[47].mxu0  ;;  %v4791_v41 = vmul.f32 %v13242_v20, %v13242_v20 }
 0x642   : > { %v4775_v9 = vadd.f32 %v4774_v60, %v13246_v15  ;;  %v4789_v18 = vmul.f32 %v13246_v15, %v13246_v15  ;;  %v4795_v13 = vadd.f32 %v4794_v62, %v4788_v30  ;;  %v13254_v3 = vadd.f32 %v4758_v24, %v4694_v29 }
 0x643   : > { %v4792_v31 = vmul.f32 %v13249_v52, %v13249_v52 }
 0x644   : > { %v4796_v58 = vadd.f32 %v4795_v13, %v4789_v18  ;;  %v4776_v63 = vadd.f32 %v4775_v9, %v13254_v3  ;;  %v4790_v21 = vmul.f32 %v13254_v3, %v13254_v3 }
 0x646   : > { %v4777_v59 = vadd.f32 %v4776_v63, %v13242_v20  ;;  %v4797_v54 = vadd.f32 %v4796_v58, %v4790_v21 }
 0x648   : > { %v4778_v53 = vadd.f32 %v4777_v59, %v13249_v52  ;;  %v4798_v57 = vadd.f32 %v4797_v54, %v4791_v41 }
 0x64a   : > { %v4779_v29 = vrot.slane %v4778_v53, 4  ;;  %v4799_v0 = vadd.f32 %v4798_v57, %v4792_v31 }
 0x64c   : > { %v4780_v33 = vadd.f32 %v4779_v29, %v4778_v53  ;;  %v4800_v45 = vrot.slane %v4799_v0, 4 }
 0x64e   : > { %v4781_v56 = vrot.slane %v4780_v33, 2  ;;  %v4801_v46 = vadd.f32 %v4800_v45, %v4799_v0  ;;  %v14039_v0 = vld [vmem:[#allocation57_spill] sm:$0xff]  ;;  %v14041_v45 = vld [vmem:[#allocation58_spill] sm:$0xff] }
 0x650   : > { %v4782_v5 = vadd.f32 %v4781_v56, %v4780_v33  ;;  %v4802_v30 = vrot.slane %v4801_v46, 2  ;;  %v14040_v33 = vand.u32 4294901760, %v14039_v0  ;;  %v14042_v56 = vand.u32 4294901760, %v14041_v45  ;;  %v11423_v0 = vld [vmem:[#allocation8 + $0x90] sm:$0xff]   ;;  %v11426_v45 = vld [vmem:[#allocation8 + $0xd8] sm:$0xff]  }
 0x652   : > { %v4783_v62 = vrot.slane %v4782_v5, 1  ;;  %v4803_v60 = vadd.f32 %v4802_v30, %v4801_v46  ;;  %v11000_v46 = vpack.c.bf16 %v14042_v56, %v14040_v33  ;;  %v11425_v33 = vld [vmem:[#allocation8 + $0x18] sm:$0xff]   ;;  %v11428_v56 = vld [vmem:[#allocation8 + $0x60] sm:$0xff]  }
 0x654   : > { %v4784_v23 = vadd.f32 %v4783_v62, %v4782_v5  ;;  %v4804_v24 = vrot.slane %v4803_v60, 1  ;;  %v14043_v5 = vld [vmem:[#allocation59_spill] sm:$0xff]  ;;  %v14045_v62 = vld [vmem:[#allocation60_spill] sm:$0xff] }
 0x655   : > { %v14044_v30 = vand.u32 4294901760, %v14043_v5  ;;  %v11429_v5 = vld [vmem:[#allocation8 + $0x20] sm:$0xff]  }
 0x656   : > { %v4805_v9 = vadd.f32 %v4804_v24, %v4803_v60  ;;  %v13265_v18 = vand.u32 4294901760, %v4784_v23  ;;  %v14046_v60 = vand.u32 4294901760, %v14045_v62  ;;  %v11432_v62 = vld [vmem:[#allocation8 + $0x68] sm:$0xff]  }
 0x658   : > { %v13267_v13 = vand.u32 4294901760, %v4805_v9  ;;  %v13270_v58 = vsub.f32 %v4784_v23, %v13265_v18  ;;  %v11003_v23 = vpack.c.bf16 %v14046_v60, %v14044_v30  ;;  %v11430_v30 = vld [vmem:[#allocation8 + $0xe0] sm:$0xff]  }
 0x659   : > { %v11431_v60 = vld [vmem:[#allocation8 + $0xa0] sm:$0xff]  }
 0x65a   : > { %v4905_v63 = vand.u32 4294901760, %v13270_v58  ;;  %v13274_v21 = vsub.f32 %v4805_v9, %v13267_v13 }
 0x65c   : > { %v4906_v41 = vsub.f32 %v13270_v58, %v4905_v63  ;;  %v5546_v59 = vand.u32 4294901760, %v13274_v21 }
 0x65e   : > { %v4907_v54 = vand.u32 4294901760, %v4906_v41  ;;  %v5547_v31 = vsub.f32 %v13274_v21, %v5546_v59 }
 0x660   : > { %10126 = vmatmul.mubr.f32.vlgmr.msra.gmra.mrb[14].mxu1 %v4907_v54  ;;  %v5548_v53 = vand.u32 4294901760, %v5547_v31 }
 0x661   : > { %10911 = vmatpush3.bf16.msra.mxu1 %v13017_v38  ;;  %10160 = vmatprep.mubr.msk.f32.mxu1 %vm11621_vm0, %v13962_v36 }
 0x662   : > { %10336 = vmatmul.mubr.f32.vlgmr.msra.gmra.mrb[6].mxu0 %v5548_v53  ;;  %10912 = vmatprep.subr.bf16.mxu1 %v13963_v25 }
 0x663   : > { %11055 = vmatpush3.bf16.msra.mxu0 %v13017_v38  ;;  %10370 = vmatprep.mubr.msk.f32.mxu0 %vm11621_vm0, %v13962_v36  ;;  %v14022_v38 = vand.u32 4294901760, %v12947_v32  ;;  %v14026_v32 = vand.u32 4294901760, %v13007_v27 }
 0x664   : > { %11056 = vmatprep.subr.bf16.mxu0 %v13963_v25 }
 0x665   : > { %10914 = vmatpush3.bf16.msra.mxu1 %v13035_v6 }
 0x666   : > { %10915 = vmatprep.subr.bf16.mxu1 %v13963_v25 }
 0x667   : > { %11058 = vmatpush3.bf16.msra.mxu0 %v13035_v6 }
 0x668   : > { %11059 = vmatprep.subr.bf16.mxu0 %v13963_v25 }
 0x669   : > { %10917 = vmatpush3.bf16.msra.mxu1 %v13061_v4 }
 0x66a   : > { %10918 = vmatprep.subr.bf16.mxu1 %v13963_v25 }
 0x66b   : > { %11061 = vmatpush3.bf16.msra.mxu0 %v13061_v4  ;;  %v14024_v4 = vand.u32 4294901760, %v12971_v49  ;;  %v14027_v49 = vld [vmem:[#allocation51_spill] sm:$0xff] }
 0x66c   : > { %11062 = vmatprep.subr.bf16.mxu0 %v13963_v25 }
 0x66d   : > { %10920 = vmatpush3.bf16.msra.mxu1 %v13103_v14 }
 0x66e   : > { %10921 = vmatprep.subr.bf16.mxu1 %v13963_v25 }
 0x66f   : > { %11064 = vmatpush3.bf16.msra.mxu0 %v13103_v14  ;;  %v14023_v14 = vand.u32 4294901760, %v12969_v34 }
 0x670   : > { %11065 = vmatprep.subr.bf16.mxu0 %v13963_v25 }
 0x671   : > { %10923 = vmatpush3.bf16.msra.mxu1 %v13116_v22 }
 0x672   : > { %10924 = vmatprep.subr.bf16.mxu1 %v13963_v25 }
 0x673   : > { %11067 = vmatpush3.bf16.msra.mxu0 %v13116_v22  ;;  %v10985_v22 = vpack.c.bf16 %v14024_v4, %v14023_v14 }
 0x674   : > { %11068 = vmatprep.subr.bf16.mxu0 %v13963_v25 }
 0x675   : > { %10926 = vmatpush3.bf16.msra.mxu1 %v13135_v50 }
 0x676   : > { %10927 = vmatprep.subr.bf16.mxu1 %v13963_v25 }
 0x677   : > { %11070 = vmatpush3.bf16.msra.mxu0 %v13135_v50  ;;  %v14028_v50 = vand.u32 4294901760, %v14027_v49 }
 0x678   : > { %11071 = vmatprep.subr.bf16.mxu0 %v13963_v25 }
 0x679   : > { %10929 = vmatpush3.bf16.msra.mxu1 %v13166_v2 }
 0x67a   : > { %10930 = vmatprep.subr.bf16.mxu1 %v13963_v25 }
 0x67b   : > { %11073 = vmatpush3.bf16.msra.mxu0 %v13166_v2 }
 0x67c   : > { %11074 = vmatprep.subr.bf16.mxu0 %v13963_v25 }
 0x67d   : > { %10932 = vmatpush3.bf16.msra.mxu1 %v13173_v11 }
 0x67e   : > { %10933 = vmatprep.subr.bf16.mxu1 %v13963_v25 }
 0x67f   : > { %11076 = vmatpush3.bf16.msra.mxu0 %v13173_v11  ;;  %v14029_v11 = vld [vmem:[#allocation52_spill] sm:$0xff] }
 0x680   : > { %10161 = vmatmul.mubr.f32.vlgmr.msra.gmra.mrb[14].mxu1 %v13265_v18  ;;  %11077 = vmatprep.subr.bf16.mxu0 %v13963_v25  ;;  %v14030_v2 = vand.u32 4294901760, %v14029_v11 }
 0x681   : > { %10935 = vmatpush3.bf16.msra.mxu1 %v13170_v19  ;;  %10195 = vmatprep.mubr.msk.f32.mxu1 %vm11621_vm0, %v13962_v36 }
 0x682   : > { %10371 = vmatmul.mubr.f32.vlgmr.msra.gmra.mrb[6].mxu0 %v13267_v13  ;;  %10936 = vmatprep.subr.bf16.mxu1 %v13963_v25 }
 0x683   : > { %11079 = vmatpush3.bf16.msra.mxu0 %v13170_v19  ;;  %10405 = vmatprep.mubr.msk.f32.mxu0 %vm11621_vm0, %v13962_v36  ;;  %v10991_v19 = vpack.c.bf16 %v14030_v2, %v14028_v50 }
 0x684   : > { %11080 = vmatprep.subr.bf16.mxu0 %v13963_v25 }
 0x685   : > { %10938 = vmatpush3.bf16.msra.mxu1 %v13177_v7 }
 0x686   : > { %10939 = vmatprep.subr.bf16.mxu1 %v13963_v25 }
 0x687   : > { %11082 = vmatpush3.bf16.msra.mxu0 %v13177_v7  ;;  %v14033_v7 = vld [vmem:[#allocation54_spill] sm:$0xff] }
 0x688   : > { %11083 = vmatprep.subr.bf16.mxu0 %v13963_v25 }
 0x689   : > { %10941 = vmatpush3.bf16.msra.mxu1 %v13186_v42 }
 0x68a   : > { %10942 = vmatprep.subr.bf16.mxu1 %v13963_v25 }
 0x68b   : > { %11085 = vmatpush3.bf16.msra.mxu0 %v13186_v42  ;;  %v14034_v42 = vand.u32 4294901760, %v14033_v7  ;;  %v11415_v7 = vld [vmem:[#allocation8 + $0x80] sm:$0xff]  }
 0x68c   : > { %11086 = vmatprep.subr.bf16.mxu0 %v13963_v25 }
 0x68d   : > { %10944 = vmatpush3.bf16.msra.mxu1 %v13191_v47 }
 0x68e   : > { %10945 = vmatprep.subr.bf16.mxu1 %v13963_v25 }
 0x68f   : > { %11088 = vmatpush3.bf16.msra.mxu0 %v13191_v47 }
 0x690   : > { %11089 = vmatprep.subr.bf16.mxu0 %v13963_v25 }
 0x691   : > { %10947 = vmatpush3.bf16.msra.mxu1 %v13200_v8 }
 0x692   : > { %10948 = vmatprep.subr.bf16.mxu1 %v13963_v25 }
 0x693   : > { %11091 = vmatpush3.bf16.msra.mxu0 %v13200_v8  ;;  %v14035_v8 = vld [vmem:[#allocation55_spill] sm:$0xff] }
 0x694   : > { %11092 = vmatprep.subr.bf16.mxu0 %v13963_v25 }
 0x695   : > { %10950 = vmatpush3.bf16.msra.mxu1 %v13205_v35 }
 0x696   : > { %10951 = vmatprep.subr.bf16.mxu1 %v13963_v25 }
 0x697   : > { %11094 = vmatpush3.bf16.msra.mxu0 %v13205_v35  ;;  %v14036_v35 = vand.u32 4294901760, %v14035_v8  ;;  %v11418_v8 = vld [vmem:[#allocation8 + $0xc8] sm:$0xff]  }
 0x698   : > { %11095 = vmatprep.subr.bf16.mxu0 %v13963_v25 }
 0x699   : > { %10953 = vmatpush3.bf16.msra.mxu1 %v13212_v55 }
 0x69a   : > { %10954 = vmatprep.subr.bf16.mxu1 %v13963_v25 }
 0x69b   : > { %11097 = vmatpush3.bf16.msra.mxu0 %v13212_v55  ;;  %v14021_v55 = vand.u32 4294901760, %v12945_v16  ;;  %v14025_v16 = vand.u32 4294901760, %v13005_v43  ;;  %v14031_v43 = vld [vmem:[#allocation53_spill] sm:$0xff] }
 0x69c   : > { %11098 = vmatprep.subr.bf16.mxu0 %v13963_v25  ;;  %v14032_v27 = vand.u32 4294901760, %v14031_v43  ;;  %v11413_v43 = vld [vmem:[#allocation8] sm:$0xff]  }
 0x69d   : > { %10956 = vmatpush3.bf16.msra.mxu1 %v13217_v12  ;;  %v10982_v6 = vpack.c.bf16 %v14022_v38, %v14021_v55  ;;  %v10988_v34 = vpack.c.bf16 %v14026_v32, %v14025_v16 }
 0x69e   : > { %10957 = vmatprep.subr.bf16.mxu1 %v13963_v25  ;;  %v10994_v47 = vpack.c.bf16 %v14034_v42, %v14032_v27  ;;  %v11414_v27 = vld [vmem:[#allocation8 + $0xc0] sm:$0xff]   ;;  %v11416_v42 = vld [vmem:[#allocation8 + $0x48] sm:$0xff]  }
 0x69f   : > { %11100 = vmatpush3.bf16.msra.mxu0 %v13217_v12  ;;  %v14037_v12 = vld [vmem:[#allocation56_spill] sm:$0xff] }
 0x6a0   : > { %10196 = vmatmul.mubr.f32.vlgmr.msra.gmra.mrb[14].mxu1 %v13270_v58  ;;  %11101 = vmatprep.subr.bf16.mxu0 %v13963_v25  ;;  %v14038_v57 = vand.u32 4294901760, %v14037_v12  ;;  %v11419_v12 = vld [vmem:[#allocation8 + $0x88] sm:$0xff]  }
 0x6a1   : > { %10959 = vmatpush3.bf16.msra.mxu1 %v12897_v51  ;;  %10230 = vmatprep.mubr.msk.f32.mxu1 %vm11621_vm0, %v13962_v36 }
 0x6a2   : > { %10406 = vmatmul.mubr.f32.vlgmr.msra.gmra.mrb[6].mxu0 %v13274_v21  ;;  %10960 = vmatprep.subr.bf16.mxu1 %v13963_v25  ;;  %v10997_v29 = vpack.c.bf16 %v14038_v57, %v14036_v35  ;;  %v14047_v21 = vld [vmem:[#allocation30_spill] sm:$0xff]  ;;  %v11420_v35 = vld [vmem:[#allocation8 + $0x50] sm:$0xff]  }
 0x6a3   : > { %11103 = vmatpush3.bf16.msra.mxu0 %v12897_v51  ;;  %10440 = vmatprep.mubr.msk.f32.mxu0 %vm11621_vm0, %v13962_v36  ;;  %v11421_v57 = vld [vmem:[#allocation8 + $0x10] sm:$0xff]  }
 0x6a4   : > { %11104 = vmatprep.subr.bf16.mxu0 %v13963_v25 }
 0x6a5   : > { %10962 = vmatpush3.bf16.msra.mxu1 %v12925_v40 }
 0x6a6   : > { %10963 = vmatprep.subr.bf16.mxu1 %v13963_v25 }
 0x6a7   : > { %11106 = vmatpush3.bf16.msra.mxu0 %v12925_v40 }
 0x6a8   : > { %11107 = vmatprep.subr.bf16.mxu0 %v13963_v25 }
 0x6a9   : > { %10965 = vmatpush3.bf16.msra.mxu1 %v12929_v10 }
 0x6aa   : > { %10966 = vmatprep.subr.bf16.mxu1 %v13963_v25 }
 0x6ab   : > { %11109 = vmatpush3.bf16.msra.mxu0 %v12929_v10 }
 0x6ac   : > { %11110 = vmatprep.subr.bf16.mxu0 %v13963_v25 }
 0x6ad   : > { %10968 = vmatpush3.bf16.msra.mxu1 %v12951_v1 }
 0x6ae   : > { %10969 = vmatprep.subr.bf16.mxu1 %v13963_v25 }
 0x6af   : > { %11112 = vmatpush3.bf16.msra.mxu0 %v12951_v1 }
 0x6b0   : > { %11113 = vmatprep.subr.bf16.mxu0 %v13963_v25 }
 0x6b1   : > { %10971 = vmatpush3.bf16.msra.mxu1 %v12983_v48 }
 0x6b2   : > { %10972 = vmatprep.subr.bf16.mxu1 %v13963_v25 }
 0x6b3   : > { %11115 = vmatpush3.bf16.msra.mxu0 %v12983_v48 }
 0x6b4   : > { %11116 = vmatprep.subr.bf16.mxu0 %v13963_v25 }
 0x6b5   : > { %10974 = vmatpush3.bf16.msra.mxu1 %v13013_v61 }
 0x6b6   : > { %10975 = vmatprep.subr.bf16.mxu1 %v13963_v25 }
 0x6b7   : > { %11118 = vmatpush3.bf16.msra.mxu0 %v13013_v61 }
 0x6b8   : > { %11119 = vmatprep.subr.bf16.mxu0 %v13963_v25 }
 0x6b9   : > { %10977 = vmatpush3.bf16.msra.mxu1 %v13055_v26 }
 0x6ba   : > { %10978 = vmatprep.subr.bf16.mxu1 %v13963_v25 }
 0x6bb   : > { %11121 = vmatpush3.bf16.msra.mxu0 %v13055_v26 }
 0x6bc   : > { %11122 = vmatprep.subr.bf16.mxu0 %v13963_v25 }
 0x6bd   : > { %10980 = vmatpush3.bf16.msra.mxu1 %v13081_v28 }
 0x6be   : > { %10981 = vmatprep.subr.bf16.mxu1 %v13963_v25 }
 0x6bf   : > { %11124 = vmatpush3.bf16.msra.mxu0 %v13081_v28 }
 0x6c0   : > { %10231 = vmatmul.mubr.f32.vlgmr.msra.gmra.mrb[14].mxu1 %v4905_v63  ;;  %11125 = vmatprep.subr.bf16.mxu0 %v13963_v25 }
 0x6c1   : > { %10983 = vmatpush3.bf16.msra.mxu1 %v10982_v6  ;;  %10265 = vmatprep.mubr.msk.f32.mxu1 %vm11621_vm0, %v13962_v36 }
 0x6c2   : > { %10441 = vmatmul.mubr.f32.vlgmr.msra.gmra.mrb[6].mxu0 %v5546_v59  ;;  %10984 = vmatprep.subr.bf16.mxu1 %v13963_v25 }
 0x6c3   : > { %11127 = vmatpush3.bf16.msra.mxu0 %v10982_v6  ;;  %10475 = vmatprep.mubr.msk.f32.mxu0 %vm11621_vm0, %v13962_v36 }
 0x6c4   : > { %11128 = vmatprep.subr.bf16.mxu0 %v13963_v25 }
 0x6c5   : > { %10986 = vmatpush3.bf16.msra.mxu1 %v10985_v22 }
 0x6c6   : > { %10987 = vmatprep.subr.bf16.mxu1 %v13963_v25 }
 0x6c7   : > { %11130 = vmatpush3.bf16.msra.mxu0 %v10985_v22 }
 0x6c8   : > { %11131 = vmatprep.subr.bf16.mxu0 %v13963_v25 }
 0x6c9   : > { %10989 = vmatpush3.bf16.msra.mxu1 %v10988_v34 }
 0x6ca   : > { %10990 = vmatprep.subr.bf16.mxu1 %v13963_v25 }
 0x6cb   : > { %11133 = vmatpush3.bf16.msra.mxu0 %v10988_v34 }
 0x6cc   : > { %11134 = vmatprep.subr.bf16.mxu0 %v13963_v25 }
 0x6cd   : > { %10992 = vmatpush3.bf16.msra.mxu1 %v10991_v19 }
 0x6ce   : > { %10993 = vmatprep.subr.bf16.mxu1 %v13963_v25 }
 0x6cf   : > { %11136 = vmatpush3.bf16.msra.mxu0 %v10991_v19  ;;  %v11412_v19 = vld [vmem:[#allocation8 + $0x40] sm:$0xff]  }
 0x6d0   : > { %11137 = vmatprep.subr.bf16.mxu0 %v13963_v25 }
 0x6d1   : > { %10995 = vmatpush3.bf16.msra.mxu1 %v10994_v47 }
 0x6d2   : > { %10996 = vmatprep.subr.bf16.mxu1 %v13963_v25 }
 0x6d3   : > { %11139 = vmatpush3.bf16.msra.mxu0 %v10994_v47  ;;  %v11417_v47 = vld [vmem:[#allocation8 + $0x8] sm:$0xff]  }
 0x6d4   : > { %11140 = vmatprep.subr.bf16.mxu0 %v13963_v25 }
 0x6d5   : > { %10998 = vmatpush3.bf16.msra.mxu1 %v10997_v29 }
 0x6d6   : > { %10999 = vmatprep.subr.bf16.mxu1 %v13963_v25 }
 0x6d7   : > { %11142 = vmatpush3.bf16.msra.mxu0 %v10997_v29  ;;  %v11422_v29 = vld [vmem:[#allocation8 + $0xd0] sm:$0xff]  }
 0x6d8   : > { %11143 = vmatprep.subr.bf16.mxu0 %v13963_v25 }
 0x6d9   : > { %11001 = vmatpush3.bf16.msra.mxu1 %v11000_v46 }
 0x6da   : > { %11002 = vmatprep.subr.bf16.mxu1 %v13963_v25 }
 0x6db   : > { %11145 = vmatpush3.bf16.msra.mxu0 %v11000_v46  ;;  %v11427_v46 = vld [vmem:[#allocation8 + $0x98] sm:$0xff]  }
 0x6dc   : > { %11146 = vmatprep.subr.bf16.mxu0 %v13963_v25 }
 0x6dd   : > { %11004 = vmatpush3.bf16.msra.mxu1 %v11003_v23 }
 0x6de   : > { %11005 = vmatprep.subr.bf16.mxu1 %v13963_v25 }
 0x6df   : > { %11148 = vmatpush3.bf16.msra.mxu0 %v11003_v23  ;;  %v11433_v23 = vld [vmem:[#allocation8 + $0x28] sm:$0xff]  }
 0x6e0   : > { %10266 = vmatmul.mubr.f32.vlgmr.msra.gmra.mrb[14].mxu1 %v13265_v18  ;;  %11149 = vmatprep.subr.bf16.mxu0 %v13963_v25 }
 0x6e1   : > { %11007 = vmatpush3.bf16.msra.mxu1 %v12897_v51  ;;  %10300 = vmatprep.mubr.msk.f32.mxu1 %vm11621_vm0, %v13962_v36 }
 0x6e2   : > { %10476 = vmatmul.mubr.f32.vlgmr.msra.gmra.mrb[6].mxu0 %v13267_v13  ;;  %11008 = vmatprep.subr.bf16.mxu1 %v13963_v25 }
 0x6e3   : > { %11151 = vmatpush3.bf16.msra.mxu0 %v12897_v51  ;;  %10510 = vmatprep.mubr.msk.f32.mxu0 %vm11621_vm0, %v13962_v36 }
 0x6e4   : > { %11152 = vmatprep.subr.bf16.mxu0 %v13963_v25 }
 0x6e5   : > { %11010 = vmatpush3.bf16.msra.mxu1 %v12925_v40 }
 0x6e6   : > { %11011 = vmatprep.subr.bf16.mxu1 %v13963_v25 }
 0x6e7   : > { %11154 = vmatpush3.bf16.msra.mxu0 %v12925_v40 }
 0x6e8   : > { %11155 = vmatprep.subr.bf16.mxu0 %v13963_v25 }
 0x6e9   : > { %11013 = vmatpush3.bf16.msra.mxu1 %v12929_v10 }
 0x6ea   : > { %11014 = vmatprep.subr.bf16.mxu1 %v13963_v25 }
 0x6eb   : > { %11157 = vmatpush3.bf16.msra.mxu0 %v12929_v10 }
 0x6ec   : > { %11158 = vmatprep.subr.bf16.mxu0 %v13963_v25 }
 0x6ed   : > { %11016 = vmatpush3.bf16.msra.mxu1 %v12951_v1 }
 0x6ee   : > { %11017 = vmatprep.subr.bf16.mxu1 %v13963_v25 }
 0x6ef   : > { %11160 = vmatpush3.bf16.msra.mxu0 %v12951_v1 }
 0x6f0   : > { %11161 = vmatprep.subr.bf16.mxu0 %v13963_v25 }
 0x6f1   : > { %11019 = vmatpush3.bf16.msra.mxu1 %v12983_v48 }
 0x6f2   : > { %11020 = vmatprep.subr.bf16.mxu1 %v13963_v25 }
 0x6f3   : > { %11163 = vmatpush3.bf16.msra.mxu0 %v12983_v48 }
 0x6f4   : > { %11164 = vmatprep.subr.bf16.mxu0 %v13963_v25 }
 0x6f5   : > { %11022 = vmatpush3.bf16.msra.mxu1 %v13013_v61 }
 0x6f6   : > { %11023 = vmatprep.subr.bf16.mxu1 %v13963_v25 }
 0x6f7   : > { %11166 = vmatpush3.bf16.msra.mxu0 %v13013_v61 }
 0x6f8   : > { %11167 = vmatprep.subr.bf16.mxu0 %v13963_v25 }
 0x6f9   : > { %11025 = vmatpush3.bf16.msra.mxu1 %v13055_v26 }
 0x6fa   : > { %11026 = vmatprep.subr.bf16.mxu1 %v13963_v25 }
 0x6fb   : > { %11169 = vmatpush3.bf16.msra.mxu0 %v13055_v26 }
 0x6fc   : > { %11170 = vmatprep.subr.bf16.mxu0 %v13963_v25  ;;  %v6121_v25 = vld [vmem:[%s13816_s5] sm:$0xff] }
 0x6fd   : > { %11028 = vmatpush3.bf16.msra.mxu1 %v13081_v28  ;;  %v13498_v51 = vand.u32 4294901760, %v6121_v25 }
 0x6fe   : > { %10513 = vmatprep.subr.mxu1 %v13962_v36 }
 0x6ff   : > { %11172 = vmatpush3.bf16.msra.mxu0 %v13081_v28  ;;  %v6203_v58 = vsub.f32 %v6121_v25, %v13498_v51  ;;  %v11434_v25 = vld [vmem:[#allocation8 + $0xe8] sm:$0xff]  }
 0x700   : > { %10301 = vmatmul.mubr.f32.vlgmr.msra.gmra.mrb[14].mxu1 %v13265_v18  ;;  %10543 = vmatprep.subr.mxu0 %v13962_v36 }
 0x701   : > { %10515 = vmatprep.mubr.msk.f32.mxu1 %vm11621_vm0, %v13962_v36  ;;  %10514 = vmatpush3.msra.mxu1 %v13498_v51  ;;  %v6204_v31 = vand.u32 4294901760, %v6203_v58 }
 0x702   : > { %10511 = vmatmul.mubr.f32.vlgmr.msra.gmra.mrb[6].mxu0 %v13267_v13  ;;  %10518 = vmatprep.subr.mxu1 %v13962_v36 }
 0x703   : > { %10545 = vmatprep.mubr.msk.f32.mxu0 %vm11621_vm0, %v13962_v36  ;;  %10544 = vmatpush3.msra.mxu0 %v13498_v51  ;;  %v6205_v4 = vsub.f32 %v6203_v58, %v6204_v31 }
 0x704   : > { %10548 = vmatprep.subr.mxu0 %v13962_v36 }
 0x705   : > { %v6206_v49 = vand.u32 4294901760, %v6205_v4 }
 0x7d3   : > { %v5459_v40 = vpop.f32.mrb[14].mxu1 }
 0x7d4   : > { %v6104_v10 = vmul.f32 0.0009765625, %v5459_v40  ;;  %v10302_v1 = vpop.f32.mrb[15].mxu1  ;;  %v11435_v40 = vld [vmem:[#allocation8 + $0xa8] sm:$0xff]  }
 0x7d5   : > { %v6100_v48 = vpop.f32.mrb[6].mxu0  ;;  %v11438_v1 = vld [vmem:[#allocation8 + $0xf0] sm:$0xff]  }
 0x7d6   : > { %v6106_v61 = vmul.f32 %v6104_v10, %v6104_v10  ;;  %v6105_v26 = vmul.f32 0.0009765625, %v6100_v48  ;;  %v10512_v28 = vpop.f32.mrb[7].mxu0  ;;  %v6115_v13 = vsub.f32 0.0, %v6104_v10  ;;  %v11437_v10 = vld [vmem:[#allocation8 + $0x30] sm:$0xff]   ;;  %v11440_v48 = vld [vmem:[#allocation8 + $0x78] sm:$0xff]  }
 0x7d7   : > { %v11442_v28 = vld [vmem:[#allocation8 + $0xf8] sm:$0xff]  }
 0x7d8   : > { %v6107_v24 = vsub.f32 %v6105_v26, %v6106_v61  ;;  %v11439_v61 = vld [vmem:[#allocation8 + $0xb0] sm:$0xff]   ;;  %v11441_v26 = vld [vmem:[#allocation8 + $0x38] sm:$0xff]  }
 0x7da   : > { %v6108_v9 = vmax.f32 %v6107_v24, 0.0  ;;  %v11444_v24 = vld [vmem:[#allocation8 + $0x140] sm:$0xff]  }
 0x7dc   : > { %v6109_v18 = vadd.f32 1e-05, %v6108_v9  ;;  %v11443_v9 = vld [vmem:[#allocation8 + $0xb8] sm:$0xff]  }
 0x7de   : > { %11486 = vrsqrt.f32 %v6109_v18  ;;  %v11446_v18 = vld [vmem:[#allocation8 + $0x1c0] sm:$0xff]  }
 0x7e8   : > { %v11487_v63 = vpop.eup %11486 }
 0x7e9   : > { %v6114_v41 = vrot.slane %v11487_v63, %v14047_v21  ;;  %v6116_v59 = vmul.f32 %v11487_v63, %v6115_v13  ;;  %v7068_v13 = vld [vmem:[#allocation4] sm:$0xf8]  ;;  %v4770_v63 = vld [vmem:[%s13822_s11] sm:$0x1] }
 0x7eb   : > { %v6123_v54 = vsel %vm2121_vm2, %v6114_v41, 0  ;;  %v6120_v53 = vrot.slane %v6116_v59, %v14047_v21  ;;  %v14048_v41 = vld [vmem:[#allocation32_spill] sm:$0xff] }
 0x7ec   : > { %v6191_v55 = vand.u32 4294901760, %v6123_v54  ;;  %v7073_v59 = vmul.bf16 %v7068_v13, %v14048_v41 }
 0x7ed   : > { %v6572_v38 = vsel %vm2121_vm2, %v6120_v53, 0  ;;  %v14049_v53 = vld [vmem:[#allocation33_spill] sm:$0xff] }
 0x7ee   : > { %v6192_v6 = vsub.f32 %v6123_v54, %v6191_v55  ;;  %v6640_v14 = vand.u32 4294901760, %v6572_v38 }
 0x7f0   : > { %v6193_v22 = vand.u32 4294901760, %v6192_v6  ;;  %v6641_v16 = vsub.f32 %v6572_v38, %v6640_v14 }
 0x7f2   : > { %v6194_v32 = vsub.f32 %v6192_v6, %v6193_v22  ;;  %v6642_v34 = vand.u32 4294901760, %v6641_v16 }
 0x7f4   : > { %v6195_v50 = vand.u32 4294901760, %v6194_v32  ;;  %v6643_v11 = vsub.f32 %v6641_v16, %v6642_v34  ;;  %v14050_v32 = vld [vmem:[#allocation31_spill] sm:$0xff] }
 0x7f6   : > { %10516 = vmatmul.mubr.f32.vlgmr.msra.gmra.mrb[48].mxu1 %v6195_v50  ;;  %v6644_v2 = vand.u32 4294901760, %v6643_v11  ;;  %v4771_v50 = vld [vmem:[%s13823_s12] sm:$0x1]  ;;  %v7082_v11 = vshll.u32 %v7073_v59, 16 }
 0x7f7   : > { %10519 = vmatpush3.msra.mxu1 %v6206_v49  ;;  %10520 = vmatprep.mubr.msk.f32.mxu1 %vm11621_vm0, %v13962_v36 }
 0x7f8   : > { %10546 = vmatmul.mubr.f32.vlgmr.msra.gmra.mrb[48].mxu0 %v6644_v2  ;;  %10523 = vmatprep.subr.mxu1 %v13962_v36 }
 0x7f9   : > { %10549 = vmatpush3.msra.mxu0 %v6206_v49  ;;  %10550 = vmatprep.mubr.msk.f32.mxu0 %vm11621_vm0, %v13962_v36 }
 0x7fa   : > { %10553 = vmatprep.subr.mxu0 %v13962_v36 }
 0x7fe   : > { %10521 = vmatmul.mubr.f32.vlgmr.msra.gmra.mrb[48].mxu1 %v6191_v55 }
 0x7ff   : > { %10524 = vmatpush3.msra.mxu1 %v6203_v58  ;;  %10525 = vmatprep.mubr.msk.f32.mxu1 %vm11621_vm0, %v13962_v36 }
 0x800   : > { %10551 = vmatmul.mubr.f32.vlgmr.msra.gmra.mrb[48].mxu0 %v6640_v14  ;;  %10528 = vmatprep.subr.mxu1 %v13962_v36 }
 0x801   : > { %10554 = vmatpush3.msra.mxu0 %v6203_v58  ;;  %10555 = vmatprep.mubr.msk.f32.mxu0 %vm11621_vm0, %v13962_v36  ;;  %v7157_v58 = vld [vmem:[#allocation4] sm:$0xf0] }
 0x802   : > { %10558 = vmatprep.subr.mxu0 %v13962_v36 }
 0x806   : > { %10526 = vmatmul.mubr.f32.vlgmr.msra.gmra.mrb[48].mxu1 %v6192_v6 }
 0x807   : > { %10529 = vmatpush3.msra.mxu1 %v13498_v51  ;;  %10530 = vmatprep.mubr.msk.f32.mxu1 %vm11621_vm0, %v13962_v36 }
 0x808   : > { %10556 = vmatmul.mubr.f32.vlgmr.msra.gmra.mrb[48].mxu0 %v6641_v16  ;;  %10533 = vmatprep.subr.mxu1 %v13962_v36  ;;  %v7079_v16 = vshrl.u32 %v7073_v59, 16 }
 0x809   : > { %10559 = vmatpush3.msra.mxu0 %v13498_v51  ;;  %10560 = vmatprep.mubr.msk.f32.mxu0 %vm11621_vm0, %v13962_v36 }
 0x80a   : > { %10563 = vmatprep.subr.mxu0 %v13962_v36 }
 0x80e   : > { %10531 = vmatmul.mubr.f32.vlgmr.msra.gmra.mrb[48].mxu1 %v6193_v22 }
 0x80f   : > { %10534 = vmatpush3.msra.mxu1 %v6204_v31  ;;  %10535 = vmatprep.mubr.msk.f32.mxu1 %vm11621_vm0, %v13962_v36 }
 0x810   : > { %10561 = vmatmul.mubr.f32.vlgmr.msra.gmra.mrb[48].mxu0 %v6642_v34  ;;  %10538 = vmatprep.subr.mxu1 %v13962_v36 }
 0x811   : > { %10564 = vmatpush3.msra.mxu0 %v6204_v31  ;;  %10565 = vmatprep.mubr.msk.f32.mxu0 %vm11621_vm0, %v13962_v36  ;;  %v7219_v31 = vld [vmem:[#allocation4] sm:$0x80] }
 0x812   : > { %10568 = vmatprep.subr.mxu0 %v13962_v36  ;;  %v7224_v34 = vmul.bf16 %v7219_v31, %v14050_v32 }
 0x816   : > { %10536 = vmatmul.mubr.f32.vlgmr.msra.gmra.mrb[48].mxu1 %v6191_v55 }
 0x817   : > { %10539 = vmatpush3.msra.mxu1 %v13498_v51  ;;  %10540 = vmatprep.mubr.msk.f32.mxu1 %vm11621_vm0, %v13962_v36 }
 0x818   : > { %10566 = vmatmul.mubr.f32.vlgmr.msra.gmra.mrb[48].mxu0 %v6640_v14  ;;  %9387 = vmatprep.subr.bf16.mxu1 %v11412_v19 }
 0x819   : > { %10569 = vmatpush3.msra.mxu0 %v13498_v51  ;;  %10570 = vmatprep.mubr.msk.f32.mxu0 %vm11621_vm0, %v13962_v36  ;;  %v11424_v36 = vld [vmem:[#allocation8 + $0x58] sm:$0xff]   ;;  %v11436_v51 = vld [vmem:[#allocation8 + $0x70] sm:$0xff]  }
 0x81a   : > { %9427 = vmatprep.subr.bf16.mxu0 %v11414_v27  ;;  %v13551_v27 = vrot.slane %v7079_v16, 3 }
 0x81e   : > { %10541 = vmatmul.mubr.f32.vlgmr.msra.gmra.mrb[48].mxu1 %v6191_v55  ;;  %v7162_v55 = vmul.bf16 %v7157_v58, %v14049_v53  ;;  %v14052_v58 = vld [vmem:[#allocation34_spill] sm:$0xff] }
 0x81f   : > { %9388 = vmatpush3.bf16.msra.mxu1 %v11413_v43 }
 0x820   : > { %10571 = vmatmul.mubr.f32.vlgmr.msra.gmra.mrb[48].mxu0 %v6640_v14  ;;  %9389 = vmatprep.subr.bf16.mxu1 %v11416_v42  ;;  %v7168_v2 = vshrl.u32 %v7162_v55, 16  ;;  %v7171_v19 = vshll.u32 %v7162_v55, 16  ;;  %v14054_v55 = vld [vmem:[#allocation35_spill] sm:$0xff] }
 0x821   : > { %9428 = vmatpush3.bf16.msra.mxu0 %v11415_v7  ;;  %v13553_v7 = vshrl.u32 %v7224_v34, 16 }
 0x822   : > { %9429 = vmatprep.subr.bf16.mxu0 %v11418_v8  ;;  %v13558_v8 = vrot.slane %v7168_v2, 4 }
 0x823   : > { %9390 = vmatpush3.bf16.msra.mxu1 %v11417_v47  ;;  %v13556_v47 = vrot.slane %v7082_v11, 4 }
 0x824   : > { %9391 = vmatprep.subr.bf16.mxu1 %v11420_v35  ;;  %v13560_v35 = vrot.slane %v7171_v19, 5 }
 0x825   : > { %9430 = vmatpush3.bf16.msra.mxu0 %v11419_v12 }
 0x826   : > { %9431 = vmatprep.subr.bf16.mxu0 %v11422_v29 }
 0x827   : > { %9392 = vmatpush3.bf16.msra.mxu1 %v11421_v57 }
 0x828   : > { %9393 = vmatprep.subr.bf16.mxu1 %v11424_v36 }
 0x829   : > { %9432 = vmatpush3.bf16.msra.mxu0 %v11423_v0 }
 0x82a   : > { %9433 = vmatprep.subr.bf16.mxu0 %v11426_v45 }
 0x82b   : > { %9394 = vmatpush3.bf16.msra.mxu1 %v11425_v33 }
 0x82c   : > { %9395 = vmatprep.subr.bf16.mxu1 %v11428_v56 }
 0x82d   : > { %9434 = vmatpush3.bf16.msra.mxu0 %v11427_v46 }
 0x82e   : > { %9435 = vmatprep.subr.bf16.mxu0 %v11430_v30 }
 0x82f   : > { %9396 = vmatpush3.bf16.msra.mxu1 %v11429_v5 }
 0x830   : > { %9397 = vmatprep.subr.bf16.mxu1 %v11432_v62 }
 0x831   : > { %9436 = vmatpush3.bf16.msra.mxu0 %v11431_v60 }
 0x832   : > { %9437 = vmatprep.subr.bf16.mxu0 %v11434_v25 }
 0x833   : > { %9398 = vmatpush3.bf16.msra.mxu1 %v11433_v23  ;;  %v7130_v23 = vld [vmem:[#allocation4] sm:$0xf0] }
 0x834   : > { %9399 = vmatprep.subr.bf16.mxu1 %v11436_v51 }
 0x835   : > { %9438 = vmatpush3.bf16.msra.mxu0 %v11435_v40 }
 0x836   : > { %9439 = vmatprep.subr.bf16.mxu0 %v11438_v1  ;;  %v7140_v1 = vrot.slane %v7130_v23, 4  ;;  %v7285_v23 = vld [vmem:[#allocation4 + $0x28] sm:$0x1] }
 0x837   : > { %9400 = vmatpush3.bf16.msra.mxu1 %v11437_v10 }
 0x838   : > { %9401 = vmatprep.subr.bf16.mxu1 %v11440_v48  ;;  %v7232_v48 = vrot.slane %v13553_v7, 7 }
 0x839   : > { %9440 = vmatpush3.bf16.msra.mxu0 %v11439_v61 }
 0x83a   : > { %9441 = vmatprep.subr.bf16.mxu0 %v11442_v28  ;;  %v7085_v28 = vor.u32 %v13556_v47, %v13551_v27 }
 0x83b   : > { %9402 = vmatpush3.bf16.msra.mxu1 %v11441_v26 }
 0x83c   : > { %9467 = vmatprep.subr.bf16.mxu1 %v11444_v24  ;;  %v7174_v24 = vor.u32 %v13560_v35, %v13558_v8 }
 0x83d   : > { %9442 = vmatpush3.bf16.msra.mxu0 %v11443_v9 }
 0x83e   : > { %9507 = vmatprep.subr.bf16.mxu0 %v11446_v18  ;;  %v14051_v18 = vld [vmem:[#allocation42_spill] sm:$0xff] }
 0x8f1   : > { %v6567_v54 = vpop.f32.mrb[48].mxu1 }
 0x8f2   : > { %v7020_v38 = vmul.f32 %v6567_v54, %v4770_v63  ;;  %v10542_v6 = vpop.f32.mrb[49].mxu1  ;;  %v14053_v54 = vld [vmem:[#allocation43_spill] sm:$0xff] }
 0x8f3   : > { %v7016_v14 = vpop.f32.mrb[48].mxu0  ;;  %v14055_v6 = vld [vmem:[#allocation36_spill] sm:$0xff] }
 0x8f4   : > { %v7021_v4 = vmul.f32 %v7016_v14, %v4770_v63  ;;  %v10572_v22 = vpop.f32.mrb[49].mxu0  ;;  %v7027_v49 = vrot.slane %v7020_v38, %v14047_v21 }
 0x8f6   : > { %v7022_v43 = vadd.f32 %v7021_v4, %v4771_v50  ;;  %v7029_v42 = vmul.f32 %v7027_v49, %v13227_v17  ;;  %v7030_v12 = vmul.f32 %v7027_v49, %v13231_v44  ;;  %v7031_v57 = vmul.f32 %v7027_v49, %v13225_v39 }
 0x8f7   : > { %v7032_v29 = vmul.f32 %v7027_v49, %v13229_v37  ;;  %v7033_v0 = vmul.f32 %v7027_v49, %v13246_v15  ;;  %v7034_v33 = vmul.f32 %v7027_v49, %v13254_v3  ;;  %v7035_v17 = vmul.f32 %v7027_v49, %v13242_v20 }
 0x8f8   : > { %v7041_v36 = vrot.slane %v7022_v43, %v14047_v21  ;;  %v7036_v45 = vmul.f32 %v7027_v49, %v13249_v52 }
 0x8fa   : > { %v7043_v56 = vadd.f32 %v7041_v36, %v7029_v42  ;;  %v7044_v46 = vadd.f32 %v7041_v36, %v7030_v12  ;;  %v7045_v5 = vadd.f32 %v7041_v36, %v7031_v57  ;;  %v7046_v30 = vadd.f32 %v7041_v36, %v7032_v29  ;;  %v11445_v29 = vld [vmem:[#allocation8 + $0x100] sm:$0xff]  }
 0x8fb   : > { %v7047_v62 = vadd.f32 %v7041_v36, %v7033_v0  ;;  %v7048_v44 = vadd.f32 %v7041_v36, %v7034_v33  ;;  %v7049_v60 = vadd.f32 %v7041_v36, %v7035_v17  ;;  %v7050_v39 = vadd.f32 %v7041_v36, %v7036_v45  ;;  %v11448_v17 = vld [vmem:[#allocation8 + $0x148] sm:$0xff]  }
 0x8fc   : > { %v7051_v37 = vmax.f32 %v7043_v56, 0.0  ;;  %v7052_v25 = vmax.f32 %v7044_v46, 0.0  ;;  %v7053_v21 = vmax.f32 %v7045_v5, 0.0  ;;  %v7054_v51 = vmax.f32 %v7046_v30, 0.0  ;;  %v14056_v46 = vld [vmem:[#allocation44_spill] sm:$0xff] }
 0x8fd   : > { %v7055_v15 = vmax.f32 %v7047_v62, 0.0  ;;  %v7056_v40 = vmax.f32 %v7048_v44, 0.0  ;;  %v7057_v3 = vmax.f32 %v7049_v60, 0.0  ;;  %v7058_v10 = vmax.f32 %v7050_v39, 0.0  ;;  %v11447_v60 = vld [vmem:[#allocation8 + $0x180] sm:$0xff]  }
 0x8fe   : > { %v13570_v20 = vpack.c.bf16 %v7052_v25, %v7051_v37  ;;  %v13572_v52 = vpack.c.bf16 %v7054_v51, %v7053_v21  ;;  %v11450_v25 = vld [vmem:[#allocation8 + $0x1c8] sm:$0xff]  }
 0x8ff   : > { %v13575_v61 = vpack.c.bf16 %v7056_v40, %v7055_v15  ;;  %v13577_v26 = vpack.c.bf16 %v7058_v10, %v7057_v3  ;;  %v14057_v15 = vld [vmem:[#allocation38_spill] sm:$0xff]  ;;  %v11449_v10 = vld [vmem:[#allocation8 + $0x108] sm:$0xff]  }
 0x900   : > { %7064 = vst [vmem:[#allocation4 + $0x8] sm:$0xff] %v13570_v20  ;;  %7065 = vst [vmem:[#allocation4 + $0x10] sm:$0xff] %v13572_v52  ;;  %v7141_v9 = vrot.slane %v13570_v20, 4  ;;  %v7074_v13 = vmul.bf16 %v13570_v20, %v14051_v18  ;;  %v7225_v63 = vmul.bf16 %v13570_v20, %v14052_v58  ;;  %v13591_v59 = vrot.slane %v13572_v52, 4 }
 0x901   : > { %7066 = vst [vmem:[#allocation4 + $0x18] sm:$0xff] %v13575_v61  ;;  %7067 = vst [vmem:[#allocation4 + $0x20] sm:$0xff] %v13577_v26  ;;  %v7163_v31 = vmul.bf16 %v13570_v20, %v14053_v54  ;;  %v7226_v38 = vmul.bf16 %v13572_v52, %v14054_v55  ;;  %v7075_v14 = vmul.bf16 %v13572_v52, %v14055_v6  ;;  %v13602_v4 = vrot.slane %v13575_v61, 4  ;;  %v14059_v55 = vld [vmem:[#allocation40_spill] sm:$0xff] }
 0x902   : > { %v7142_v22 = vsel %vm3298_vm6, %v7140_v1, %v7141_v9  ;;  %v7087_v16 = vshrl.u32 %v7074_v13, 16  ;;  %v7090_v32 = vshll.u32 %v7074_v13, 16  ;;  %v7234_v34 = vshrl.u32 %v7225_v63, 16  ;;  %v11452_v13 = vld [vmem:[#allocation8 + $0x150] sm:$0xff]  }
 0x903   : > { %8136 = vmatprep.mubr.bf16.mxu1 %v7142_v22  ;;  %v7237_v49 = vshll.u32 %v7225_v63, 16  ;;  %v7144_v50 = vsel %vm3298_vm6, %v7141_v9, %v13591_v59  ;;  %v7176_v11 = vshrl.u32 %v7163_v31, 16  ;;  %v7179_v2 = vshll.u32 %v7163_v31, 16 }
 0x904   : > { %v7089_v19 = vrot.slane %v7087_v16, 3  ;;  %v7092_v43 = vrot.slane %v7090_v32, 4  ;;  %v7236_v27 = vrot.slane %v7234_v34, 7  ;;  %v7242_v7 = vshrl.u32 %v7226_v38, 16 }
 0x905   : > { %v7178_v42 = vrot.slane %v7176_v11, 4  ;;  %v7181_v47 = vrot.slane %v7179_v2, 5  ;;  %v7245_v8 = vshll.u32 %v7226_v38, 16  ;;  %v7096_v35 = vshrl.u32 %v7075_v14, 16  ;;  %v14060_v2 = vld [vmem:[#allocation47_spill] sm:$0xff] }
 0x906   : > { %v7093_v12 = vor.u32 %v7092_v43, %v7089_v19  ;;  %v7239_v57 = vor.u32 %v7237_v49, %v7236_v27  ;;  %v13607_v36 = vrot.slane %v7242_v7, 7  ;;  %v7099_v0 = vshll.u32 %v7075_v14, 16  ;;  %v11451_v14 = vld [vmem:[#allocation8 + $0x188] sm:$0xff]   ;;  %v11453_v7 = vld [vmem:[#allocation8 + $0x110] sm:$0xff]  }
 0x907   : > { %v7182_v33 = vor.u32 %v7181_v47, %v7178_v42  ;;  %v7098_v45 = vrot.slane %v7096_v35, 3  ;;  %v13612_v56 = vsel %vm3298_vm6, %v13591_v59, %v13602_v4  ;;  %v7164_v5 = vmul.bf16 %v13572_v52, %v14056_v46  ;;  %v14061_v43 = vld [vmem:[#allocation39_spill] sm:$0xff] }
 0x908   : > { %v7094_v30 = vsel %vm3235_vm5, %v7085_v28, %v7093_v12  ;;  %v7240_v62 = vsel %vm3553_vm7, %v7232_v48, %v7239_v57  ;;  %v7247_v44 = vor.u32 %v7245_v8, %v13607_v36  ;;  %v7101_v39 = vrot.slane %v7099_v0, 4  ;;  %v14058_v48 = vld [vmem:[#allocation46_spill] sm:$0xff]  ;;  %v7072_v9 = vld [vmem:[#allocation4 + $0x20] sm:$0xf]  ;;  %v14062_v8 = vld [vmem:[#allocation37_spill] sm:$0xff] }
 0x909   : > { %8137 = vmatmul.mubr.bf16.vlgmr.msra.gmra.mrb[52].mxu1 %v7094_v30  ;;  %8201 = vmatprep.mubr.bf16.mxu0 %v7240_v62  ;;  %v7183_v37 = vsel %vm3189_vm4, %v7174_v24, %v7182_v33  ;;  %v7185_v21 = vshrl.u32 %v7164_v5, 16  ;;  %v7188_v51 = vshll.u32 %v7164_v5, 16  ;;  %v7227_v40 = vmul.bf16 %v13575_v61, %v14057_v15  ;;  %v7161_v31 = vld [vmem:[#allocation4 + $0x20] sm:$0x1f] }
 0x90a   : > { %9468 = vmatpush3.bf16.msra.mxu1 %v11445_v29  ;;  %8144 = vmatprep.mubr.bf16.mxu1 %v7144_v50  ;;  %v7248_v3 = vsel %vm3553_vm7, %v7236_v27, %v7247_v44  ;;  %v7102_v1 = vor.u32 %v7101_v39, %v7098_v45  ;;  %v7076_v28 = vmul.bf16 %v13575_v61, %v14058_v48  ;;  %v11454_v50 = vld [vmem:[#allocation8 + $0x1d0] sm:$0xff]  }
 0x90b   : > { %8202 = vmatmul.mubr.bf16.vlgmr.msra.gmra.mrb[52].mxu0 %v7183_v37  ;;  %9469 = vmatprep.subr.bf16.mxu1 %v11448_v17  ;;  %v7187_v24 = vrot.slane %v7185_v21, 4  ;;  %v7190_v58 = vrot.slane %v7188_v51, 5  ;;  %v7250_v63 = vshrl.u32 %v7227_v40, 16  ;;  %v7290_v38 = vmul.bf16 %v7285_v23, %v14059_v55  ;;  %v11456_v17 = vld [vmem:[#allocation8 + $0x158] sm:$0xff]   ;;  %v11455_v30 = vld [vmem:[#allocation8 + $0x190] sm:$0xff]  }
 0x90c   : > { %8209 = vmatprep.mubr.bf16.mxu0 %v7248_v3  ;;  %9508 = vmatpush3.bf16.msra.mxu0 %v11447_v60  ;;  %v7103_v22 = vsel %vm3235_vm5, %v7093_v12, %v7102_v1  ;;  %v7253_v16 = vshll.u32 %v7227_v40, 16  ;;  %v7105_v32 = vshrl.u32 %v7076_v28, 16  ;;  %v7108_v34 = vshll.u32 %v7076_v28, 16  ;;  %v14063_v12 = vld [vmem:[#allocation45_spill] sm:$0xff]  ;;  %v7134_v40 = vld [vmem:[#allocation4 + $0x20] sm:$0xf] }
 0x90d   : > { %9509 = vmatprep.subr.bf16.mxu0 %v11450_v25  ;;  %v7191_v49 = vor.u32 %v7190_v58, %v7187_v24  ;;  %v7252_v11 = vrot.slane %v7250_v63, 7  ;;  %v7165_v19 = vmul.bf16 %v13575_v61, %v14060_v2  ;;  %v7228_v27 = vmul.bf16 %v13577_v26, %v14061_v43  ;;  %v11458_v37 = vld [vmem:[#allocation8 + $0x1d8] sm:$0xff]   ;;  %v14065_v55 = vld [vmem:[#allocation48_spill] sm:$0xff] }
 0x90e   : > { %9470 = vmatpush3.bf16.msra.mxu1 %v11449_v10  ;;  %v7107_v42 = vrot.slane %v7105_v32, 3  ;;  %v7110_v47 = vrot.slane %v7108_v34, 4  ;;  %v7077_v35 = vmul.bf16 %v7072_v9, %v14062_v8  ;;  %v7166_v57 = vmul.bf16 %v7161_v31, %v14063_v12  ;;  %v11457_v51 = vld [vmem:[#allocation8 + $0x118] sm:$0xff]   ;;  %v11460_v9 = vld [vmem:[#allocation8 + $0x160] sm:$0xff]  }
 0x90f   : > { %9471 = vmatprep.subr.bf16.mxu1 %v11452_v13  ;;  %v7192_v29 = vsel %vm3189_vm4, %v7182_v33, %v7191_v49  ;;  %v7255_v0 = vor.u32 %v7253_v16, %v7252_v11  ;;  %v7194_v45 = vshrl.u32 %v7165_v19, 16  ;;  %v7197_v5 = vshll.u32 %v7165_v19, 16  ;;  %v14064_v24 = vld [vmem:[#allocation41_spill] sm:$0xff]  ;;  %v11462_v16 = vld [vmem:[#allocation8 + $0x1e0] sm:$0xff]  }
 0x910   : > { %9510 = vmatpush3.bf16.msra.mxu0 %v11451_v14  ;;  %v13634_v62 = vor.u32 %v7110_v47, %v7107_v42  ;;  %v7258_v44 = vshrl.u32 %v7228_v27, 16  ;;  %v7114_v60 = vshrl.u32 %v7077_v35, 16  ;;  %v13636_v39 = vshll.u32 %v7290_v38, 16  ;;  %v11459_v63 = vld [vmem:[#allocation8 + $0x198] sm:$0xff]   ;;  %v11461_v19 = vld [vmem:[#allocation8 + $0x120] sm:$0xff]  }
 0x911   : > { %8145 = vmatmul.mubr.bf16.gmra.mrb[56].mxu1 %v7103_v22  ;;  %9511 = vmatprep.subr.bf16.mxu0 %v11454_v50  ;;  %v7256_v23 = vsel %vm3553_vm7, %v13607_v36, %v7255_v0  ;;  %v7196_v25 = vrot.slane %v7194_v45, 4  ;;  %v7199_v33 = vrot.slane %v7197_v5, 5  ;;  %v7117_v21 = vshll.u32 %v7077_v35, 16  ;;  %v7335_v50 = vld [vmem:[#allocation4 + $0x8] sm:$0xf8]  ;;  %v11464_v35 = vld [vmem:[#allocation8 + $0x168] sm:$0xff]  }
 0x912   : > { %9472 = vmatpush3.bf16.msra.mxu1 %v11453_v7  ;;  %8152 = vmatprep.mubr.bf16.mxu1 %v13612_v56  ;;  %v7112_v15 = vsel %vm3235_vm5, %v7102_v1, %v13634_v62  ;;  %v7260_v3 = vrot.slane %v7258_v44, 7  ;;  %v7261_v10 = vshll.u32 %v7228_v27, 16  ;;  %v7203_v28 = vshrl.u32 %v7166_v57, 16  ;;  %v13659_v47 = vld [vmem:[#allocation4 + $0x8] sm:$0xf0]  ;;  %v11463_v45 = vld [vmem:[#allocation8 + $0x1a0] sm:$0xff]  }
 0x913   : > { %8210 = vmatmul.mubr.bf16.gmra.mrb[56].mxu0 %v7192_v29  ;;  %9473 = vmatprep.subr.bf16.mxu1 %v11456_v17  ;;  %v13643_v13 = vor.u32 %v7199_v33, %v7196_v25  ;;  %v7206_v36 = vshll.u32 %v7166_v57, 16  ;;  %v7286_v58 = vmul.bf16 %v13570_v20, %v14064_v24  ;;  %v7287_v1 = vmul.bf16 %v13572_v52, %v14065_v55  ;;  %v14066_v29 = vld [vmem:[#allocation49_spill] sm:$0xff]  ;;  %v14067_v33 = vld [vmem:[#allocation50_spill] sm:$0xff]  ;;  %v11467_v24 = vld [vmem:[#allocation8 + $0x1a8] sm:$0xff]  }
 0x914   : > { %8217 = vmatprep.mubr.bf16.mxu0 %v7256_v23  ;;  %9512 = vmatpush3.bf16.msra.mxu0 %v11455_v30  ;;  %v7263_v31 = vor.u32 %v7261_v10, %v7260_v3  ;;  %v7325_v38 = vrot.slane %v13636_v39, 1  ;;  %v7147_v14 = vrot.slane %v7134_v40, 4  ;;  %v13652_v32 = vrot.slane %v7114_v60, 3  ;;  %v11466_v23 = vld [vmem:[#allocation8 + $0x1e8] sm:$0xff]   ;;  %v11468_v3 = vld [vmem:[#allocation8 + $0x170] sm:$0xff]  }
 0x915   : > { %9513 = vmatprep.subr.bf16.mxu0 %v11458_v37  ;;  %v7201_v22 = vsel %vm3189_vm4, %v7191_v49, %v13643_v13  ;;  %v13654_v34 = vrot.slane %v7117_v21, 4  ;;  %v13657_v27 = vrot.slane %v7203_v28, 4  ;;  %v7294_v7 = vshll.u32 %v7286_v58, 16 }
 0x916   : > { %9474 = vmatpush3.bf16.msra.mxu1 %v11457_v51  ;;  %v7264_v43 = vsel %vm3553_vm7, %v7252_v11, %v7263_v31  ;;  %v7299_v42 = vshll.u32 %v7287_v1, 16  ;;  %v13661_v57 = vrot.slane %v7206_v36, 5  ;;  %v7292_v49 = vshrl.u32 %v7286_v58, 16  ;;  %v11465_v51 = vld [vmem:[#allocation8 + $0x128] sm:$0xff]  }
 0x917   : > { %9475 = vmatprep.subr.bf16.mxu1 %v11460_v9  ;;  %v7288_v0 = vmul.bf16 %v13575_v61, %v14066_v29  ;;  %v7303_v17 = vshrl.u32 %v7287_v1, 16  ;;  %v7296_v5 = vrot.slane %v7294_v7, 1  ;;  %v13666_v11 = vmul.bf16 %v7335_v50, %v14048_v41  ;;  %v11470_v1 = vld [vmem:[#allocation8 + $0x1f0] sm:$0xff]  }
 0x918   : > { %9514 = vmatpush3.bf16.msra.mxu0 %v11459_v63  ;;  %v7301_v30 = vrot.slane %v7299_v42, 1  ;;  %v7341_v44 = vmul.bf16 %v13572_v52, %v14051_v18  ;;  %v7148_v60 = vsel %vm3298_vm6, %v13602_v4, %v7147_v14  ;;  %v7407_v37 = vrot.slane %v13659_v47, 4  ;;  %v11472_v42 = vld [vmem:[#allocation8 + $0x178] sm:$0xff]   ;;  %v11478_v47 = vld [vmem:[#allocation8 + $0x210] sm:$0xff]  }
 0x919   : > { %8153 = vmatmul.mubr.bf16.gmra.mrb[60].mxu1 %v7112_v15  ;;  %9515 = vmatprep.subr.bf16.mxu0 %v11462_v16  ;;  %v7307_v25 = vshll.u32 %v7288_v0, 16  ;;  %v7289_v21 = vmul.bf16 %v13577_v26, %v14067_v33  ;;  %v7120_v41 = vor.u32 %v13654_v34, %v13652_v32  ;;  %v7297_v40 = vor.u32 %v7296_v5, %v7292_v49  ;;  %v11469_v34 = vld [vmem:[#allocation8 + $0x130] sm:$0xff]  }
 0x91a   : > { %9476 = vmatpush3.bf16.msra.mxu1 %v11461_v19  ;;  %8160 = vmatprep.mubr.bf16.mxu1 %v7148_v60  ;;  %v7305_v18 = vor.u32 %v7303_v17, %v7301_v30  ;;  %v7311_v15 = vshrl.u32 %v7288_v0, 16  ;;  %v7354_v28 = vshrl.u32 %v7341_v44, 16  ;;  %v7357_v9 = vshll.u32 %v7341_v44, 16  ;;  %v11471_v49 = vld [vmem:[#allocation8 + $0x1b0] sm:$0xff]   ;;  %v11473_v44 = vld [vmem:[#allocation8 + $0x138] sm:$0xff]  }
 0x91b   : > { %8218 = vmatmul.mubr.bf16.gmra.mrb[60].mxu0 %v7201_v22  ;;  %9477 = vmatprep.subr.bf16.mxu1 %v11464_v35  ;;  %v7309_v10 = vrot.slane %v7307_v25, 1  ;;  %v7315_v36 = vshll.u32 %v7289_v21, 16  ;;  %v7209_v58 = vor.u32 %v13661_v57, %v13657_v27  ;;  %v7302_v63 = vsel %vm3531_vm3, %v7297_v40, %v7301_v30 }
 0x91c   : > { %8225 = vmatprep.mubr.bf16.mxu0 %v7264_v43  ;;  %9516 = vmatpush3.bf16.msra.mxu0 %v11463_v45  ;;  %v7346_v31 = vshrl.u32 %v13666_v11, 16  ;;  %v7342_v55 = vmul.bf16 %v13575_v61, %v14055_v6  ;;  %v7356_v22 = vrot.slane %v7354_v28, 3  ;;  %v7359_v16 = vrot.slane %v7357_v9, 4  ;;  %v11479_v28 = vld [vmem:[#allocation8 + $0x218] sm:$0xff]  }
 0x91d   : > { %9517 = vmatprep.subr.bf16.mxu0 %v11466_v23  ;;  %v7310_v14 = vsel %vm3531_vm3, %v7305_v18, %v7309_v10  ;;  %v7313_v32 = vor.u32 %v7311_v15, %v7309_v10  ;;  %v7349_v50 = vshll.u32 %v13666_v11, 16  ;;  %v7317_v19 = vrot.slane %v7315_v36, 1  ;;  %v7425_v10 = vld [vmem:[#allocation4 + $0x10] sm:$0xff]  ;;  %v7339_v36 = vld [vmem:[#allocation4 + $0x28] sm:$0xf] }
 0x91e   : > { %9478 = vmatpush3.bf16.msra.mxu1 %v11465_v51  ;;  %v7363_v43 = vshrl.u32 %v7342_v55, 16  ;;  %v7366_v27 = vshll.u32 %v7342_v55, 16  ;;  %v7121_v7 = vsel %vm3235_vm5, %v13634_v62, %v7120_v41  ;;  %v7412_v6 = vrot.slane %v13577_v26, 4  ;;  %v11474_v62 = vld [vmem:[#allocation8 + $0x1f8] sm:$0xff]  }
 0x91f   : > { %9479 = vmatprep.subr.bf16.mxu1 %v11468_v3  ;;  %v7319_v35 = vshrl.u32 %v7289_v21, 16  ;;  %v7343_v57 = vmul.bf16 %v13577_v26, %v14058_v48  ;;  %v7360_v29 = vor.u32 %v7359_v16, %v7356_v22  ;;  %v7318_v0 = vsel %vm3531_vm3, %v7313_v32, %v7317_v19  ;;  %v11476_v21 = vld [vmem:[#allocation8 + $0x200] sm:$0xff]   ;;  %v11475_v41 = vld [vmem:[#allocation8 + $0x1b8] sm:$0xff]   ;;  %v11481_v22 = vld [vmem:[#allocation8 + $0x228] sm:$0xff]  }
 0x920   : > { %9518 = vmatpush3.bf16.msra.mxu0 %v11467_v24  ;;  %v7365_v17 = vrot.slane %v7363_v43, 3  ;;  %v7368_v45 = vrot.slane %v7366_v27, 4  ;;  %v7210_v5 = vsel %vm3189_vm4, %v13643_v13, %v7209_v58  ;;  %v7413_v30 = vsel %vm3298_vm6, %v13602_v4, %v7412_v6  ;;  %v11480_v24 = vld [vmem:[#allocation8 + $0x220] sm:$0xff]   ;;  %v7401_v58 = vld [vmem:[#allocation4 + $0x28] sm:$0xf] }
 0x921   : > { %8161 = vmatmul.mubr.bf16.gmra.mrb[64].mxu1 %v7121_v7  ;;  %9519 = vmatprep.subr.bf16.mxu0 %v11470_v1  ;;  %v7321_v11 = vor.u32 %v7319_v35, %v7317_v19  ;;  %v7372_v48 = vshrl.u32 %v7343_v57, 16  ;;  %v7348_v60 = vrot.slane %v7346_v31, 3  ;;  %v7351_v23 = vrot.slane %v7349_v50, 4  ;;  %v11482_v7 = vld [vmem:[#allocation8 + $0x230] sm:$0xff]  }
 0x922   : > { %9480 = vmatpush3.bf16.msra.mxu1 %v11469_v34  ;;  %8266 = vmatprep.mubr.bf16.mxu1 %v7302_v63  ;;  %v7369_v25 = vor.u32 %v7368_v45, %v7365_v17  ;;  %v7375_v33 = vshll.u32 %v7343_v57, 16  ;;  %v7409_v13 = vsel %vm3298_vm6, %v7407_v37, %v13591_v59  ;;  %v11477_v59 = vld [vmem:[#allocation8 + $0x208] sm:$0xff]   ;;  %v7424_v37 = vld [vmem:[#allocation4 + $0x8] sm:$0xf0] }
 0x923   : > { %8226 = vmatmul.mubr.bf16.gmra.mrb[64].mxu0 %v7210_v5  ;;  %9481 = vmatprep.subr.bf16.mxu1 %v11472_v42  ;;  %v7326_v4 = vsel %vm3531_vm3, %v7321_v11, %v7325_v38  ;;  %v7374_v51 = vrot.slane %v7372_v48, 3  ;;  %v7352_v15 = vor.u32 %v7351_v23, %v7348_v60  ;;  %v7429_v9 = vmul.bf16 %v7424_v37, %v14049_v53  ;;  %v7276_v53 = vld [vmem:[#allocation4 + $0x20] sm:$0xff]  ;;  %v7428_v17 = vld [vmem:[#allocation4 + $0x28] sm:$0x1f] }
 0x924   : > { %9520 = vmatpush3.bf16.msra.mxu0 %v11471_v49  ;;  %8331 = vmatprep.mubr.bf16.mxu0 %v7409_v13  ;;  %v7370_v40 = vsel %vm3235_vm5, %v7360_v29, %v7369_v25  ;;  %v7377_v18 = vrot.slane %v7375_v33, 4  ;;  %v7432_v43 = vmul.bf16 %v7276_v53, %v14060_v2  ;;  %v11483_v2 = vld [vmem:[#allocation8 + $0x238] sm:$0xff]   ;;  %v7433_v48 = vmul.bf16 %v7428_v17, %v14063_v12 }
 0x925   : > { %9521 = vmatprep.subr.bf16.mxu0 %v11474_v62  ;;  %v7361_v38 = vsel %vm3235_vm5, %v7352_v15, %v7360_v29  ;;  %v7435_v63 = vshrl.u32 %v7429_v9, 16  ;;  %v7438_v31 = vshll.u32 %v7429_v9, 16 }
 0x926   : > { %9482 = vmatpush3.bf16.msra.mxu1 %v11473_v44  ;;  %v13705_v3 = vor.u32 %v7377_v18, %v7374_v51  ;;  %v7461_v29 = vshrl.u32 %v7432_v43, 16  ;;  %v7470_v23 = vshrl.u32 %v7433_v48, 16 }
 0x927   : > { %10573 = vmatprep.subr.bf16.mxu1 %v11476_v21  ;;  %v7437_v32 = vrot.slane %v7435_v63, 4  ;;  %v7440_v50 = vrot.slane %v7438_v31, 5 }
 0x928   : > { %9522 = vmatpush3.bf16.msra.mxu0 %v11475_v41  ;;  %v7379_v39 = vsel %vm3235_vm5, %v7369_v25, %v13705_v3  ;;  %v7463_v62 = vrot.slane %v7461_v29, 4  ;;  %v7473_v25 = vshll.u32 %v7433_v48, 16 }
 0x929   : > { %8267 = vmatmul.mubr.bf16.vlgmr.msra.gmra.mrb[68].mxu1 %v13570_v20  ;;  %v7430_v20 = vmul.bf16 %v7425_v10, %v14053_v54 }
 0x92a   : > { %10574 = vmatpush3.bf16.msra.mxu1 %v11476_v21  ;;  %8274 = vmatprep.mubr.bf16.mxu1 %v7310_v14  ;;  %v7426_v14 = vld [vmem:[#allocation4 + $0x18] sm:$0xff]  ;;  %v7472_v21 = vrot.slane %v7470_v23, 4 }
 0x92b   : > { %8332 = vmatmul.mubr.bf16.vlgmr.msra.gmra.mrb[68].mxu0 %v7361_v38  ;;  %10575 = vmatprep.subr.bf16.mxu1 %v11477_v59  ;;  %v7443_v55 = vshrl.u32 %v7430_v20, 16  ;;  %v7446_v1 = vshll.u32 %v7430_v20, 16  ;;  %v7431_v34 = vmul.bf16 %v7426_v14, %v14056_v46 }
 0x92c   : > { %8339 = vmatprep.mubr.bf16.mxu0 %v13612_v56  ;;  %v7344_v56 = vmul.bf16 %v7339_v36, %v14062_v8 }
 0x92d   : > { %v7445_v19 = vrot.slane %v7443_v55, 4  ;;  %v7448_v8 = vrot.slane %v7446_v1, 5  ;;  %v7452_v46 = vshrl.u32 %v7431_v34, 16  ;;  %v7455_v57 = vshll.u32 %v7431_v34, 16 }
 0x92e   : > { %10576 = vmatpush3.bf16.msra.mxu1 %v11477_v59  ;;  %v7381_v54 = vshrl.u32 %v7344_v56, 16  ;;  %v7384_v16 = vshll.u32 %v7344_v56, 16 }
 0x92f   : > { %10577 = vmatprep.subr.bf16.mxu1 %v11478_v47  ;;  %v7449_v49 = vor.u32 %v7448_v8, %v7445_v19  ;;  %v7454_v5 = vrot.slane %v7452_v46, 4  ;;  %v7457_v26 = vrot.slane %v7455_v57, 5 }
 0x930   : > { %v7383_v42 = vrot.slane %v7381_v54, 3  ;;  %v7386_v35 = vrot.slane %v7384_v16, 4 }
 0x931   : > { %8275 = vmatmul.mubr.bf16.gmra.mrb[72].mxu1 %v13572_v52  ;;  %v7414_v52 = vrot.slane %v7401_v58, 4  ;;  %v7458_v44 = vor.u32 %v7457_v26, %v7454_v5 }
 0x932   : > { %10578 = vmatpush3.bf16.msra.mxu1 %v11478_v47  ;;  %8282 = vmatprep.mubr.bf16.mxu1 %v7318_v0  ;;  %v7464_v0 = vshll.u32 %v7432_v43, 16  ;;  %v7387_v45 = vor.u32 %v7386_v35, %v7383_v42 }
 0x933   : > { %8340 = vmatmul.mubr.bf16.gmra.mrb[72].mxu0 %v7370_v40  ;;  %10579 = vmatprep.subr.bf16.mxu1 %v11479_v28  ;;  %v7415_v27 = vsel %vm3298_vm6, %v7412_v6, %v7414_v52  ;;  %v7459_v33 = vsel %vm3189_vm4, %v7449_v49, %v7458_v44  ;;  %v8665_v40 = vld [vmem:[%s13825_s14] ss:$0 sm:$0xff] }
 0x934   : > { %8347 = vmatprep.mubr.bf16.mxu0 %v7413_v30  ;;  %v7466_v30 = vrot.slane %v7464_v0, 5  ;;  %v7388_v11 = vsel %vm3235_vm5, %v13705_v3, %v7387_v45 }
 0x936   : > { %10580 = vmatpush3.bf16.msra.mxu1 %v11479_v28  ;;  %v7467_v60 = vor.u32 %v7466_v30, %v7463_v62 }
 0x937   : > { %10581 = vmatprep.subr.bf16.mxu1 %v11480_v24 }
 0x938   : > { %v7468_v13 = vsel %vm3189_vm4, %v7458_v44, %v7467_v60 }
 0x939   : > { %8283 = vmatmul.mubr.bf16.gmra.mrb[76].mxu1 %v13575_v61  ;;  %v7441_v61 = vor.u32 %v7440_v50, %v7437_v32 }
 0x93a   : > { %10582 = vmatpush3.bf16.msra.mxu1 %v11480_v24  ;;  %8290 = vmatprep.mubr.bf16.mxu1 %v7326_v4  ;;  %v7475_v4 = vrot.slane %v7473_v25, 5 }
 0x93b   : > { %8348 = vmatmul.mubr.bf16.gmra.mrb[76].mxu0 %v7379_v39  ;;  %10583 = vmatprep.subr.bf16.mxu1 %v11481_v22  ;;  %v7450_v6 = vsel %vm3189_vm4, %v7441_v61, %v7449_v49 }
 0x93c   : > { %8355 = vmatprep.mubr.bf16.mxu0 %v7415_v27  ;;  %v7476_v51 = vor.u32 %v7475_v4, %v7472_v21 }
 0x93e   : > { %10584 = vmatpush3.bf16.msra.mxu1 %v11481_v22  ;;  %v7477_v41 = vsel %vm3189_vm4, %v7467_v60, %v7476_v51 }
 0x93f   : > { %10585 = vmatprep.subr.bf16.mxu1 %v11482_v7 }
 0x941   : > { %8291 = vmatmul.mubr.bf16.gmra.mrb[80].mxu1 %v7276_v53 }
 0x942   : > { %10586 = vmatpush3.bf16.msra.mxu1 %v11482_v7  ;;  %10589 = vmatprep.mubr.bf16.mxu1 %v7450_v6 }
 0x943   : > { %8356 = vmatmul.mubr.bf16.gmra.mrb[80].mxu0 %v7388_v11  ;;  %10587 = vmatprep.subr.bf16.mxu1 %v11483_v2 }
 0x946   : > { %10588 = vmatpush3.bf16.msra.mxu1 %v11483_v2 }
 0x949   : > { %10590 = vmatmul.mubr.bf16.vlgmr.msra.gmra.mrb[84].mxu1 %v7459_v33 }
 0x94a   : > { %10593 = vmatprep.mubr.bf16.mxu1 %v7468_v13 }
 0x951   : > { %10594 = vmatmul.mubr.bf16.gmra.mrb[88].mxu1 %v7477_v41 }
 0x9dc   : > { %v9403_v12 = vpop.f32.mrb[52].mxu1 }
 0x9dd   : > { %v9404_v18 = vpop.f32.mrb[53].mxu1 }
 0x9de   : > { %v9405_v15 = vadd.f32 %v9404_v18, %v9403_v12  ;;  %v9443_v3 = vpop.f32.mrb[52].mxu0  ;;  %v9406_v59 = vpop.f32.mrb[54].mxu1 }
 0x9df   : > { %v9444_v39 = vpop.f32.mrb[53].mxu0  ;;  %v9407_v38 = vpop.f32.mrb[55].mxu1 }
 0x9e0   : > { %v8139_v47 = vadd.f32 %v9405_v15, %v8665_v40  ;;  %v9445_v37 = vadd.f32 %v9444_v39, %v9443_v3  ;;  %v9408_v10 = vadd.f32 %v9407_v38, %v9406_v59  ;;  %v9446_v28 = vpop.f32.mrb[54].mxu0 }
 0x9e1   : > { %v9447_v9 = vpop.f32.mrb[55].mxu0 }
 0x9e2   : > { %v8204_v36 = vadd.f32 %v9445_v37, %v8139_v47  ;;  %v8142_v20 = vadd.f32 %v9408_v10, %v8665_v40  ;;  %v9448_v24 = vadd.f32 %v9447_v9, %v9446_v28 }
 0x9e4   : > { %v8207_v58 = vadd.f32 %v9448_v24, %v8142_v20  ;;  %v9409_v56 = vpop.f32.mrb[56].mxu1 }
 0x9e5   : > { %v9410_v63 = vpop.f32.mrb[57].mxu1 }
 0x9e6   : > { %v9411_v31 = vadd.f32 %v9410_v63, %v9409_v56  ;;  %v9449_v55 = vpop.f32.mrb[56].mxu0  ;;  %v9412_v1 = vpop.f32.mrb[58].mxu1 }
 0x9e7   : > { %v9450_v14 = vpop.f32.mrb[57].mxu0  ;;  %v9413_v53 = vpop.f32.mrb[59].mxu1 }
 0x9e8   : > { %v8147_v52 = vadd.f32 %v9411_v31, %v8665_v40  ;;  %v9451_v22 = vadd.f32 %v9450_v14, %v9449_v55  ;;  %v9414_v54 = vadd.f32 %v9413_v53, %v9412_v1  ;;  %v9452_v16 = vpop.f32.mrb[58].mxu0 }
 0x9e9   : > { %v9453_v32 = vpop.f32.mrb[59].mxu0 }
 0x9ea   : > { %v8212_v34 = vadd.f32 %v9451_v22, %v8147_v52  ;;  %v8150_v50 = vadd.f32 %v9414_v54, %v8665_v40  ;;  %v9454_v19 = vadd.f32 %v9453_v32, %v9452_v16 }
 0x9ec   : > { %v8215_v8 = vadd.f32 %v9454_v19, %v8150_v50  ;;  %v9415_v43 = vpop.f32.mrb[60].mxu1 }
 0x9ed   : > { %v9416_v27 = vpop.f32.mrb[61].mxu1 }
 0x9ee   : > { %v9417_v7 = vadd.f32 %v9416_v27, %v9415_v43  ;;  %v9455_v42 = vpop.f32.mrb[60].mxu0  ;;  %v9418_v35 = vpop.f32.mrb[62].mxu1 }
 0x9ef   : > { %v9456_v46 = vpop.f32.mrb[61].mxu0  ;;  %v9419_v57 = vpop.f32.mrb[63].mxu1 }
 0x9f0   : > { %v8155_v61 = vadd.f32 %v9417_v7, %v8665_v40  ;;  %v9457_v49 = vadd.f32 %v9456_v46, %v9455_v42  ;;  %v9420_v29 = vadd.f32 %v9419_v57, %v9418_v35  ;;  %v9458_v0 = vpop.f32.mrb[62].mxu0 }
 0x9f1   : > { %v9459_v2 = vpop.f32.mrb[63].mxu0 }
 0x9f2   : > { %v8220_v17 = vadd.f32 %v9457_v49, %v8155_v61  ;;  %v8158_v45 = vadd.f32 %v9420_v29, %v8665_v40  ;;  %v9460_v5 = vadd.f32 %v9459_v2, %v9458_v0 }
 0x9f4   : > { %v8223_v26 = vadd.f32 %v9460_v5, %v8158_v45  ;;  %v9421_v6 = vpop.f32.mrb[64].mxu1 }
 0x9f5   : > { %v9422_v62 = vpop.f32.mrb[65].mxu1 }
 0x9f6   : > { %v9423_v30 = vadd.f32 %v9422_v62, %v9421_v6  ;;  %v9461_v11 = vpop.f32.mrb[64].mxu0  ;;  %v9424_v48 = vpop.f32.mrb[66].mxu1 }
 0x9f7   : > { %v9462_v44 = vpop.f32.mrb[65].mxu0  ;;  %v9425_v60 = vpop.f32.mrb[67].mxu1 }
 0x9f8   : > { %v8163_v23 = vadd.f32 %v9423_v30, %v8665_v40  ;;  %v9463_v25 = vadd.f32 %v9462_v44, %v9461_v11  ;;  %v9426_v33 = vadd.f32 %v9425_v60, %v9424_v48  ;;  %v9464_v13 = vpop.f32.mrb[66].mxu0 }
 0x9f9   : > { %v9465_v21 = vpop.f32.mrb[67].mxu0 }
 0x9fa   : > { %v8228_v4 = vadd.f32 %v9463_v25, %v8163_v23  ;;  %v8166_v51 = vadd.f32 %v9426_v33, %v8665_v40  ;;  %v9466_v41 = vadd.f32 %v9465_v21, %v9464_v13 }
 0x9fc   : > { %v13732_v12 = vadd.f32 %v9466_v41, %v8166_v51  ;;  %v9483_v18 = vpop.f32.mrb[68].mxu1  ;;  %v14069_v41 = vld [vmem:[#allocation23_spill] sm:$0xff] }
 0x9fd   : > { %v9484_v15 = vpop.f32.mrb[69].mxu1 }
 0x9fe   : > { %v9485_v3 = vadd.f32 %v9484_v15, %v9483_v18  ;;  %v9523_v59 = vpop.f32.mrb[68].mxu0  ;;  %v9486_v39 = vpop.f32.mrb[70].mxu1  ;;  %v14070_v18 = vld [vmem:[#allocation25_spill] sm:$0xff] }
 0x9ff   : > { %v9524_v38 = vpop.f32.mrb[69].mxu0  ;;  %v9487_v47 = vpop.f32.mrb[71].mxu1 }
 0xa00   : > { %v8269_v37 = vadd.f32 %v9485_v3, %v8204_v36  ;;  %v9525_v10 = vadd.f32 %v9524_v38, %v9523_v59  ;;  %v9488_v28 = vadd.f32 %v9487_v47, %v9486_v39  ;;  %v9526_v9 = vpop.f32.mrb[70].mxu0  ;;  %v14071_v59 = vld [vmem:[#allocation22_spill] sm:$0xff]  ;;  %v14072_v39 = vld [vmem:[#allocation24_spill] sm:$0xff] }
 0xa01   : > { %v9527_v20 = vpop.f32.mrb[71].mxu0  ;;  %v761_v38 = vpack.c.bf16 %v14072_v39, %v14071_v59 }
 0xa02   : > { %v8272_v24 = vadd.f32 %v9488_v28, %v8207_v58  ;;  %v9528_v56 = vadd.f32 %v9527_v20, %v9526_v9  ;;  %v8334_v63 = vadd.f32 %v9525_v10, %v8269_v37 }
 0xa04   : > { %v9489_v31 = vpop.f32.mrb[72].mxu1  ;;  %v13734_v40 = vadd.f32 %v9528_v56, %v8272_v24  ;;  %v8433_v24 = vunpack.c.l.bf16 %v761_v38 }
 0xa05   : > { %v9490_v55 = vpop.f32.mrb[73].mxu1 }
 0xa06   : > { %v9491_v1 = vadd.f32 %v9490_v55, %v9489_v31  ;;  %v9529_v14 = vpop.f32.mrb[72].mxu0  ;;  %v9492_v53 = vpop.f32.mrb[74].mxu1 }
 0xa07   : > { %v9530_v52 = vpop.f32.mrb[73].mxu0  ;;  %v9493_v22 = vpop.f32.mrb[75].mxu1 }
 0xa08   : > { %v8277_v54 = vadd.f32 %v9491_v1, %v8212_v34  ;;  %v9531_v16 = vadd.f32 %v9530_v52, %v9529_v14  ;;  %v9494_v32 = vadd.f32 %v9493_v22, %v9492_v53  ;;  %v9532_v36 = vpop.f32.mrb[74].mxu0  ;;  %v8434_v52 = vunpack.c.h.bf16 %v761_v38 }
 0xa09   : > { %v9533_v50 = vpop.f32.mrb[75].mxu0 }
 0xa0a   : > { %v8280_v19 = vadd.f32 %v9494_v32, %v8215_v8  ;;  %v9534_v43 = vadd.f32 %v9533_v50, %v9532_v36  ;;  %v8342_v27 = vadd.f32 %v9531_v16, %v8277_v54  ;;  %v14074_v54 = vld [vmem:[#allocation29_spill] sm:$0xff]  ;;  %v14075_v36 = vld [vmem:[#allocation26_spill] sm:$0xff]  ;;  %v14076_v50 = vld [vmem:[#allocation28_spill] sm:$0xff] }
 0xa0c   : > { %v9495_v58 = vpop.f32.mrb[76].mxu1  ;;  %v8345_v7 = vadd.f32 %v9534_v43, %v8280_v19  ;;  %v763_v19 = vpack.c.bf16 %v14076_v50, %v14075_v36 }
 0xa0d   : > { %v9496_v42 = vpop.f32.mrb[77].mxu1 }
 0xa0e   : > { %v9497_v35 = vadd.f32 %v9496_v42, %v9495_v58  ;;  %v9535_v46 = vpop.f32.mrb[76].mxu0  ;;  %v9498_v57 = vpop.f32.mrb[78].mxu1  ;;  %v8437_v42 = vunpack.c.l.bf16 %v763_v19 }
 0xa0f   : > { %v9536_v61 = vpop.f32.mrb[77].mxu0  ;;  %v9499_v49 = vpop.f32.mrb[79].mxu1 }
 0xa10   : > { %v8285_v29 = vadd.f32 %v9497_v35, %v8220_v17  ;;  %v9537_v0 = vadd.f32 %v9536_v61, %v9535_v46  ;;  %v9500_v2 = vadd.f32 %v9499_v49, %v9498_v57  ;;  %v9538_v45 = vpop.f32.mrb[78].mxu0 }
 0xa11   : > { %v9539_v34 = vpop.f32.mrb[79].mxu0 }
 0xa12   : > { %v8288_v5 = vadd.f32 %v9500_v2, %v8223_v26  ;;  %v9540_v6 = vadd.f32 %v9539_v34, %v9538_v45  ;;  %v8350_v62 = vadd.f32 %v9537_v0, %v8285_v29  ;;  %v762_v26 = vpack.c.bf16 %v14070_v18, %v14069_v41 }
 0xa13   : > { %v8438_v2 = vunpack.c.h.bf16 %v763_v19 }
 0xa14   : > { %v9501_v8 = vpop.f32.mrb[80].mxu1  ;;  %v8353_v30 = vadd.f32 %v9540_v6, %v8288_v5  ;;  %v8435_v28 = vunpack.c.l.bf16 %v762_v26  ;;  %v8436_v1 = vunpack.c.h.bf16 %v762_v26 }
 0xa15   : > { %v9502_v11 = vpop.f32.mrb[81].mxu1 }
 0xa16   : > { %v9503_v48 = vadd.f32 %v9502_v11, %v9501_v8  ;;  %v9541_v44 = vpop.f32.mrb[80].mxu0  ;;  %v9504_v60 = vpop.f32.mrb[82].mxu1 }
 0xa17   : > { %v9542_v23 = vpop.f32.mrb[81].mxu0  ;;  %v9505_v25 = vpop.f32.mrb[83].mxu1 }
 0xa18   : > { %v8293_v33 = vadd.f32 %v9503_v48, %v8228_v4  ;;  %v9543_v13 = vadd.f32 %v9542_v23, %v9541_v44  ;;  %v9506_v17 = vadd.f32 %v9505_v25, %v9504_v60  ;;  %v9544_v21 = vpop.f32.mrb[82].mxu0 }
 0xa19   : > { %v9545_v51 = vpop.f32.mrb[83].mxu0 }
 0xa1a   : > { %v8296_v15 = vadd.f32 %v9506_v17, %v13732_v12  ;;  %v9546_v3 = vadd.f32 %v9545_v51, %v9544_v21  ;;  %v8358_v47 = vadd.f32 %v9543_v13, %v8293_v33 }
 0xa1c   : > { %v10591_v37 = vpop.f32.mrb[84].mxu1  ;;  %v8361_v10 = vadd.f32 %v9546_v3, %v8296_v15 }
 0xa1d   : > { %v8407_v4 = vadd.f32 %v10591_v37, %v8342_v27  ;;  %v8398_v9 = vpop.f32.mrb[85].mxu1 }
 0xa1e   : > { %v8399_v20 = vadd.f32 %v8398_v9, %v8334_v63  ;;  %v10592_v56 = vpop.f32.mrb[86].mxu1  ;;  %v14073_v63 = vld [vmem:[#allocation27_spill] sm:$0xff] }
 0xa1f   : > { %v8443_v31 = vadd.f32 %v8435_v28, %v8407_v4  ;;  %v8410_v55 = vadd.f32 %v10592_v56, %v8345_v7  ;;  %v8401_v14 = vpop.f32.mrb[87].mxu1  ;;  %v764_v16 = vpack.c.bf16 %v14074_v54, %v14073_v63 }
 0xa20   : > { %v8441_v12 = vadd.f32 %v8433_v24, %v8399_v20  ;;  %v8402_v53 = vadd.f32 %v8401_v14, %v13734_v40 }
 0xa21   : > { %8451 = vst [vmem:[%s13745_s16 + $0x10] sm:$0xff] %v8443_v31  ;;  %v8444_v22 = vadd.f32 %v8436_v1, %v8410_v55  ;;  %v8439_v27 = vunpack.c.l.bf16 %v764_v16  ;;  %v8440_v61 = vunpack.c.h.bf16 %v764_v16 }
 0xa22   : > { %8449 = vst [vmem:[%s13745_s16] sm:$0xff] %v8441_v12  ;;  %v8442_v32 = vadd.f32 %v8434_v52, %v8402_v53 }
 0xa23   : > { %8452 = vst [vmem:[%s13745_s16 + $0x18] sm:$0xff] %v8444_v22 }
 0xa24   : > { %8450 = vst [vmem:[%s13745_s16 + $0x8] sm:$0xff] %v8442_v32  ;;  %v10595_v40 = vpop.f32.mrb[88].mxu1 }
 0xa25   : > { %v8423_v43 = vadd.f32 %v10595_v40, %v8358_v47  ;;  %v8414_v58 = vpop.f32.mrb[89].mxu1 }
 0xa26   : > { %v8415_v7 = vadd.f32 %v8414_v58, %v8350_v62  ;;  %v10596_v35 = vpop.f32.mrb[90].mxu1 }
 0xa27   : > { %v8447_v46 = vadd.f32 %v8439_v27, %v8423_v43  ;;  %v8426_v57 = vadd.f32 %v10596_v35, %v8361_v10  ;;  %v8417_v49 = vpop.f32.mrb[91].mxu1 }
 0xa28   : > { %v8445_v29 = vadd.f32 %v8437_v42, %v8415_v7  ;;  %v8418_v0 = vadd.f32 %v8417_v49, %v8353_v30 }
 0xa29   : > { %8455 = vst [vmem:[%s13745_s16 + $0x30] sm:$0xff] %v8447_v46  ;;  %v8448_v45 = vadd.f32 %v8440_v61, %v8426_v57 }
 0xa2a   : > { %8453 = vst [vmem:[%s13745_s16 + $0x20] sm:$0xff] %v8445_v29  ;;  %v8446_v34 = vadd.f32 %v8438_v2, %v8418_v0 }
 0xa2b   : > { %8456 = vst [vmem:[%s13745_s16 + $0x38] sm:$0xff] %v8448_v45 }
 0xa2c   : > { %8454 = vst [vmem:[%s13745_s16 + $0x28] sm:$0xff] %v8446_v34 }
 0xa2d   : > { %11557 = shalt.err (!%p11554_p11)
}
 0xa2e   : > { %s11558_s21 = scalar_lea.hbm %s13764_s23, 1024  ;;  %s11562_s16 = scalar_lea.hbm %s14078_s30, 2048 }
 0xa2f   : > { %p11559_p13 = scmp.ne.s32.totalorder %s13764_s23, %s11558_s21  ;;  %p11563_p6 = scmp.lt.u32.totalorder %s13764_s23, %s14078_s30 }
 0xa30   : > { %p11564_p9 = scmp.lt.u32.totalorder %s11562_s16, %s11558_s21  ;;  %p11566_p10 = scmp.lt.u32.totalorder %s11558_s21, %s13764_s23 }
 0xa31   : > { %p11560_p5 = pnand %p11559_p13, %p14079_p1 }
 0xa32   : > { %p11565_p12 = por %p11564_p9, %p11563_p6 }
 0xa33   : > { %p11561_p0 = pneg %p11560_p5 }
 0xa34   : > { %p11567_p2 = por %p11566_p10, %p11565_p12 }
 0xa36   : > { %p11568_p3 = pnand %p11567_p2, %p11561_p0 }
 0xa38   : > { %11571 = shalt.err (!%p11568_p3)
}
 0xa39   : > { %s11627_s28 = smov 128   ;;  %s11628_s26 = smov 8  }
 0xa3a   : > { %11261 = dma.vmem_to_hbm [thread:$0]  (%p14079_p1), %s13757_s25, 1024, %s13764_s23, %s13770_s22, %s11627_s28, %s11627_s28, %s11628_s26  }
 0xa3b PF: > { %s14080_s20 = sld [smem:[#allocation17_spill]]  ;;  %s14081_s27 = sld [smem:[#allocation14_spill]] }
 0xa3c   : > { %s14082_s18 = sld [smem:[#allocation21_spill]] }
 0xa41   : > { %p11278_p4 = scmp.ge.s32.totalorder %s14080_s20, 2  ;;  %s8486_s24 = sand.u32 1, %s14081_s27  }
 0xa42   : > { %p14083_p7 = scmp.ne.s32.totalorder %s14082_s18, 0  ;;  %s8487_s21 = scalar_lea.sflag [#allocation7], %s8486_s24 }
 0xa44   : > { %p11271_p8 = pnand %p11278_p4, %p14083_p7 }
 0xa46   : > { %11597 = dma.done.wait (!%p11271_p8), %s8487_s21, 1024  }
 0xa47   : > { %11599 = vsyncadd (!%p11271_p8), %s8487_s21, 4294966272  ;;  %s14084_s21 = sld [smem:[#allocation18_spill]]  ;;  %s14085_s18 = sld [smem:[#allocation15_spill]] }
 0xa48   : > { %s14086_s19 = sld [smem:[#allocation16_spill]]  ;;  %s14087_s20 = sld [smem:[#allocation19_spill]] }
 0xa4d   : > { %p27_p11 = scmp.ge.s32.totalorder %s14084_s21, 4  }
 0xa4f   :  { %29 = sbr.rel (!%p27_p11) target bundleno = 7 (0x7), region = 124 }
 0xa56   :  { %8492 = vsyncpa [#allocation6], 1 }
 0xa57   :  { %8494 = vsyncpa [#allocation6 + $0x1], 1 }
 0xa58   :  { %8495 = vsyncpa [#allocation9], 1 }
 0xa59   :  { %8496 = vsyncpa [#allocation7], 1 }
 0xa5a   :  { %8498 = vsyncpa [#allocation7 + $0x1], 1 }

</bundles_post_ra>
